<compile_context>
chip_gen: v7x
topology: tpu7x:2x2x1
jax: 0.10.0
libtpu: 0.0.40
codegen_flags: <defaults>
</compile_context>

<pallas_src>
import numpy as np
import jax
import jax.numpy as jnp
from jax import lax
from jax.experimental import pallas as pl
from jax.experimental.pallas import tpu as pltpu

# ---------------- configuration (stand-in for the JSON config) --------------
N_INPUT_DIMS = 3
F_POS = 6                        # pos frequency encoding: 3 * 2 * 6 = 36 dims
F_DIR = 4                        # dir frequency encoding: 3 * 2 * 4 = 24 dims
P_POS = N_INPUT_DIMS * F_POS     # 18 projected pos columns (pre sin/cos)
P_DIR = N_INPUT_DIMS * F_DIR     # 12 projected dir columns (pre sin/cos)
HIDDEN = 64
PROJ_PAD = 48                    # 18 + 12 + 12 = 42 -> padded to 48 (8-aligned)
ENC_DIM = 2 * PROJ_PAD           # 96 rows: [proj | proj + pi/2] -> sin = [sin|cos]
TILE = 512                       # batch rows per grid step (on the lane axis)


# ------------------------------ Pallas kernel --------------------------------
def nerf_kernel(x_ref, wproj_ref, w1_ref, w2_ref, w3_ref, out_ref):
    f32 = jnp.float32
    bf16 = jnp.bfloat16

    # x: (8, TILE) -- rows 0-2 pos, 3-5 dir, 6 = 1.0 (phase bias), 7 = 0 pad.
    x = x_ref[...]

    # Fused frequency projection, kept in f32 (sin arguments need precision).
    #   rows  0:48 -> [pos@Spos | pos@Sdir | dir@Sdir | pad]
    #   rows 48:96 -> same + pi/2 (via the constant-1 input row)
    proj = jnp.dot(wproj_ref[...], x, preferred_element_type=f32)   # (96, TILE)
    enc = jnp.sin(proj)                                             # [sin | cos]

    # Layer 1: rows 0:64 density hidden, rows 64:128 rgb hidden.
    hg = jnp.dot(w1_ref[...], enc.astype(bf16), preferred_element_type=f32)
    hg = jnp.maximum(hg, 0.0)

    # Layer 2: block-diagonal [wd2 | wr2].
    hg2 = jnp.dot(w2_ref[...], hg.astype(bf16), preferred_element_type=f32)
    hg2 = jnp.maximum(hg2, 0.0)

    # Head: rows 0-2 rgb (sigmoid), row 3 density (linear).
    out = jnp.dot(w3_ref[...], hg2.astype(bf16), preferred_element_type=f32)
    row = lax.broadcasted_iota(jnp.int32, out.shape, 0)
    out_ref[...] = jnp.where(row < 3, jax.nn.sigmoid(out), out)


# ------------------------------ wrapper ---------------------------------------
def tcnn_nerf_forward(pos, dirs, params, tile=TILE):
    n = pos.shape[0]
    n_pad = ((n + tile - 1) // tile) * tile

    # Pack inputs batch-on-lanes into a single lane-dense (8, n_pad) slab.
    x = jnp.zeros((8, n_pad), jnp.float32)
    x = x.at[0:3, :n].set(pos.T)
    x = x.at[3:6, :n].set(dirs.T)
    x = x.at[6, :].set(1.0)              # constant 1 -> +pi/2 phase column

    wproj, w1, w2, w3 = (params["wproj"], params["w1"],
                         params["w2"], params["w3"])

    out = pl.pallas_call(
        nerf_kernel,
        out_shape=jax.ShapeDtypeStruct((4, n_pad), jnp.float32),
        grid_spec=pltpu.PrefetchScalarGridSpec(
            num_scalar_prefetch=0,
            grid=(n_pad // tile,),
            in_specs=[
                pl.BlockSpec((8, tile), lambda i: (0, i)),
                pl.BlockSpec(wproj.shape, lambda i: (0, 0)),
                pl.BlockSpec(w1.shape, lambda i: (0, 0)),
                pl.BlockSpec(w2.shape, lambda i: (0, 0)),
                pl.BlockSpec(w3.shape, lambda i: (0, 0)),
            ],
            out_specs=pl.BlockSpec((4, tile), lambda i: (0, i)),
        ),
        compiler_params=pltpu.CompilerParams(
            dimension_semantics=("parallel",)),
    )(x, wproj, w1, w2, w3)

    rgb = out[:3, :n].T                  # (n, 3)
    density = out[3:4, :n].T             # (n, 1)
    return rgb, density


# --------------------------- parameter construction ---------------------------
def freq_proj_matrix(n_freqs):
    """(3, 3*n_freqs) matrix so that x @ S gives 2^f * pi * x_d per column."""
    S = np.zeros((N_INPUT_DIMS, N_INPUT_DIMS * n_freqs), dtype=np.float32)
    for d in range(N_INPUT_DIMS):
        for f in range(n_freqs):
            S[d, d * n_freqs + f] = (2.0 ** f) * np.pi
    return S


def init_params(key):
    def dense(k, fan_in, fan_out):
        bound = 1.0 / np.sqrt(fan_in)
        return jax.random.uniform(k, (fan_in, fan_out), jnp.float32,
                                  -bound, bound)

    ks = jax.random.split(key, 6)
    wd1 = dense(ks[0], 2 * P_POS, HIDDEN)        # 36 -> 64
    wd2 = dense(ks[1], HIDDEN, HIDDEN)           # 64 -> 64
    wd3 = dense(ks[2], HIDDEN, 1)                # 64 -> 1
    wr1 = dense(ks[3], 4 * P_DIR, HIDDEN)        # 48 -> 64
    wr2 = dense(ks[4], HIDDEN, HIDDEN)           # 64 -> 64
    wr3 = dense(ks[5], HIDDEN, 3)                # 64 -> 3

    spos = freq_proj_matrix(F_POS)               # (3, 18)
    sdir = freq_proj_matrix(F_DIR)               # (3, 12)

    # ---- packed / transposed / block-fused weights for the kernel ----
    # Projection rows: [pproj(18) | p2proj(12) | dproj(12) | pad(6)] x {sin,cos}
    wproj = np.zeros((ENC_DIM, 8), np.float32)
    wproj[0:P_POS, 0:3] = spos.T
    wproj[P_POS:P_POS + P_DIR, 0:3] = sdir.T
    wproj[P_POS + P_DIR:P_POS + 2 * P_DIR, 3:6] = sdir.T
    wproj[PROJ_PAD:, 0:6] = wproj[:PROJ_PAD, 0:6]
    wproj[PROJ_PAD:, 6] = np.pi / 2.0            # cos(x) = sin(x + pi/2)

    wd1n, wr1n = np.asarray(wd1), np.asarray(wr1)
    w1 = np.zeros((2 * HIDDEN, ENC_DIM), np.float32)
    # density hidden (rows 0:64): input = [sin(pproj) | cos(pproj)]
    w1[:HIDDEN, 0:P_POS] = wd1n[0:P_POS].T
    w1[:HIDDEN, PROJ_PAD:PROJ_PAD + P_POS] = wd1n[P_POS:2 * P_POS].T
    # rgb hidden (rows 64:128): input = [sin(p2)|cos(p2)|sin(d)|cos(d)]
    s_p2, s_d = P_POS, P_POS + P_DIR
    c_p2, c_d = PROJ_PAD + P_POS, PROJ_PAD + P_POS + P_DIR
    w1[HIDDEN:, s_p2:s_p2 + P_DIR] = wr1n[0 * P_DIR:1 * P_DIR].T
    w1[HIDDEN:, c_p2:c_p2 + P_DIR] = wr1n[1 * P_DIR:2 * P_DIR].T
    w1[HIDDEN:, s_d:s_d + P_DIR] = wr1n[2 * P_DIR:3 * P_DIR].T
    w1[HIDDEN:, c_d:c_d + P_DIR] = wr1n[3 * P_DIR:4 * P_DIR].T

    w2 = np.zeros((2 * HIDDEN, 2 * HIDDEN), np.float32)
    w2[:HIDDEN, :HIDDEN] = np.asarray(wd2).T
    w2[HIDDEN:, HIDDEN:] = np.asarray(wr2).T

    w3 = np.zeros((4, 2 * HIDDEN), np.float32)
    w3[0:3, HIDDEN:] = np.asarray(wr3).T         # rgb rows
    w3[3, :HIDDEN] = np.asarray(wd3)[:, 0]       # density row

    return {
        # raw f32 parameters for the pure-JAX references
        "spos": jnp.asarray(spos), "sdir": jnp.asarray(sdir),
        "wd1": wd1, "wd2": wd2, "wd3": wd3,
        "wr1": wr1, "wr2": wr2, "wr3": wr3,
        # packed kernel parameters (bf16 MXU weights, f32 projection)
        "wproj": jnp.asarray(wproj),
        "w1": jnp.asarray(w1, dtype=jnp.bfloat16),
        "w2": jnp.asarray(w2, dtype=jnp.bfloat16),
        "w3": jnp.asarray(w3, dtype=jnp.bfloat16),
    }


# ------------------------------ pure-JAX references ----------------------------
def _encode(x, S):
    proj = x @ S
    return jnp.concatenate([jnp.sin(proj), jnp.cos(proj)], axis=-1)


def reference_forward_f32(pos, dirs, p):
    pos_feat = _encode(pos, p["spos"])
    h = jax.nn.relu(pos_feat @ p["wd1"])
    h = jax.nn.relu(h @ p["wd2"])
    density = h @ p["wd3"]

    dir_feat = _encode(dirs, p["sdir"])
    pos_feat2 = _encode(pos, p["sdir"])
    xcat = jnp.concatenate([pos_feat2, dir_feat], axis=-1)
    g = jax.nn.relu(xcat @ p["wr1"])
    g = jax.nn.relu(g @ p["wr2"])
    rgb = jax.nn.sigmoid(g @ p["wr3"])
    return rgb, density


def reference_forward_bf16(pos, dirs, p):
    # Same math with the kernel's dtype policy: bf16 matmul operands,
    # f32 accumulation, f32 encoding / activations.
    def mm(a, b):
        return jnp.dot(a.astype(jnp.bfloat16), b.astype(jnp.bfloat16),
                       preferred_element_type=jnp.float32)

    pos_feat = _encode(pos, p["spos"])
    h = jax.nn.relu(mm(pos_feat, p["wd1"]))
    h = jax.nn.relu(mm(h, p["wd2"]))
    density = mm(h, p["wd3"])

    dir_feat = _encode(dirs, p["sdir"])
    pos_feat2 = _encode(pos, p["sdir"])
    xcat = jnp.concatenate([pos_feat2, dir_feat], axis=-1)
    g = jax.nn.relu(mm(xcat, p["wr1"]))
    g = jax.nn.relu(mm(g, p["wr2"]))
    rgb = jax.nn.sigmoid(mm(g, p["wr3"]))
    return rgb, density


# ----------------------------------- main --------------------------------------
if __name__ == "__main__":
    key = jax.random.PRNGKey(0)
    k_pos, k_dir, k_par = jax.random.split(key, 3)

    N = 1024  # 2 grid steps at TILE=512 (lets v7x shard the 'parallel' axis)
    pos_inputs = jax.random.uniform(k_pos, (N, N_INPUT_DIMS), jnp.float32)
    dir_inputs = jax.random.normal(k_dir, (N, N_INPUT_DIMS), jnp.float32)
    dir_inputs = dir_inputs / jnp.linalg.norm(dir_inputs, axis=-1, keepdims=True)

    params = init_params(k_par)

    rgb, density = tcnn_nerf_forward(pos_inputs, dir_inputs, params)
    rgb = jax.block_until_ready(rgb)
    density = jax.block_until_ready(density)
    assert rgb.shape == (N, 3) and density.shape == (N, 1)

    # Tight check vs a reference with the same bf16-matmul policy.
    rgb_b, den_b = reference_forward_bf16(pos_inputs, dir_inputs, params)
    np.testing.assert_allclose(np.asarray(rgb), np.asarray(rgb_b),
                               rtol=1e-2, atol=1e-2)
    np.testing.assert_allclose(np.asarray(density), np.asarray(den_b),
                               rtol=1e-2, atol=1e-2)

    # Looser sanity check vs the pure-f32 reference (bf16 matmul operands).
    rgb_f, den_f = reference_forward_f32(pos_inputs, dir_inputs, params)
    np.testing.assert_allclose(np.asarray(rgb), np.asarray(rgb_f),
                               rtol=5e-2, atol=5e-2)
    np.testing.assert_allclose(np.asarray(density), np.asarray(den_f),
                               rtol=5e-2, atol=5e-2)

    print("KERNEL_OK")
</pallas_src>

<mosaic_0001>
module attributes {stable_mosaic.version = 11 : i64} {
  func.func @nerf_kernel(%arg0: i32, %arg1: memref<8x512xf32, #tpu.memory_space<vmem>>, %arg2: memref<96x8xf32, #tpu.memory_space<vmem>>, %arg3: memref<128x96xbf16, #tpu.memory_space<vmem>>, %arg4: memref<128x128xbf16, #tpu.memory_space<vmem>>, %arg5: memref<4x128xbf16, #tpu.memory_space<vmem>>, %arg6: memref<4x512xf32, #tpu.memory_space<vmem>>) attributes {dimension_semantics = [#tpu.dimension_semantics<parallel>], iteration_bounds = array<i64: 2>, scalar_prefetch = 0 : i64, scratch_operands = 0 : i64, tpu.core_type = #tpu.core_type<tc>, window_params = [{transform_indices = @transform_0, window_bounds = array<i64: 8, 512>}, {pipeline_mode = #tpu.pipeline_mode<synchronous>, transform_indices = @transform_1, window_bounds = array<i64: 96, 8>}, {pipeline_mode = #tpu.pipeline_mode<synchronous>, transform_indices = @transform_2, window_bounds = array<i64: 128, 96>}, {pipeline_mode = #tpu.pipeline_mode<synchronous>, transform_indices = @transform_3, window_bounds = array<i64: 128, 128>}, {pipeline_mode = #tpu.pipeline_mode<synchronous>, transform_indices = @transform_4, window_bounds = array<i64: 4, 128>}, {transform_indices = @transform_5, window_bounds = array<i64: 4, 512>}]} {
    %c0 = arith.constant 0 : index
    %c0_0 = arith.constant 0 : index
    %0 = vector.load %arg1[%c0, %c0_0] : memref<8x512xf32, #tpu.memory_space<vmem>>, vector<8x512xf32>
    %c0_1 = arith.constant 0 : index
    %c0_2 = arith.constant 0 : index
    %1 = vector.load %arg2[%c0_1, %c0_2] : memref<96x8xf32, #tpu.memory_space<vmem>>, vector<96x8xf32>
    %cst = arith.constant dense<0.000000e+00> : vector<96x512xf32>
    %2 = tpu.matmul %1, %0, %cst {dimension_numbers = #tpu.dot_dimension_numbers<[1], [0], [0], [1], [0, 0, 1, 1], [], []>} : vector<96x8xf32>, vector<8x512xf32>, vector<96x512xf32> -> vector<96x512xf32>
    %3 = math.sin %2 : vector<96x512xf32>
    %c0_3 = arith.constant 0 : index
    %c0_4 = arith.constant 0 : index
    %4 = vector.load %arg3[%c0_3, %c0_4] : memref<128x96xbf16, #tpu.memory_space<vmem>>, vector<128x96xbf16>
    %5 = arith.truncf %3 : vector<96x512xf32> to vector<96x512xbf16>
    %cst_5 = arith.constant dense<0.000000e+00> : vector<128x512xf32>
    %6 = tpu.matmul %4, %5, %cst_5 {dimension_numbers = #tpu.dot_dimension_numbers<[1], [0], [0], [1], [0, 0, 1, 1], [], []>} : vector<128x96xbf16>, vector<96x512xbf16>, vector<128x512xf32> -> vector<128x512xf32>
    %cst_6 = arith.constant 0.000000e+00 : f32
    %7 = vector.broadcast %cst_6 : f32 to vector<128x512xf32>
    %8 = arith.maximumf %6, %7 : vector<128x512xf32>
    %c0_7 = arith.constant 0 : index
    %c0_8 = arith.constant 0 : index
    %9 = vector.load %arg4[%c0_7, %c0_8] : memref<128x128xbf16, #tpu.memory_space<vmem>>, vector<128x128xbf16>
    %10 = arith.truncf %8 : vector<128x512xf32> to vector<128x512xbf16>
    %cst_9 = arith.constant dense<0.000000e+00> : vector<128x512xf32>
    %11 = tpu.matmul %9, %10, %cst_9 {dimension_numbers = #tpu.dot_dimension_numbers<[1], [0], [0], [1], [0, 0, 1, 1], [], []>} : vector<128x128xbf16>, vector<128x512xbf16>, vector<128x512xf32> -> vector<128x512xf32>
    %cst_10 = arith.constant 0.000000e+00 : f32
    %12 = vector.broadcast %cst_10 : f32 to vector<128x512xf32>
    %13 = arith.maximumf %11, %12 : vector<128x512xf32>
    %c0_11 = arith.constant 0 : index
    %c0_12 = arith.constant 0 : index
    %14 = vector.load %arg5[%c0_11, %c0_12] : memref<4x128xbf16, #tpu.memory_space<vmem>>, vector<4x128xbf16>
    %15 = arith.truncf %13 : vector<128x512xf32> to vector<128x512xbf16>
    %cst_13 = arith.constant dense<0.000000e+00> : vector<4x512xf32>
    %16 = tpu.matmul %14, %15, %cst_13 {dimension_numbers = #tpu.dot_dimension_numbers<[1], [0], [0], [1], [0, 0, 1, 1], [], []>} : vector<4x128xbf16>, vector<128x512xbf16>, vector<4x512xf32> -> vector<4x512xf32>
    %17 = tpu.iota {dimensions = array<i32: 0>} : vector<4x512xi32>
    %c3_i32 = arith.constant 3 : i32
    %18 = vector.broadcast %c3_i32 : i32 to vector<4x512xi32>
    %19 = arith.cmpi slt, %17, %18 : vector<4x512xi32>
    %20 = arith.negf %16 : vector<4x512xf32>
    %21 = math.exp %20 : vector<4x512xf32>
    %cst_14 = arith.constant 1.000000e+00 : f32
    %22 = vector.broadcast %cst_14 : f32 to vector<4x512xf32>
    %23 = arith.addf %22, %21 : vector<4x512xf32>
    %24 = arith.divf %22, %23 : vector<4x512xf32>
    %25 = arith.select %19, %24, %16 : vector<4x512xi1>, vector<4x512xf32>
    %c0_15 = arith.constant 0 : index
    %c0_16 = arith.constant 0 : index
    %26 = vector.load %arg6[%c0_15, %c0_16] : memref<4x512xf32, #tpu.memory_space<vmem>>, vector<4x512xf32>
    tpu.vector_store %arg6[%c0_15, %c0_16], %25 {strides = array<i32>} : memref<4x512xf32, #tpu.memory_space<vmem>>, vector<4x512xf32>,
    return
  }
  func.func @transform_0(%arg0: i32) -> (i32, i32) {
    %c0_i32 = arith.constant 0 : i32
    %c0_i32_0 = arith.constant 0 : i32
    return %c0_i32, %arg0 : i32, i32
  }
  func.func @transform_1(%arg0: i32) -> (i32, i32) {
    %c0_i32 = arith.constant 0 : i32
    %c0_i32_0 = arith.constant 0 : i32
    %c0_i32_1 = arith.constant 0 : i32
    return %c0_i32, %c0_i32_0 : i32, i32
  }
  func.func @transform_2(%arg0: i32) -> (i32, i32) {
    %c0_i32 = arith.constant 0 : i32
    %c0_i32_0 = arith.constant 0 : i32
    %c0_i32_1 = arith.constant 0 : i32
    return %c0_i32, %c0_i32_0 : i32, i32
  }
  func.func @transform_3(%arg0: i32) -> (i32, i32) {
    %c0_i32 = arith.constant 0 : i32
    %c0_i32_0 = arith.constant 0 : i32
    %c0_i32_1 = arith.constant 0 : i32
    return %c0_i32, %c0_i32_0 : i32, i32
  }
  func.func @transform_4(%arg0: i32) -> (i32, i32) {
    %c0_i32 = arith.constant 0 : i32
    %c0_i32_0 = arith.constant 0 : i32
    %c0_i32_1 = arith.constant 0 : i32
    return %c0_i32, %c0_i32_0 : i32, i32
  }
  func.func @transform_5(%arg0: i32) -> (i32, i32) {
    %c0_i32 = arith.constant 0 : i32
    %c0_i32_0 = arith.constant 0 : i32
    return %c0_i32, %arg0 : i32, i32
  }
}

</mosaic_0001>

<bundles_post_ra>
// kernel: tpu_custom_call.1
= control target key start
LH: loop header
LB: loop body
LE: loop exit
PB: predicated region body
PF: predicated region fallthrough
CT: control target
= control target key end

     0   :  { %10 = vsyncpa [#allocation3], 0  ;;  %s12696_s0 = inlined_call_operand.vmem [shape: f32[8,1024], index: 0, kind: input, shape index: {}]   ;;  %s12697_s1 = inlined_call_operand.vmem [shape: f32[96,8], index: 1, kind: input, shape index: {}]   ;;  %s12698_s2 = inlined_call_operand.vmem [shape: bf16[128,96], index: 2, kind: input, shape index: {}]   ;;  %s12699_s3 = inlined_call_operand.vmem [shape: bf16[128,128], index: 3, kind: input, shape index: {}]   ;;  %s12700_s4 = inlined_call_operand.vmem [shape: bf16[4,128], index: 4, kind: input, shape index: {}]   ;;  %s12701_s5 = inlined_call_operand.hbm [shape: f32[4,1024], index: 5, kind: output, shape index: {}]  }
   0x1   :  { %12 = vsyncpa [#allocation3 + $0x1], 0  ;;  %s7388_s18 = smov 0   ;;  %s7390_s19 = smov 0  }
   0x2   :  { %s7392_s20 = smov 0   ;;  %s7394_s21 = smov 0  }
   0x3 LB: > { %s7409_s22 = sadd.s32 4294967295, %s7347_s21   ;;  %s6557_s23 = sadd.s32 4294967294, %s7347_s21   ;;  %s7347_s21 = sphi %s7394_s21, %s13455_s21   ;;  %s7343_s20 = sphi %s7392_s20, %s13454_s20   ;;  %s7339_s19 = sphi %s7390_s19, %s13453_s19   ;;  %s7335_s18 = sphi %s7388_s18, %s13452_s18  }
   0x4   : > { %s7413_s24 = sadd.s32 1, %s7347_s21   ;;  %s135_s25 = sadd.s32 1, %s7343_s20 }
   0x5   : > { %s132_s26 = ssub.s32 %s7347_s21, %s7413_s24  ;;  %p145_p0 = scmp.ne.s32.totalorder %s7343_s20, %s7339_s19 }
   0x6   : > { %p133_p1 = scmp.eq.s32.totalorder %s132_s26, 0  ;;  %p146_p2 = scmp.eq.s32.totalorder %s7409_s22, 1 }
   0x7   : > { %p151_p3 = scmp.ne.s32.totalorder %s7339_s19, %s7335_s18  ;;  %p152_p4 = scmp.eq.s32.totalorder %s6557_s23, 1 }
   0x8   : > { %s7424_s27 = scalar_select %p133_p1, %s7343_s20, %s135_s25  }
   0x9   : > { %p7426_p5 = por %p146_p2, %p145_p0  ;;  %p7430_p6 = por %p152_p4, %p151_p3 }
   0xa   : > { %p6560_p7 = scmp.ge.s32.totalorder %s7347_s21, 1  ;;  %p191_p8 = scmp.lt.s32.totalorder %s7347_s21, 3 }
   0xc   : > { %p192_p9 = pnand %p6560_p7, %p191_p8 }
   0xe   : > { %195 = sbr.rel (%p192_p9) target bundleno = 2263 (0x8d7), region = 40 }
  0x15   : > { %s6562_s30 = sshll.u32 %s7409_s22, 2  ;;  %v7349_v0 = vmov 0.0   ;;  %v231_v1 = vld [vmem:[%s12697_s1] sm:$0xff]  ;;  %vm243_vm0 = vcmask 64512   ;;  %v232_v6 = vld [vmem:[%s12697_s1 + $0x8] sm:$0xff]  ;;  %v233_v7 = vld [vmem:[%s12697_s1 + $0x10] sm:$0xff] }
  0x16   : > { %p220_p10 = scmp.lt.s32.totalorder %s6562_s30, 7  ;;  %344 = vmatprep.mubr.f32.mxu0 %v7349_v0  ;;  %481 = vmatprep.mubr.f32.mxu1 %v7349_v0  ;;  %v234_v8 = vld [vmem:[%s12697_s1 + $0x18] sm:$0xff]  ;;  %v235_v9 = vld [vmem:[%s12697_s1 + $0x20] sm:$0xff]  ;;  %v236_v10 = vld [vmem:[%s12697_s1 + $0x28] sm:$0xff]  ;;  %v12707_v45 = vmov 683565275  }
  0x17   : > { %v237_v11 = vld [vmem:[%s12697_s1 + $0x30] sm:$0xff]  ;;  %v238_v12 = vld [vmem:[%s12697_s1 + $0x38] sm:$0xff]  ;;  %v239_v13 = vld [vmem:[%s12697_s1 + $0x40] sm:$0xff]  ;;  %v12714_v47 = vmov 2475754826   ;;  %s216_s26 = sand.u32 1, %s7339_s19  }
  0x18   : > { %s13457_s30 = smov (!%p220_p10, %s6562_s30), 7  ;;  %v240_v14 = vld [vmem:[%s12697_s1 + $0x48] sm:$0xff]  ;;  %v241_v15 = vld [vmem:[%s12697_s1 + $0x50] sm:$0xff]  ;;  %v242_v16 = vld [vmem:[%s12697_s1 + $0x58] sm:$0xff]  ;;  %v12722_v51 = vmov 2131351028  }
  0x19   : > { %s6563_s6 = sshll.u32 %s13457_s30, 3  ;;  %v12718_v54 = vmov 2102212464   ;;  %v12724_v57 = vmov 920167782   ;;  %s6561_s30 = sshll.u32 %s216_s26, 4 }
  0x1a   : > { %s223_s11 = scalar_lea.vmem %s12696_s0, %s6563_s6  ;;  %v12709_v60 = vmov 1326507024   ;;  %s6821_s6 = sshll.u32 %s7409_s22, 8 }
  0x1b   : > { %v228_v2 = vld [vmem:[%s223_s11 + $0x8] sm:$0xff]  ;;  %v230_v3 = vld [vmem:[%s223_s11 + $0x18] sm:$0xff]  ;;  %v227_v4 = vld [vmem:[%s223_s11] sm:$0xff]  ;;  %s218_s7 = scalar_lea.vmem [#allocation2], %s6561_s30  ;;  %s6484_s12 = scalar_lea.sflag [#allocation3], %s216_s26 }
  0x1c   : > { %280 = vmatprep.subr.mxu0 %v228_v2  ;;  %417 = vmatprep.subr.mxu1 %v230_v3  ;;  %v229_v5 = vld [vmem:[%s223_s11 + $0x10] sm:$0xff]  ;;  %s6498_s8 = sshll.u32 %s218_s7, 4  ;;  %s12654_s11 = scalar_lea.hbm %s12701_s5, %s6821_s6  ;;  %s12656_s8 = int_to_ptr.vmem [resolvable:$true] %s6498_s8 }
  0x1d   : > { %281 = vmatpush1.msra.mxu0 %v227_v4  ;;  %418 = vmatpush1.msra.mxu1 %v229_v5  ;;  %s7285_s22 = scalar_lea.vmem %s12656_s8, 256  ;;  %s7357_s13 = smov [#allocation2]  }
  0x1e   : > { %6564 = vmatmul.mubr.msk.f32.vlgmr.msra.gmra.mrb[0].mxu0 %vm243_vm0, %v231_v1  ;;  %6576 = vmatmul.mubr.msk.f32.vlgmr.msra.gmra.mrb[0].mxu1 %vm243_vm0, %v231_v1  ;;  %p7286_p11 = scmp.ne.s32.totalorder %s12656_s8, %s7285_s22  ;;  %s7289_s14 = sshll.u32 %s7357_s13, 4  ;;  %s7290_s14 = int_to_ptr.vmem [resolvable:$false] %s7289_s14 }
  0x1f   : > { %350 = vmatprep.mubr.f32.mxu0 %v7349_v0  ;;  %487 = vmatprep.mubr.f32.mxu1 %v7349_v0  ;;  %s7291_s15 = scalar_lea.vmem %s7290_s14, 512  ;;  %p7292_p0 = scmp.lt.s32.totalorder %s12656_s8, %s7290_s14 }
  0x20   : > { %p7287_p12 = pnand %p7286_p11, %p7426_p5  ;;  %p7293_p1 = scmp.lt.s32.totalorder %s7291_s15, %s7285_s22 }
  0x22   : > { %6565 = vmatmul.mubr.msk.f32.gmra.mrb[2].mxu0 %vm243_vm0, %v232_v6  ;;  %6577 = vmatmul.mubr.msk.f32.gmra.mrb[2].mxu1 %vm243_vm0, %v232_v6  ;;  %p7288_p13 = pneg %p7287_p12  ;;  %p7294_p2 = por %p7293_p1, %p7292_p0 }
  0x23   : > { %356 = vmatprep.mubr.f32.mxu0 %v7349_v0  ;;  %493 = vmatprep.mubr.f32.mxu1 %v7349_v0 }
  0x24   : > { %p7295_p3 = pnand %p7294_p2, %p7288_p13 }
  0x26   : > { %6566 = vmatmul.mubr.msk.f32.gmra.mrb[4].mxu0 %vm243_vm0, %v233_v7  ;;  %6578 = vmatmul.mubr.msk.f32.gmra.mrb[4].mxu1 %vm243_vm0, %v233_v7 }
  0x27   : > { %362 = vmatprep.mubr.f32.mxu0 %v7349_v0  ;;  %499 = vmatprep.mubr.f32.mxu1 %v7349_v0 }
  0x2a   : > { %6567 = vmatmul.mubr.msk.f32.gmra.mrb[6].mxu0 %vm243_vm0, %v234_v8  ;;  %6579 = vmatmul.mubr.msk.f32.gmra.mrb[6].mxu1 %vm243_vm0, %v234_v8 }
  0x2b   : > { %368 = vmatprep.mubr.f32.mxu0 %v7349_v0  ;;  %505 = vmatprep.mubr.f32.mxu1 %v7349_v0 }
  0x2e   : > { %6568 = vmatmul.mubr.msk.f32.gmra.mrb[8].mxu0 %vm243_vm0, %v235_v9  ;;  %6580 = vmatmul.mubr.msk.f32.gmra.mrb[8].mxu1 %vm243_vm0, %v235_v9 }
  0x2f   : > { %374 = vmatprep.mubr.f32.mxu0 %v7349_v0  ;;  %511 = vmatprep.mubr.f32.mxu1 %v7349_v0 }
  0x32   : > { %6569 = vmatmul.mubr.msk.f32.gmra.mrb[10].mxu0 %vm243_vm0, %v236_v10  ;;  %6581 = vmatmul.mubr.msk.f32.gmra.mrb[10].mxu1 %vm243_vm0, %v236_v10 }
  0x33   : > { %380 = vmatprep.mubr.f32.mxu0 %v7349_v0  ;;  %517 = vmatprep.mubr.f32.mxu1 %v7349_v0 }
  0x36   : > { %6570 = vmatmul.mubr.msk.f32.gmra.mrb[12].mxu0 %vm243_vm0, %v237_v11  ;;  %6582 = vmatmul.mubr.msk.f32.gmra.mrb[12].mxu1 %vm243_vm0, %v237_v11 }
  0x37   : > { %386 = vmatprep.mubr.f32.mxu0 %v7349_v0  ;;  %523 = vmatprep.mubr.f32.mxu1 %v7349_v0 }
  0x3a   : > { %6571 = vmatmul.mubr.msk.f32.gmra.mrb[14].mxu0 %vm243_vm0, %v238_v12  ;;  %6583 = vmatmul.mubr.msk.f32.gmra.mrb[14].mxu1 %vm243_vm0, %v238_v12 }
  0x3b   : > { %392 = vmatprep.mubr.f32.mxu0 %v7349_v0  ;;  %529 = vmatprep.mubr.f32.mxu1 %v7349_v0 }
  0x3e   : > { %6572 = vmatmul.mubr.msk.f32.gmra.mrb[16].mxu0 %vm243_vm0, %v239_v13  ;;  %6584 = vmatmul.mubr.msk.f32.gmra.mrb[16].mxu1 %vm243_vm0, %v239_v13 }
  0x3f   : > { %398 = vmatprep.mubr.f32.mxu0 %v7349_v0  ;;  %535 = vmatprep.mubr.f32.mxu1 %v7349_v0 }
  0x42   : > { %6573 = vmatmul.mubr.msk.f32.gmra.mrb[18].mxu0 %vm243_vm0, %v240_v14  ;;  %6585 = vmatmul.mubr.msk.f32.gmra.mrb[18].mxu1 %vm243_vm0, %v240_v14 }
  0x43   : > { %404 = vmatprep.mubr.f32.mxu0 %v7349_v0  ;;  %541 = vmatprep.mubr.f32.mxu1 %v7349_v0 }
  0x46   : > { %6574 = vmatmul.mubr.msk.f32.gmra.mrb[20].mxu0 %vm243_vm0, %v241_v15  ;;  %6586 = vmatmul.mubr.msk.f32.gmra.mrb[20].mxu1 %vm243_vm0, %v241_v15 }
  0x47   : > { %410 = vmatprep.mubr.f32.mxu0 %v7349_v0  ;;  %547 = vmatprep.mubr.f32.mxu1 %v7349_v0 }
  0x4a   : > { %6575 = vmatmul.mubr.msk.f32.gmra.mrb[22].mxu0 %vm243_vm0, %v242_v16  ;;  %6587 = vmatmul.mubr.msk.f32.gmra.mrb[22].mxu1 %vm243_vm0, %v242_v16 }
  0xf1   : > { %v7524_v17 = vpop.f32.mrb[0].mxu0  ;;  %v7526_v18 = vpop.f32.mrb[0].mxu1 }
  0xf2   : > { %12946 = vst [vmem:[#allocation5_spill] sm:$0xff] %v7524_v17  ;;  %12947 = vst [vmem:[#allocation6_spill] sm:$0xff] %v7526_v18  ;;  %v557_v19 = vand.u32 2139095040, %v7524_v17  ;;  %v7529_v20 = vpop.f32.mrb[1].mxu0  ;;  %v7531_v21 = vpop.f32.mrb[1].mxu1  ;;  %v765_v22 = vand.u32 2139095040, %v7526_v18 }
  0xf3   : > { %12948 = vst [vmem:[#allocation7_spill] sm:$0xff] %v7529_v20  ;;  %12949 = vst [vmem:[#allocation8_spill] sm:$0xff] %v7531_v21  ;;  %v554_v25 = vand.u32 2147483647, %v7524_v17  ;;  %v762_v31 = vand.u32 2147483647, %v7526_v18 }
  0xf4   : > { %v558_v23 = vshrl.u32 %v557_v19, 23  ;;  %v766_v24 = vshrl.u32 %v765_v22, 23  ;;  %v661_v35 = vand.u32 2139095040, %v7529_v20 }
  0xf5   : > { %v7535_v28 = vpop.f32.mrb[2].mxu0  ;;  %v7537_v29 = vpop.f32.mrb[2].mxu1  ;;  %v561_v34 = vand.u32 8388607, %v554_v25  ;;  %v7549_v42 = vand.u32 8388607, %v762_v31 }
  0xf6   : > { %v6588_v26 = vadd.s32 4294967169, %v558_v23  ;;  %v6596_v27 = vadd.s32 4294967169, %v766_v24  ;;  %12950 = vst [vmem:[#allocation9_spill] sm:$0xff] %v7535_v28  ;;  %12951 = vst [vmem:[#allocation10_spill] sm:$0xff] %v7537_v29  ;;  %v7540_v33 = vpop.f32.mrb[3].mxu0  ;;  %v7545_v36 = vpop.f32.mrb[3].mxu1 }
  0xf7   : > { %12952 = vst [vmem:[#allocation11_spill] sm:$0xff] %v7540_v33  ;;  %12953 = vst [vmem:[#allocation12_spill] sm:$0xff] %v7545_v36  ;;  %v562_v40 = vor.u32 8388608, %v561_v34  ;;  %v662_v43 = vshrl.u32 %v661_v35, 23 }
  0xf8   : > { %v564_v30 = vadd.s32 1, %v6588_v26  ;;  %v772_v32 = vadd.s32 1, %v6596_v27 }
  0xf9   : > { %v7563_v1 = vshll.u32 %v562_v40, 8  ;;  %v6592_v7 = vadd.s32 4294967169, %v662_v43  ;;  %v7573_v8 = vpop.f32.mrb[4].mxu0 }
  0xfa   : > { %vm565_vm1 = vcmp.gt.s32.totalorder %v564_v30, 0  ;;  %vm773_vm2 = vcmp.gt.s32.totalorder %v772_v32, 0  ;;  %12954 = vst [vmem:[#allocation13_spill] sm:$0xff] %v7573_v8 }
  0xfb   : > { %v566_v37 = vsel %vm565_vm1, %v564_v30, 0  ;;  %v774_v39 = vsel %vm773_vm2, %v772_v32, 0 }
  0xfc   : > { %v568_v38 = vand.u32 31, %v566_v37  ;;  %v7551_v44 = vshrl.u32 %v566_v37, 5  ;;  %v776_v49 = vand.u32 31, %v774_v39  ;;  %v7580_v11 = vshrl.u32 %v774_v39, 5 }
  0xfe   : > { %v569_v41 = vsub.s32 32, %v568_v38  ;;  %v571_v46 = vshll.u32 %v12707_v45, %v568_v38  ;;  %v574_v48 = vshll.u32 %v12714_v47, %v568_v38  ;;  %v577_v53 = vshll.u32 %v12722_v51, %v568_v38 }
  0xff   : > { %v580_v56 = vshll.u32 %v12718_v54, %v568_v38  ;;  %v583_v59 = vshll.u32 %v12724_v57, %v568_v38  ;;  %vm586_vm3 = vcmp.lt.s32.totalorder %v7551_v44, 1  ;;  %v7566_v4 = vsub.s32 32, %v776_v49 }
 0x100   : > { %v572_v50 = vshrl.u32 %v12714_v47, %v569_v41  ;;  %v575_v52 = vshrl.u32 %v12722_v51, %v569_v41  ;;  %v578_v55 = vshrl.u32 %v12718_v54, %v569_v41  ;;  %v581_v58 = vshrl.u32 %v12724_v57, %v569_v41 }
 0x101   : > { %v584_v61 = vshrl.u32 %v12709_v60, %v569_v41  ;;  %vm589_vm4 = vcmp.lt.s32.totalorder %v7551_v44, 4  ;;  %vm588_vm5 = vcmp.lt.s32.totalorder %v7551_v44, 3  ;;  %v570_v12 = vshrl.u32 %v12707_v45, %v569_v41 }
 0x102   : > { %v573_v62 = vor.u32 %v572_v50, %v571_v46  ;;  %v576_v63 = vor.u32 %v575_v52, %v574_v48  ;;  %v579_v0 = vor.u32 %v578_v55, %v577_v53  ;;  %v582_v2 = vor.u32 %v581_v58, %v580_v56 }
 0x103   : > { %v585_v3 = vor.u32 %v584_v61, %v583_v59  ;;  %vm587_vm6 = vcmp.lt.s32.totalorder %v7551_v44, 2  ;;  %v780_v19 = vshrl.u32 %v12714_v47, %v7566_v4  ;;  %v783_v22 = vshrl.u32 %v12722_v51, %v7566_v4 }
 0x104   : > { %v594_v5 = vsel %vm586_vm3, %v573_v62, %v576_v63  ;;  %v598_v6 = vsel %vm586_vm3, %v576_v63, %v579_v0  ;;  %v595_v9 = vsel %vm589_vm4, %v582_v2, 920167782  ;;  %v779_v30 = vshll.u32 %v12707_v45, %v776_v49 }
 0x105   : > { %v599_v10 = vsel %vm589_vm4, %v585_v3, 1326507024  ;;  %v596_v13 = vsel %vm588_vm5, %v579_v0, %v595_v9  ;;  %v782_v32 = vshll.u32 %v12714_v47, %v776_v49  ;;  %v785_v34 = vshll.u32 %v12722_v51, %v776_v49 }
 0x106   : > { %v600_v14 = vsel %vm588_vm5, %v582_v2, %v599_v10  ;;  %v597_v15 = vsel %vm587_vm6, %v594_v5, %v596_v13  ;;  %v786_v35 = vshrl.u32 %v12718_v54, %v7566_v4  ;;  %v591_v37 = vsel %vm589_vm4, %v579_v0, 2102212464 }
 0x107   : > { %v601_v16 = vsel %vm587_vm6, %v598_v6, %v600_v14  ;;  %v7601_v26 = vmul.u32.u64.low %v7563_v1, %v597_v15  ;;  %v7602_v27 = vmul.u32.u64.high %v7563_v1, %v597_v15, %v7601_v26  ;;  %v788_v38 = vshll.u32 %v12718_v54, %v776_v49 }
 0x108   : > { %v7597_v23 = vmul.u32.u64.low %v7563_v1, %v601_v16  ;;  %v7598_v24 = vmul.u32.u64.high %v7563_v1, %v601_v16, %v7597_v23  ;;  %v789_v39 = vshrl.u32 %v12724_v57, %v7566_v4  ;;  %v792_v40 = vshrl.u32 %v12709_v60, %v7566_v4 }
 0x109   : > { %v781_v41 = vor.u32 %v780_v19, %v779_v30  ;;  %v784_v43 = vor.u32 %v783_v22, %v782_v32  ;;  %v787_v46 = vor.u32 %v786_v35, %v785_v34  ;;  %v791_v48 = vshll.u32 %v12724_v57, %v776_v49 }
 0x10a   : > { %v770_v50 = vor.u32 8388608, %v7549_v42  ;;  %v790_v52 = vor.u32 %v789_v39, %v788_v38  ;;  %v668_v53 = vadd.s32 1, %v6592_v7  ;;  %v590_v55 = vsel %vm586_vm3, %v570_v12, %v573_v62 }
 0x10b   : > { %v592_v56 = vsel %vm588_vm5, %v576_v63, %v591_v37  ;;  %v793_v58 = vor.u32 %v792_v40, %v791_v48  ;;  %vm797_vm7 = vcmp.lt.s32.totalorder %v7580_v11, 4  ;;  %v612_v59 = vadd.s32 1, %v7602_v27 }
 0x10c   : > { %vm794_vm8 = vcmp.lt.s32.totalorder %v7580_v11, 1  ;;  %vm796_vm9 = vcmp.lt.s32.totalorder %v7580_v11, 3  ;;  %v803_v42 = vsel %vm797_vm7, %v790_v52, 920167782  ;;  %vm611_vm10 = vc.u32 %v7598_v24, %v7601_v26 }
 0x10d   : > { %v802_v49 = vsel %vm794_vm8, %v781_v41, %v784_v43  ;;  %v804_v61 = vsel %vm796_vm9, %v787_v46, %v803_v42  ;;  %v807_v62 = vsel %vm797_vm7, %v793_v58, 1326507024  ;;  %v593_v63 = vsel %vm587_vm6, %v590_v55, %v592_v56 }
 0x10e   : > { %v806_v0 = vsel %vm794_vm8, %v784_v43, %v787_v46  ;;  %v808_v2 = vsel %vm796_vm9, %v790_v52, %v807_v62  ;;  %vm795_vm11 = vcmp.lt.s32.totalorder %v7580_v11, 2  ;;  %v613_v3 = vsel %vm611_vm10, %v612_v59, %v7602_v27  ;;  %v7662_v27 = vpop.f32.mrb[4].mxu1 }
 0x10f   : > { %v805_v5 = vsel %vm795_vm11, %v802_v49, %v804_v61  ;;  %vm669_vm12 = vcmp.gt.s32.totalorder %v668_v53, 0  ;;  %v609_v6 = vmul.u32 %v7563_v1, %v593_v63  ;;  %v809_v44 = vsel %vm795_vm11, %v806_v0, %v808_v2  ;;  %12955 = vst [vmem:[#allocation14_spill] sm:$0xff] %v7662_v27 }
 0x110   : > { %v810_v7 = vshll.u32 %v770_v50, 8  ;;  %v670_v13 = vsel %vm669_vm12, %v668_v53, 0  ;;  %v799_v22 = vsel %vm797_vm7, %v787_v46, 2102212464  ;;  %v778_v1 = vshrl.u32 %v12707_v45, %v7566_v4 }
 0x111   : > { %v614_v9 = vadd.s32 %v613_v3, %v609_v6  ;;  %v672_v16 = vand.u32 31, %v670_v13  ;;  %v869_v23 = vand.u32 2139095040, %v7531_v21  ;;  %v800_v32 = vsel %vm796_vm9, %v784_v43, %v799_v22 }
 0x112   : > { %v7650_v10 = vmul.u32.u64.low %v810_v7, %v805_v5  ;;  %v7651_v12 = vmul.u32.u64.high %v810_v7, %v805_v5, %v7650_v10  ;;  %v7654_v14 = vmul.u32.u64.low %v810_v7, %v809_v44  ;;  %v7655_v15 = vmul.u32.u64.high %v810_v7, %v809_v44, %v7654_v14 }
 0x113   : > { %v615_v19 = vadd.s32 536870912, %v614_v9  ;;  %v798_v30 = vsel %vm794_vm8, %v778_v1, %v781_v41  ;;  %v673_v34 = vsub.s32 32, %v672_v16  ;;  %v870_v38 = vshrl.u32 %v869_v23, 23 }
 0x114   : > { %v820_v37 = vadd.s32 1, %v7651_v12  ;;  %vm819_vm13 = vc.u32 %v7655_v15, %v7650_v10  ;;  %v801_v4 = vsel %vm795_vm11, %v798_v30, %v800_v32  ;;  %v12703_v48 = vand.u32 2147483647, %v7529_v20 }
 0x115   : > { %v7668_v35 = vshrl.u32 %v615_v19, 30  ;;  %v688_v39 = vshrl.u32 %v12709_v60, %v673_v34  ;;  %v685_v43 = vshrl.u32 %v12724_v57, %v673_v34  ;;  %v817_v46 = vmul.u32 %v810_v7, %v801_v4 }
 0x116   : > { %v821_v41 = vsel %vm819_vm13, %v820_v37, %v7651_v12  ;;  %v687_v50 = vshll.u32 %v12724_v57, %v672_v16  ;;  %v6600_v52 = vadd.s32 4294967169, %v870_v38  ;;  %v7681_v53 = vshrl.u32 %v670_v13, 5 }
 0x117   : > { %v617_v40 = vshll.u32 %v7668_v35, 30  ;;  %v679_v55 = vshrl.u32 %v12722_v51, %v673_v34  ;;  %v682_v11 = vshrl.u32 %v12718_v54, %v673_v34  ;;  %v684_v56 = vshll.u32 %v12718_v54, %v672_v16 }
 0x118   : > { %v822_v58 = vadd.s32 %v821_v41, %v817_v46  ;;  %v676_v59 = vshrl.u32 %v12714_v47, %v673_v34  ;;  %v689_v42 = vor.u32 %v688_v39, %v687_v50  ;;  %v678_v61 = vshll.u32 %v12714_v47, %v672_v16  ;;  %v7723_v46 = vpop.f32.mrb[5].mxu0 }
 0x119   : > { %v7687_v49 = vsub.s32 %v614_v9, %v617_v40  ;;  %v681_v62 = vshll.u32 %v12722_v51, %v672_v16  ;;  %v686_v63 = vor.u32 %v685_v43, %v684_v56  ;;  %v675_v0 = vshll.u32 %v12707_v45, %v672_v16  ;;  %12956 = vst [vmem:[#allocation15_spill] sm:$0xff] %v7723_v46 }
 0x11a   : > { %v12702_v2 = vand.u32 2147483647, %v7531_v21  ;;  %v876_v3 = vadd.s32 1, %v6600_v52  ;;  %v665_v5 = vand.u32 8388607, %v12703_v48  ;;  %v680_v6 = vor.u32 %v679_v55, %v678_v61 }
 0x11b   : > { %v683_v44 = vor.u32 %v682_v11, %v681_v62  ;;  %vm693_vm14 = vcmp.lt.s32.totalorder %v7681_v53, 4  ;;  %v823_v7 = vadd.s32 536870912, %v822_v58  ;;  %v677_v9 = vor.u32 %v676_v59, %v675_v0 }
 0x11c   : > { %v703_v12 = vsel %vm693_vm14, %v689_v42, 1326507024  ;;  %vm877_vm15 = vcmp.gt.s32.totalorder %v876_v3, 0  ;;  %v620_v13 = vsub.s32 0, %v7687_v49  ;;  %v699_v14 = vsel %vm693_vm14, %v686_v63, 920167782 }
 0x11d   : > { %v878_v16 = vsel %vm877_vm15, %v876_v3, 0  ;;  %vm690_vm0 = vcmp.lt.s32.totalorder %v7681_v53, 1  ;;  %vm692_vm1 = vcmp.lt.s32.totalorder %v7681_v53, 3  ;;  %v666_v22 = vor.u32 8388608, %v665_v5 }
 0x11e   : > { %v880_v19 = vand.u32 31, %v878_v16  ;;  %v702_v1 = vsel %vm690_vm0, %v680_v6, %v683_v44  ;;  %v704_v23 = vsel %vm692_vm1, %v686_v63, %v703_v12  ;;  %v7707_v30 = vshrl.u32 %v823_v7, 30 }
 0x11f   : > { %v698_v32 = vsel %vm690_vm0, %v677_v9, %v680_v6  ;;  %v700_v37 = vsel %vm692_vm1, %v683_v44, %v699_v14  ;;  %v873_v38 = vand.u32 8388607, %v12702_v2  ;;  %v6589_v4 = vmin.u32 %v620_v13, %v7687_v49 }
 0x120   : > { %vm691_vm2 = vcmp.lt.s32.totalorder %v7681_v53, 2  ;;  %v7717_v39 = vsub.s32 32, %v880_v19  ;;  %v706_v43 = vshll.u32 %v666_v22, 8  ;;  %v825_v50 = vshll.u32 %v7707_v30, 30 }
 0x121   : > { %v705_v40 = vsel %vm691_vm2, %v702_v1, %v704_v23  ;;  %v701_v41 = vsel %vm691_vm2, %v698_v32, %v700_v37  ;;  %v674_v52 = vshrl.u32 %v12707_v45, %v673_v34  ;;  %v874_v55 = vor.u32 8388608, %v873_v38 }
 0x122   : > { %v884_v11 = vshrl.u32 %v12714_v47, %v7717_v39  ;;  %v622_v56 = vclz %v6589_v4  ;;  %v7729_v59 = vmul.u32.u64.low %v706_v43, %v705_v40  ;;  %v7730_v42 = vmul.u32.u64.high %v706_v43, %v705_v40, %v7729_v59 }
 0x123   : > { %v887_v61 = vshrl.u32 %v12722_v51, %v7717_v39  ;;  %v7734_v62 = vmul.u32.u64.low %v706_v43, %v701_v41  ;;  %v7735_v63 = vmul.u32.u64.high %v706_v43, %v701_v41, %v7734_v62  ;;  %v883_v0 = vshll.u32 %v12707_v45, %v880_v19 }
 0x124   : > { %v890_v34 = vshrl.u32 %v12718_v54, %v7717_v39  ;;  %v695_v3 = vsel %vm693_vm14, %v683_v44, 2102212464  ;;  %v886_v5 = vshll.u32 %v12714_v47, %v880_v19  ;;  %v892_v7 = vshll.u32 %v12718_v54, %v880_v19 }
 0x125   : > { %v893_v12 = vshrl.u32 %v12724_v57, %v7717_v39  ;;  %v7747_v13 = vsub.s32 %v822_v58, %v825_v50  ;;  %v879_v14 = vshrl.u32 %v878_v16, 5  ;;  %v885_v22 = vor.u32 %v884_v11, %v883_v0 }
 0x126   : > { %v889_v1 = vshll.u32 %v12722_v51, %v880_v19  ;;  %v888_v23 = vor.u32 %v887_v61, %v886_v5  ;;  %v895_v37 = vshll.u32 %v12724_v57, %v880_v19  ;;  %v896_v44 = vshrl.u32 %v12709_v60, %v7717_v39 }
 0x127   : > { %v894_v32 = vor.u32 %v893_v12, %v892_v7  ;;  %v973_v4 = vand.u32 2139095040, %v7535_v28  ;;  %v694_v40 = vsel %vm690_vm0, %v674_v52, %v677_v9  ;;  %v696_v58 = vsel %vm692_vm1, %v680_v6, %v695_v3 }
 0x128   : > { %v891_v38 = vor.u32 %v890_v34, %v889_v1  ;;  %v897_v16 = vor.u32 %v896_v44, %v895_v37  ;;  %v6590_v41 = vadd.s32 4294967294, %v622_v56  ;;  %v828_v50 = vsub.s32 0, %v7747_v13 }
 0x129   : > { %vm898_vm3 = vcmp.lt.s32.totalorder %v879_v14, 1  ;;  %vm901_vm4 = vcmp.lt.s32.totalorder %v879_v14, 4  ;;  %vm900_vm5 = vcmp.lt.s32.totalorder %v879_v14, 3  ;;  %v914_v59 = vshll.u32 %v874_v55, 8 }
 0x12a   : > { %v906_v19 = vsel %vm898_vm3, %v885_v22, %v888_v23  ;;  %v907_v11 = vsel %vm901_vm4, %v894_v32, 920167782  ;;  %v716_v61 = vadd.s32 1, %v7735_v63  ;;  %vm899_vm6 = vcmp.lt.s32.totalorder %v879_v14, 2 }
 0x12b   : > { %v908_v9 = vsel %vm900_vm5, %v891_v38, %v907_v11  ;;  %v974_v52 = vshrl.u32 %v973_v4, 23  ;;  %vm715_vm7 = vc.u32 %v7730_v42, %v7734_v62  ;;  %v910_v56 = vsel %vm898_vm3, %v888_v23, %v891_v38 }
 0x12c   : > { %v909_v6 = vsel %vm899_vm6, %v906_v19, %v908_v9  ;;  %v911_v0 = vsel %vm901_vm4, %v897_v16, 1326507024  ;;  %v6597_v34 = vmin.u32 %v828_v50, %v7747_v13  ;;  %v697_v55 = vsel %vm691_vm2, %v694_v40, %v696_v58 }
 0x12d   : > { %v912_v3 = vsel %vm900_vm5, %v894_v32, %v911_v0  ;;  %v7773_v7 = vmul.u32.u64.low %v914_v59, %v909_v6  ;;  %v7774_v12 = vmul.u32.u64.high %v914_v59, %v909_v6, %v7773_v7  ;;  %v717_v1 = vsel %vm715_vm7, %v716_v61, %v7735_v63 }
 0x12e   : > { %v913_v5 = vsel %vm899_vm6, %v910_v56, %v912_v3  ;;  %v6604_v4 = vadd.s32 4294967169, %v974_v52  ;;  %vm6591_vm8 = vcmp.lt.s32.totalorder %v6590_v41, 0  ;;  %v713_v16 = vmul.u32 %v706_v43, %v697_v55 }
 0x12f   : > { %v7778_v37 = vmul.u32.u64.low %v914_v59, %v913_v5  ;;  %v7779_v44 = vmul.u32.u64.high %v914_v59, %v913_v5, %v7778_v37  ;;  %v830_v50 = vclz %v6597_v34  ;;  %v903_v40 = vsel %vm901_vm4, %v891_v38, 2102212464 }
 0x130   : > { %v980_v19 = vadd.s32 1, %v6604_v4  ;;  %v718_v53 = vadd.s32 %v717_v1, %v713_v16  ;;  %v625_v32 = vsel %vm6591_vm8, 0, %v6590_v41  ;;  %v882_v58 = vshrl.u32 %v12707_v45, %v7717_v39  ;;  %v7792_v39 = vpop.f32.mrb[5].mxu1 }
 0x131   : > { %v6598_v11 = vadd.s32 4294967294, %v830_v50  ;;  %v904_v63 = vsel %vm900_vm5, %v888_v23, %v903_v40  ;;  %v630_v6 = vsub.s32 4294967266, %v625_v32  ;;  %v924_v43 = vadd.s32 1, %v7774_v12  ;;  %12957 = vst [vmem:[#allocation16_spill] sm:$0xff] %v7792_v39 }
 0x132   : > { %vm981_vm9 = vcmp.gt.s32.totalorder %v980_v19, 0  ;;  %v902_v9 = vsel %vm898_vm3, %v882_v58, %v885_v22  ;;  %v719_v52 = vadd.s32 536870912, %v718_v53  ;;  %vm923_vm10 = vc.u32 %v7779_v44, %v7773_v7 }
 0x133   : > { %v982_v61 = vsel %vm981_vm9, %v980_v19, 0  ;;  %v905_v38 = vsel %vm899_vm6, %v902_v9, %v904_v63  ;;  %vm6599_vm11 = vcmp.lt.s32.totalorder %v6598_v11, 0  ;;  %v631_v0 = vadd.s32 127, %v630_v6 }
 0x134   : > { %v984_v56 = vand.u32 31, %v982_v61  ;;  %v7794_v22 = vshrl.u32 %v719_v52, 30  ;;  %v925_v23 = vsel %vm923_vm10, %v924_v43, %v7774_v12  ;;  %v921_v34 = vmul.u32 %v914_v59, %v905_v38 }
 0x135   : > { %v12704_v55 = vand.u32 2147483647, %v7535_v28  ;;  %v610_v3 = vadd.s32 %v7601_v26, %v7598_v24  ;;  %v640_v5 = vsub.s32 4, %v7668_v35  ;;  %v7801_v14 = vsel %vm6599_vm11, 0, %v6598_v11 }
 0x136   : > { %v7790_v41 = vsub.s32 32, %v984_v56  ;;  %v1181_v1 = vand.u32 2139095040, %v7537_v29  ;;  %v626_v37 = vsub.s32 32, %v625_v32  ;;  %v818_v4 = vadd.s32 %v7650_v10, %v7655_v15 }
 0x137   : > { %v7806_v16 = vadd.s32 %v925_v23, %v921_v34  ;;  %v627_v12 = vshll.u32 %v7687_v49, %v625_v32  ;;  %v632_v50 = vshll.u32 %v631_v0, 23  ;;  %v721_v24 = vshll.u32 %v7794_v22, 30 }
 0x138   : > { %v997_v59 = vshrl.u32 %v12724_v57, %v7790_v41  ;;  %v1000_v26 = vshrl.u32 %v12709_v60, %v7790_v41  ;;  %v838_v19 = vsub.s32 4294967266, %v7801_v14  ;;  %v7815_v40 = vshrl.u32 %v982_v61, 5 }
 0x139   : > { %v988_v10 = vshrl.u32 %v12714_v47, %v7790_v41  ;;  %v996_v15 = vshll.u32 %v12718_v54, %v984_v56  ;;  %v991_v58 = vshrl.u32 %v12722_v51, %v7790_v41  ;;  %v994_v49 = vshrl.u32 %v12718_v54, %v7790_v41 }
 0x13a   : > { %v999_v32 = vshll.u32 %v12724_v57, %v984_v56  ;;  %v1182_v11 = vshrl.u32 %v1181_v1, 23  ;;  %v628_v9 = vshrl.u32 %v610_v3, %v626_v37  ;;  %v927_v63 = vadd.s32 536870912, %v7806_v16 }
 0x13b   : > { %v987_v61 = vshll.u32 %v12707_v45, %v984_v56  ;;  %v998_v6 = vor.u32 %v997_v59, %v996_v15  ;;  %v7827_v52 = vsub.s32 %v718_v53, %v721_v24  ;;  %v990_v43 = vshll.u32 %v12714_v47, %v984_v56 }
 0x13c   : > { %v993_v38 = vshll.u32 %v12722_v51, %v984_v56  ;;  %v1001_v0 = vor.u32 %v1000_v26, %v999_v32  ;;  %v633_v23 = vor.u32 4788187, %v632_v50  ;;  %v839_v34 = vadd.s32 127, %v838_v19 }
 0x13d   : > { %v977_v2 = vand.u32 8388607, %v12704_v55  ;;  %v7833_v48 = vor.u32 %v988_v10, %v987_v61  ;;  %v7835_v3 = vor.u32 %v991_v58, %v990_v43  ;;  %vm1005_vm12 = vcmp.lt.s32.totalorder %v7815_v40, 4 }
 0x13e   : > { %v995_v1 = vor.u32 %v994_v49, %v993_v38  ;;  %v6612_v37 = vadd.s32 4294967169, %v1182_v11  ;;  %v629_v53 = vor.u32 %v628_v9, %v627_v12  ;;  %v848_v59 = vsub.s32 4, %v7707_v30 }
 0x13f   : > { %v7839_v24 = vshrl.u32 %v927_v63, 30  ;;  %v1011_v56 = vsel %vm1005_vm12, %v998_v6, 920167782  ;;  %v834_v50 = vsub.s32 32, %v7801_v14  ;;  %v724_v26 = vsub.s32 0, %v7827_v52 }
 0x140   : > { %v1015_v19 = vsel %vm1005_vm12, %v1001_v0, 1326507024  ;;  %v1188_v10 = vadd.s32 1, %v6612_v37  ;;  %v634_v15 = vand.u32 2147483647, %v633_v23  ;;  %v840_v58 = vshll.u32 %v839_v34, 23 }
 0x141   : > { %vm1002_vm13 = vcmp.lt.s32.totalorder %v7815_v40, 1  ;;  %vm1004_vm14 = vcmp.lt.s32.totalorder %v7815_v40, 3  ;;  %v978_v12 = vor.u32 8388608, %v977_v2  ;;  %v636_v11 = vcvt.s32.f32 %v629_v53  ;;  %v7873_v53 = vpop.f32.mrb[6].mxu0 }
 0x142   : > { %v1010_v49 = vsel %vm1002_vm13, %v7833_v48, %v7835_v3  ;;  %v1012_v32 = vsel %vm1004_vm14, %v995_v1, %v1011_v56  ;;  %vm1189_vm15 = vcmp.gt.s32.totalorder %v1188_v10, 0  ;;  %v929_v9 = vshll.u32 %v7839_v24, 30  ;;  %12958 = vst [vmem:[#allocation17_spill] sm:$0xff] %v7873_v53 }
 0x143   : > { %v1014_v63 = vsel %vm1002_vm13, %v7835_v3, %v995_v1  ;;  %v1016_v61 = vsel %vm1004_vm14, %v998_v6, %v1015_v19  ;;  %v836_v2 = vshrl.u32 %v818_v4, %v834_v50  ;;  %v6593_v43 = vmin.u32 %v724_v26, %v7827_v52 }
 0x144   : > { %vm1003_vm0 = vcmp.lt.s32.totalorder %v7815_v40, 2  ;;  %v1190_v38 = vsel %vm1189_vm15, %v1188_v10, 0  ;;  %vm556_vm1 = vcmp.lt.s32.totalorder %v7524_v17, 0  ;;  %vm764_vm2 = vcmp.lt.s32.totalorder %v7526_v18, 0 }
 0x145   : > { %v835_v0 = vshll.u32 %v7747_v13, %v7801_v14  ;;  %v1013_v23 = vsel %vm1003_vm0, %v1010_v49, %v1012_v32  ;;  %v637_v34 = vmul.f32 %v636_v11, %v634_v15  ;;  %v841_v37 = vor.u32 4788187, %v840_v58 }
 0x146   : > { %v1017_v4 = vsel %vm1003_vm0, %v1014_v63, %v1016_v61  ;;  %v7871_v6 = vshll.u32 %v978_v12, 8  ;;  %v641_v56 = vsel %vm556_vm1, %v640_v5, %v7668_v35  ;;  %v849_v13 = vsel %vm764_vm2, %v848_v59, %v7707_v30 }
 0x147   : > { %v7884_v14 = vsub.s32 %v7806_v16, %v929_v9  ;;  %v1192_v50 = vand.u32 31, %v1190_v38  ;;  %v837_v26 = vor.u32 %v836_v2, %v835_v0  ;;  %v726_v19 = vclz %v6593_v43 }
 0x148   : > { %v7887_v10 = vmul.u32.u64.low %v7871_v6, %v1013_v23  ;;  %v7888_v15 = vmul.u32.u64.high %v7871_v6, %v1013_v23, %v7887_v10  ;;  %vm7893_vm3 = vcmp.le.f32.partialorder %v554_v25, 0.7853982  ;;  %vm7899_vm4 = vcmp.le.f32.partialorder %v762_v31, 0.7853982 }
 0x149   : > { %v7904_v30 = vmul.u32.u64.low %v7871_v6, %v1017_v4  ;;  %v7905_v5 = vmul.u32.u64.high %v7871_v6, %v1017_v4, %v7904_v30  ;;  %v638_v16 = vxor.u32 2147483648, %v637_v34  ;;  %v643_v59 = vsel %vm7893_vm3, 0, %v641_v56 }
 0x14a   : > { %v842_v12 = vand.u32 2147483647, %v841_v37  ;;  %v851_v25 = vsel %vm7899_vm4, 0, %v849_v13  ;;  %v932_v49 = vsub.s32 0, %v7884_v14  ;;  %v7912_v32 = vsub.s32 32, %v1192_v50 }
 0x14b   : > { %v844_v31 = vcvt.s32.f32 %v837_v26  ;;  %v6594_v11 = vadd.s32 4294967294, %v726_v19  ;;  %v7914_v9 = vadd.s32 3, %v643_v59  ;;  %v7916_v63 = vadd.s32 3, %v851_v25 }
 0x14c   : > { %v1007_v61 = vsel %vm1005_vm12, %v995_v1, 2102212464  ;;  %v1077_v2 = vand.u32 2139095040, %v7540_v33  ;;  %v639_v43 = vsel %vm556_vm1, %v638_v16, %v637_v34  ;;  %v7925_v23 = vadd.s32 %v7734_v62, %v7730_v42 }
 0x14d   : > { %v845_v0 = vmul.f32 %v844_v31, %v842_v12  ;;  %v986_v37 = vshrl.u32 %v12707_v45, %v7790_v41  ;;  %v6601_v4 = vmin.u32 %v932_v49, %v7884_v14  ;;  %v12706_v56 = vand.u32 2147483647, %v7537_v29 }
 0x14e   : > { %v1205_v1 = vshrl.u32 %v12724_v57, %v7912_v32  ;;  %v1208_v13 = vshrl.u32 %v12709_v60, %v7912_v32  ;;  %vm6595_vm5 = vcmp.lt.s32.totalorder %v6594_v11, 0  ;;  %v1008_v42 = vsel %vm1004_vm14, %v7835_v3, %v1007_v61 }
 0x14f   : > { %v1006_v34 = vsel %vm1002_vm13, %v986_v37, %v7833_v48  ;;  %v1028_v62 = vadd.s32 1, %v7888_v15  ;;  %vm1027_vm6 = vc.u32 %v7905_v5, %v7887_v10  ;;  %v1204_v41 = vshll.u32 %v12718_v54, %v1192_v50 }
 0x150   : > { %v1207_v26 = vshll.u32 %v12724_v57, %v1192_v50  ;;  %v1078_v19 = vshrl.u32 %v1077_v2, 23  ;;  %v7946_v30 = vshrl.u32 %v1190_v38, 5  ;;  %v1196_v16 = vshrl.u32 %v12714_v47, %v7912_v32 }
 0x151   : > { %v1199_v48 = vshrl.u32 %v12722_v51, %v7912_v32  ;;  %v1202_v3 = vshrl.u32 %v12718_v54, %v7912_v32  ;;  %vm660_vm7 = vcmp.lt.s32.totalorder %v7529_v20, 0  ;;  %v934_v59 = vclz %v6601_v4 }
 0x152   : > { %v1185_v12 = vand.u32 8388607, %v12706_v56  ;;  %v1206_v25 = vor.u32 %v1205_v1, %v1204_v41  ;;  %v1209_v49 = vor.u32 %v1208_v13, %v1207_v26  ;;  %v1009_v38 = vsel %vm1003_vm0, %v1006_v34, %v1008_v42 }
 0x153   : > { %v1195_v31 = vshll.u32 %v12707_v45, %v1192_v50  ;;  %v1198_v61 = vshll.u32 %v12714_v47, %v1192_v50  ;;  %v1201_v2 = vshll.u32 %v12722_v51, %v1192_v50  ;;  %v7963_v37 = vsel %vm6595_vm5, 0, %v6594_v11 }
 0x154   : > { %v744_v55 = vsub.s32 4, %v7794_v22  ;;  %v1029_v4 = vsel %vm1027_vm6, %v1028_v62, %v7888_v15  ;;  %v6608_v1 = vadd.s32 4294967169, %v1078_v19  ;;  %vm1213_vm8 = vcmp.lt.s32.totalorder %v7946_v30, 4 }
 0x155   : > { %v7970_v13 = vor.u32 %v1196_v16, %v1195_v31  ;;  %v7972_v40 = vor.u32 %v1199_v48, %v1198_v61  ;;  %v1203_v34 = vor.u32 %v1202_v3, %v1201_v2  ;;  %v1025_v50 = vmul.u32 %v7871_v6, %v1009_v38 }
 0x156   : > { %v1219_v11 = vsel %vm1213_vm8, %v1206_v25, 920167782  ;;  %v1223_v42 = vsel %vm1213_vm8, %v1209_v49, 1326507024  ;;  %v1084_v41 = vadd.s32 1, %v6608_v1  ;;  %v846_v26 = vxor.u32 2147483648, %v845_v0 }
 0x157   : > { %v734_v15 = vsub.s32 4294967266, %v7963_v37  ;;  %v6602_v62 = vadd.s32 4294967294, %v934_v59  ;;  %v1186_v19 = vor.u32 8388608, %v1185_v12  ;;  %v7981_v16 = vadd.s32 %v1029_v4, %v1025_v50 }
 0x158   : > { %vm1210_vm9 = vcmp.lt.s32.totalorder %v7946_v30, 1  ;;  %vm1212_vm10 = vcmp.lt.s32.totalorder %v7946_v30, 3  ;;  %vm1085_vm11 = vcmp.gt.s32.totalorder %v1084_v41, 0  ;;  %v7999_v12 = vsel %vm7893_vm3, %v7524_v17, %v639_v43 }
 0x159   : > { %v1218_v6 = vsel %vm1210_vm9, %v7970_v13, %v7972_v40  ;;  %v1220_v48 = vsel %vm1212_vm10, %v1203_v34, %v1219_v11  ;;  %v1222_v3 = vsel %vm1210_vm9, %v7972_v40, %v1203_v34  ;;  %v1224_v59 = vsel %vm1212_vm10, %v1206_v25, %v1223_v42 }
 0x15a   : > { %v12705_v49 = vand.u32 2147483647, %v7540_v33  ;;  %v1086_v38 = vsel %vm1085_vm11, %v1084_v41, 0  ;;  %v1285_v31 = vand.u32 2139095040, %v7545_v36  ;;  %v8005_v61 = vsel %vm764_vm2, %v846_v26, %v845_v0  ;;  %v8031_v26 = vpop.f32.mrb[6].mxu1 }
 0x15b   : > { %v8010_v2 = vsel %vm660_vm7, %v744_v55, %v7794_v22  ;;  %vm6603_vm12 = vcmp.lt.s32.totalorder %v6602_v62, 0  ;;  %vm1211_vm13 = vcmp.lt.s32.totalorder %v7946_v30, 2  ;;  %v1031_v58 = vadd.s32 536870912, %v7981_v16  ;;  %12963 = vst [vmem:[#allocation18_spill] sm:$0xff] %v8031_v26 }
 0x15c   : > { %v1221_v43 = vsel %vm1211_vm13, %v1218_v6, %v1220_v48  ;;  %v1225_v25 = vsel %vm1211_vm13, %v1222_v3, %v1224_v59  ;;  %v1088_v4 = vand.u32 31, %v1086_v38  ;;  %v730_v0 = vsub.s32 32, %v7963_v37 }
 0x15d   : > { %v8021_v50 = vadd.s32 127, %v734_v15  ;;  %v8023_v22 = vshll.u32 %v1186_v19, 8  ;;  %v8025_v55 = vsel %vm6603_vm12, 0, %v6602_v62  ;;  %v1081_v11 = vand.u32 8388607, %v12705_v49 }
 0x15e   : > { %v8029_v42 = vsub.s32 32, %v1088_v4  ;;  %v1286_v41 = vshrl.u32 %v1285_v31, 23  ;;  %v8042_v19 = vshrl.u32 %v1031_v58, 30  ;;  %v1091_v62 = vshll.u32 %v12707_v45, %v1088_v4 }
 0x15f   : > { %v8034_v6 = vmul.u32.u64.low %v8023_v22, %v1225_v25  ;;  %v8035_v48 = vmul.u32.u64.high %v8023_v22, %v1225_v25, %v8034_v6  ;;  %v8038_v3 = vmul.u32.u64.low %v8023_v22, %v1221_v43  ;;  %v8039_v15 = vmul.u32.u64.high %v8023_v22, %v1221_v43, %v8038_v3 }
 0x160   : > { %v1092_v59 = vshrl.u32 %v12714_v47, %v8029_v42  ;;  %v1095_v31 = vshrl.u32 %v12722_v51, %v8029_v42  ;;  %v1094_v49 = vshll.u32 %v12714_v47, %v1088_v4  ;;  %v1098_v25 = vshrl.u32 %v12718_v54, %v8029_v42 }
 0x161   : > { %v1100_v6 = vshll.u32 %v12718_v54, %v1088_v4  ;;  %v1101_v43 = vshrl.u32 %v12724_v57, %v8029_v42  ;;  %v8055_v58 = vshrl.u32 %v1086_v38, 5  ;;  %v1097_v56 = vshll.u32 %v12722_v51, %v1088_v4 }
 0x162   : > { %v1103_v1 = vshll.u32 %v12724_v57, %v1088_v4  ;;  %v6616_v45 = vadd.s32 4294967169, %v1286_v41  ;;  %v1093_v60 = vor.u32 %v1092_v59, %v1091_v62  ;;  %v1096_v17 = vor.u32 %v1095_v31, %v1094_v49 }
 0x163   : > { %v1102_v26 = vor.u32 %v1101_v43, %v1100_v6  ;;  %v12964_v47 = vmov 1326507024   ;;  %v12965_v39 = vand.u32 2147483647, %v7529_v20  ;;  %v12968_v38 = vmov 683565275  }
 0x164   : > { %v1104_v53 = vshrl.u32 %v12964_v47, %v8029_v42  ;;  %v1194_v33 = vshrl.u32 %v12968_v38, %v7912_v32  ;;  %v1215_v51 = vsel %vm1213_vm8, %v1203_v34, 2102212464  ;;  %v1082_v4 = vor.u32 8388608, %v1081_v11 }
 0x165   : > { %vm8063_vm14 = vcmp.le.f32.partialorder %v12965_v39, 0.7853982  ;;  %v1099_v41 = vor.u32 %v1098_v25, %v1097_v56  ;;  %v732_v49 = vshrl.u32 %v7925_v23, %v730_v0  ;;  %v736_v62 = vshll.u32 %v8021_v50, 23 }
 0x166   : > { %v942_v59 = vsub.s32 4294967266, %v8025_v55  ;;  %v1105_v31 = vor.u32 %v1104_v53, %v1103_v1  ;;  %v1033_v39 = vshll.u32 %v8042_v19, 30  ;;  %v1214_v6 = vsel %vm1210_vm9, %v1194_v33, %v7970_v13 }
 0x167   : > { %vm1106_vm15 = vcmp.lt.s32.totalorder %v8055_v58, 1  ;;  %vm1109_vm0 = vcmp.lt.s32.totalorder %v8055_v58, 4  ;;  %v1216_v32 = vsel %vm1212_vm10, %v7972_v40, %v1215_v51  ;;  %v1292_v56 = vadd.s32 1, %v6616_v45 }
 0x168   : > { %v1114_v23 = vsel %vm1106_vm15, %v1093_v60, %v1096_v17  ;;  %v1115_v53 = vsel %vm1109_vm0, %v1102_v26, 920167782  ;;  %v1236_v34 = vadd.s32 1, %v8039_v15  ;;  %vm1108_vm1 = vcmp.lt.s32.totalorder %v8055_v58, 3 }
 0x169   : > { %v1118_v33 = vsel %vm1106_vm15, %v1096_v17, %v1099_v41  ;;  %v8091_v13 = vshll.u32 %v1082_v4, 8  ;;  %vm1235_vm2 = vc.u32 %v8035_v48, %v8038_v3  ;;  %vm1107_vm3 = vcmp.lt.s32.totalorder %v8055_v58, 2 }
 0x16a   : > { %v1116_v51 = vsel %vm1108_vm1, %v1099_v41, %v1115_v53  ;;  %v1119_v45 = vsel %vm1109_vm0, %v1105_v31, 1326507024  ;;  %v8101_v40 = vsub.s32 %v7981_v16, %v1033_v39  ;;  %v1217_v0 = vsel %vm1211_vm13, %v1214_v6, %v1216_v32 }
 0x16b   : > { %v1117_v1 = vsel %vm1107_vm3, %v1114_v23, %v1116_v51  ;;  %v1120_v50 = vsel %vm1108_vm1, %v1102_v26, %v1119_v45  ;;  %vm1293_vm5 = vcmp.gt.s32.totalorder %v1292_v56, 0  ;;  %v1237_v16 = vsel %vm1235_vm2, %v1236_v34, %v8039_v15 }
 0x16c   : > { %v1121_v11 = vsel %vm1107_vm3, %v1118_v33, %v1120_v50  ;;  %v8112_v25 = vmul.u32.u64.low %v8091_v13, %v1117_v1  ;;  %v8113_v43 = vmul.u32.u64.high %v8091_v13, %v1117_v1, %v8112_v25  ;;  %v1294_v31 = vsel %vm1293_vm5, %v1292_v56, 0 }
 0x16d   : > { %v8118_v30 = vmul.u32.u64.low %v8091_v13, %v1121_v11  ;;  %v8119_v4 = vmul.u32.u64.high %v8091_v13, %v1121_v11, %v8118_v30  ;;  %v8122_v39 = vand.u32 3, %v7914_v9  ;;  %v747_v26 = vsel %vm8063_vm14, 0, %v8010_v2 }
 0x16e   : > { %v1233_v6 = vmul.u32 %v8023_v22, %v1217_v0  ;;  %v1296_v32 = vand.u32 31, %v1294_v31  ;;  %7077 = vcosq.f32 %v7999_v12  ;;  %v8133_v15 = vsel %vm7899_vm4, %v7526_v18, %v8005_v61 }
 0x16f   : > { %12969 = vst [vmem:[#allocation19_spill] sm:$0xff] %v8122_v39  ;;  %v12970_v23 = vshll.u32 %v7827_v52, %v7963_v37  ;;  %v1111_v53 = vsel %vm1109_vm0, %v1099_v41, 2102212464  ;;  %v737_v56 = vor.u32 4788187, %v736_v62  ;;  %v1036_v2 = vsub.s32 0, %v8101_v40 }
 0x170   : > { %v8141_v22 = vadd.s32 %v1237_v16, %v1233_v6  ;;  %v1090_v34 = vshrl.u32 %v12968_v38, %v8029_v42  ;;  %7079 = vsinq.f32 %v7999_v12  ;;  %v8147_v35 = vand.u32 3, %v7916_v63  ;;  %v8163_v12 = vpop.f32.mrb[7].mxu0 }
 0x171   : > { %v733_v9 = vor.u32 %v732_v49, %v12970_v23  ;;  %v8149_v61 = vadd.s32 3, %v747_v26  ;;  %v943_v52 = vadd.s32 127, %v942_v59  ;;  %v1112_v41 = vsel %vm1108_vm1, %v1096_v17, %v1111_v53  ;;  %12972 = vst [vmem:[#allocation21_spill] sm:$0xff] %v8163_v12 }
 0x172   : > { %12971 = vst [vmem:[#allocation20_spill] sm:$0xff] %v8147_v35  ;;  %v1110_v37 = vsel %vm1106_vm15, %v1090_v34, %v1093_v60  ;;  %v1132_v49 = vadd.s32 1, %v8113_v43  ;;  %v8156_v62 = vsub.s32 32, %v1296_v32  ;;  %7081 = vcosq.f32 %v8133_v15 }
 0x173   : > { %v740_v42 = vcvt.s32.f32 %v733_v9  ;;  %v922_v63 = vadd.s32 %v7773_v7, %v7779_v44  ;;  %vm1131_vm4 = vc.u32 %v8119_v4, %v8112_v25  ;;  %v738_v59 = vand.u32 2147483647, %v737_v56 }
 0x174   : > { %v6605_v60 = vmin.u32 %v1036_v2, %v8101_v40  ;;  %v1239_v17 = vadd.s32 536870912, %v8141_v22  ;;  %v938_v51 = vsub.s32 32, %v8025_v55  ;;  %v944_v45 = vshll.u32 %v943_v52, 23 }
 0x175   : > { %v1113_v0 = vsel %vm1107_vm3, %v1110_v37, %v1112_v41  ;;  %v8171_v1 = vshrl.u32 %v1294_v31, 5  ;;  %v1133_v7 = vsel %vm1131_vm4, %v1132_v49, %v8113_v43  ;;  %v12973_v44 = vmov 2475754826  }
 0x176   : > { %v1300_v50 = vshrl.u32 %v12973_v44, %v8156_v62  ;;  %v12974_v11 = vmov 2102212464   ;;  %v1309_v30 = vshrl.u32 %v12724_v57, %v8156_v62  ;;  %vm868_vm6 = vcmp.lt.s32.totalorder %v7531_v21, 0 }
 0x177   : > { %v1308_v16 = vshll.u32 %v12974_v11, %v1296_v32  ;;  %v12975_v26 = vmov 2131351028   ;;  %v1306_v58 = vshrl.u32 %v12974_v11, %v8156_v62  ;;  %v1311_v31 = vshll.u32 %v12724_v57, %v1296_v32 }
 0x178   : > { %v1303_v6 = vshrl.u32 %v12975_v26, %v8156_v62  ;;  %v1312_v43 = vshrl.u32 %v12964_v47, %v8156_v62  ;;  %v1038_v23 = vclz %v6605_v60  ;;  %v8187_v9 = vshrl.u32 %v1239_v17, 30  ;;  %v8190_v2 = vpop.eup %7077 }
 0x179   : > { %v1129_v53 = vmul.u32 %v8091_v13, %v1113_v0  ;;  %v1310_v56 = vor.u32 %v1309_v30, %v1308_v16  ;;  %12976 = vst [vmem:[#allocation22_spill] sm:$0xff] %v8190_v2  ;;  %v1299_v34 = vshll.u32 %v12968_v38, %v1296_v32  ;;  %v1302_v52 = vshll.u32 %v12973_v44, %v1296_v32 }
 0x17a   : > { %v1305_v37 = vshll.u32 %v12975_v26, %v1296_v32  ;;  %v1313_v41 = vor.u32 %v1312_v43, %v1311_v31  ;;  %v741_v49 = vmul.f32 %v740_v42, %v738_v59  ;;  %v12977_v57 = vand.u32 2147483647, %v7531_v21  ;;  %v8206_v16 = vpop.eup %7079 }
 0x17b   : > { %v952_v60 = vsub.s32 4, %v7839_v24  ;;  %v8202_v13 = vadd.s32 %v1133_v7, %v1129_v53  ;;  %v12980_v17 = vand.u32 2147483647, %v7545_v36  ;;  %12981 = vst [vmem:[#allocation23_spill] sm:$0xff] %v8206_v16  ;;  %v1301_v30 = vor.u32 %v1300_v50, %v1299_v34 }
 0x17c   : > { %vm8197_vm8 = vcmp.le.f32.partialorder %v12977_v57, 0.7853982  ;;  %v1304_v35 = vor.u32 %v1303_v6, %v1302_v52  ;;  %v1307_v32 = vor.u32 %v1306_v58, %v1305_v37  ;;  %vm1317_vm9 = vcmp.lt.s32.totalorder %v8171_v1, 4  ;;  %v8213_v7 = vpop.eup %7081 }
 0x17d   : > { %v1289_v0 = vand.u32 8388607, %v12980_v17  ;;  %v940_v42 = vshrl.u32 %v922_v63, %v938_v51  ;;  %v1241_v57 = vshll.u32 %v8187_v9, 30  ;;  %v1323_v59 = vsel %vm1317_vm9, %v1310_v56, 920167782  ;;  %12982 = vst [vmem:[#allocation24_spill] sm:$0xff] %v8213_v7 }
 0x17e   : > { %v1389_v31 = vand.u32 2139095040, %v7573_v8  ;;  %v939_v43 = vshll.u32 %v7884_v14, %v8025_v55  ;;  %v945_v53 = vor.u32 4788187, %v944_v45  ;;  %v6606_v17 = vadd.s32 4294967294, %v1038_v23 }
 0x17f   : > { %v1327_v50 = vsel %vm1317_vm9, %v1313_v41, 1326507024  ;;  %v1135_v6 = vadd.s32 536870912, %v8202_v13  ;;  %v1290_v63 = vor.u32 8388608, %v1289_v0  ;;  %vm1314_vm10 = vcmp.lt.s32.totalorder %v8171_v1, 1 }
 0x180   : > { %vm1316_vm11 = vcmp.lt.s32.totalorder %v8171_v1, 3  ;;  %v1322_v51 = vsel %vm1314_vm10, %v1301_v30, %v1304_v35  ;;  %v1326_v14 = vsel %vm1314_vm10, %v1304_v35, %v1307_v32  ;;  %v941_v45 = vor.u32 %v940_v42, %v939_v43 }
 0x181   : > { %v1324_v58 = vsel %vm1316_vm11, %v1307_v32, %v1323_v59  ;;  %v1328_v55 = vsel %vm1316_vm11, %v1310_v56, %v1327_v50  ;;  %v953_v23 = vsel %vm868_vm6, %v952_v60, %v7839_v24  ;;  %v8234_v34 = vsub.s32 %v8141_v22, %v1241_v57 }
 0x182   : > { %v1390_v52 = vshrl.u32 %v1389_v31, 23  ;;  %7083 = vsinq.f32 %v8133_v15  ;;  %v8238_v37 = vand.u32 3, %v8149_v61  ;;  %vm972_vm12 = vcmp.lt.s32.totalorder %v7535_v28, 0 }
 0x183   : > { %vm6607_vm13 = vcmp.lt.s32.totalorder %v6606_v17, 0  ;;  %vm1315_vm15 = vcmp.lt.s32.totalorder %v8171_v1, 2  ;;  %v946_v56 = vand.u32 2147483647, %v945_v53  ;;  %v742_v60 = vxor.u32 2147483648, %v741_v49 }
 0x184   : > { %12983 = vst [vmem:[#allocation25_spill] sm:$0xff] %v8238_v37  ;;  %v1325_v41 = vsel %vm1315_vm15, %v1322_v51, %v1324_v58  ;;  %v1329_v24 = vsel %vm1315_vm15, %v1326_v14, %v1328_v55  ;;  %v6620_v22 = vadd.s32 4294967169, %v1390_v52  ;;  %v955_v15 = vsel %vm8197_vm8, 0, %v953_v23 }
 0x185   : > { %v8248_v0 = vshrl.u32 %v1135_v6, 30  ;;  %v8250_v61 = vshll.u32 %v1290_v63, 8  ;;  %v948_v42 = vcvt.s32.f32 %v941_v45  ;;  %v8252_v57 = vsel %vm6607_vm13, 0, %v6606_v17 }
 0x186   : > { %v1244_v59 = vsub.s32 0, %v8234_v34  ;;  %v1396_v31 = vadd.s32 1, %v6620_v22  ;;  %v1056_v6 = vsub.s32 4, %v8042_v19  ;;  %v1319_v17 = vsel %vm1317_vm9, %v1307_v32, 2102212464 }
 0x187   : > { %v8256_v43 = vmul.u32.u64.low %v8250_v61, %v1329_v24  ;;  %v8257_v53 = vmul.u32.u64.high %v8250_v61, %v1329_v24, %v8256_v43  ;;  %v8260_v50 = vmul.u32.u64.low %v8250_v61, %v1325_v41  ;;  %v8261_v51 = vmul.u32.u64.high %v8250_v61, %v1325_v41, %v8260_v50 }
 0x188   : > { %v8264_v58 = vmul.f32 %v948_v42, %v946_v56  ;;  %vm1397_vm0 = vcmp.gt.s32.totalorder %v1396_v31, 0  ;;  %v743_v63 = vsel %vm660_vm7, %v742_v60, %v741_v49  ;;  %v1137_v14 = vshll.u32 %v8248_v0, 30  ;;  %v8297_v42 = vpop.f32.mrb[7].mxu1 }
 0x189   : > { %v1298_v55 = vshrl.u32 %v12968_v38, %v8156_v62  ;;  %v1398_v45 = vsel %vm1397_vm0, %v1396_v31, 0  ;;  %v8274_v23 = vadd.s32 3, %v955_v15  ;;  %v1046_v52 = vsub.s32 4294967266, %v8252_v57  ;;  %12984 = vst [vmem:[#allocation26_spill] sm:$0xff] %v8297_v42 }
 0x18a   : > { %v6613_v56 = vmin.u32 %v1244_v59, %v8234_v34  ;;  %v12727_v41 = vand.u32 2147483647, %v7573_v8  ;;  %v1320_v49 = vsel %vm1316_vm11, %v1304_v35, %v1319_v17  ;;  %v1400_v24 = vand.u32 31, %v1398_v45 }
 0x18b   : > { %v1318_v32 = vsel %vm1314_vm10, %v1298_v55, %v1301_v30  ;;  %v1597_v22 = vand.u32 2139095040, %v7662_v27  ;;  %v8287_v62 = vsel %vm8063_vm14, %v7529_v20, %v743_v63  ;;  %v1026_v15 = vadd.s32 %v7887_v10, %v7905_v5 }
 0x18c   : > { %v8295_v30 = vsel %vm972_vm12, %v1056_v6, %v8042_v19  ;;  %v8299_v35 = vpop.eup %7083  ;;  %v1042_v59 = vsub.s32 32, %v8252_v57  ;;  %v1043_v54 = vshll.u32 %v8101_v40, %v8252_v57  ;;  %v8305_v31 = vsub.s32 %v8202_v13, %v1137_v14 }
 0x18d   : > { %12985 = vst [vmem:[#allocation27_spill] sm:$0xff] %v8299_v35  ;;  %v8307_v43 = vsub.s32 32, %v1400_v24  ;;  %v1047_v10 = vadd.s32 127, %v1046_v52  ;;  %v1246_v5 = vclz %v6613_v56  ;;  %v1321_v19 = vsel %vm1315_vm15, %v1318_v32, %v1320_v49 }
 0x18e   : > { %v1393_v6 = vand.u32 8388607, %v12727_v41  ;;  %vm1339_vm7 = vc.u32 %v8257_v53, %v8260_v50  ;;  %v1340_v17 = vadd.s32 1, %v8261_v51  ;;  %v1598_v13 = vshrl.u32 %v1597_v22, 23 }
 0x18f   : > { %v1404_v40 = vshrl.u32 %v12973_v44, %v8307_v43  ;;  %v1403_v57 = vshll.u32 %v12968_v38, %v1400_v24  ;;  %v1406_v63 = vshll.u32 %v12973_v44, %v1400_v24  ;;  %v1407_v1 = vshrl.u32 %v12975_v26, %v8307_v43 }
 0x190   : > { %v1410_v14 = vshrl.u32 %v12974_v11, %v8307_v43  ;;  %v1140_v55 = vsub.s32 0, %v8305_v31  ;;  %v8325_v52 = vshrl.u32 %v1398_v45, 5  ;;  %v1412_v56 = vshll.u32 %v12974_v11, %v1400_v24 }
 0x191   : > { %v12986_v32 = vmov 920167782   ;;  %v1044_v22 = vshrl.u32 %v1026_v15, %v1042_v59  ;;  %v8330_v41 = vor.u32 %v1404_v40, %v1403_v57  ;;  %v8332_v60 = vor.u32 %v1407_v1, %v1406_v63 }
 0x192   : > { %v1413_v49 = vshrl.u32 %v12986_v32, %v8307_v43  ;;  %v1409_v7 = vshll.u32 %v12975_v26, %v1400_v24  ;;  %v12987_v35 = vand.u32 2147483647, %v7535_v28  ;;  %v1048_v45 = vshll.u32 %v1047_v10, 23 }
 0x193   : > { %v1341_v2 = vsel %vm1339_vm7, %v1340_v17, %v8261_v51  ;;  %v6628_v15 = vadd.s32 4294967169, %v1598_v13  ;;  %v1337_v59 = vmul.u32 %v8250_v61, %v1321_v19  ;;  %v1415_v57 = vshll.u32 %v12986_v32, %v1400_v24 }
 0x194   : > { %vm8337_vm14 = vcmp.le.f32.partialorder %v12987_v35, 0.7853982  ;;  %v1414_v16 = vor.u32 %v1413_v49, %v1412_v56  ;;  %v1411_v40 = vor.u32 %v1410_v14, %v1409_v7  ;;  %v1416_v63 = vshrl.u32 %v12964_v47, %v8307_v43 }
 0x195   : > { %v6614_v35 = vadd.s32 4294967294, %v1246_v5  ;;  %v6609_v1 = vmin.u32 %v1140_v55, %v8305_v31  ;;  %v1394_v39 = vor.u32 8388608, %v1393_v6  ;;  %vm1418_vm1 = vcmp.lt.s32.totalorder %v8325_v52, 1 }
 0x196   : > { %v8351_v10 = vadd.s32 %v1341_v2, %v1337_v59  ;;  %v1417_v20 = vor.u32 %v1416_v63, %v1415_v57  ;;  %vm1421_vm2 = vcmp.lt.s32.totalorder %v8325_v52, 4  ;;  %v1426_v7 = vsel %vm1418_vm1, %v8330_v41, %v8332_v60 }
 0x197   : > { %v1049_v61 = vor.u32 4788187, %v1048_v45  ;;  %vm1420_vm3 = vcmp.lt.s32.totalorder %v8325_v52, 3  ;;  %v1427_v51 = vsel %vm1421_vm2, %v1414_v16, 920167782  ;;  %v1604_v24 = vadd.s32 1, %v6628_v15 }
 0x198   : > { %vm1419_vm5 = vcmp.lt.s32.totalorder %v8325_v52, 2  ;;  %v1428_v2 = vsel %vm1420_vm3, %v1411_v40, %v1427_v51  ;;  %v1430_v5 = vsel %vm1418_vm1, %v8332_v60, %v1411_v40  ;;  %v1431_v19 = vsel %vm1421_vm2, %v1417_v20, 1326507024 }
 0x199   : > { %v1142_v6 = vclz %v6609_v1  ;;  %v1429_v17 = vsel %vm1419_vm5, %v1426_v7, %v1428_v2  ;;  %v1432_v13 = vsel %vm1420_vm3, %v1414_v16, %v1431_v19  ;;  %v8373_v14 = vshll.u32 %v1394_v39, 8 }
 0x19a   : > { %7085 = vcosq.f32 %v8287_v62  ;;  %v8377_v55 = vand.u32 3, %v8274_v23  ;;  %vm6615_vm4 = vcmp.lt.s32.totalorder %v6614_v35, 0  ;;  %v1343_v56 = vadd.s32 536870912, %v8351_v10 }
 0x19b   : > { %v1045_v49 = vor.u32 %v1044_v22, %v1043_v54  ;;  %v1433_v20 = vsel %vm1419_vm5, %v1430_v5, %v1432_v13  ;;  %v8383_v45 = vmul.u32.u64.low %v8373_v14, %v1429_v17  ;;  %v8384_v15 = vmul.u32.u64.high %v8373_v14, %v1429_v17, %v8383_v45 }
 0x19c   : > { %12990 = vst [vmem:[#allocation28_spill] sm:$0xff] %v8377_v55  ;;  %v12991_v39 = vxor.u32 2147483648, %v8264_v58  ;;  %v1050_v23 = vand.u32 2147483647, %v1049_v61  ;;  %v1059_v59 = vsel %vm8337_vm14, 0, %v8295_v30  ;;  %vm1605_vm9 = vcmp.gt.s32.totalorder %v1604_v24, 0 }
 0x19d   : > { %v8395_v54 = vsel %vm6615_vm4, 0, %v6614_v35  ;;  %v6610_v22 = vadd.s32 4294967294, %v1142_v6  ;;  %v12737_v57 = vand.u32 2147483647, %v7662_v27  ;;  %v1606_v63 = vsel %vm1605_vm9, %v1604_v24, 0 }
 0x19e   : > { %v951_v16 = vsel %vm868_vm6, %v12991_v39, %v8264_v58  ;;  %v8398_v1 = vshrl.u32 %v1343_v56, 30  ;;  %v8401_v7 = vmul.u32.u64.low %v8373_v14, %v1433_v20  ;;  %v8402_v51 = vmul.u32.u64.high %v8373_v14, %v1433_v20, %v8401_v7 }
 0x19f   : > { %v1608_v2 = vand.u32 31, %v1606_v63  ;;  %7087 = vsinq.f32 %v8287_v62  ;;  %v8408_v58 = vsel %vm8197_vm8, %v7531_v21, %v951_v16  ;;  %v1052_v30 = vcvt.s32.f32 %v1045_v49 }
 0x1a0   : > { %v1063_v35 = vadd.s32 3, %v1059_v59  ;;  %v1234_v61 = vadd.s32 %v8038_v3, %v8035_v48  ;;  %v1402_v24 = vshrl.u32 %v12968_v38, %v8307_v43  ;;  %v1423_v5 = vsel %vm1421_vm2, %v1411_v40, 2102212464  ;;  %v8429_v43 = vpop.f32.mrb[8].mxu0 }
 0x1a1   : > { %v8416_v19 = vsub.s32 32, %v1608_v2  ;;  %v8418_v6 = vmul.f32 %v1052_v30, %v1050_v23  ;;  %v1250_v62 = vsub.s32 32, %v8395_v54  ;;  %v1254_v33 = vsub.s32 4294967266, %v8395_v54  ;;  %12992 = vst [vmem:[#allocation29_spill] sm:$0xff] %v8429_v43 }
 0x1a2   : > { %v1264_v17 = vsub.s32 4, %v8187_v9  ;;  %vm6611_vm6 = vcmp.lt.s32.totalorder %v6610_v22, 0  ;;  %v1345_v13 = vshll.u32 %v8398_v1, 30  ;;  %v1422_v48 = vsel %vm1418_vm1, %v1402_v24, %v8330_v41 }
 0x1a3   : > { %v1601_v3 = vand.u32 8388607, %v12737_v57  ;;  %v1424_v40 = vsel %vm1420_vm3, %v8332_v60, %v1423_v5  ;;  %v1444_v56 = vadd.s32 1, %v8384_v15  ;;  %v1612_v49 = vshrl.u32 %v12973_v44, %v8416_v19 }
 0x1a4   : > { %v1615_v20 = vshrl.u32 %v12975_v26, %v8416_v19  ;;  %v8439_v39 = vpop.eup %7085  ;;  %vm1180_vm8 = vcmp.lt.s32.totalorder %v7537_v29, 0  ;;  %v8442_v41 = vshrl.u32 %v1606_v63, 5  ;;  %v1618_v16 = vshrl.u32 %v12974_v11, %v8416_v19 }
 0x1a5   : > { %12993 = vst [vmem:[#allocation30_spill] sm:$0xff] %v8439_v39  ;;  %v1620_v23 = vshll.u32 %v12974_v11, %v1608_v2  ;;  %v1621_v60 = vshrl.u32 %v12986_v32, %v8416_v19  ;;  %v1611_v59 = vshll.u32 %v12968_v38, %v1608_v2  ;;  %v1614_v7 = vshll.u32 %v12973_v44, %v1608_v2 }
 0x1a6   : > { %v1623_v30 = vshll.u32 %v12986_v32, %v1608_v2  ;;  %v1624_v24 = vshrl.u32 %v12964_v47, %v8416_v19  ;;  %v8455_v63 = vsub.s32 %v8351_v10, %v1345_v13  ;;  %vm1443_vm10 = vc.u32 %v8402_v51, %v8383_v45 }
 0x1a7   : > { %v1617_v5 = vshll.u32 %v12975_v26, %v1608_v2  ;;  %v1622_v57 = vor.u32 %v1621_v60, %v1620_v23  ;;  %v12994_v55 = vand.u32 2147483647, %v7537_v29  ;;  %v1425_v39 = vsel %vm1419_vm5, %v1422_v48, %v1424_v40 }
 0x1a8   : > { %v8468_v37 = vor.u32 %v1612_v49, %v1611_v59  ;;  %v8470_v43 = vor.u32 %v1615_v20, %v1614_v7  ;;  %v1625_v10 = vor.u32 %v1624_v24, %v1623_v30  ;;  %v1054_v13 = vxor.u32 2147483648, %v8418_v6 }
 0x1a9   : > { %vm8462_vm11 = vcmp.le.f32.partialorder %v12994_v55, 0.7853982  ;;  %v1252_v42 = vshrl.u32 %v1234_v61, %v1250_v62  ;;  %v1255_v27 = vadd.s32 127, %v1254_v33  ;;  %v1619_v2 = vor.u32 %v1618_v16, %v1617_v5  ;;  %v8473_v23 = vpop.eup %7087 }
 0x1aa   : > { %12997 = vst [vmem:[#allocation31_spill] sm:$0xff] %v8473_v23  ;;  %v8476_v55 = vsel %vm6611_vm6, 0, %v6610_v22  ;;  %v1445_v60 = vsel %vm1443_vm10, %v1444_v56, %v8384_v15  ;;  %v1602_v12 = vor.u32 8388608, %v1601_v3  ;;  %vm1629_vm13 = vcmp.lt.s32.totalorder %v8442_v41, 4 }
 0x1ab   : > { %v1441_v52 = vmul.u32 %v8373_v14, %v1425_v39  ;;  %vm1626_vm15 = vcmp.lt.s32.totalorder %v8442_v41, 1  ;;  %v1635_v48 = vsel %vm1629_vm13, %v1622_v57, 920167782  ;;  %v1639_v61 = vsel %vm1629_vm13, %v1625_v10, 1326507024 }
 0x1ac   : > { %v1348_v62 = vsub.s32 0, %v8455_v63  ;;  %vm1628_vm0 = vcmp.lt.s32.totalorder %v8442_v41, 3  ;;  %v1634_v15 = vsel %vm1626_vm15, %v8468_v37, %v8470_v43  ;;  %v1493_v22 = vand.u32 2139095040, %v7723_v46 }
 0x1ad   : > { %v8493_v14 = vadd.s32 %v1445_v60, %v1441_v52  ;;  %v1636_v33 = vsel %vm1628_vm0, %v1619_v2, %v1635_v48  ;;  %v1638_v3 = vsel %vm1626_vm15, %v8470_v43, %v1619_v2  ;;  %v1640_v40 = vsel %vm1628_vm0, %v1622_v57, %v1639_v61 }
 0x1ae   : > { %v8502_v56 = vand.u32 3, %v1063_v35  ;;  %v1256_v49 = vshll.u32 %v1255_v27, 23  ;;  %v1265_v20 = vsel %vm1180_vm8, %v1264_v17, %v8187_v9  ;;  %vm1627_vm7 = vcmp.lt.s32.totalorder %v8442_v41, 2 }
 0x1af   : > { %7089 = vcosq.f32 %v8408_v58  ;;  %v1251_v39 = vshll.u32 %v8234_v34, %v8395_v54  ;;  %v1150_v16 = vsub.s32 4294967266, %v8476_v55  ;;  %v1637_v59 = vsel %vm1627_vm7, %v1634_v15, %v1636_v33  ;;  %v12999_v54 = vld [vmem:[#allocation11_spill] sm:$0xff] }
 0x1b0   : > { %12998 = vst [vmem:[#allocation32_spill] sm:$0xff] %v8502_v56  ;;  %v6617_v57 = vmin.u32 %v1348_v62, %v8455_v63  ;;  %v1641_v27 = vsel %vm1627_vm7, %v1638_v3, %v1640_v40  ;;  %v8517_v35 = vshll.u32 %v1602_v12, 8  ;;  %v1494_v9 = vshrl.u32 %v1493_v22, 23 }
 0x1b1   : > { %v1055_v17 = vsel %vm972_vm12, %v1054_v13, %v8418_v6  ;;  %v1253_v7 = vor.u32 %v1252_v42, %v1251_v39  ;;  %v1267_v34 = vsel %vm8462_vm11, 0, %v1265_v20  ;;  %vm1076_vm1 = vcmp.lt.s32.totalorder %v12999_v54, 0  ;;  %v13000_v42 = vld [vmem:[#allocation16_spill] sm:$0xff] }
 0x1b2   : > { %v1447_v30 = vadd.s32 536870912, %v8493_v14  ;;  %v1257_v24 = vor.u32 4788187, %v1256_v49  ;;  %v8527_v5 = vmul.u32.u64.low %v8517_v35, %v1637_v59  ;;  %v8528_v10 = vmul.u32.u64.high %v8517_v35, %v1637_v59, %v8527_v5 }
 0x1b3   : > { %v6624_v12 = vadd.s32 4294967169, %v1494_v9  ;;  %7091 = vsinq.f32 %v8408_v58  ;;  %v8533_v60 = vmul.u32.u64.low %v8517_v35, %v1641_v27  ;;  %v8534_v6 = vmul.u32.u64.high %v8517_v35, %v1641_v27, %v8533_v60 }
 0x1b4   : > { %v1701_v13 = vand.u32 2139095040, %v13000_v42  ;;  %v1146_v52 = vsub.s32 32, %v8476_v55  ;;  %v1151_v48 = vadd.s32 127, %v1150_v16  ;;  %v1350_v61 = vclz %v6617_v57 }
 0x1b5   : > { %v1500_v62 = vadd.s32 1, %v6624_v12  ;;  %v8541_v15 = vsel %vm8337_vm14, %v7535_v28, %v1055_v17  ;;  %v8543_v22 = vadd.s32 3, %v1267_v34  ;;  %v1130_v58 = vadd.s32 %v8112_v25, %v8119_v4  ;;  %v8555_v4 = vpop.f32.mrb[8].mxu1 }
 0x1b6   : > { %v8547_v33 = vshrl.u32 %v1447_v30, 30  ;;  %v1258_v3 = vand.u32 2147483647, %v1257_v24  ;;  %v1260_v40 = vcvt.s32.f32 %v1253_v7  ;;  %v1160_v49 = vsub.s32 4, %v8248_v0  ;;  %13001 = vst [vmem:[#allocation33_spill] sm:$0xff] %v8555_v4 }
 0x1b7   : > { %v1631_v20 = vsel %vm1629_vm13, %v1619_v2, 2102212464  ;;  %v1610_v39 = vshrl.u32 %v12968_v38, %v8416_v19  ;;  %v12749_v18 = vand.u32 2147483647, %v7723_v46  ;;  %vm1501_vm12 = vcmp.gt.s32.totalorder %v1500_v62, 0 }
 0x1b8   : > { %v1702_v16 = vshrl.u32 %v1701_v13, 23  ;;  %v1148_v59 = vshrl.u32 %v1130_v58, %v1146_v52  ;;  %v1152_v57 = vshll.u32 %v1151_v48, 23  ;;  %v6618_v27 = vadd.s32 4294967294, %v1350_v61 }
 0x1b9   : > { %v1502_v25 = vsel %vm1501_vm12, %v1500_v62, 0  ;;  %v8557_v9 = vpop.eup %7089  ;;  %v1449_v17 = vshll.u32 %v8547_v33, 30  ;;  %v1630_v2 = vsel %vm1626_vm15, %v1610_v39, %v8468_v37  ;;  %v1632_v19 = vsel %vm1628_vm0, %v8470_v43, %v1631_v20 }
 0x1ba   : > { %13002 = vst [vmem:[#allocation34_spill] sm:$0xff] %v8557_v9  ;;  %v1504_v7 = vand.u32 31, %v1502_v25  ;;  %v8566_v34 = vmul.f32 %v1260_v40, %v1258_v3  ;;  %v1147_v30 = vshll.u32 %v8305_v31, %v8476_v55  ;;  %v8573_v24 = vsel %vm1076_vm1, %v1160_v49, %v8248_v0 }
 0x1bb   : > { %v1652_v12 = vadd.s32 1, %v8528_v10  ;;  %v8578_v37 = vadd.s32 %v8260_v50, %v8257_v53  ;;  %vm1651_vm14 = vc.u32 %v8534_v6, %v8527_v5  ;;  %v6632_v60 = vadd.s32 4294967169, %v1702_v16 }
 0x1bc   : > { %v1505_v43 = vsub.s32 32, %v1504_v7  ;;  %v1149_v13 = vor.u32 %v1148_v59, %v1147_v30  ;;  %v1153_v52 = vor.u32 4788187, %v1152_v57  ;;  %vm6619_vm2 = vcmp.lt.s32.totalorder %v6618_v27, 0 }
 0x1bd   : > { %v1633_v31 = vsel %vm1627_vm7, %v1630_v2, %v1632_v19  ;;  %v8584_v55 = vpop.eup %7091  ;;  %v8587_v0 = vsub.s32 %v8493_v14, %v1449_v17  ;;  %v1497_v53 = vand.u32 8388607, %v12749_v18  ;;  %v1653_v61 = vsel %vm1651_vm14, %v1652_v12, %v8528_v10 }
 0x1be   : > { %13003 = vst [vmem:[#allocation35_spill] sm:$0xff] %v8584_v55  ;;  %v1508_v50 = vshrl.u32 %v12973_v44, %v1505_v43  ;;  %v1511_v48 = vshrl.u32 %v12975_v26, %v1505_v43  ;;  %v1507_v62 = vshll.u32 %v12968_v38, %v1504_v7  ;;  %v1510_v58 = vshll.u32 %v12973_v44, %v1504_v7 }
 0x1bf   : > { %v1514_v41 = vshrl.u32 %v12974_v11, %v1505_v43  ;;  %v1649_v3 = vmul.u32 %v8517_v35, %v1633_v31  ;;  %v8598_v40 = vshrl.u32 %v1502_v25, 5  ;;  %v1513_v14 = vshll.u32 %v12975_v26, %v1504_v7 }
 0x1c0   : > { %v1708_v49 = vadd.s32 1, %v6632_v60  ;;  %v1509_v20 = vor.u32 %v1508_v50, %v1507_v62  ;;  %v1512_v39 = vor.u32 %v1511_v48, %v1510_v58  ;;  %v1516_v16 = vshll.u32 %v12974_v11, %v1504_v7 }
 0x1c1   : > { %v1517_v59 = vshrl.u32 %v12986_v32, %v1505_v43  ;;  %v8603_v10 = vadd.s32 %v1653_v61, %v1649_v3  ;;  %v1498_v57 = vor.u32 8388608, %v1497_v53  ;;  %v1519_v17 = vshll.u32 %v12986_v32, %v1504_v7 }
 0x1c2   : > { %v1520_v2 = vshrl.u32 %v12964_v47, %v1505_v43  ;;  %v1154_v19 = vand.u32 2147483647, %v1153_v52  ;;  %v1156_v35 = vcvt.s32.f32 %v1149_v13  ;;  %v1515_v25 = vor.u32 %v1514_v41, %v1513_v14 }
 0x1c3   : > { %v1518_v30 = vor.u32 %v1517_v59, %v1516_v16  ;;  %v8608_v12 = vsel %vm6619_vm2, 0, %v6618_v27  ;;  %vm1522_vm3 = vcmp.lt.s32.totalorder %v8598_v40, 1  ;;  %vm1709_vm5 = vcmp.gt.s32.totalorder %v1708_v49, 0 }
 0x1c4   : > { %v1521_v60 = vor.u32 %v1520_v2, %v1519_v17  ;;  %v1452_v31 = vsub.s32 0, %v8587_v0  ;;  %vm1525_vm4 = vcmp.lt.s32.totalorder %v8598_v40, 4  ;;  %v1530_v7 = vsel %vm1522_vm3, %v1509_v20, %v1512_v39 }
 0x1c5   : > { %v12748_v53 = vand.u32 2147483647, %v13000_v42  ;;  %v1655_v13 = vadd.s32 536870912, %v8603_v10  ;;  %vm1524_vm9 = vcmp.lt.s32.totalorder %v8598_v40, 3  ;;  %v1531_v27 = vsel %vm1525_vm4, %v1518_v30, 920167782 }
 0x1c6   : > { %v8620_v52 = vshll.u32 %v1498_v57, 8  ;;  %vm1523_vm6 = vcmp.lt.s32.totalorder %v8598_v40, 2  ;;  %v1532_v50 = vsel %vm1524_vm9, %v1515_v25, %v1531_v27  ;;  %v1534_v48 = vsel %vm1522_vm3, %v1512_v39, %v1515_v25 }
 0x1c7   : > { %v1710_v61 = vsel %vm1709_vm5, %v1708_v49, 0  ;;  %v1354_v62 = vsub.s32 32, %v8608_v12  ;;  %v1358_v58 = vsub.s32 4294967266, %v8608_v12  ;;  %v1533_v41 = vsel %vm1523_vm6, %v1530_v7, %v1532_v50 }
 0x1c8   : > { %v1535_v3 = vsel %vm1525_vm4, %v1521_v60, 1326507024  ;;  %v6621_v14 = vmin.u32 %v1452_v31, %v8587_v0  ;;  %v8637_v59 = vmul.u32.u64.low %v8620_v52, %v1533_v41  ;;  %v8638_v57 = vmul.u32.u64.high %v8620_v52, %v1533_v41, %v8637_v59 }
 0x1c9   : > { %v1536_v16 = vsel %vm1524_vm9, %v1518_v30, %v1535_v3  ;;  %v1527_v49 = vsel %vm1525_vm4, %v1515_v25, 2102212464  ;;  %v1705_v2 = vand.u32 8388607, %v12748_v53  ;;  %v1712_v60 = vand.u32 31, %v1710_v61 }
 0x1ca   : > { %v1537_v17 = vsel %vm1523_vm6, %v1534_v48, %v1536_v16  ;;  %v8647_v7 = vmul.f32 %v1156_v35, %v1154_v19  ;;  %v8650_v30 = vshrl.u32 %v1655_v13, 30  ;;  %v1506_v27 = vshrl.u32 %v12968_v38, %v1505_v43  ;;  %v8664_v13 = vpop.f32.mrb[9].mxu0 }
 0x1cb   : > { %v8656_v25 = vmul.u32.u64.low %v8620_v52, %v1537_v17  ;;  %v8657_v41 = vmul.u32.u64.high %v8620_v52, %v1537_v17, %v8656_v25  ;;  %v1713_v48 = vsub.s32 32, %v1712_v60  ;;  %v1356_v3 = vshrl.u32 %v8578_v37, %v1354_v62  ;;  %13004 = vst [vmem:[#allocation36_spill] sm:$0xff] %v8664_v13 }
 0x1cc   : > { %v1359_v16 = vadd.s32 127, %v1358_v58  ;;  %v1526_v19 = vsel %vm1522_vm3, %v1506_v27, %v1509_v20  ;;  %v1528_v35 = vsel %vm1524_vm9, %v1512_v39, %v1527_v49  ;;  %v1454_v43 = vclz %v6621_v14 }
 0x1cd   : > { %v1706_v53 = vor.u32 8388608, %v1705_v2  ;;  %v1716_v18 = vshrl.u32 %v12973_v44, %v1713_v48  ;;  %v1719_v50 = vshrl.u32 %v12975_v26, %v1713_v48  ;;  %v1657_v17 = vshll.u32 %v8650_v30, 30 }
 0x1ce   : > { %v1715_v25 = vshll.u32 %v12968_v38, %v1712_v60  ;;  %v1718_v37 = vshll.u32 %v12973_v44, %v1712_v60  ;;  %v1722_v62 = vshrl.u32 %v12974_v11, %v1713_v48  ;;  %v1529_v20 = vsel %vm1523_vm6, %v1526_v19, %v1528_v35 }
 0x1cf   : > { %v1548_v39 = vadd.s32 1, %v8638_v57  ;;  %v1711_v58 = vshrl.u32 %v1710_v61, 5  ;;  %v1721_v14 = vshll.u32 %v12975_v26, %v1712_v60  ;;  %v13005_v49 = vand.u32 2147483647, %v12999_v54 }
 0x1d0   : > { %vm1284_vm13 = vcmp.lt.s32.totalorder %v7545_v36, 0  ;;  %vm1547_vm15 = vc.u32 %v8657_v41, %v8637_v59  ;;  %v1717_v27 = vor.u32 %v1716_v18, %v1715_v25  ;;  %v1720_v31 = vor.u32 %v1719_v50, %v1718_v37 }
 0x1d1   : > { %vm8678_vm10 = vcmp.le.f32.partialorder %v13005_v49, 0.7853982  ;;  %v1724_v40 = vshll.u32 %v12974_v11, %v1712_v60  ;;  %v1723_v19 = vor.u32 %v1722_v62, %v1721_v14  ;;  %v1725_v61 = vshrl.u32 %v12986_v32, %v1713_v48 }
 0x1d2   : > { %v1727_v35 = vshll.u32 %v12986_v32, %v1712_v60  ;;  %v1728_v56 = vshrl.u32 %v12964_v47, %v1713_v48  ;;  %v1360_v49 = vshll.u32 %v1359_v16, 23  ;;  %v6622_v28 = vadd.s32 4294967294, %v1454_v43 }
 0x1d3   : > { %v8690_v9 = vsub.s32 %v8603_v10, %v1657_v17  ;;  %v1545_v55 = vmul.u32 %v8620_v52, %v1529_v20  ;;  %v1549_v23 = vsel %vm1547_vm15, %v1548_v39, %v8638_v57  ;;  %v1726_v18 = vor.u32 %v1725_v61, %v1724_v40 }
 0x1d4   : > { %v1729_v50 = vor.u32 %v1728_v56, %v1727_v35  ;;  %vm1730_vm0 = vcmp.lt.s32.totalorder %v1711_v58, 1  ;;  %v13008_v25 = vand.u32 2147483647, %v7545_v36  ;;  %v1714_v60 = vshrl.u32 %v12968_v38, %v1713_v48 }
 0x1d5   : > { %vm1733_vm12 = vcmp.lt.s32.totalorder %v1711_v58, 4  ;;  %v1738_v16 = vsel %vm1730_vm0, %v1717_v27, %v1720_v31  ;;  %v1746_v43 = vshll.u32 %v1706_v53, 8  ;;  %vm1732_vm14 = vcmp.lt.s32.totalorder %v1711_v58, 3 }
 0x1d6   : > { %vm8696_vm7 = vcmp.le.f32.partialorder %v13008_v25, 0.7853982  ;;  %v1735_v10 = vsel %vm1733_vm12, %v1723_v19, 2102212464  ;;  %v1739_v17 = vsel %vm1733_vm12, %v1726_v18, 920167782  ;;  %v1742_v52 = vsel %vm1730_vm0, %v1720_v31, %v1723_v19 }
 0x1d7   : > { %v8701_v62 = vadd.s32 %v1549_v23, %v1545_v55  ;;  %vm1731_vm2 = vcmp.lt.s32.totalorder %v1711_v58, 2  ;;  %v1740_v56 = vsel %vm1732_vm14, %v1723_v19, %v1739_v17  ;;  %v1743_v57 = vsel %vm1733_vm12, %v1729_v50, 1326507024 }
 0x1d8   : > { %v1660_v20 = vsub.s32 0, %v8690_v9  ;;  %v1734_v39 = vsel %vm1730_vm0, %v1714_v60, %v1717_v27  ;;  %v1741_v14 = vsel %vm1731_vm2, %v1738_v16, %v1740_v56  ;;  %v1744_v40 = vsel %vm1732_vm14, %v1726_v18, %v1743_v57 }
 0x1d9   : > { %v1736_v61 = vsel %vm1732_vm14, %v1720_v31, %v1735_v10  ;;  %v1745_v48 = vsel %vm1731_vm2, %v1742_v52, %v1744_v40  ;;  %v8706_v35 = vmul.u32.u64.low %v1746_v43, %v1741_v14  ;;  %v8707_v53 = vmul.u32.u64.high %v1746_v43, %v1741_v14, %v8706_v35 }
 0x1da   : > { %v1262_v25 = vxor.u32 2147483648, %v8566_v34  ;;  %v1163_v23 = vsel %vm8678_vm10, 0, %v8573_v24  ;;  %v1361_v55 = vor.u32 4788187, %v1360_v49  ;;  %v13011_v27 = vsub.s32 4, %v8398_v1  ;;  %v13013_v49 = vld [vmem:[#allocation17_spill] sm:$0xff] }
 0x1db   : > { %v13012_v31 = vshll.u32 %v8455_v63, %v8608_v12  ;;  %v1551_v50 = vadd.s32 536870912, %v8701_v62  ;;  %v8723_v60 = vmul.u32.u64.low %v1746_v43, %v1745_v48  ;;  %v8724_v16 = vmul.u32.u64.high %v1746_v43, %v1745_v48, %v8723_v60 }
 0x1dc   : > { %v1369_v19 = vsel %vm1284_vm13, %v13011_v27, %v8398_v1  ;;  %vm6623_vm3 = vcmp.lt.s32.totalorder %v6622_v28, 0  ;;  %v6629_v10 = vmin.u32 %v1660_v20, %v8690_v9  ;;  %v1737_v24 = vsel %vm1731_vm2, %v1734_v39, %v1736_v61 }
 0x1dd   : > { %v1357_v18 = vor.u32 %v1356_v3, %v13012_v31  ;;  %v1805_v17 = vand.u32 2139095040, %v13013_v49  ;;  %v8730_v52 = vand.u32 3, %v8543_v22  ;;  %v1158_v1 = vxor.u32 2147483648, %v8647_v7 }
 0x1de   : > { %v1167_v56 = vadd.s32 3, %v1163_v23  ;;  %vm1388_vm5 = vcmp.lt.s32.totalorder %v7573_v8, 0  ;;  %v1756_v63 = vadd.s32 1, %v8707_v53  ;;  %v1263_v12 = vsel %vm1180_vm8, %v1262_v25, %v8566_v34 }
 0x1df   : > { %13014 = vst [vmem:[#allocation37_spill] sm:$0xff] %v8730_v52  ;;  %v1362_v3 = vand.u32 2147483647, %v1361_v55  ;;  %v1371_v58 = vsel %vm8696_vm7, 0, %v1369_v19  ;;  %v1806_v57 = vshrl.u32 %v1805_v17, 23  ;;  %v8740_v20 = vsel %vm6623_vm3, 0, %v6622_v28 }
 0x1e0   : > { %v8742_v22 = vshrl.u32 %v1551_v50, 30  ;;  %v1753_v39 = vmul.u32 %v1746_v43, %v1737_v24  ;;  %vm1755_vm4 = vc.u32 %v8724_v16, %v8706_v35  ;;  %v1364_v14 = vcvt.s32.f32 %v1357_v18 }
 0x1e1   : > { %v1662_v40 = vclz %v6629_v10  ;;  %v1757_v61 = vsel %vm1755_vm4, %v1756_v63, %v8707_v53  ;;  %v6636_v48 = vadd.s32 4294967169, %v1806_v57  ;;  %7093 = vcosq.f32 %v8541_v15 }
 0x1e2   : > { %v1266_v34 = vsel %vm8462_vm11, %v7537_v29, %v1263_v12  ;;  %v1159_v28 = vsel %vm1076_vm1, %v1158_v1, %v8647_v7  ;;  %v8754_v25 = vadd.s32 %v1757_v61, %v1753_v39  ;;  %v1365_v43 = vmul.f32 %v1364_v14, %v1362_v3  ;;  %v8787_v39 = vpop.f32.mrb[9].mxu1 }
 0x1e3   : > { %v1462_v23 = vsub.s32 4294967266, %v8740_v20  ;;  %v1472_v55 = vsub.s32 4, %v8547_v33  ;;  %v1812_v27 = vadd.s32 1, %v6636_v48  ;;  %7095 = vsinq.f32 %v8541_v15  ;;  %13021 = vst [vmem:[#allocation40_spill] sm:$0xff] %v8787_v39 }
 0x1e4   : > { %v1375_v53 = vadd.s32 3, %v1371_v58  ;;  %v13015_v19 = vand.u32 2147483647, %v7573_v8  ;;  %v1553_v31 = vshll.u32 %v8742_v22, 30  ;;  %7097 = vcosq.f32 %v1266_v34  ;;  %v13020_v58 = vld [vmem:[#allocation18_spill] sm:$0xff] }
 0x1e5   : > { %v8766_v7 = vand.u32 3, %v1167_v56  ;;  %v6630_v18 = vadd.s32 4294967294, %v1662_v40  ;;  %vm1813_vm11 = vcmp.gt.s32.totalorder %v1812_v27, 0  ;;  %7099 = vsinq.f32 %v1266_v34 }
 0x1e6   : > { %vm8761_vm8 = vcmp.le.f32.partialorder %v13015_v19, 0.7853982  ;;  %v1162_v50 = vsel %vm8678_vm10, %v12999_v54, %v1159_v28  ;;  %v1759_v15 = vadd.s32 536870912, %v8754_v25  ;;  %v1814_v60 = vsel %vm1813_vm11, %v1812_v27, 0 }
 0x1e7   : > { %13018 = vst [vmem:[#allocation38_spill] sm:$0xff] %v8766_v7  ;;  %v1366_v10 = vxor.u32 2147483648, %v1365_v43  ;;  %v1458_v24 = vsub.s32 32, %v8740_v20  ;;  %v1463_v17 = vadd.s32 127, %v1462_v23  ;;  %v8776_v1 = vsel %vm1388_vm5, %v1472_v55, %v8547_v33 }
 0x1e8   : > { %v8778_v56 = vand.u32 3, %v1375_v53  ;;  %v8781_v63 = vsub.s32 %v8701_v62, %v1553_v31  ;;  %v12756_v2 = vand.u32 2147483647, %v13013_v49  ;;  %v1816_v12 = vand.u32 31, %v1814_v60 }
 0x1e9   : > { %7101 = vcosq.f32 %v1162_v50  ;;  %v1442_v3 = vadd.s32 %v8383_v45, %v8402_v51  ;;  %vm6631_vm1 = vcmp.lt.s32.totalorder %v6630_v18, 0  ;;  %v2013_v57 = vand.u32 2139095040, %v13020_v58 }
 0x1ea   : > { %13019 = vst [vmem:[#allocation39_spill] sm:$0xff] %v8778_v56  ;;  %7103 = vsinq.f32 %v1162_v50  ;;  %v8792_v14 = vshrl.u32 %v1759_v15, 30  ;;  %v1817_v62 = vsub.s32 32, %v1816_v12  ;;  %v8796_v40 = vsel %vm1284_vm13, %v1366_v10, %v1365_v43 }
 0x1eb   : > { %v1459_v45 = vshll.u32 %v8587_v0, %v8740_v20  ;;  %v1460_v51 = vshrl.u32 %v1442_v3, %v1458_v24  ;;  %v1464_v61 = vshll.u32 %v1463_v17, 23  ;;  %v8800_v48 = vpop.eup %7093  ;;  %v8802_v34 = vsel %vm6631_vm1, 0, %v6630_v18 }
 0x1ec   : > { %13022 = vst [vmem:[#allocation41_spill] sm:$0xff] %v8800_v48  ;;  %v1556_v28 = vsub.s32 0, %v8781_v63  ;;  %v1809_v23 = vand.u32 8388607, %v12756_v2  ;;  %v1820_v55 = vshrl.u32 %v12973_v44, %v1817_v62  ;;  %v1819_v27 = vshll.u32 %v12968_v38, %v1816_v12 }
 0x1ed   : > { %v1822_v43 = vshll.u32 %v12973_v44, %v1816_v12  ;;  %v1823_v53 = vshrl.u32 %v12975_v26, %v1817_v62  ;;  %v2014_v0 = vshrl.u32 %v2013_v57, 23  ;;  %v8811_v20 = vpop.eup %7095  ;;  %v1761_v19 = vshll.u32 %v8792_v14, 30 }
 0x1ee   : > { %13023 = vst [vmem:[#allocation42_spill] sm:$0xff] %v8811_v20  ;;  %v8814_v31 = vshrl.u32 %v1814_v60, 5  ;;  %v1825_v18 = vshll.u32 %v12975_v26, %v1816_v12  ;;  %v1826_v50 = vshrl.u32 %v12974_v11, %v1817_v62  ;;  %v8818_v15 = vpop.eup %7097  ;;  %v1821_v10 = vor.u32 %v1820_v55, %v1819_v27 }
 0x1ef   : > { %13024 = vst [vmem:[#allocation43_spill] sm:$0xff] %v8818_v15  ;;  %v1824_v24 = vor.u32 %v1823_v53, %v1822_v43  ;;  %v1828_v17 = vshll.u32 %v12974_v11, %v1816_v12  ;;  %v1829_v3 = vshrl.u32 %v12986_v32, %v1817_v62  ;;  %v8822_v2 = vpop.eup %7099  ;;  %v1810_v57 = vor.u32 8388608, %v1809_v23 }
 0x1f0   : > { %13025 = vst [vmem:[#allocation44_spill] sm:$0xff] %v8822_v2  ;;  %v1827_v33 = vor.u32 %v1826_v50, %v1825_v18  ;;  %v1831_v52 = vshll.u32 %v12986_v32, %v1816_v12  ;;  %v1832_v60 = vshrl.u32 %v12964_v47, %v1817_v62  ;;  %v1465_v29 = vor.u32 4788187, %v1464_v61 }
 0x1f1   : > { %v6625_v48 = vmin.u32 %v1556_v28, %v8781_v63  ;;  %v1830_v20 = vor.u32 %v1829_v3, %v1828_v17  ;;  %v6644_v56 = vadd.s32 4294967169, %v2014_v0  ;;  %v8828_v55 = vsub.s32 %v8754_v25, %v1761_v19 }
 0x1f2   : > { %v1833_v27 = vor.u32 %v1832_v60, %v1831_v52  ;;  %vm1834_vm9 = vcmp.lt.s32.totalorder %v8814_v31, 1  ;;  %vm1837_vm6 = vcmp.lt.s32.totalorder %v8814_v31, 4  ;;  %v1670_v23 = vsub.s32 4294967266, %v8802_v34 }
 0x1f3   : > { %v8832_v43 = vpop.eup %7101  ;;  %vm1836_vm10 = vcmp.lt.s32.totalorder %v8814_v31, 3  ;;  %v1842_v12 = vsel %vm1834_vm9, %v1821_v10, %v1824_v24  ;;  %v1843_v61 = vsel %vm1837_vm6, %v1830_v20, 920167782  ;;  %vm1835_vm13 = vcmp.lt.s32.totalorder %v8814_v31, 2 }
 0x1f4   : > { %13026 = vst [vmem:[#allocation45_spill] sm:$0xff] %v8832_v43  ;;  %v8840_v28 = vpop.eup %7103  ;;  %v1844_v52 = vsel %vm1836_vm10, %v1827_v33, %v1843_v61  ;;  %v8845_v25 = vshll.u32 %v1810_v57, 8  ;;  %v1846_v19 = vsel %vm1834_vm9, %v1824_v24, %v1827_v33  ;;  %v1847_v18 = vsel %vm1837_vm6, %v1833_v27, 1326507024 }
 0x1f5   : > { %13027 = vst [vmem:[#allocation46_spill] sm:$0xff] %v8840_v28  ;;  %v1845_v0 = vsel %vm1835_vm13, %v1842_v12, %v1844_v52  ;;  %v2020_v50 = vadd.s32 1, %v6644_v56  ;;  %v1461_v17 = vor.u32 %v1460_v51, %v1459_v45  ;;  %v1466_v3 = vand.u32 2147483647, %v1465_v29 }
 0x1f6   : > { %v1558_v60 = vclz %v6625_v48  ;;  %v1764_v15 = vsub.s32 0, %v8828_v55  ;;  %v1666_v57 = vsub.s32 32, %v8802_v34  ;;  %v1848_v61 = vsel %vm1836_vm10, %v1830_v20, %v1847_v18 }
 0x1f7   : > { %v8859_v53 = vmul.u32.u64.low %v8845_v25, %v1845_v0  ;;  %v8860_v12 = vmul.u32.u64.high %v8845_v25, %v1845_v0, %v8859_v53  ;;  %v1671_v52 = vadd.s32 127, %v1670_v23  ;;  %v1839_v27 = vsel %vm1837_vm6, %v1827_v33, 2102212464 }
 0x1f8   : > { %v1849_v29 = vsel %vm1835_vm13, %v1846_v19, %v1848_v61  ;;  %v13028_v56 = vand.u32 2147483647, %v13020_v58  ;;  %v1818_v51 = vshrl.u32 %v12968_v38, %v1817_v62  ;;  %vm2021_vm15 = vcmp.gt.s32.totalorder %v2020_v50, 0 }
 0x1f9   : > { %v8871_v48 = vmul.u32.u64.low %v8845_v25, %v1849_v29  ;;  %v8872_v20 = vmul.u32.u64.high %v8845_v25, %v1849_v29, %v8871_v48  ;;  %v1468_v0 = vcvt.s32.f32 %v1461_v17  ;;  %v6626_v18 = vadd.s32 4294967294, %v1558_v60 }
 0x1fa   : > { %v2017_v45 = vand.u32 8388607, %v13028_v56  ;;  %v6633_v23 = vmin.u32 %v1764_v15, %v8828_v55  ;;  %v2022_v2 = vsel %vm2021_vm15, %v2020_v50, 0  ;;  %v1650_v33 = vadd.s32 %v8527_v5, %v8534_v6 }
 0x1fb   : > { %v1838_v19 = vsel %vm1834_vm9, %v1818_v51, %v1821_v10  ;;  %v1840_v61 = vsel %vm1836_vm10, %v1824_v24, %v1839_v27  ;;  %v2024_v62 = vand.u32 31, %v2022_v2  ;;  %v8885_v29 = vsel %vm8696_vm7, %v7545_v36, %v8796_v40  ;;  %v8896_v27 = vpop.f32.mrb[10].mxu0 }
 0x1fc   : > { %v8887_v17 = vmul.f32 %v1468_v0, %v1466_v3  ;;  %v13029_v15 = vsel %vm8761_vm8, 0, %v8776_v1  ;;  %v1668_v10 = vshrl.u32 %v1650_v33, %v1666_v57  ;;  %v1672_v50 = vshll.u32 %v1671_v52, 23  ;;  %13030 = vst [vmem:[#allocation47_spill] sm:$0xff] %v8896_v27  ;;  %v13031_v3 = vld [vmem:[#allocation21_spill] sm:$0xff]  ;;  %v13032_v27 = vld [vmem:[#allocation14_spill] sm:$0xff] }
 0x1fd   : > { %v8893_v5 = vadd.s32 3, %v13029_v15  ;;  %v2018_v24 = vor.u32 8388608, %v2017_v45  ;;  %v2025_v60 = vsub.s32 32, %v2024_v62  ;;  %vm6627_vm0 = vcmp.lt.s32.totalorder %v6626_v18, 0 }
 0x1fe   : > { %v1766_v37 = vclz %v6633_v23  ;;  %v1841_v40 = vsel %vm1835_vm13, %v1838_v19, %v1840_v61  ;;  %v1909_v56 = vand.u32 2139095040, %v13031_v3  ;;  %v1860_v51 = vadd.s32 1, %v8860_v12 }
 0x1ff   : > { %v2027_v1 = vshll.u32 %v12968_v38, %v2024_v62  ;;  %v2028_v48 = vshrl.u32 %v12973_v44, %v2025_v60  ;;  %v2031_v57 = vshrl.u32 %v12975_v26, %v2025_v60  ;;  %v2030_v52 = vshll.u32 %v12973_v44, %v2024_v62 }
 0x200   : > { %v2034_v45 = vshrl.u32 %v12974_v11, %v2025_v60  ;;  %v2036_v0 = vshll.u32 %v12974_v11, %v2024_v62  ;;  %v2037_v23 = vshrl.u32 %v12986_v32, %v2025_v60  ;;  %vm1859_vm7 = vc.u32 %v8872_v20, %v8859_v53 }
 0x201   : > { %v8911_v31 = vshrl.u32 %v2022_v2, 5  ;;  %v2029_v33 = vor.u32 %v2028_v48, %v2027_v1  ;;  %v2033_v19 = vshll.u32 %v12975_v26, %v2024_v62  ;;  %v2032_v61 = vor.u32 %v2031_v57, %v2030_v52 }
 0x202   : > { %v2038_v15 = vor.u32 %v2037_v23, %v2036_v0  ;;  %v2039_v6 = vshll.u32 %v12986_v32, %v2024_v62  ;;  %v2040_v36 = vshrl.u32 %v12964_v47, %v2025_v60  ;;  %v1470_v43 = vxor.u32 2147483648, %v8887_v17 }
 0x203   : > { %v1667_v28 = vshll.u32 %v8690_v9, %v8802_v34  ;;  %v1673_v54 = vor.u32 4788187, %v1672_v50  ;;  %v1910_v7 = vshrl.u32 %v1909_v56, 23  ;;  %vm1596_vm12 = vcmp.lt.s32.totalorder %v13032_v27, 0 }
 0x204   : > { %v8921_v2 = vsel %vm6627_vm0, 0, %v6626_v18  ;;  %v1861_v1 = vsel %vm1859_vm7, %v1860_v51, %v8860_v12  ;;  %v2035_v48 = vor.u32 %v2034_v45, %v2033_v19  ;;  %v2041_v57 = vor.u32 %v2040_v36, %v2039_v6 }
 0x205   : > { %v6634_v52 = vadd.s32 4294967294, %v1766_v37  ;;  %v1857_v62 = vmul.u32 %v8845_v25, %v1841_v40  ;;  %vm2042_vm14 = vcmp.lt.s32.totalorder %v8911_v31, 1  ;;  %vm2045_vm2 = vcmp.lt.s32.totalorder %v8911_v31, 4 }
 0x206   : > { %v1669_v0 = vor.u32 %v1668_v10, %v1667_v28  ;;  %v2050_v9 = vsel %vm2042_vm14, %v2029_v33, %v2032_v61  ;;  %v2051_v34 = vsel %vm2045_vm2, %v2038_v15, 920167782  ;;  %v2058_v18 = vshll.u32 %v2018_v24, 8 }
 0x207   : > { %v1566_v50 = vsub.s32 4294967266, %v8921_v2  ;;  %v8932_v12 = vadd.s32 %v1861_v1, %v1857_v62  ;;  %vm2044_vm3 = vcmp.lt.s32.totalorder %v8911_v31, 3  ;;  %v6640_v36 = vadd.s32 4294967169, %v1910_v7 }
 0x208   : > { %v13033_v25 = vand.u32 2147483647, %v13032_v27  ;;  %vm2043_vm11 = vcmp.lt.s32.totalorder %v8911_v31, 2  ;;  %v2052_v28 = vsel %vm2044_vm3, %v2035_v48, %v2051_v34  ;;  %v2054_v10 = vsel %vm2042_vm14, %v2032_v61, %v2035_v48 }
 0x209   : > { %v2055_v24 = vsel %vm2045_vm2, %v2041_v57, 1326507024  ;;  %v1674_v37 = vand.u32 2147483647, %v1673_v54  ;;  %vm6635_vm1 = vcmp.lt.s32.totalorder %v6634_v52, 0  ;;  %v2053_v7 = vsel %vm2043_vm11, %v2050_v9, %v2052_v28 }
 0x20a   : > { %vm8937_vm4 = vcmp.le.f32.partialorder %v13033_v25, 0.7853982  ;;  %v2056_v40 = vsel %vm2044_vm3, %v2038_v15, %v2055_v24  ;;  %v2047_v56 = vsel %vm2045_vm2, %v2035_v48, 2102212464  ;;  %v1863_v19 = vadd.s32 536870912, %v8932_v12 }
 0x20b   : > { %v2057_v51 = vsel %vm2043_vm11, %v2054_v10, %v2056_v40  ;;  %v8956_v45 = vmul.u32.u64.low %v2058_v18, %v2053_v7  ;;  %v8957_v23 = vmul.u32.u64.high %v2058_v18, %v2053_v7, %v8956_v45  ;;  %v2026_v54 = vshrl.u32 %v12968_v38, %v2025_v60 }
 0x20c   : > { %v8962_v1 = vmul.u32.u64.low %v2058_v18, %v2057_v51  ;;  %v8963_v57 = vmul.u32.u64.high %v2058_v18, %v2057_v51, %v8962_v1  ;;  %7105 = vcosq.f32 %v8885_v29  ;;  %v8967_v15 = vand.u32 3, %v8893_v5 }
 0x20d   : > { %v1567_v48 = vadd.s32 127, %v1566_v50  ;;  %v1916_v62 = vadd.s32 1, %v6640_v36  ;;  %v1676_v9 = vcvt.s32.f32 %v1669_v0  ;;  %v13037_v34 = vsub.s32 4, %v8650_v30 }
 0x20e   : > { %13036 = vst [vmem:[#allocation48_spill] sm:$0xff] %v8967_v15  ;;  %v2046_v60 = vsel %vm2042_vm14, %v2026_v54, %v2029_v33  ;;  %v2048_v28 = vsel %vm2044_vm3, %v2032_v61, %v2047_v56  ;;  %v1471_v5 = vsel %vm1388_vm5, %v1470_v43, %v8887_v17  ;;  %v8984_v50 = vsel %vm6635_vm1, 0, %v6634_v52 }
 0x20f   : > { %v8974_v25 = vsel %vm1596_vm12, %v13037_v34, %v8650_v30  ;;  %v2068_v0 = vadd.s32 1, %v8957_v23  ;;  %vm1917_vm9 = vcmp.gt.s32.totalorder %v1916_v62, 0  ;;  %v1677_v36 = vmul.f32 %v1676_v9, %v1674_v37 }
 0x210   : > { %v8987_v10 = vshrl.u32 %v1863_v19, 30  ;;  %vm2067_vm6 = vc.u32 %v8963_v57, %v8956_v45  ;;  %v1918_v30 = vsel %vm1917_vm9, %v1916_v62, 0  ;;  %v1562_v33 = vsub.s32 32, %v8921_v2 }
 0x211   : > { %v1568_v61 = vshll.u32 %v1567_v48, 23  ;;  %v2049_v24 = vsel %vm2043_vm11, %v2046_v60, %v2048_v28  ;;  %v1920_v43 = vand.u32 31, %v1918_v30  ;;  %7107 = vsinq.f32 %v8885_v29  ;;  %v13039_v60 = vld [vmem:[#allocation26_spill] sm:$0xff] }
 0x212   : > { %v8998_v17 = vsel %vm8761_vm8, %v7573_v8, %v1471_v5  ;;  %v1774_v37 = vsub.s32 4294967266, %v8984_v50  ;;  %v1546_v7 = vadd.s32 %v8637_v59, %v8657_v41  ;;  %v2069_v31 = vsel %vm2067_vm6, %v2068_v0, %v8957_v23 }
 0x213   : > { %v12772_v40 = vand.u32 2147483647, %v13031_v3  ;;  %v9008_v56 = vsub.s32 32, %v1920_v43  ;;  %v1678_v29 = vxor.u32 2147483648, %v1677_v36  ;;  %v1576_v21 = vsub.s32 4, %v8742_v22 }
 0x214   : > { %v1865_v51 = vshll.u32 %v8987_v10, 30  ;;  %v2065_v19 = vmul.u32 %v2058_v18, %v2049_v24  ;;  %v1564_v54 = vshrl.u32 %v1546_v7, %v1562_v33  ;;  %v1569_v1 = vor.u32 4788187, %v1568_v61  ;;  %v9038_v24 = vpop.f32.mrb[10].mxu1 }
 0x215   : > { %v1754_v48 = vadd.s32 %v8706_v35, %v8724_v16  ;;  %v1770_v62 = vsub.s32 32, %v8984_v50  ;;  %v1775_v59 = vadd.s32 127, %v1774_v37  ;;  %v1924_v23 = vshrl.u32 %v12973_v44, %v9008_v56  ;;  %13040 = vst [vmem:[#allocation50_spill] sm:$0xff] %v9038_v24 }
 0x216   : > { %v9015_v41 = vadd.s32 %v2069_v31, %v2065_v19  ;;  %v1927_v9 = vshrl.u32 %v12975_v26, %v9008_v56  ;;  %v9021_v34 = vpop.eup %7105  ;;  %vm1492_vm5 = vcmp.lt.s32.totalorder %v7723_v46, 0  ;;  %v1913_v18 = vand.u32 8388607, %v12772_v40 }
 0x217   : > { %13038 = vst [vmem:[#allocation49_spill] sm:$0xff] %v9021_v34  ;;  %v1930_v35 = vshrl.u32 %v12974_v11, %v9008_v56  ;;  %v1933_v16 = vshrl.u32 %v12986_v32, %v9008_v56  ;;  %v2117_v28 = vand.u32 2139095040, %v13039_v60  ;;  %v9032_v5 = vsub.s32 %v8932_v12, %v1865_v51 }
 0x218   : > { %v9034_v0 = vshrl.u32 %v1918_v30, 5  ;;  %v1923_v33 = vshll.u32 %v12968_v38, %v1920_v43  ;;  %v1926_v61 = vshll.u32 %v12973_v44, %v1920_v43  ;;  %v1929_v37 = vshll.u32 %v12975_v26, %v1920_v43 }
 0x219   : > { %v1932_v7 = vshll.u32 %v12974_v11, %v1920_v43  ;;  %v1935_v31 = vshll.u32 %v12986_v32, %v1920_v43  ;;  %v1936_v19 = vshrl.u32 %v12964_v47, %v9008_v56  ;;  %v1563_v12 = vshll.u32 %v8781_v63, %v8921_v2 }
 0x21a   : > { %v2071_v30 = vadd.s32 536870912, %v9015_v41  ;;  %v1925_v51 = vor.u32 %v1924_v23, %v1923_v33  ;;  %v1928_v40 = vor.u32 %v1927_v9, %v1926_v61  ;;  %v1931_v52 = vor.u32 %v1930_v35, %v1929_v37 }
 0x21b   : > { %v1934_v15 = vor.u32 %v1933_v16, %v1932_v7  ;;  %v1937_v8 = vor.u32 %v1936_v19, %v1935_v31  ;;  %v2118_v34 = vshrl.u32 %v2117_v28, 23  ;;  %v9048_v24 = vpop.eup %7107  ;;  %v1679_v39 = vsel %vm1596_vm12, %v1678_v29, %v1677_v36 }
 0x21c   : > { %13041 = vst [vmem:[#allocation51_spill] sm:$0xff] %v9048_v24  ;;  %v1565_v43 = vor.u32 %v1564_v54, %v1563_v12  ;;  %v1570_v13 = vand.u32 2147483647, %v1569_v1  ;;  %v1772_v3 = vshrl.u32 %v1754_v48, %v1770_v62  ;;  %v1776_v58 = vshll.u32 %v1775_v59, 23 }
 0x21d   : > { %v1868_v49 = vsub.s32 0, %v9032_v5  ;;  %v1914_v63 = vor.u32 8388608, %v1913_v18  ;;  %vm1938_vm8 = vcmp.lt.s32.totalorder %v9034_v0, 1  ;;  %v9054_v2 = vshrl.u32 %v2071_v30, 30 }
 0x21e   : > { %vm1940_vm10 = vcmp.lt.s32.totalorder %v9034_v0, 3  ;;  %vm1941_vm13 = vcmp.lt.s32.totalorder %v9034_v0, 4  ;;  %v1946_v23 = vsel %vm1938_vm8, %v1925_v51, %v1928_v40  ;;  %v13042_v36 = vand.u32 2147483647, %v7723_v46 }
 0x21f   : > { %v1947_v54 = vsel %vm1941_vm13, %v1934_v15, 920167782  ;;  %v1950_v1 = vsel %vm1938_vm8, %v1928_v40, %v1931_v52  ;;  %v1951_v48 = vsel %vm1941_vm13, %v1937_v8, 1326507024  ;;  %v6648_v62 = vadd.s32 4294967169, %v2118_v34 }
 0x220   : > { %vm9062_vm15 = vcmp.le.f32.partialorder %v13042_v36, 0.7853982  ;;  %v1572_v59 = vcvt.s32.f32 %v1565_v43  ;;  %v9075_v9 = vsel %vm1492_vm5, %v1576_v21, %v8742_v22  ;;  %v1771_v18 = vshll.u32 %v8828_v55, %v8984_v50 }
 0x221   : > { %v1948_v35 = vsel %vm1940_vm10, %v1931_v52, %v1947_v54  ;;  %v6637_v16 = vmin.u32 %v1868_v49, %v9032_v5  ;;  %vm1939_vm0 = vcmp.lt.s32.totalorder %v9034_v0, 2  ;;  %v1952_v8 = vsel %vm1940_vm10, %v1934_v15, %v1951_v48 }
 0x222   : > { %v2124_v34 = vadd.s32 1, %v6648_v62  ;;  %v2073_v28 = vshll.u32 %v9054_v2, 30  ;;  %v1949_v22 = vsel %vm1939_vm0, %v1946_v23, %v1948_v35  ;;  %v1953_v21 = vsel %vm1939_vm0, %v1950_v1, %v1952_v8  ;;  %v9140_v62 = vpop.f32.mrb[11].mxu0 }
 0x223   : > { %v9090_v55 = vshll.u32 %v1914_v63, 8  ;;  %v1573_v50 = vmul.f32 %v1572_v59, %v1570_v13  ;;  %v1773_v33 = vor.u32 %v1772_v3, %v1771_v18  ;;  %v1777_v61 = vor.u32 4788187, %v1776_v58  ;;  %13046 = vst [vmem:[#allocation52_spill] sm:$0xff] %v9140_v62 }
 0x224   : > { %vm2125_vm7 = vcmp.gt.s32.totalorder %v2124_v34, 0  ;;  %v1943_v49 = vsel %vm1941_vm13, %v1931_v52, 2102212464  ;;  %v12784_v7 = vand.u32 2147483647, %v13039_v60  ;;  %v1922_v31 = vshrl.u32 %v12968_v38, %v9008_v56 }
 0x225   : > { %v9095_v15 = vmul.u32.u64.low %v9090_v55, %v1953_v21  ;;  %v9096_v37 = vmul.u32.u64.high %v9090_v55, %v1953_v21, %v9095_v15  ;;  %v9102_v19 = vmul.u32.u64.low %v9090_v55, %v1949_v22  ;;  %v9103_v12 = vmul.u32.u64.high %v9090_v55, %v1949_v22, %v9102_v19 }
 0x226   : > { %v2126_v13 = vsel %vm2125_vm7, %v2124_v34, 0  ;;  %7109 = vcosq.f32 %v8998_v17  ;;  %v13045_v58 = vsel %vm8937_vm4, 0, %v8974_v25  ;;  %vm1700_vm12 = vcmp.lt.s32.totalorder %v13000_v42, 0 }
 0x227   : > { %v9111_v3 = vadd.s32 3, %v13045_v58  ;;  %v1870_v52 = vclz %v6637_v16  ;;  %v9115_v30 = vsub.s32 %v9015_v41, %v2073_v28  ;;  %7111 = vsinq.f32 %v8998_v17 }
 0x228   : > { %v1942_v56 = vsel %vm1938_vm8, %v1922_v31, %v1925_v51  ;;  %v1944_v43 = vsel %vm1940_vm10, %v1928_v40, %v1943_v49  ;;  %v2128_v63 = vand.u32 31, %v2126_v13  ;;  %v9125_v25 = vsel %vm8937_vm4, %v13032_v27, %v1679_v39 }
 0x229   : > { %v1574_v23 = vxor.u32 2147483648, %v1573_v50  ;;  %v1579_v41 = vsel %vm9062_vm15, 0, %v9075_v9  ;;  %v1784_v36 = vsub.s32 4, %v8792_v14  ;;  %v1778_v17 = vand.u32 2147483647, %v1777_v61 }
 0x22a   : > { %v1780_v54 = vcvt.s32.f32 %v1773_v33  ;;  %v2121_v51 = vand.u32 8388607, %v12784_v7  ;;  %v9133_v1 = vsub.s32 32, %v2128_v63  ;;  %v6638_v40 = vadd.s32 4294967294, %v1870_v52 }
 0x22b   : > { %v2076_v48 = vsub.s32 0, %v9115_v30  ;;  %v1945_v39 = vsel %vm1939_vm0, %v1942_v56, %v1944_v43  ;;  %v9138_v6 = vshrl.u32 %v2126_v13, 5  ;;  %v2131_v59 = vshll.u32 %v12968_v38, %v2128_v63  ;;  %v13050_v43 = vld [vmem:[#allocation29_spill] sm:$0xff] }
 0x22c   : > { %v2132_v9 = vshrl.u32 %v12973_v44, %v9133_v1  ;;  %v2134_v18 = vshll.u32 %v12973_v44, %v2128_v63  ;;  %v2135_v35 = vshrl.u32 %v12975_v26, %v9133_v1  ;;  %v2137_v16 = vshll.u32 %v12975_v26, %v2128_v63 }
 0x22d   : > { %v2138_v0 = vshrl.u32 %v12974_v11, %v9133_v1  ;;  %v2140_v8 = vshll.u32 %v12974_v11, %v2128_v63  ;;  %v2141_v34 = vshrl.u32 %v12986_v32, %v9133_v1  ;;  %v13047_v28 = vand.u32 2147483647, %v13000_v42 }
 0x22e   : > { %vm1963_vm2 = vc.u32 %v9096_v37, %v9102_v19  ;;  %v1964_v21 = vadd.s32 1, %v9103_v12  ;;  %v2133_v33 = vor.u32 %v2132_v9, %v2131_v59  ;;  %v2136_v61 = vor.u32 %v2135_v35, %v2134_v18 }
 0x22f   : > { %vm9156_vm14 = vcmp.le.f32.partialorder %v13047_v28, 0.7853982  ;;  %v2139_v49 = vor.u32 %v2138_v0, %v2137_v16  ;;  %v2142_v15 = vor.u32 %v2141_v34, %v2140_v8  ;;  %v2143_v31 = vshll.u32 %v12986_v32, %v2128_v63 }
 0x230   : > { %v2144_v13 = vshrl.u32 %v12964_v47, %v9133_v1  ;;  %v1575_v58 = vsel %vm1492_vm5, %v1574_v23, %v1573_v50  ;;  %v1785_v52 = vsel %vm1700_vm12, %v1784_v36, %v8792_v14  ;;  %v6645_v56 = vmin.u32 %v2076_v48, %v9115_v30  ;;  %v9173_v59 = vpop.eup %7109 }
 0x231   : > { %v2221_v28 = vand.u32 2139095040, %v13050_v43  ;;  %13051 = vst [vmem:[#allocation53_spill] sm:$0xff] %v9173_v59  ;;  %v1781_v9 = vmul.f32 %v1780_v54, %v1778_v17  ;;  %vm6639_vm3 = vcmp.lt.s32.totalorder %v6638_v40, 0  ;;  %v2122_v18 = vor.u32 8388608, %v2121_v51  ;;  %v9175_v35 = vpop.eup %7111 }
 0x232   : > { %v2145_v63 = vor.u32 %v2144_v13, %v2143_v31  ;;  %13052 = vst [vmem:[#allocation54_spill] sm:$0xff] %v9175_v35  ;;  %v1961_v16 = vmul.u32 %v9090_v55, %v1945_v39  ;;  %v1965_v50 = vsel %vm1963_vm2, %v1964_v21, %v9103_v12  ;;  %vm2146_vm4 = vcmp.lt.s32.totalorder %v9138_v6, 1 }
 0x233   : > { %vm2149_vm11 = vcmp.lt.s32.totalorder %v9138_v6, 4  ;;  %vm2148_vm1 = vcmp.lt.s32.totalorder %v9138_v6, 3  ;;  %v2154_v14 = vsel %vm2146_vm4, %v2133_v33, %v2136_v61  ;;  %v2158_v55 = vsel %vm2146_vm4, %v2136_v61, %v2139_v49 }
 0x234   : > { %v2155_v23 = vsel %vm2149_vm11, %v2142_v15, 920167782  ;;  %v2078_v36 = vclz %v6645_v56  ;;  %v2159_v12 = vsel %vm2149_vm11, %v2145_v63, 1326507024  ;;  %v2222_v54 = vshrl.u32 %v2221_v28, 23 }
 0x235   : > { %v2156_v17 = vsel %vm2148_vm1, %v2139_v49, %v2155_v23  ;;  %v9195_v51 = vadd.s32 %v1965_v50, %v1961_v16  ;;  %vm2147_vm9 = vcmp.lt.s32.totalorder %v9138_v6, 2  ;;  %v2160_v48 = vsel %vm2148_vm1, %v2142_v15, %v2159_v12 }
 0x236   : > { %v2162_v39 = vshll.u32 %v2122_v18, 8  ;;  %7113 = vcosq.f32 %v9125_v25  ;;  %v1583_v0 = vadd.s32 3, %v1579_v41  ;;  %v2157_v8 = vsel %vm2147_vm9, %v2154_v14, %v2156_v17 }
 0x237   : > { %v2161_v34 = vsel %vm2147_vm9, %v2158_v55, %v2160_v48  ;;  %v1578_v21 = vsel %vm9062_vm15, %v7723_v46, %v1575_v58  ;;  %v1787_v31 = vsel %vm9156_vm14, 0, %v1785_v52  ;;  %v1782_v15 = vxor.u32 2147483648, %v1781_v9 }
 0x238   : > { %v9210_v13 = vmul.u32.u64.low %v2162_v39, %v2161_v34  ;;  %v9211_v56 = vmul.u32.u64.high %v2162_v39, %v2161_v34, %v9210_v13  ;;  %v9214_v28 = vsel %vm6639_vm3, 0, %v6638_v40  ;;  %v6646_v41 = vadd.s32 4294967294, %v2078_v36 }
 0x239   : > { %v6652_v18 = vadd.s32 4294967169, %v2222_v54  ;;  %v1967_v63 = vadd.s32 536870912, %v9195_v51  ;;  %v2151_v16 = vsel %vm2149_vm11, %v2139_v49, 2102212464  ;;  %7115 = vsinq.f32 %v9125_v25 }
 0x23a   : > { %v9219_v50 = vmul.u32.u64.low %v2162_v39, %v2157_v8  ;;  %v9220_v29 = vmul.u32.u64.high %v2162_v39, %v2157_v8, %v9219_v50  ;;  %v9225_v58 = vand.u32 3, %v9111_v3  ;;  %v2130_v40 = vshrl.u32 %v12968_v38, %v9133_v1 }
 0x23b   : > { %v2228_v52 = vadd.s32 1, %v6652_v18  ;;  %7117 = vcosq.f32 %v1578_v21  ;;  %v9229_v14 = vand.u32 3, %v1583_v0  ;;  %v1791_v23 = vadd.s32 3, %v1787_v31  ;;  %v9249_v0 = vpop.f32.mrb[11].mxu1 }
 0x23c   : > { %13053 = vst [vmem:[#allocation55_spill] sm:$0xff] %v9225_v58  ;;  %v1878_v55 = vsub.s32 4294967266, %v9214_v28  ;;  %v1783_v49 = vsel %vm1700_vm12, %v1782_v15, %v1781_v9  ;;  %v2150_v36 = vsel %vm2146_vm4, %v2130_v40, %v2133_v33  ;;  %v2152_v3 = vsel %vm2148_vm1, %v2136_v61, %v2151_v16  ;;  %13056 = vst [vmem:[#allocation58_spill] sm:$0xff] %v9249_v0 }
 0x23d   : > { %13054 = vst [vmem:[#allocation56_spill] sm:$0xff] %v9229_v14  ;;  %vm2229_vm6 = vcmp.gt.s32.totalorder %v2228_v52, 0  ;;  %vm6647_vm5 = vcmp.lt.s32.totalorder %v6646_v41, 0  ;;  %v9238_v25 = vshrl.u32 %v1967_v63, 30  ;;  %v2172_v1 = vadd.s32 1, %v9220_v29 }
 0x23e   : > { %v2230_v17 = vsel %vm2229_vm6, %v2228_v52, 0  ;;  %v1874_v12 = vsub.s32 32, %v9214_v28  ;;  %vm2171_vm8 = vc.u32 %v9211_v56, %v9219_v50  ;;  %v12783_v9 = vand.u32 2147483647, %v13050_v43 }
 0x23f   : > { %v2232_v54 = vand.u32 31, %v2230_v17  ;;  %7119 = vsinq.f32 %v1578_v21  ;;  %v9245_v33 = vand.u32 3, %v1791_v23  ;;  %v1879_v48 = vadd.s32 127, %v1878_v55 }
 0x240   : > { %v2153_v61 = vsel %vm2147_vm9, %v2150_v36, %v2152_v3  ;;  %v9251_v8 = vpop.eup %7113  ;;  %v9256_v34 = vsel %vm9156_vm14, %v13000_v42, %v1783_v49  ;;  %v1858_v31 = vadd.s32 %v8859_v53, %v8872_v20  ;;  %v9262_v13 = vsel %vm6647_vm5, 0, %v6646_v41 }
 0x241   : > { %13055 = vst [vmem:[#allocation57_spill] sm:$0xff] %v9245_v33  ;;  %13057 = vst [vmem:[#allocation59_spill] sm:$0xff] %v9251_v8  ;;  %v1969_v6 = vshll.u32 %v9238_v25, 30  ;;  %v2173_v15 = vsel %vm2171_vm8, %v2172_v1, %v9220_v29  ;;  %v2233_v18 = vsub.s32 32, %v2232_v54  ;;  %v2429_v63 = vand.u32 2139095040, %v8555_v4 }
 0x242   : > { %v1875_v22 = vshll.u32 %v9032_v5, %v9214_v28  ;;  %v1876_v16 = vshrl.u32 %v1858_v31, %v1874_v12  ;;  %v2169_v40 = vmul.u32 %v2162_v39, %v2153_v61  ;;  %v2225_v53 = vand.u32 8388607, %v12783_v9 }
 0x243   : > { %v1880_v20 = vshll.u32 %v1879_v48, 23  ;;  %v2086_v52 = vsub.s32 4294967266, %v9262_v13  ;;  %v2236_v41 = vshrl.u32 %v12973_v44, %v2233_v18  ;;  %v2239_v23 = vshrl.u32 %v12975_v26, %v2233_v18  ;;  %v9274_v55 = vpop.eup %7115 }
 0x244   : > { %13058 = vst [vmem:[#allocation60_spill] sm:$0xff] %v9274_v55  ;;  %v9276_v29 = vadd.s32 %v2173_v15, %v2169_v40  ;;  %v2235_v49 = vshll.u32 %v12968_v38, %v2232_v54  ;;  %v2242_v5 = vshrl.u32 %v12974_v11, %v2233_v18  ;;  %v2245_v39 = vshrl.u32 %v12986_v32, %v2233_v18 }
 0x245   : > { %v9281_v28 = vpop.eup %7117  ;;  %v9284_v36 = vsub.s32 %v9195_v51, %v1969_v6  ;;  %v2238_v3 = vshll.u32 %v12973_v44, %v2232_v54  ;;  %v2244_v1 = vshll.u32 %v12974_v11, %v2232_v54  ;;  %v2430_v12 = vshrl.u32 %v2429_v63, 23 }
 0x246   : > { %13059 = vst [vmem:[#allocation61_spill] sm:$0xff] %v9281_v28  ;;  %v2226_v48 = vor.u32 8388608, %v2225_v53  ;;  %v2231_v61 = vshrl.u32 %v2230_v17, 5  ;;  %v2237_v31 = vor.u32 %v2236_v41, %v2235_v49  ;;  %v2241_v15 = vshll.u32 %v12975_v26, %v2232_v54 }
 0x247   : > { %v2240_v40 = vor.u32 %v2239_v23, %v2238_v3  ;;  %v2246_v9 = vor.u32 %v2245_v39, %v2244_v1  ;;  %v2247_v7 = vshll.u32 %v12986_v32, %v2232_v54  ;;  %v2248_v21 = vshrl.u32 %v12964_v47, %v2233_v18  ;;  %v13061_v54 = vld [vmem:[#allocation17_spill] sm:$0xff] }
 0x248   : > { %v1877_v8 = vor.u32 %v1876_v16, %v1875_v22  ;;  %v2066_v51 = vadd.s32 %v8956_v45, %v8963_v57  ;;  %v2175_v6 = vadd.s32 536870912, %v9276_v29  ;;  %v2243_v55 = vor.u32 %v2242_v5, %v2241_v15  ;;  %v13062_v22 = vld [vmem:[#allocation18_spill] sm:$0xff] }
 0x249   : > { %v9294_v58 = vpop.eup %7119  ;;  %v1881_v63 = vor.u32 4788187, %v1880_v20  ;;  %v2082_v17 = vsub.s32 32, %v9262_v13  ;;  %v2249_v53 = vor.u32 %v2248_v21, %v2247_v7  ;;  %v6660_v41 = vadd.s32 4294967169, %v2430_v12 }
 0x24a   : > { %13060 = vst [vmem:[#allocation62_spill] sm:$0xff] %v9294_v58  ;;  %v2087_v23 = vadd.s32 127, %v2086_v52  ;;  %v1972_v49 = vsub.s32 0, %v9284_v36  ;;  %vm2250_vm10 = vcmp.lt.s32.totalorder %v2231_v61, 1  ;;  %vm2253_vm13 = vcmp.lt.s32.totalorder %v2231_v61, 4 }
 0x24b   : > { %vm1804_vm15 = vcmp.lt.s32.totalorder %v13061_v54, 0  ;;  %vm2012_vm0 = vcmp.lt.s32.totalorder %v13062_v22, 0  ;;  %v2234_v45 = vshrl.u32 %v12968_v38, %v2233_v18  ;;  %v2258_v57 = vsel %vm2250_vm10, %v2237_v31, %v2240_v40 }
 0x24c   : > { %v2259_v16 = vsel %vm2253_vm13, %v2246_v9, 920167782  ;;  %v2266_v5 = vshll.u32 %v2226_v48, 8  ;;  %v9302_v20 = vshrl.u32 %v2175_v6, 30  ;;  %vm2252_vm7 = vcmp.lt.s32.totalorder %v2231_v61, 3 }
 0x24d   : > { %v2255_v7 = vsel %vm2253_vm13, %v2243_v55, 2102212464  ;;  %v2262_v21 = vsel %vm2250_vm10, %v2240_v40, %v2243_v55  ;;  %vm2251_vm12 = vcmp.lt.s32.totalorder %v2231_v61, 2  ;;  %v2260_v52 = vsel %vm2252_vm7, %v2243_v55, %v2259_v16 }
 0x24e   : > { %v2263_v39 = vsel %vm2253_vm13, %v2249_v53, 1326507024  ;;  %v2436_v3 = vadd.s32 1, %v6660_v41  ;;  %v6641_v1 = vmin.u32 %v1972_v49, %v9284_v36  ;;  %v2254_v12 = vsel %vm2250_vm10, %v2234_v45, %v2237_v31 }
 0x24f   : > { %v2261_v18 = vsel %vm2251_vm12, %v2258_v57, %v2260_v52  ;;  %v2264_v15 = vsel %vm2252_vm7, %v2246_v9, %v2263_v39  ;;  %v2256_v59 = vsel %vm2252_vm7, %v2240_v40, %v2255_v7  ;;  %v2096_v35 = vsub.s32 4, %v9054_v2 }
 0x250   : > { %v2265_v48 = vsel %vm2251_vm12, %v2262_v21, %v2264_v15  ;;  %v9309_v6 = vmul.u32.u64.low %v2266_v5, %v2261_v18  ;;  %v9310_v27 = vmul.u32.u64.high %v2266_v5, %v2261_v18, %v9309_v6  ;;  %v2177_v55 = vshll.u32 %v9302_v20, 30 }
 0x251   : > { %v9315_v53 = vmul.u32.u64.low %v2266_v5, %v2265_v48  ;;  %v9316_v41 = vmul.u32.u64.high %v2266_v5, %v2265_v48, %v9315_v53  ;;  %7121 = vcosq.f32 %v9256_v34  ;;  %v1882_v31 = vand.u32 2147483647, %v1881_v63 }
 0x252   : > { %v2084_v49 = vshrl.u32 %v2066_v51, %v2082_v17  ;;  %vm2437_vm14 = vcmp.gt.s32.totalorder %v2436_v3, 0  ;;  %v2088_v9 = vshll.u32 %v2087_v23, 23  ;;  %v1974_v40 = vclz %v6641_v1 }
 0x253   : > { %v2257_v45 = vsel %vm2251_vm12, %v2254_v12, %v2256_v59  ;;  %v2438_v57 = vsel %vm2437_vm14, %v2436_v3, 0  ;;  %v1884_v16 = vcvt.s32.f32 %v1877_v8  ;;  %v2276_v7 = vadd.s32 1, %v9310_v27 }
 0x254   : > { %v12791_v21 = vand.u32 2147483647, %v8555_v4  ;;  %v2440_v52 = vand.u32 31, %v2438_v57  ;;  %v13063_v39 = vsub.s32 4, %v8987_v10  ;;  %v2083_v51 = vshll.u32 %v9115_v30, %v9262_v13 }
 0x255   : > { %v9334_v59 = vsel %vm2012_vm0, %v2096_v35, %v9054_v2  ;;  %v9337_v8 = vsub.s32 %v9276_v29, %v2177_v55  ;;  %v9339_v61 = vmul.f32 %v1884_v16, %v1882_v31  ;;  %v2273_v63 = vmul.u32 %v2266_v5, %v2257_v45 }
 0x256   : > { %v9327_v18 = vsel %vm1804_vm15, %v13063_v39, %v8987_v10  ;;  %vm2275_vm2 = vc.u32 %v9316_v41, %v9309_v6  ;;  %v2441_v17 = vsub.s32 32, %v2440_v52  ;;  %v2085_v10 = vor.u32 %v2084_v49, %v2083_v51 }
 0x257   : > { %v2089_v23 = vor.u32 4788187, %v2088_v9  ;;  %v6642_v3 = vadd.s32 4294967294, %v1974_v40  ;;  %v2277_v30 = vsel %vm2275_vm2, %v2276_v7, %v9310_v27  ;;  %v2433_v2 = vand.u32 8388607, %v12791_v21 }
 0x258   : > { %v9344_v13 = vadd.s32 %v2277_v30, %v2273_v63  ;;  %v2444_v35 = vshrl.u32 %v12973_v44, %v2441_v17  ;;  %v2447_v29 = vshrl.u32 %v12975_v26, %v2441_v17  ;;  %v2180_v5 = vsub.s32 0, %v9337_v8  ;;  %v9369_v30 = vpop.f32.mrb[12].mxu0 }
 0x259   : > { %v2443_v1 = vshll.u32 %v12968_v38, %v2440_v52  ;;  %v2446_v12 = vshll.u32 %v12973_v44, %v2440_v52  ;;  %v2450_v15 = vshrl.u32 %v12974_v11, %v2441_v17  ;;  %v2439_v48 = vshrl.u32 %v2438_v57, 5  ;;  %13068 = vst [vmem:[#allocation64_spill] sm:$0xff] %v9369_v30 }
 0x25a   : > { %v2449_v27 = vshll.u32 %v12975_v26, %v2440_v52  ;;  %v2452_v55 = vshll.u32 %v12974_v11, %v2440_v52  ;;  %v2453_v53 = vshrl.u32 %v12986_v32, %v2441_v17  ;;  %v13064_v31 = vand.u32 2147483647, %v13061_v54 }
 0x25b   : > { %v1886_v9 = vxor.u32 2147483648, %v9339_v61  ;;  %v2279_v40 = vadd.s32 536870912, %v9344_v13  ;;  %v2445_v45 = vor.u32 %v2444_v35, %v2443_v1  ;;  %v2448_v16 = vor.u32 %v2447_v29, %v2446_v12  ;;  %v9365_v7 = vpop.eup %7121 }
 0x25c   : > { %vm9359_vm3 = vcmp.le.f32.partialorder %v13064_v31, 0.7853982  ;;  %13067 = vst [vmem:[#allocation63_spill] sm:$0xff] %v9365_v7  ;;  %v2451_v57 = vor.u32 %v2450_v15, %v2449_v27  ;;  %v2454_v39 = vor.u32 %v2453_v53, %v2452_v55  ;;  %v2455_v51 = vshll.u32 %v12986_v32, %v2440_v52 }
 0x25d   : > { %v2456_v63 = vshrl.u32 %v12964_v47, %v2441_v17  ;;  %v13069_v31 = vand.u32 2147483647, %v13062_v22  ;;  %v2090_v33 = vand.u32 2147483647, %v2089_v23  ;;  %v2092_v42 = vcvt.s32.f32 %v2085_v10 }
 0x25e   : > { %v6649_v35 = vmin.u32 %v2180_v5, %v9337_v8  ;;  %v2434_v29 = vor.u32 8388608, %v2433_v2  ;;  %vm6643_vm11 = vcmp.lt.s32.totalorder %v6642_v3, 0  ;;  %vm2458_vm1 = vcmp.lt.s32.totalorder %v2439_v48, 1 }
 0x25f   : > { %vm9373_vm4 = vcmp.le.f32.partialorder %v13069_v31, 0.7853982  ;;  %v2457_v1 = vor.u32 %v2456_v63, %v2455_v51  ;;  %vm2461_vm9 = vcmp.lt.s32.totalorder %v2439_v48, 4  ;;  %v2442_v52 = vshrl.u32 %v12968_v38, %v2441_v17  ;;  %v13072_v51 = vld [vmem:[#allocation21_spill] sm:$0xff]  ;;  %v13073_v31 = vld [vmem:[#allocation36_spill] sm:$0xff] }
 0x260   : > { %vm2460_vm6 = vcmp.lt.s32.totalorder %v2439_v48, 3  ;;  %v2466_v12 = vsel %vm2458_vm1, %v2445_v45, %v2448_v16  ;;  %v2467_v15 = vsel %vm2461_vm9, %v2454_v39, 920167782  ;;  %v9381_v27 = vshrl.u32 %v2279_v40, 30 }
 0x261   : > { %vm2459_vm5 = vcmp.lt.s32.totalorder %v2439_v48, 2  ;;  %v2463_v23 = vsel %vm2461_vm9, %v2451_v57, 2102212464  ;;  %v2468_v10 = vsel %vm2460_vm6, %v2451_v57, %v2467_v15  ;;  %v9385_v5 = vsel %vm6643_vm11, 0, %v6642_v3 }
 0x262   : > { %v2182_v2 = vclz %v6649_v35  ;;  %v2469_v55 = vsel %vm2459_vm5, %v2466_v12, %v2468_v10  ;;  %v2474_v53 = vshll.u32 %v2434_v29, 8  ;;  %vm1908_vm8 = vcmp.lt.s32.totalorder %v13072_v51, 0 }
 0x263   : > { %v2462_v17 = vsel %vm2458_vm1, %v2442_v52, %v2445_v45  ;;  %v2470_v63 = vsel %vm2458_vm1, %v2448_v16, %v2451_v57  ;;  %v2471_v40 = vsel %vm2461_vm9, %v2457_v1, 1326507024  ;;  %v2325_v7 = vand.u32 2139095040, %v13073_v31 }
 0x264   : > { %v2464_v28 = vsel %vm2460_vm6, %v2448_v16, %v2463_v23  ;;  %v2472_v15 = vsel %vm2460_vm6, %v2454_v39, %v2471_v40  ;;  %v9395_v3 = vmul.u32.u64.low %v2474_v53, %v2469_v55  ;;  %v9396_v58 = vmul.u32.u64.high %v2474_v53, %v2469_v55, %v9395_v3 }
 0x265   : > { %v1891_v35 = vsel %vm9359_vm3, 0, %v9327_v18  ;;  %v2093_v29 = vmul.f32 %v2092_v42, %v2090_v33  ;;  %v2281_v45 = vshll.u32 %v9381_v27, 30  ;;  %v2473_v57 = vsel %vm2459_vm5, %v2470_v63, %v2472_v15 }
 0x266   : > { %7123 = vsinq.f32 %v9256_v34  ;;  %v1982_v1 = vsub.s32 4294967266, %v9385_v5  ;;  %v9406_v16 = vmul.u32.u64.low %v2474_v53, %v2473_v57  ;;  %v9407_v52 = vmul.u32.u64.high %v2474_v53, %v2473_v57, %v9406_v16 }
 0x267   : > { %v2099_v39 = vsel %vm9373_vm4, 0, %v9334_v59  ;;  %v13074_v12 = vand.u32 2147483647, %v13072_v51  ;;  %v6650_v42 = vadd.s32 4294967294, %v2182_v2  ;;  %v2465_v33 = vsel %vm2459_vm5, %v2462_v17, %v2464_v28 }
 0x268   : > { %v2326_v23 = vshrl.u32 %v2325_v7, 23  ;;  %v1887_v34 = vsel %vm1804_vm15, %v1886_v9, %v9339_v61  ;;  %v1895_v10 = vadd.s32 3, %v1891_v35  ;;  %v1992_v55 = vsub.s32 4, %v9238_v25 }
 0x269   : > { %vm9414_vm10 = vcmp.le.f32.partialorder %v13074_v12, 0.7853982  ;;  %v2484_v63 = vadd.s32 1, %v9396_v58  ;;  %v2094_v59 = vxor.u32 2147483648, %v2093_v29  ;;  %v1978_v40 = vsub.s32 32, %v9385_v5 }
 0x26a   : > { %v9426_v15 = vsub.s32 %v9344_v13, %v2281_v45  ;;  %v6656_v57 = vadd.s32 4294967169, %v2326_v23  ;;  %v2103_v2 = vadd.s32 3, %v2099_v39  ;;  %v1983_v48 = vadd.s32 127, %v1982_v1  ;;  %v9443_v45 = vpop.f32.mrb[12].mxu1 }
 0x26b   : > { %v2481_v28 = vmul.u32 %v2474_v53, %v2465_v33  ;;  %vm2483_vm13 = vc.u32 %v9407_v52, %v9395_v3  ;;  %v1962_v61 = vadd.s32 %v9102_v19, %v9096_v37  ;;  %vm6651_vm15 = vcmp.lt.s32.totalorder %v6650_v42, 0  ;;  %13078 = vst [vmem:[#allocation65_spill] sm:$0xff] %v9443_v45  ;;  %v13080_v33 = vld [vmem:[#allocation40_spill] sm:$0xff] }
 0x26c   : > { %v2485_v9 = vsel %vm2483_vm13, %v2484_v63, %v9396_v58  ;;  %v2332_v7 = vadd.s32 1, %v6656_v57  ;;  %v1890_v17 = vsel %vm9359_vm3, %v13061_v54, %v1887_v34  ;;  %v9436_v13 = vand.u32 3, %v1895_v10 }
 0x26d   : > { %v9441_v53 = vsel %vm1908_vm8, %v1992_v55, %v9238_v25  ;;  %v2486_v35 = vadd.s32 %v2485_v9, %v2481_v28  ;;  %v2095_v37 = vsel %vm2012_vm0, %v2094_v59, %v2093_v29  ;;  %v1980_v19 = vshrl.u32 %v1962_v61, %v1978_v40 }
 0x26e   : > { %13077 = vst [vmem:[#allocation36_spill] sm:$0xff] %v9436_v13  ;;  %v2284_v58 = vsub.s32 0, %v9426_v15  ;;  %vm2333_vm7 = vcmp.gt.s32.totalorder %v2332_v7, 0  ;;  %v1984_v1 = vshll.u32 %v1983_v48, 23  ;;  %v9448_v49 = vsel %vm6651_vm15, 0, %v6650_v42 }
 0x26f   : > { %v2487_v16 = vadd.s32 536870912, %v2486_v35  ;;  %v2334_v39 = vsel %vm2333_vm7, %v2332_v7, 0  ;;  %7125 = vcosq.f32 %v1890_v17  ;;  %v9450_v12 = vand.u32 3, %v2103_v2 }
 0x270   : > { %v2336_v25 = vand.u32 31, %v2334_v39  ;;  %v2533_v23 = vand.u32 2139095040, %v13080_v33  ;;  %v9453_v34 = vpop.eup %7123  ;;  %7127 = vsinq.f32 %v1890_v17  ;;  %v9458_v29 = vsel %vm9373_vm4, %v13062_v22, %v2095_v37 }
 0x271   : > { %13079 = vst [vmem:[#allocation66_spill] sm:$0xff] %v9450_v12  ;;  %13081 = vst [vmem:[#allocation67_spill] sm:$0xff] %v9453_v34  ;;  %v1979_v42 = vshll.u32 %v9284_v36, %v9385_v5  ;;  %v2190_v55 = vsub.s32 4294967266, %v9448_v49  ;;  %v6653_v63 = vmin.u32 %v2284_v58, %v9426_v15  ;;  %v12799_v59 = vand.u32 2147483647, %v13073_v31 }
 0x272   : > { %v2337_v40 = vsub.s32 32, %v2336_v25  ;;  %v9470_v2 = vor.u32 4788187, %v1984_v1  ;;  %v2170_v21 = vadd.s32 %v9219_v50, %v9211_v56  ;;  %v9474_v48 = vshrl.u32 %v2487_v16, 30 }
 0x273   : > { %v9468_v57 = vor.u32 %v1980_v19, %v1979_v42  ;;  %v2186_v36 = vsub.s32 32, %v9448_v49  ;;  %v2534_v61 = vshrl.u32 %v2533_v23, 23  ;;  %v2339_v9 = vshll.u32 %v12968_v38, %v2336_v25 }
 0x274   : > { %v2340_v28 = vshrl.u32 %v12973_v44, %v2337_v40  ;;  %v2342_v7 = vshll.u32 %v12973_v44, %v2336_v25  ;;  %v2343_v17 = vshrl.u32 %v12975_v26, %v2337_v40  ;;  %v2346_v37 = vshrl.u32 %v12974_v11, %v2337_v40 }
 0x275   : > { %v2191_v19 = vadd.s32 127, %v2190_v55  ;;  %v2286_v58 = vclz %v6653_v63  ;;  %v2329_v56 = vand.u32 8388607, %v12799_v59  ;;  %v2335_v50 = vshrl.u32 %v2334_v39, 5 }
 0x276   : > { %v2489_v1 = vshll.u32 %v9474_v48, 30  ;;  %v2341_v16 = vor.u32 %v2340_v28, %v2339_v9  ;;  %v2344_v42 = vor.u32 %v2343_v17, %v2342_v7  ;;  %v2345_v23 = vshll.u32 %v12975_v26, %v2336_v25 }
 0x277   : > { %v2348_v5 = vshll.u32 %v12974_v11, %v2336_v25  ;;  %v2349_v10 = vshrl.u32 %v12986_v32, %v2337_v40  ;;  %v2351_v12 = vshll.u32 %v12986_v32, %v2336_v25  ;;  %v2352_v22 = vshrl.u32 %v12964_v47, %v2337_v40 }
 0x278   : > { %v1986_v55 = vand.u32 2147483647, %v9470_v2  ;;  %v2187_v63 = vshll.u32 %v9337_v8, %v9448_v49  ;;  %v2347_v39 = vor.u32 %v2346_v37, %v2345_v23  ;;  %v6664_v59 = vadd.s32 4294967169, %v2534_v61 }
 0x279   : > { %v9494_v13 = vpop.eup %7125  ;;  %v2330_v28 = vor.u32 8388608, %v2329_v56  ;;  %v2350_v9 = vor.u32 %v2349_v10, %v2348_v5  ;;  %v2353_v7 = vor.u32 %v2352_v22, %v2351_v12  ;;  %vm2354_vm0 = vcmp.lt.s32.totalorder %v2335_v50, 1 }
 0x27a   : > { %13082 = vst [vmem:[#allocation68_spill] sm:$0xff] %v9494_v13  ;;  %v9496_v17 = vpop.eup %7127  ;;  %v2188_v54 = vshrl.u32 %v2170_v21, %v2186_v36  ;;  %v9498_v34 = vsub.s32 %v2486_v35, %v2489_v1  ;;  %vm2357_vm12 = vcmp.lt.s32.totalorder %v2335_v50, 4  ;;  %v2362_v25 = vsel %vm2354_vm0, %v2341_v16, %v2344_v42  ;;  %v9561_v13 = vpop.f32.mrb[13].mxu0 }
 0x27b   : > { %13083 = vst [vmem:[#allocation69_spill] sm:$0xff] %v9496_v17  ;;  %vm2116_vm14 = vcmp.lt.s32.totalorder %v13039_v60, 0  ;;  %v2192_v2 = vshll.u32 %v2191_v19, 23  ;;  %v6654_v8 = vadd.s32 4294967294, %v2286_v58  ;;  %vm2356_vm2 = vcmp.lt.s32.totalorder %v2335_v50, 3 }
 0x27c   : > { %v2363_v49 = vsel %vm2357_vm12, %v2350_v9, 920167782  ;;  %vm2355_vm3 = vcmp.lt.s32.totalorder %v2335_v50, 2  ;;  %v2366_v22 = vsel %vm2354_vm0, %v2344_v42, %v2347_v39  ;;  %v2540_v12 = vadd.s32 1, %v6664_v59 }
 0x27d   : > { %v2364_v61 = vsel %vm2356_vm2, %v2347_v39, %v2363_v49  ;;  %v2359_v10 = vsel %vm2357_vm12, %v2347_v39, 2102212464  ;;  %v2367_v35 = vsel %vm2357_vm12, %v2353_v7, 1326507024  ;;  %v2370_v36 = vshll.u32 %v2330_v28, 8 }
 0x27e   : > { %v2365_v21 = vsel %vm2355_vm3, %v2362_v25, %v2364_v61  ;;  %v2189_v5 = vor.u32 %v2188_v54, %v2187_v63  ;;  %v2492_v37 = vsub.s32 0, %v9498_v34  ;;  %v2338_v56 = vshrl.u32 %v12968_v38, %v2337_v40 }
 0x27f   : > { %v2368_v19 = vsel %vm2356_vm2, %v2350_v9, %v2367_v35  ;;  %vm6655_vm4 = vcmp.lt.s32.totalorder %v6654_v8, 0  ;;  %v9509_v1 = vmul.u32.u64.low %v2370_v36, %v2365_v21  ;;  %v9510_v23 = vmul.u32.u64.high %v2370_v36, %v2365_v21, %v9509_v1 }
 0x280   : > { %v2369_v58 = vsel %vm2355_vm3, %v2366_v22, %v2368_v19  ;;  %v2358_v59 = vsel %vm2354_vm0, %v2338_v56, %v2341_v16  ;;  %v2360_v39 = vsel %vm2356_vm2, %v2344_v42, %v2359_v10  ;;  %v12803_v28 = vand.u32 2147483647, %v13080_v33 }
 0x281   : > { %vm2541_vm11 = vcmp.gt.s32.totalorder %v2540_v12, 0  ;;  %v2193_v54 = vor.u32 4788187, %v2192_v2  ;;  %v9516_v63 = vmul.u32.u64.low %v2370_v36, %v2369_v58  ;;  %v9517_v7 = vmul.u32.u64.high %v2370_v36, %v2369_v58, %v9516_v63 }
 0x282   : > { %v2542_v40 = vsel %vm2541_vm11, %v2540_v12, 0  ;;  %v1988_v9 = vcvt.s32.f32 %v9468_v57  ;;  %v9520_v25 = vsel %vm6655_vm4, 0, %v6654_v8  ;;  %v6661_v49 = vmin.u32 %v2492_v37, %v9498_v34 }
 0x283   : > { %v2544_v61 = vand.u32 31, %v2542_v40  ;;  %7129 = vcosq.f32 %v9458_v29  ;;  %v13084_v16 = vsel %vm9414_vm10, 0, %v9441_v53  ;;  %v2361_v2 = vsel %vm2355_vm3, %v2358_v59, %v2360_v39 }
 0x284   : > { %v9528_v42 = vadd.s32 3, %v13084_v16  ;;  %v2380_v22 = vadd.s32 1, %v9510_v23  ;;  %v9532_v12 = vmul.f32 %v1988_v9, %v1986_v55  ;;  %v13085_v57 = vsub.s32 4, %v9302_v20 }
 0x285   : > { %v2537_v10 = vand.u32 8388607, %v12803_v28  ;;  %v2545_v21 = vsub.s32 32, %v2544_v61  ;;  %v2194_v53 = vand.u32 2147483647, %v2193_v54  ;;  %v2196_v35 = vcvt.s32.f32 %v2189_v5 }
 0x286   : > { %v9539_v8 = vsel %vm2116_vm14, %v13085_v57, %v9302_v20  ;;  %v2294_v50 = vsub.s32 4294967266, %v9520_v25  ;;  %vm2379_vm1 = vc.u32 %v9517_v7, %v9509_v1  ;;  %v2494_v55 = vclz %v6661_v49 }
 0x287   : > { %v2377_v37 = vmul.u32 %v2370_v36, %v2361_v2  ;;  %v2381_v56 = vsel %vm2379_vm1, %v2380_v22, %v9510_v23  ;;  %v2547_v19 = vshll.u32 %v12968_v38, %v2544_v61  ;;  %v2548_v20 = vshrl.u32 %v12973_v44, %v2545_v21 }
 0x288   : > { %v2550_v58 = vshll.u32 %v12973_v44, %v2544_v61  ;;  %v2551_v59 = vshrl.u32 %v12975_v26, %v2545_v21  ;;  %v2554_v39 = vshrl.u32 %v12974_v11, %v2545_v21  ;;  %v2538_v5 = vor.u32 8388608, %v2537_v10 }
 0x289   : > { %v9552_v54 = vshrl.u32 %v2542_v40, 5  ;;  %v2556_v63 = vshll.u32 %v12974_v11, %v2544_v61  ;;  %v2557_v9 = vshrl.u32 %v12986_v32, %v2545_v21  ;;  %v9556_v36 = vadd.s32 %v2381_v56, %v2377_v37 }
 0x28a   : > { %v2549_v23 = vor.u32 %v2548_v20, %v2547_v19  ;;  %v2552_v49 = vor.u32 %v2551_v59, %v2550_v58  ;;  %v2553_v16 = vshll.u32 %v12975_v26, %v2544_v61  ;;  %v2295_v2 = vadd.s32 127, %v2294_v50 }
 0x28b   : > { %v2558_v22 = vor.u32 %v2557_v9, %v2556_v63  ;;  %v2559_v57 = vshll.u32 %v12986_v32, %v2544_v61  ;;  %v2560_v28 = vshrl.u32 %v12964_v47, %v2545_v21  ;;  %v1990_v40 = vxor.u32 2147483648, %v9532_v12 }
 0x28c   : > { %v2274_v10 = vadd.s32 %v9309_v6, %v9316_v41  ;;  %v6662_v17 = vadd.s32 4294967294, %v2494_v55  ;;  %v2555_v37 = vor.u32 %v2554_v39, %v2553_v16  ;;  %v13086_v56 = vand.u32 2147483647, %v13039_v60 }
 0x28d   : > { %v9572_v50 = vmul.f32 %v2196_v35, %v2194_v53  ;;  %v2304_v61 = vsub.s32 4, %v9381_v27  ;;  %v2561_v20 = vor.u32 %v2560_v28, %v2559_v57  ;;  %vm2562_vm6 = vcmp.lt.s32.totalorder %v9552_v54, 1  ;;  %v9576_v58 = vpop.eup %7129  ;;  %v13090_v57 = vld [vmem:[#allocation47_spill] sm:$0xff] }
 0x28e   : > { %vm9568_vm9 = vcmp.le.f32.partialorder %v13086_v56, 0.7853982  ;;  %13089 = vst [vmem:[#allocation70_spill] sm:$0xff] %v9576_v58  ;;  %v2290_v59 = vsub.s32 32, %v9520_v25  ;;  %v2383_v6 = vadd.s32 536870912, %v9556_v36  ;;  %vm2565_vm5 = vcmp.lt.s32.totalorder %v9552_v54, 4 }
 0x28f   : > { %v2570_v41 = vsel %vm2562_vm6, %v2549_v23, %v2552_v49  ;;  %vm2220_vm13 = vcmp.lt.s32.totalorder %v13050_v43, 0  ;;  %v2296_v53 = vshll.u32 %v2295_v2, 23  ;;  %vm2564_vm15 = vcmp.lt.s32.totalorder %v9552_v54, 3 }
 0x290   : > { %v2571_v35 = vsel %vm2565_vm5, %v2558_v22, 920167782  ;;  %v2578_v28 = vshll.u32 %v2538_v5, 8  ;;  %vm6663_vm7 = vcmp.lt.s32.totalorder %v6662_v17, 0  ;;  %vm2563_vm0 = vcmp.lt.s32.totalorder %v9552_v54, 2 }
 0x291   : > { %v2572_v55 = vsel %vm2564_vm15, %v2555_v37, %v2571_v35  ;;  %v2574_v39 = vsel %vm2562_vm6, %v2552_v49, %v2555_v37  ;;  %v2567_v63 = vsel %vm2565_vm5, %v2555_v37, 2102212464  ;;  %v2575_v16 = vsel %vm2565_vm5, %v2561_v20, 1326507024 }
 0x292   : > { %v2573_v9 = vsel %vm2563_vm0, %v2570_v41, %v2572_v55  ;;  %v2637_v2 = vand.u32 2139095040, %v13090_v57  ;;  %v2292_v56 = vshrl.u32 %v2274_v10, %v2290_v59  ;;  %v9593_v58 = vshrl.u32 %v2383_v6, 30 }
 0x293   : > { %v2546_v5 = vshrl.u32 %v12968_v38, %v2545_v21  ;;  %v2576_v14 = vsel %vm2564_vm15, %v2558_v22, %v2575_v16  ;;  %v13091_v35 = vand.u32 2147483647, %v13050_v43  ;;  %v9604_v37 = vsel %vm6663_vm7, 0, %v6662_v17 }
 0x294   : > { %v2577_v20 = vsel %vm2563_vm0, %v2574_v39, %v2576_v14  ;;  %v9608_v41 = vmul.u32.u64.low %v2578_v28, %v2573_v9  ;;  %v9609_v10 = vmul.u32.u64.high %v2578_v28, %v2573_v9, %v9608_v41  ;;  %v2568_v22 = vsel %vm2564_vm15, %v2552_v49, %v2567_v63 }
 0x295   : > { %vm9600_vm12 = vcmp.le.f32.partialorder %v13091_v35, 0.7853982  ;;  %v2566_v21 = vsel %vm2562_vm6, %v2546_v5, %v2549_v23  ;;  %v9616_v59 = vmul.u32.u64.low %v2578_v28, %v2577_v20  ;;  %v9617_v6 = vmul.u32.u64.high %v2578_v28, %v2577_v20, %v9616_v59  ;;  %v13094_v35 = vld [vmem:[#allocation50_spill] sm:$0xff] }
 0x296   : > { %v1991_v17 = vsel %vm1908_vm8, %v1990_v40, %v9532_v12  ;;  %v2291_v14 = vshll.u32 %v9426_v15, %v9520_v25  ;;  %v2297_v55 = vor.u32 4788187, %v2296_v53  ;;  %v2638_v39 = vshrl.u32 %v2637_v2, 23 }
 0x297   : > { %7131 = vsinq.f32 %v9458_v29  ;;  %v2203_v23 = vsel %vm9568_vm9, 0, %v9539_v8  ;;  %v2502_v49 = vsub.s32 4294967266, %v9604_v37  ;;  %v2385_v63 = vshll.u32 %v9593_v58, 30 }
 0x298   : > { %v2293_v9 = vor.u32 %v2292_v56, %v2291_v14  ;;  %v2569_v16 = vsel %vm2563_vm0, %v2566_v21, %v2568_v22  ;;  %v2588_v12 = vadd.s32 1, %v9609_v10  ;;  %v6668_v40 = vadd.s32 4294967169, %v2638_v39  ;;  %v9648_v21 = vpop.f32.mrb[13].mxu1 }
 0x299   : > { %v1994_v15 = vsel %vm9414_vm10, %v13072_v51, %v1991_v17  ;;  %v2198_v29 = vxor.u32 2147483648, %v9572_v50  ;;  %v2305_v25 = vsel %vm2220_vm13, %v2304_v61, %v9381_v27  ;;  %vm2587_vm8 = vc.u32 %v9617_v6, %v9608_v41  ;;  %13095 = vst [vmem:[#allocation71_spill] sm:$0xff] %v9648_v21 }
 0x29a   : > { %v2298_v8 = vand.u32 2147483647, %v2297_v55  ;;  %v2498_v54 = vsub.s32 32, %v9604_v37  ;;  %v2589_v53 = vsel %vm2587_vm8, %v2588_v12, %v9609_v10  ;;  %v2644_v2 = vadd.s32 1, %v6668_v40 }
 0x29b   : > { %v2503_v56 = vadd.s32 127, %v2502_v49  ;;  %v9645_v5 = vsub.s32 %v9556_v36, %v2385_v63  ;;  %v2585_v18 = vmul.u32 %v2578_v28, %v2569_v16  ;;  %v2845_v20 = vand.u32 2139095040, %v13094_v35 }
 0x29c   : > { %v9651_v27 = vand.u32 3, %v9528_v42  ;;  %v2207_v61 = vadd.s32 3, %v2203_v23  ;;  %v2300_v22 = vcvt.s32.f32 %v2293_v9  ;;  %vm2645_vm10 = vcmp.gt.s32.totalorder %v2644_v2, 0 }
 0x29d   : > { %7133 = vcosq.f32 %v1994_v15  ;;  %v2307_v10 = vsel %vm9600_vm12, 0, %v2305_v25  ;;  %v2482_v59 = vadd.s32 %v9395_v3, %v9407_v52  ;;  %v9657_v36 = vadd.s32 %v2589_v53, %v2585_v18 }
 0x29e   : > { %13096 = vst [vmem:[#allocation72_spill] sm:$0xff] %v9651_v27  ;;  %v2199_v28 = vsel %vm2116_vm14, %v2198_v29, %v9572_v50  ;;  %v2301_v17 = vmul.f32 %v2300_v22, %v2298_v8  ;;  %v12810_v42 = vand.u32 2147483647, %v13090_v57  ;;  %v2646_v14 = vsel %vm2645_vm10, %v2644_v2, 0 }
 0x29f   : > { %v2500_v55 = vshrl.u32 %v2482_v59, %v2498_v54  ;;  %v2504_v39 = vshll.u32 %v2503_v56, 23  ;;  %v2388_v23 = vsub.s32 0, %v9645_v5  ;;  %v2846_v49 = vshrl.u32 %v2845_v20, 23 }
 0x2a0   : > { %7135 = vsinq.f32 %v1994_v15  ;;  %v9664_v63 = vand.u32 3, %v2207_v61  ;;  %vm2428_vm2 = vcmp.lt.s32.totalorder %v8555_v4, 0  ;;  %v2648_v3 = vand.u32 31, %v2646_v14 }
 0x2a1   : > { %v9667_v52 = vpop.eup %7131  ;;  %v9672_v50 = vsel %vm9568_vm9, %v13039_v60, %v2199_v28  ;;  %v9674_v9 = vadd.s32 3, %v2307_v10  ;;  %v2499_v16 = vshll.u32 %v9498_v34, %v9604_v37  ;;  %v2591_v12 = vadd.s32 536870912, %v9657_v36 }
 0x2a2   : > { %13097 = vst [vmem:[#allocation73_spill] sm:$0xff] %v9664_v63  ;;  %13098 = vst [vmem:[#allocation74_spill] sm:$0xff] %v9667_v52  ;;  %v2302_v40 = vxor.u32 2147483648, %v2301_v17  ;;  %v2512_v15 = vsub.s32 4, %v9474_v48  ;;  %v2641_v29 = vand.u32 8388607, %v12810_v42  ;;  %v6657_v19 = vmin.u32 %v2388_v23, %v9645_v5 }
 0x2a3   : > { %v2649_v25 = vsub.s32 32, %v2648_v3  ;;  %v2501_v8 = vor.u32 %v2500_v55, %v2499_v16  ;;  %v2505_v54 = vor.u32 4788187, %v2504_v39  ;;  %v6676_v53 = vadd.s32 4294967169, %v2846_v49 }
 0x2a4   : > { %v2651_v2 = vshll.u32 %v12968_v38, %v2648_v3  ;;  %v2654_v34 = vshll.u32 %v12973_v44, %v2648_v3  ;;  %v9687_v18 = vshrl.u32 %v2591_v12, 30  ;;  %v2647_v20 = vshrl.u32 %v2646_v14, 5 }
 0x2a5   : > { %v2652_v56 = vshrl.u32 %v12973_v44, %v2649_v25  ;;  %v2655_v37 = vshrl.u32 %v12975_v26, %v2649_v25  ;;  %v2657_v61 = vshll.u32 %v12975_v26, %v2648_v3  ;;  %v2658_v22 = vshrl.u32 %v12974_v11, %v2649_v25 }
 0x2a6   : > { %v2660_v28 = vshll.u32 %v12974_v11, %v2648_v3  ;;  %v2661_v55 = vshrl.u32 %v12986_v32, %v2649_v25  ;;  %v2506_v23 = vand.u32 2147483647, %v2505_v54  ;;  %v9698_v49 = vsel %vm2428_vm2, %v2512_v15, %v9474_v48 }
 0x2a7   : > { %v2653_v10 = vor.u32 %v2652_v56, %v2651_v2  ;;  %v2656_v59 = vor.u32 %v2655_v37, %v2654_v34  ;;  %v9693_v39 = vpop.eup %7133  ;;  %v2390_v16 = vclz %v6657_v19  ;;  %v2852_v14 = vadd.s32 1, %v6676_v53 }
 0x2a8   : > { %13099 = vst [vmem:[#allocation75_spill] sm:$0xff] %v9693_v39  ;;  %v2659_v12 = vor.u32 %v2658_v22, %v2657_v61  ;;  %v2662_v42 = vor.u32 %v2661_v55, %v2660_v28  ;;  %v2663_v52 = vshll.u32 %v12986_v32, %v2648_v3  ;;  %v2664_v2 = vshrl.u32 %v12964_v47, %v2649_v25 }
 0x2a9   : > { %v2303_v56 = vsel %vm2220_vm13, %v2302_v40, %v2301_v17  ;;  %v2508_v34 = vcvt.s32.f32 %v2501_v8  ;;  %v2593_v37 = vshll.u32 %v9687_v18, 30  ;;  %vm2666_vm14 = vcmp.lt.s32.totalorder %v2647_v20, 1 }
 0x2aa   : > { %v9705_v54 = vpop.eup %7135  ;;  %v13101_v48 = vand.u32 2147483647, %v8555_v4  ;;  %v2642_v19 = vor.u32 8388608, %v2641_v29  ;;  %v2665_v53 = vor.u32 %v2664_v2, %v2663_v52  ;;  %vm2669_vm4 = vcmp.lt.s32.totalorder %v2647_v20, 4 }
 0x2ab   : > { %13100 = vst [vmem:[#allocation76_spill] sm:$0xff] %v9705_v54  ;;  %v2674_v3 = vsel %vm2666_vm14, %v2653_v10, %v2656_v59  ;;  %v9714_v61 = vmul.f32 %v2508_v34, %v2506_v23  ;;  %v6658_v17 = vadd.s32 4294967294, %v2390_v16  ;;  %vm2668_vm11 = vcmp.lt.s32.totalorder %v2647_v20, 3 }
 0x2ac   : > { %vm9709_vm3 = vcmp.le.f32.partialorder %v13101_v48, 0.7853982  ;;  %v2675_v40 = vsel %vm2669_vm4, %v2662_v42, 920167782  ;;  %vm2667_vm1 = vcmp.lt.s32.totalorder %v2647_v20, 2  ;;  %vm2853_vm9 = vcmp.gt.s32.totalorder %v2852_v14, 0 }
 0x2ad   : > { %v2671_v8 = vsel %vm2669_vm4, %v2659_v12, 2102212464  ;;  %v2676_v22 = vsel %vm2668_vm11, %v2659_v12, %v2675_v40  ;;  %v9718_v28 = vsub.s32 %v9657_v36, %v2593_v37  ;;  %v2650_v55 = vshrl.u32 %v12968_v38, %v2649_v25 }
 0x2ae   : > { %v2677_v52 = vsel %vm2667_vm1, %v2674_v3, %v2676_v22  ;;  %v2678_v29 = vsel %vm2666_vm14, %v2656_v59, %v2659_v12  ;;  %v2679_v2 = vsel %vm2669_vm4, %v2665_v53, 1326507024  ;;  %v2682_v23 = vshll.u32 %v2642_v19, 8 }
 0x2af   : > { %v12813_v16 = vand.u32 2147483647, %v13094_v35  ;;  %v2741_v34 = vand.u32 2139095040, %v9140_v62  ;;  %vm6659_vm6 = vcmp.lt.s32.totalorder %v6658_v17, 0  ;;  %v2670_v48 = vsel %vm2666_vm14, %v2650_v55, %v2653_v10 }
 0x2b0   : > { %v2672_v40 = vsel %vm2668_vm11, %v2656_v59, %v2671_v8  ;;  %v2680_v36 = vsel %vm2668_vm11, %v2662_v42, %v2679_v2  ;;  %v9729_v25 = vmul.u32.u64.low %v2682_v23, %v2677_v52  ;;  %v9730_v63 = vmul.u32.u64.high %v2682_v23, %v2677_v52, %v9729_v25 }
 0x2b1   : > { %v2681_v37 = vsel %vm2667_vm1, %v2678_v29, %v2680_v36  ;;  %v2854_v12 = vsel %vm2853_vm9, %v2852_v14, 0  ;;  %v9734_v19 = vand.u32 3, %v9674_v9  ;;  %v2596_v53 = vsub.s32 0, %v9718_v28 }
 0x2b2   : > { %v9737_v3 = vmul.u32.u64.low %v2682_v23, %v2681_v37  ;;  %v9738_v22 = vmul.u32.u64.high %v2682_v23, %v2681_v37, %v9737_v3  ;;  %v9740_v10 = vsel %vm6659_vm6, 0, %v6658_v17  ;;  %v2673_v59 = vsel %vm2667_vm1, %v2670_v48, %v2672_v40  ;;  %v9754_v17 = vpop.f32.mrb[14].mxu0 }
 0x2b3   : > { %13104 = vst [vmem:[#allocation77_spill] sm:$0xff] %v9734_v19  ;;  %v2856_v42 = vand.u32 31, %v2854_v12  ;;  %v2742_v8 = vshrl.u32 %v2741_v34, 23  ;;  %7137 = vcosq.f32 %v9672_v50  ;;  %v9747_v14 = vsel %vm9600_vm12, %v13050_v43, %v2303_v56  ;;  %13105 = vst [vmem:[#allocation78_spill] sm:$0xff] %v9754_v17 }
 0x2b4   : > { %v2378_v55 = vadd.s32 %v9509_v1, %v9517_v7  ;;  %v2692_v52 = vadd.s32 1, %v9730_v63  ;;  %v2849_v29 = vand.u32 8388607, %v12813_v16  ;;  %v2398_v46 = vsub.s32 4294967266, %v9740_v10 }
 0x2b5   : > { %v2857_v2 = vsub.s32 32, %v2856_v42  ;;  %v6665_v56 = vmin.u32 %v2596_v53, %v9718_v28  ;;  %v2689_v34 = vmul.u32 %v2682_v23, %v2673_v59  ;;  %vm2691_vm5 = vc.u32 %v9738_v22, %v9729_v25 }
 0x2b6   : > { %v2693_v1 = vsel %vm2691_vm5, %v2692_v52, %v9730_v63  ;;  %v6672_v40 = vadd.s32 4294967169, %v2742_v8  ;;  %v2859_v37 = vshll.u32 %v12968_v38, %v2856_v42  ;;  %v2862_v3 = vshll.u32 %v12973_v44, %v2856_v42 }
 0x2b7   : > { %v2860_v7 = vshrl.u32 %v12973_v44, %v2857_v2  ;;  %v2863_v48 = vshrl.u32 %v12975_v26, %v2857_v2  ;;  %v2694_v36 = vadd.s32 %v2693_v1, %v2689_v34  ;;  %v2866_v16 = vshrl.u32 %v12974_v11, %v2857_v2 }
 0x2b8   : > { %v2855_v20 = vshrl.u32 %v2854_v12, 5  ;;  %v2865_v23 = vshll.u32 %v12975_v26, %v2856_v42  ;;  %v2868_v53 = vshll.u32 %v12974_v11, %v2856_v42  ;;  %v2869_v59 = vshrl.u32 %v12986_v32, %v2857_v2 }
 0x2b9   : > { %v2598_v63 = vclz %v6665_v56  ;;  %v2695_v52 = vadd.s32 536870912, %v2694_v36  ;;  %v2861_v9 = vor.u32 %v2860_v7, %v2859_v37  ;;  %v2864_v19 = vor.u32 %v2863_v48, %v2862_v3 }
 0x2ba   : > { %v2867_v43 = vor.u32 %v2866_v16, %v2865_v23  ;;  %v2870_v8 = vor.u32 %v2869_v59, %v2868_v53  ;;  %v2871_v34 = vshll.u32 %v12986_v32, %v2856_v42  ;;  %v2872_v1 = vshrl.u32 %v12964_v47, %v2857_v2 }
 0x2bb   : > { %v2394_v60 = vsub.s32 32, %v9740_v10  ;;  %v9776_v39 = vshrl.u32 %v2695_v52, 30  ;;  %v2850_v12 = vor.u32 8388608, %v2849_v29  ;;  %v2395_v27 = vshll.u32 %v9645_v5, %v9740_v10 }
 0x2bc   : > { %v2399_v56 = vadd.s32 127, %v2398_v46  ;;  %v2873_v51 = vor.u32 %v2872_v1, %v2871_v34  ;;  %vm2874_vm13 = vcmp.lt.s32.totalorder %v2855_v20, 1  ;;  %v6666_v16 = vadd.s32 4294967294, %v2598_v63 }
 0x2bd   : > { %v9781_v7 = vpop.eup %7137  ;;  %vm2877_vm15 = vcmp.lt.s32.totalorder %v2855_v20, 4  ;;  %v2882_v42 = vsel %vm2874_vm13, %v2861_v9, %v2864_v19  ;;  %v2748_v48 = vadd.s32 1, %v6672_v40  ;;  %v2858_v37 = vshrl.u32 %v12968_v38, %v2857_v2 }
 0x2be   : > { %13106 = vst [vmem:[#allocation79_spill] sm:$0xff] %v9781_v7  ;;  %vm2876_vm7 = vcmp.lt.s32.totalorder %v2855_v20, 3  ;;  %v2879_v3 = vsel %vm2877_vm15, %v2867_v43, 2102212464  ;;  %v2883_v29 = vsel %vm2877_vm15, %v2870_v8, 920167782  ;;  %v2886_v5 = vsel %vm2874_vm13, %v2864_v19, %v2867_v43 }
 0x2bf   : > { %v2697_v23 = vshll.u32 %v9776_v39, 30  ;;  %vm2875_vm0 = vcmp.lt.s32.totalorder %v2855_v20, 2  ;;  %v2884_v53 = vsel %vm2876_vm7, %v2867_v43, %v2883_v29  ;;  %v2396_v10 = vshrl.u32 %v2378_v55, %v2394_v60 }
 0x2c0   : > { %v2885_v46 = vsel %vm2875_vm0, %v2882_v42, %v2884_v53  ;;  %v2887_v59 = vsel %vm2877_vm15, %v2873_v51, 1326507024  ;;  %v2890_v63 = vshll.u32 %v2850_v12, 8  ;;  %v2400_v52 = vshll.u32 %v2399_v56, 23 }
 0x2c1   : > { %v2878_v34 = vsel %vm2874_vm13, %v2858_v37, %v2861_v9  ;;  %v2880_v40 = vsel %vm2876_vm7, %v2864_v19, %v2879_v3  ;;  %v2888_v1 = vsel %vm2876_vm7, %v2870_v8, %v2887_v59  ;;  %vm2749_vm12 = vcmp.gt.s32.totalorder %v2748_v48, 0  ;;  %v9831_v59 = vpop.f32.mrb[14].mxu1 }
 0x2c2   : > { %v2889_v2 = vsel %vm2875_vm0, %v2886_v5, %v2888_v1  ;;  %v9790_v54 = vmul.u32.u64.low %v2890_v63, %v2885_v46  ;;  %v9791_v7 = vmul.u32.u64.high %v2890_v63, %v2885_v46, %v9790_v54  ;;  %vm6667_vm8 = vcmp.lt.s32.totalorder %v6666_v16, 0  ;;  %13111 = vst [vmem:[#allocation81_spill] sm:$0xff] %v9831_v59 }
 0x2c3   : > { %v9794_v29 = vsub.s32 %v2694_v36, %v2697_v23  ;;  %v9796_v60 = vmul.u32.u64.low %v2890_v63, %v2889_v2  ;;  %v9797_v43 = vmul.u32.u64.high %v2890_v63, %v2889_v2, %v9796_v60  ;;  %7139 = vsinq.f32 %v9672_v50 }
 0x2c4   : > { %v13107_v51 = vsel %vm9709_vm3, 0, %v9698_v49  ;;  %v2881_v9 = vsel %vm2875_vm0, %v2878_v34, %v2880_v40  ;;  %v2750_v55 = vsel %vm2749_vm12, %v2748_v48, 0  ;;  %7141 = vcosq.f32 %v9747_v14 }
 0x2c5   : > { %v2519_v19 = vadd.s32 3, %v13107_v51  ;;  %v13108_v8 = vxor.u32 2147483648, %v9714_v61  ;;  %v2397_v12 = vor.u32 %v2396_v10, %v2395_v27  ;;  %v2752_v56 = vand.u32 31, %v2750_v55 }
 0x2c6   : > { %vm2324_vm10 = vcmp.lt.s32.totalorder %v13073_v31, 0  ;;  %v2401_v50 = vor.u32 4788187, %v2400_v52  ;;  %v9812_v42 = vsel %vm6667_vm8, 0, %v6666_v16  ;;  %v2900_v49 = vadd.s32 1, %v9791_v7 }
 0x2c7   : > { %v2511_v36 = vsel %vm2428_vm2, %v13108_v8, %v9714_v61  ;;  %v13109_v20 = vand.u32 2147483647, %v9140_v62  ;;  %v2700_v37 = vsub.s32 0, %v9794_v29  ;;  %v2897_v3 = vmul.u32 %v2890_v63, %v2881_v9 }
 0x2c8   : > { %vm2899_vm14 = vc.u32 %v9797_v43, %v9790_v54  ;;  %v2753_v23 = vsub.s32 32, %v2752_v56  ;;  %7143 = vsinq.f32 %v9747_v14  ;;  %v9821_v27 = vand.u32 3, %v2519_v19 }
 0x2c9   : > { %v2745_v48 = vand.u32 8388607, %v13109_v20  ;;  %v2408_v61 = vsub.s32 4, %v9593_v58  ;;  %v2901_v16 = vsel %vm2899_vm14, %v2900_v49, %v9791_v7  ;;  %v9828_v53 = vsel %vm9709_vm3, %v8555_v4, %v2511_v36 }
 0x2ca   : > { %13110 = vst [vmem:[#allocation80_spill] sm:$0xff] %v9821_v27  ;;  %v2404_v5 = vcvt.s32.f32 %v2397_v12  ;;  %v2902_v10 = vadd.s32 %v2901_v16, %v2897_v3  ;;  %v2756_v46 = vshrl.u32 %v12973_v44, %v2753_v23  ;;  %v2402_v63 = vand.u32 2147483647, %v2401_v50 }
 0x2cb   : > { %v2606_v14 = vsub.s32 4294967266, %v9812_v42  ;;  %v2746_v52 = vor.u32 8388608, %v2745_v48  ;;  %v2759_v34 = vshrl.u32 %v12975_v26, %v2753_v23  ;;  %v6669_v40 = vmin.u32 %v2700_v37, %v9794_v29 }
 0x2cc   : > { %v2903_v7 = vadd.s32 536870912, %v2902_v10  ;;  %v2755_v1 = vshll.u32 %v12968_v38, %v2752_v56  ;;  %v2762_v15 = vshrl.u32 %v12974_v11, %v2753_v23  ;;  %v2758_v2 = vshll.u32 %v12973_v44, %v2752_v56 }
 0x2cd   : > { %v2764_v60 = vshll.u32 %v12974_v11, %v2752_v56  ;;  %v2765_v51 = vshrl.u32 %v12986_v32, %v2753_v23  ;;  %v2949_v19 = vand.u32 2139095040, %v9249_v0  ;;  %v2751_v8 = vshrl.u32 %v2750_v55, 5  ;;  %v9845_v50 = vpop.eup %7139 }
 0x2ce   : > { %v9842_v9 = vshrl.u32 %v2903_v7, 30  ;;  %v2757_v36 = vor.u32 %v2756_v46, %v2755_v1  ;;  %v2761_v12 = vshll.u32 %v12975_v26, %v2752_v56  ;;  %13112 = vst [vmem:[#allocation82_spill] sm:$0xff] %v9845_v50  ;;  %v2760_v49 = vor.u32 %v2759_v34, %v2758_v2  ;;  %v9849_v3 = vpop.eup %7141 }
 0x2cf   : > { %v2766_v20 = vor.u32 %v2765_v51, %v2764_v60  ;;  %v2767_v48 = vshll.u32 %v12986_v32, %v2752_v56  ;;  %v2768_v37 = vshrl.u32 %v12964_v47, %v2753_v23  ;;  %13113 = vst [vmem:[#allocation83_spill] sm:$0xff] %v9849_v3  ;;  %v13114_v16 = vand.u32 2147483647, %v13073_v31 }
 0x2d0   : > { %v2409_v55 = vsel %vm2324_vm10, %v2408_v61, %v9593_v58  ;;  %v2586_v46 = vadd.s32 %v9608_v41, %v9617_v6  ;;  %v2905_v34 = vshll.u32 %v9842_v9, 30  ;;  %v2763_v56 = vor.u32 %v2762_v15, %v2761_v12 }
 0x2d1   : > { %vm9853_vm2 = vcmp.le.f32.partialorder %v13114_v16, 0.7853982  ;;  %v2405_v7 = vmul.f32 %v2404_v5, %v2402_v63  ;;  %v2602_v1 = vsub.s32 32, %v9812_v42  ;;  %v2616_v2 = vsub.s32 4, %v9687_v18 }
 0x2d2   : > { %v2769_v60 = vor.u32 %v2768_v37, %v2767_v48  ;;  %vm2532_vm3 = vcmp.lt.s32.totalorder %v13080_v33, 0  ;;  %v2607_v51 = vadd.s32 127, %v2606_v14  ;;  %v2702_v16 = vclz %v6669_v40  ;;  %v9866_v3 = vpop.eup %7143 }
 0x2d3   : > { %vm2770_vm4 = vcmp.lt.s32.totalorder %v2751_v8, 1  ;;  %vm2773_vm11 = vcmp.lt.s32.totalorder %v2751_v8, 4  ;;  %13117 = vst [vmem:[#allocation84_spill] sm:$0xff] %v9866_v3  ;;  %v2786_v6 = vshll.u32 %v2746_v52, 8  ;;  %v2950_v61 = vshrl.u32 %v2949_v19, 23 }
 0x2d4   : > { %v2778_v58 = vsel %vm2770_vm4, %v2757_v36, %v2760_v49  ;;  %v2779_v41 = vsel %vm2773_vm11, %v2766_v20, 920167782  ;;  %v9869_v15 = vsub.s32 %v2902_v10, %v2905_v34  ;;  %v2754_v5 = vshrl.u32 %v12968_v38, %v2753_v23 }
 0x2d5   : > { %vm2772_vm1 = vcmp.lt.s32.totalorder %v2751_v8, 3  ;;  %v2775_v63 = vsel %vm2773_vm11, %v2763_v56, 2102212464  ;;  %v13118_v12 = vand.u32 2147483647, %v13080_v33  ;;  %vm2771_vm6 = vcmp.lt.s32.totalorder %v2751_v8, 2 }
 0x2d6   : > { %v2780_v40 = vsel %vm2772_vm1, %v2763_v56, %v2779_v41  ;;  %v2782_v48 = vsel %vm2770_vm4, %v2760_v49, %v2763_v56  ;;  %v2783_v37 = vsel %vm2773_vm11, %v2769_v60, 1326507024  ;;  %v2608_v3 = vshll.u32 %v2607_v51, 23 }
 0x2d7   : > { %vm9874_vm9 = vcmp.le.f32.partialorder %v13118_v12, 0.7853982  ;;  %v6670_v52 = vadd.s32 4294967294, %v2702_v16  ;;  %v2774_v10 = vsel %vm2770_vm4, %v2754_v5, %v2757_v36  ;;  %v2781_v19 = vsel %vm2771_vm6, %v2778_v58, %v2780_v40 }
 0x2d8   : > { %v2776_v23 = vsel %vm2772_vm1, %v2760_v49, %v2775_v63  ;;  %v2784_v34 = vsel %vm2772_vm1, %v2766_v20, %v2783_v37  ;;  %v9881_v4 = vmul.u32.u64.low %v2786_v6, %v2781_v19  ;;  %v9882_v50 = vmul.u32.u64.high %v2786_v6, %v2781_v19, %v9881_v4 }
 0x2d9   : > { %v2604_v12 = vshrl.u32 %v2586_v46, %v2602_v1  ;;  %v2908_v24 = vsub.s32 0, %v9869_v15  ;;  %v2785_v41 = vsel %vm2771_vm6, %v2782_v48, %v2784_v34  ;;  %v6680_v59 = vadd.s32 4294967169, %v2950_v61 }
 0x2da   : > { %v2406_v56 = vxor.u32 2147483648, %v2405_v7  ;;  %v2411_v60 = vsel %vm9853_vm2, 0, %v2409_v55  ;;  %v9889_v51 = vmul.u32.u64.low %v2786_v6, %v2785_v41  ;;  %v9890_v36 = vmul.u32.u64.high %v2786_v6, %v2785_v41, %v9889_v51 }
 0x2db   : > { %v2603_v49 = vshll.u32 %v9718_v28, %v9812_v42  ;;  %vm6671_vm5 = vcmp.lt.s32.totalorder %v6670_v52, 0  ;;  %v2777_v20 = vsel %vm2771_vm6, %v2774_v10, %v2776_v23  ;;  %v2956_v16 = vadd.s32 1, %v6680_v59 }
 0x2dc   : > { %7145 = vcosq.f32 %v9828_v53  ;;  %v2609_v46 = vor.u32 4788187, %v2608_v3  ;;  %v2617_v1 = vsel %vm2532_vm3, %v2616_v2, %v9687_v18  ;;  %v2796_v58 = vadd.s32 1, %v9882_v50 }
 0x2dd   : > { %v2415_v55 = vadd.s32 3, %v2411_v60  ;;  %v2605_v61 = vor.u32 %v2604_v12, %v2603_v49  ;;  %v6677_v5 = vmin.u32 %v2908_v24, %v9869_v15  ;;  %vm2957_vm13 = vcmp.gt.s32.totalorder %v2956_v16, 0 }
 0x2de   : > { %v2705_v63 = vsel %vm6671_vm5, 0, %v6670_v52  ;;  %v2793_v28 = vmul.u32 %v2786_v6, %v2777_v20  ;;  %vm2795_vm15 = vc.u32 %v9890_v36, %v9881_v4  ;;  %v3053_v42 = vand.u32 2139095040, %v9369_v30 }
 0x2df   : > { %7147 = vsinq.f32 %v9828_v53  ;;  %v2407_v59 = vsel %vm2324_vm10, %v2406_v56, %v2405_v7  ;;  %v2619_v18 = vsel %vm9874_vm9, 0, %v2617_v1  ;;  %v2797_v8 = vsel %vm2795_vm15, %v2796_v58, %v9882_v50 }
 0x2e0   : > { %v2610_v3 = vand.u32 2147483647, %v2609_v46  ;;  %v2798_v24 = vadd.s32 %v2797_v8, %v2793_v28  ;;  %v12830_v2 = vand.u32 2147483647, %v9249_v0  ;;  %v2958_v6 = vsel %vm2957_vm13, %v2956_v16, 0  ;;  %v9930_v46 = vpop.f32.mrb[15].mxu0 }
 0x2e1   : > { %v2706_v40 = vsub.s32 32, %v2705_v63  ;;  %v2710_v48 = vsub.s32 4294967266, %v2705_v63  ;;  %v2910_v37 = vclz %v6677_v5  ;;  %v2960_v52 = vand.u32 31, %v2958_v6 }
 0x2e2   : > { %v9911_v10 = vand.u32 3, %v2415_v55  ;;  %v2612_v53 = vcvt.s32.f32 %v2605_v61  ;;  %v2799_v19 = vadd.s32 536870912, %v2798_v24  ;;  %v3054_v23 = vshrl.u32 %v3053_v42, 23 }
 0x2e3   : > { %v9916_v7 = vsel %vm9853_vm2, %v13073_v31, %v2407_v59  ;;  %v9918_v50 = vadd.s32 3, %v2619_v18  ;;  %v2690_v34 = vadd.s32 %v9729_v25, %v9738_v22  ;;  %v2961_v12 = vsub.s32 32, %v2960_v52 }
 0x2e4   : > { %13121 = vst [vmem:[#allocation85_spill] sm:$0xff] %v9911_v10  ;;  %v9922_v41 = vmul.f32 %v2612_v53, %v2610_v3  ;;  %v2707_v56 = vshll.u32 %v9794_v29, %v2705_v63  ;;  %v9925_v60 = vshrl.u32 %v2799_v19, 30  ;;  %v2953_v51 = vand.u32 8388607, %v12830_v2 }
 0x2e5   : > { %v2708_v49 = vshrl.u32 %v2690_v34, %v2706_v40  ;;  %v2711_v20 = vadd.s32 127, %v2710_v48  ;;  %v6678_v27 = vadd.s32 4294967294, %v2910_v37  ;;  %v2964_v16 = vshrl.u32 %v12973_v44, %v2961_v12 }
 0x2e6   : > { %v9932_v1 = vpop.eup %7145  ;;  %v2963_v25 = vshll.u32 %v12968_v38, %v2960_v52  ;;  %v2967_v22 = vshrl.u32 %v12975_v26, %v2961_v12  ;;  %v2970_v29 = vshrl.u32 %v12974_v11, %v2961_v12  ;;  %v6684_v58 = vadd.s32 4294967169, %v3054_v23 }
 0x2e7   : > { %13122 = vst [vmem:[#allocation86_spill] sm:$0xff] %v9932_v1  ;;  %v2966_v55 = vshll.u32 %v12973_v44, %v2960_v52  ;;  %v2969_v61 = vshll.u32 %v12975_v26, %v2960_v52  ;;  %v2972_v5 = vshll.u32 %v12974_v11, %v2960_v52  ;;  %v2973_v63 = vshrl.u32 %v12986_v32, %v2961_v12 }
 0x2e8   : > { %v2801_v28 = vshll.u32 %v9925_v60, 30  ;;  %v2959_v42 = vshrl.u32 %v2958_v6, 5  ;;  %v2965_v59 = vor.u32 %v2964_v16, %v2963_v25  ;;  %v2975_v18 = vshll.u32 %v12986_v32, %v2960_v52 }
 0x2e9   : > { %v9943_v8 = vpop.eup %7147  ;;  %v2968_v3 = vor.u32 %v2967_v22, %v2966_v55  ;;  %v2971_v40 = vor.u32 %v2970_v29, %v2969_v61  ;;  %v2974_v48 = vor.u32 %v2973_v63, %v2972_v5  ;;  %v2976_v37 = vshrl.u32 %v12964_v47, %v2961_v12 }
 0x2ea   : > { %13123 = vst [vmem:[#allocation87_spill] sm:$0xff] %v9943_v8  ;;  %v2614_v53 = vxor.u32 2147483648, %v9922_v41  ;;  %v2720_v19 = vsub.s32 4, %v9776_v39  ;;  %v2954_v23 = vor.u32 8388608, %v2953_v51  ;;  %vm2636_vm7 = vcmp.lt.s32.totalorder %v13090_v57, 0 }
 0x2eb   : > { %v9950_v6 = vor.u32 %v2708_v49, %v2707_v56  ;;  %v2712_v16 = vshll.u32 %v2711_v20, 23  ;;  %vm6679_vm0 = vcmp.lt.s32.totalorder %v6678_v27, 0  ;;  %v2977_v52 = vor.u32 %v2976_v37, %v2975_v18 }
 0x2ec   : > { %v9952_v25 = vsub.s32 %v2798_v24, %v2801_v28  ;;  %vm2978_vm12 = vcmp.lt.s32.totalorder %v2959_v42, 1  ;;  %vm2981_vm8 = vcmp.lt.s32.totalorder %v2959_v42, 4  ;;  %v3060_v22 = vadd.s32 1, %v6684_v58 }
 0x2ed   : > { %vm2980_vm10 = vcmp.lt.s32.totalorder %v2959_v42, 3  ;;  %v2983_v29 = vsel %vm2981_vm8, %v2971_v40, 2102212464  ;;  %v2986_v55 = vsel %vm2978_vm12, %v2965_v59, %v2968_v3  ;;  %v2987_v61 = vsel %vm2981_vm8, %v2974_v48, 920167782 }
 0x2ee   : > { %v2962_v51 = vshrl.u32 %v12968_v38, %v2961_v12  ;;  %vm2979_vm14 = vcmp.lt.s32.totalorder %v2959_v42, 2  ;;  %v2988_v5 = vsel %vm2980_vm10, %v2971_v40, %v2987_v61  ;;  %v2994_v63 = vshll.u32 %v2954_v23, 8 }
 0x2ef   : > { %v9956_v56 = vsel %vm6679_vm0, 0, %v6678_v27  ;;  %v2989_v49 = vsel %vm2979_vm14, %v2986_v55, %v2988_v5  ;;  %v2990_v24 = vsel %vm2978_vm12, %v2968_v3, %v2971_v40  ;;  %v2991_v20 = vsel %vm2981_vm8, %v2977_v52, 1326507024 }
 0x2f0   : > { %v2804_v28 = vsub.s32 0, %v9952_v25  ;;  %v2982_v58 = vsel %vm2978_vm12, %v2962_v51, %v2965_v59  ;;  %v2984_v18 = vsel %vm2980_vm10, %v2968_v3, %v2983_v29  ;;  %v2992_v37 = vsel %vm2980_vm10, %v2974_v48, %v2991_v20 }
 0x2f1   : > { %v2993_v2 = vsel %vm2979_vm14, %v2990_v24, %v2992_v37  ;;  %v9963_v34 = vmul.u32.u64.low %v2994_v63, %v2989_v49  ;;  %v9964_v12 = vmul.u32.u64.high %v2994_v63, %v2989_v49, %v9963_v34  ;;  %vm3061_vm2 = vcmp.gt.s32.totalorder %v3060_v22, 0 }
 0x2f2   : > { %v2713_v27 = vor.u32 4788187, %v2712_v16  ;;  %v9967_v23 = vmul.u32.u64.low %v2994_v63, %v2993_v2  ;;  %v9968_v61 = vmul.u32.u64.high %v2994_v63, %v2993_v2, %v9967_v23  ;;  %v3062_v55 = vsel %vm3061_vm2, %v3060_v22, 0 }
 0x2f3   : > { %7149 = vcosq.f32 %v9916_v7  ;;  %v9972_v40 = vand.u32 3, %v9918_v50  ;;  %v2985_v59 = vsel %vm2979_vm14, %v2982_v58, %v2984_v18  ;;  %v3064_v3 = vand.u32 31, %v3062_v55 }
 0x2f4   : > { %v9978_v48 = vsel %vm2532_vm3, %v2614_v53, %v9922_v41  ;;  %v9983_v16 = vsel %vm2636_vm7, %v2720_v19, %v9776_v39  ;;  %v2918_v2 = vsub.s32 4294967266, %v9956_v56  ;;  %v6673_v52 = vmin.u32 %v2804_v28, %v9952_v25 }
 0x2f5   : > { %13124 = vst [vmem:[#allocation88_spill] sm:$0xff] %v9972_v40  ;;  %v2716_v50 = vcvt.s32.f32 %v9950_v6  ;;  %v2898_v42 = vadd.s32 %v9790_v54, %v9797_v43  ;;  %v3004_v22 = vadd.s32 1, %v9964_v12  ;;  %v3065_v29 = vsub.s32 32, %v3064_v3  ;;  %v9999_v54 = vpop.f32.mrb[15].mxu1 }
 0x2f6   : > { %v2714_v51 = vand.u32 2147483647, %v2713_v27  ;;  %v3001_v41 = vmul.u32 %v2994_v63, %v2985_v59  ;;  %vm3003_vm3 = vc.u32 %v9968_v61, %v9963_v34  ;;  %v13125_v39 = vand.u32 2147483647, %v9369_v30  ;;  %13126 = vst [vmem:[#allocation89_spill] sm:$0xff] %v9999_v54 }
 0x2f7   : > { %v2914_v19 = vsub.s32 32, %v9956_v56  ;;  %v3005_v5 = vsel %vm3003_vm3, %v3004_v22, %v9964_v12  ;;  %v3068_v6 = vshrl.u32 %v12973_v44, %v3065_v29  ;;  %v3071_v49 = vshrl.u32 %v12975_v26, %v3065_v29 }
 0x2f8   : > { %v3057_v53 = vand.u32 8388607, %v13125_v39  ;;  %v2919_v43 = vadd.s32 127, %v2918_v2  ;;  %v2806_v24 = vclz %v6673_v52  ;;  %v3006_v20 = vadd.s32 %v3005_v5, %v3001_v41 }
 0x2f9   : > { %v3067_v63 = vshll.u32 %v12968_v38, %v3064_v3  ;;  %v3063_v28 = vshrl.u32 %v3062_v55, 5  ;;  %v3070_v58 = vshll.u32 %v12973_v44, %v3064_v3  ;;  %v3073_v18 = vshll.u32 %v12975_v26, %v3064_v3 }
 0x2fa   : > { %v3074_v37 = vshrl.u32 %v12974_v11, %v3065_v29  ;;  %v3007_v27 = vadd.s32 536870912, %v3006_v20  ;;  %v3076_v23 = vshll.u32 %v12974_v11, %v3064_v3  ;;  %v3077_v59 = vshrl.u32 %v12986_v32, %v3065_v29 }
 0x2fb   : > { %v3069_v12 = vor.u32 %v3068_v6, %v3067_v63  ;;  %v13127_v22 = vand.u32 2147483647, %v13090_v57  ;;  %v3072_v52 = vor.u32 %v3071_v49, %v3070_v58  ;;  %v3079_v41 = vshll.u32 %v12986_v32, %v3064_v3 }
 0x2fc   : > { %v3075_v55 = vor.u32 %v3074_v37, %v3073_v18  ;;  %v3080_v39 = vshrl.u32 %v12964_v47, %v3065_v29  ;;  %vm2844_vm11 = vcmp.lt.s32.totalorder %v13094_v35, 0  ;;  %v2920_v5 = vshll.u32 %v2919_v43, 23 }
 0x2fd   : > { %vm10009_vm4 = vcmp.le.f32.partialorder %v13127_v22, 0.7853982  ;;  %v10016_v6 = vshrl.u32 %v3007_v27, 30  ;;  %v3058_v63 = vor.u32 8388608, %v3057_v53  ;;  %v3078_v1 = vor.u32 %v3077_v59, %v3076_v23  ;;  %v10018_v8 = vpop.eup %7149 }
 0x2fe   : > { %13130 = vst [vmem:[#allocation90_spill] sm:$0xff] %v10018_v8  ;;  %v2717_v40 = vmul.f32 %v2716_v50, %v2714_v51  ;;  %v2915_v22 = vshll.u32 %v9869_v15, %v9956_v56  ;;  %v2928_v49 = vsub.s32 4, %v9842_v9  ;;  %v3081_v58 = vor.u32 %v3080_v39, %v3079_v41 }
 0x2ff   : > { %v2916_v18 = vshrl.u32 %v2898_v42, %v2914_v19  ;;  %v6674_v3 = vadd.s32 4294967294, %v2806_v24  ;;  %vm3082_vm1 = vcmp.lt.s32.totalorder %v3063_v28, 1  ;;  %vm3085_vm6 = vcmp.lt.s32.totalorder %v3063_v28, 4 }
 0x300   : > { %v3009_v37 = vshll.u32 %v10016_v6, 30  ;;  %v3087_v43 = vsel %vm3085_vm6, %v3075_v55, 2102212464  ;;  %v3090_v27 = vsel %vm3082_vm1, %v3069_v12, %v3072_v52  ;;  %v3091_v53 = vsel %vm3085_vm6, %v3078_v1, 920167782 }
 0x301   : > { %v13131_v23 = vand.u32 2147483647, %v13094_v35  ;;  %v2921_v15 = vor.u32 4788187, %v2920_v5  ;;  %v3066_v56 = vshrl.u32 %v12968_v38, %v3065_v29  ;;  %vm3084_vm13 = vcmp.lt.s32.totalorder %v3063_v28, 3 }
 0x302   : > { %v3098_v42 = vshll.u32 %v3058_v63, 8  ;;  %vm3083_vm15 = vcmp.lt.s32.totalorder %v3063_v28, 2  ;;  %v3092_v51 = vsel %vm3084_vm13, %v3075_v55, %v3091_v53  ;;  %v3094_v19 = vsel %vm3082_vm1, %v3072_v52, %v3075_v55 }
 0x303   : > { %vm10027_vm5 = vcmp.le.f32.partialorder %v13131_v23, 0.7853982  ;;  %v3095_v24 = vsel %vm3085_vm6, %v3081_v58, 1326507024  ;;  %vm2740_vm0 = vcmp.lt.s32.totalorder %v9140_v62, 0  ;;  %vm6675_vm12 = vcmp.lt.s32.totalorder %v6674_v3, 0 }
 0x304   : > { %v3086_v59 = vsel %vm3082_vm1, %v3066_v56, %v3069_v12  ;;  %v3088_v41 = vsel %vm3084_vm13, %v3072_v52, %v3087_v43  ;;  %v3093_v39 = vsel %vm3083_vm15, %v3090_v27, %v3092_v51  ;;  %v10036_v23 = vsub.s32 %v3006_v20, %v3009_v37 }
 0x305   : > { %v3096_v5 = vsel %vm3084_vm13, %v3078_v1, %v3095_v24  ;;  %v10038_v8 = vmul.u32.u64.low %v3098_v42, %v3093_v39  ;;  %v10039_v29 = vmul.u32.u64.high %v3098_v42, %v3093_v39, %v10038_v8  ;;  %v2618_v55 = vsel %vm9874_vm9, %v13080_v33, %v9978_v48 }
 0x306   : > { %v2723_v63 = vsel %vm10009_vm4, 0, %v9983_v16  ;;  %v2917_v12 = vor.u32 %v2916_v18, %v2915_v22  ;;  %v3097_v52 = vsel %vm3083_vm15, %v3094_v19, %v3096_v5  ;;  %v2929_v1 = vsel %vm2844_vm11, %v2928_v49, %v9842_v9 }
 0x307   : > { %v13134_v20 = vand.u32 2147483647, %v9140_v62  ;;  %v10059_v37 = vsel %vm6675_vm12, 0, %v6674_v3  ;;  %v10061_v14 = vmul.u32.u64.low %v3098_v42, %v3097_v52  ;;  %v10062_v48 = vmul.u32.u64.high %v3098_v42, %v3097_v52, %v10061_v14 }
 0x308   : > { %v2718_v43 = vxor.u32 2147483648, %v2717_v40  ;;  %v2922_v16 = vand.u32 2147483647, %v2921_v15  ;;  %v3089_v22 = vsel %vm3083_vm15, %v3086_v59, %v3088_v41  ;;  %v3261_v18 = vand.u32 2139095040, %v9443_v45 }
 0x309   : > { %vm10055_vm8 = vcmp.le.f32.partialorder %v13134_v20, 0.7853982  ;;  %7151 = vsinq.f32 %v9916_v7  ;;  %v2824_v9 = vsub.s32 4, %v9925_v60  ;;  %v3012_v49 = vsub.s32 0, %v10036_v23 }
 0x30a   : > { %v3108_v27 = vadd.s32 1, %v10039_v29  ;;  %7153 = vcosq.f32 %v2618_v55  ;;  %v2924_v3 = vcvt.s32.f32 %v2917_v12  ;;  %v2814_v53 = vsub.s32 4294967266, %v10059_v37 }
 0x30b   : > { %v3262_v56 = vshrl.u32 %v3261_v18, 23  ;;  %v2727_v51 = vadd.s32 3, %v2723_v63  ;;  %v2931_v28 = vsel %vm10027_vm5, 0, %v2929_v1  ;;  %v3105_v15 = vmul.u32 %v3098_v42, %v3089_v22 }
 0x30c   : > { %vm3107_vm9 = vc.u32 %v10062_v48, %v10038_v8  ;;  %v2719_v7 = vsel %vm2636_vm7, %v2718_v43, %v2717_v40  ;;  %v2925_v19 = vmul.f32 %v2924_v3, %v2922_v16  ;;  %v2825_v41 = vsel %vm2740_vm0, %v2824_v9, %v9925_v60 }
 0x30d   : > { %v3109_v24 = vsel %vm3107_vm9, %v3108_v27, %v10039_v29  ;;  %v6692_v59 = vadd.s32 4294967169, %v3262_v56  ;;  %v6681_v39 = vmin.u32 %v3012_v49, %v10036_v23  ;;  %v3157_v63 = vand.u32 2139095040, %v9561_v13 }
 0x30e   : > { %v3110_v5 = vadd.s32 %v3109_v24, %v3105_v15  ;;  %7155 = vsinq.f32 %v2618_v55  ;;  %v2815_v42 = vadd.s32 127, %v2814_v53  ;;  %v12835_v12 = vand.u32 2147483647, %v9443_v45 }
 0x30f   : > { %v3268_v52 = vadd.s32 1, %v6692_v59  ;;  %v2722_v40 = vsel %vm10009_vm4, %v13090_v57, %v2719_v7  ;;  %v10087_v29 = vand.u32 3, %v2727_v51  ;;  %v2935_v1 = vadd.s32 3, %v2931_v28  ;;  %v10113_v59 = vpop.f32.mrb[16].mxu0 }
 0x310   : > { %v3111_v20 = vadd.s32 536870912, %v3110_v5  ;;  %v2926_v14 = vxor.u32 2147483648, %v2925_v19  ;;  %v2810_v60 = vsub.s32 32, %v10059_v37  ;;  %v2827_v43 = vsel %vm10055_vm8, 0, %v2825_v41  ;;  %13141 = vst [vmem:[#allocation95_spill] sm:$0xff] %v10113_v59 }
 0x311   : > { %13137 = vst [vmem:[#allocation91_spill] sm:$0xff] %v10087_v29  ;;  %vm3269_vm7 = vcmp.gt.s32.totalorder %v3268_v52, 0  ;;  %v3014_v55 = vclz %v6681_v39  ;;  %v3158_v18 = vshrl.u32 %v3157_v63, 23  ;;  %7157 = vcosq.f32 %v2722_v40 }
 0x312   : > { %v10092_v16 = vshrl.u32 %v3111_v20, 30  ;;  %v3270_v22 = vsel %vm3269_vm7, %v3268_v52, 0  ;;  %v2816_v9 = vshll.u32 %v2815_v42, 23  ;;  %v3265_v2 = vand.u32 8388607, %v12835_v12 }
 0x313   : > { %v3272_v49 = vand.u32 31, %v3270_v22  ;;  %v10096_v27 = vpop.eup %7151  ;;  %7159 = vsinq.f32 %v2722_v40  ;;  %v10098_v3 = vand.u32 3, %v2935_v1  ;;  %v2794_v53 = vadd.s32 %v9881_v4, %v9890_v36 }
 0x314   : > { %13138 = vst [vmem:[#allocation92_spill] sm:$0xff] %v10096_v27  ;;  %v3113_v56 = vshll.u32 %v10092_v16, 30  ;;  %v10103_v51 = vpop.eup %7153  ;;  %v10107_v28 = vsel %vm2844_vm11, %v2926_v14, %v2925_v19  ;;  %v2811_v15 = vshll.u32 %v9952_v25, %v10059_v37  ;;  %v10111_v7 = vadd.s32 3, %v2827_v43 }
 0x315   : > { %13139 = vst [vmem:[#allocation93_spill] sm:$0xff] %v10098_v3  ;;  %13140 = vst [vmem:[#allocation94_spill] sm:$0xff] %v10103_v51  ;;  %v3273_v24 = vsub.s32 32, %v3272_v49  ;;  %v2812_v41 = vshrl.u32 %v2794_v53, %v2810_v60  ;;  %v6682_v39 = vadd.s32 4294967294, %v3014_v55  ;;  %v6688_v4 = vadd.s32 4294967169, %v3158_v18 }
 0x316   : > { %v10115_v63 = vsub.s32 %v3110_v5, %v3113_v56  ;;  %v10117_v36 = vor.u32 4788187, %v2816_v9  ;;  %v3266_v42 = vor.u32 8388608, %v3265_v2  ;;  %v3275_v52 = vshll.u32 %v12968_v38, %v3272_v49 }
 0x317   : > { %v3276_v19 = vshrl.u32 %v12973_v44, %v3273_v24  ;;  %v3278_v25 = vshll.u32 %v12973_v44, %v3272_v49  ;;  %v3279_v37 = vshrl.u32 %v12975_v26, %v3273_v24  ;;  %v3282_v1 = vshrl.u32 %v12974_v11, %v3273_v24 }
 0x318   : > { %v3116_v40 = vsub.s32 0, %v10115_v63  ;;  %v10125_v20 = vpop.eup %7155  ;;  %v3271_v5 = vshrl.u32 %v3270_v22, 5  ;;  %v3281_v14 = vshll.u32 %v12975_v26, %v3272_v49  ;;  %v3284_v60 = vshll.u32 %v12974_v11, %v3272_v49 }
 0x319   : > { %13142 = vst [vmem:[#allocation96_spill] sm:$0xff] %v10125_v20  ;;  %v3285_v43 = vshrl.u32 %v12986_v32, %v3273_v24  ;;  %vm6683_vm10 = vcmp.lt.s32.totalorder %v6682_v39, 0  ;;  %v3277_v55 = vor.u32 %v3276_v19, %v3275_v52  ;;  %v3280_v18 = vor.u32 %v3279_v37, %v3278_v25 }
 0x31a   : > { %v3164_v9 = vadd.s32 1, %v6688_v4  ;;  %v3283_v2 = vor.u32 %v3282_v1, %v3281_v14  ;;  %v3287_v56 = vshll.u32 %v12986_v32, %v3272_v49  ;;  %v3288_v12 = vshrl.u32 %v12964_v47, %v3273_v24 }
 0x31b   : > { %v3286_v53 = vor.u32 %v3285_v43, %v3284_v60  ;;  %v2813_v3 = vor.u32 %v2812_v41, %v2811_v15  ;;  %v2818_v29 = vand.u32 2147483647, %v10117_v36  ;;  %v3002_v22 = vadd.s32 %v9963_v34, %v9968_v61  ;;  %v10136_v51 = vpop.eup %7157 }
 0x31c   : > { %v6685_v57 = vmin.u32 %v3116_v40, %v10115_v63  ;;  %13143 = vst [vmem:[#allocation97_spill] sm:$0xff] %v10136_v51  ;;  %v3289_v20 = vor.u32 %v3288_v12, %v3287_v56  ;;  %vm3290_vm14 = vcmp.lt.s32.totalorder %v3271_v5, 1  ;;  %v3306_v52 = vshll.u32 %v3266_v42, 8 }
 0x31d   : > { %v12841_v4 = vand.u32 2147483647, %v9561_v13  ;;  %v10139_v19 = vpop.eup %7159  ;;  %v10142_v49 = vsel %vm6683_vm10, 0, %v6682_v39  ;;  %vm3293_vm2 = vcmp.lt.s32.totalorder %v3271_v5, 4  ;;  %v3298_v15 = vsel %vm3290_vm14, %v3277_v55, %v3280_v18 }
 0x31e   : > { %13144 = vst [vmem:[#allocation98_spill] sm:$0xff] %v10139_v19  ;;  %vm3165_vm3 = vcmp.gt.s32.totalorder %v3164_v9, 0  ;;  %v3274_v34 = vshrl.u32 %v12968_v38, %v3273_v24  ;;  %vm3292_vm4 = vcmp.lt.s32.totalorder %v3271_v5, 3  ;;  %v3295_v61 = vsel %vm3293_vm2, %v3283_v2, 2102212464 }
 0x31f   : > { %v3299_v41 = vsel %vm3293_vm2, %v3286_v53, 920167782  ;;  %v3118_v36 = vclz %v6685_v57  ;;  %vm3291_vm11 = vcmp.lt.s32.totalorder %v3271_v5, 2  ;;  %v3302_v42 = vsel %vm3290_vm14, %v3280_v18, %v3283_v2 }
 0x320   : > { %v3300_v12 = vsel %vm3292_vm4, %v3283_v2, %v3299_v41  ;;  %v3018_v40 = vsub.s32 32, %v10142_v49  ;;  %v3303_v39 = vsel %vm3293_vm2, %v3289_v20, 1326507024  ;;  %v3161_v37 = vand.u32 8388607, %v12841_v4 }
 0x321   : > { %v3301_v25 = vsel %vm3291_vm11, %v3298_v15, %v3300_v12  ;;  %v3294_v1 = vsel %vm3290_vm14, %v3274_v34, %v3277_v55  ;;  %v3296_v14 = vsel %vm3292_vm4, %v3280_v18, %v3295_v61  ;;  %v3304_v24 = vsel %vm3292_vm4, %v3286_v53, %v3303_v39 }
 0x322   : > { %v3166_v60 = vsel %vm3165_vm3, %v3164_v9, 0  ;;  %v3022_v57 = vsub.s32 4294967266, %v10142_v49  ;;  %v3305_v43 = vsel %vm3291_vm11, %v3302_v42, %v3304_v24  ;;  %v2820_v41 = vcvt.s32.f32 %v2813_v3  ;;  %v10176_v42 = vpop.f32.mrb[16].mxu1 }
 0x323   : > { %v10155_v56 = vmul.u32.u64.low %v3306_v52, %v3301_v25  ;;  %v10156_v2 = vmul.u32.u64.high %v3306_v52, %v3301_v25, %v10155_v56  ;;  %v6686_v15 = vadd.s32 4294967294, %v3118_v36  ;;  %v10166_v55 = vsel %vm10027_vm5, %v13094_v35, %v10107_v28  ;;  %13146 = vst [vmem:[#allocation100_spill] sm:$0xff] %v10176_v42 }
 0x324   : > { %v10159_v20 = vmul.u32.u64.low %v3306_v52, %v3305_v43  ;;  %v10160_v12 = vmul.u32.u64.high %v3306_v52, %v3305_v43, %v10159_v20  ;;  %v10169_v18 = vand.u32 3, %v10111_v7  ;;  %v3297_v9 = vsel %vm3291_vm11, %v3294_v1, %v3296_v14 }
 0x325   : > { %v3168_v53 = vand.u32 31, %v3166_v60  ;;  %v10172_v34 = vmul.f32 %v2820_v41, %v2818_v29  ;;  %v3019_v3 = vshll.u32 %v10036_v23, %v10142_v49  ;;  %v3020_v61 = vshrl.u32 %v3002_v22, %v3018_v40 }
 0x326   : > { %13145 = vst [vmem:[#allocation99_spill] sm:$0xff] %v10169_v18  ;;  %v3162_v36 = vor.u32 8388608, %v3161_v37  ;;  %v3023_v25 = vadd.s32 127, %v3022_v57  ;;  %v3316_v50 = vadd.s32 1, %v10156_v2  ;;  %v3365_v39 = vand.u32 2139095040, %v9648_v21 }
 0x327   : > { %v3169_v28 = vsub.s32 32, %v3168_v53  ;;  %vm6687_vm1 = vcmp.lt.s32.totalorder %v6686_v15, 0  ;;  %v3313_v7 = vmul.u32 %v3306_v52, %v3297_v9  ;;  %vm3315_vm6 = vc.u32 %v10160_v12, %v10155_v56 }
 0x328   : > { %v3171_v29 = vshll.u32 %v12968_v38, %v3168_v53  ;;  %v3317_v5 = vsel %vm3315_vm6, %v3316_v50, %v10156_v2  ;;  %v3174_v22 = vshll.u32 %v12973_v44, %v3168_v53  ;;  %v3167_v37 = vshrl.u32 %v3166_v60, 5 }
 0x329   : > { %v3172_v23 = vshrl.u32 %v12973_v44, %v3169_v28  ;;  %v3175_v49 = vshrl.u32 %v12975_v26, %v3169_v28  ;;  %v3318_v40 = vadd.s32 %v3317_v5, %v3313_v7  ;;  %v3177_v1 = vshll.u32 %v12975_v26, %v3168_v53 }
 0x32a   : > { %v3178_v14 = vshrl.u32 %v12974_v11, %v3169_v28  ;;  %v3180_v57 = vshll.u32 %v12974_v11, %v3168_v53  ;;  %v3181_v43 = vshrl.u32 %v12986_v32, %v3169_v28  ;;  %v3024_v41 = vshll.u32 %v3023_v25, 23 }
 0x32b   : > { %v3173_v52 = vor.u32 %v3172_v23, %v3171_v29  ;;  %v3176_v24 = vor.u32 %v3175_v49, %v3174_v22  ;;  %v3319_v2 = vadd.s32 536870912, %v3318_v40  ;;  %v10191_v20 = vshll.u32 %v3162_v36, 8 }
 0x32c   : > { %v3366_v9 = vshrl.u32 %v3365_v39, 23  ;;  %v3179_v50 = vor.u32 %v3178_v14, %v3177_v1  ;;  %v3182_v4 = vor.u32 %v3181_v43, %v3180_v57  ;;  %v3183_v7 = vshll.u32 %v12986_v32, %v3168_v53 }
 0x32d   : > { %v3184_v60 = vshrl.u32 %v12964_v47, %v3169_v28  ;;  %v3121_v5 = vsel %vm6687_vm1, 0, %v6686_v15  ;;  %v10196_v51 = vshrl.u32 %v3319_v2, 30  ;;  %vm3186_vm5 = vcmp.lt.s32.totalorder %v3167_v37, 1 }
 0x32e   : > { %vm3189_vm13 = vcmp.lt.s32.totalorder %v3167_v37, 4  ;;  %vm3187_vm15 = vcmp.lt.s32.totalorder %v3167_v37, 2  ;;  %v3194_v25 = vsel %vm3186_vm5, %v3173_v52, %v3176_v24  ;;  %v3170_v39 = vshrl.u32 %v12968_v38, %v3169_v28 }
 0x32f   : > { %v3185_v29 = vor.u32 %v3184_v60, %v3183_v7  ;;  %v3195_v23 = vsel %vm3189_vm13, %v3182_v4, 920167782  ;;  %v3321_v36 = vshll.u32 %v10196_v51, 30  ;;  %vm3188_vm12 = vcmp.lt.s32.totalorder %v3167_v37, 3 }
 0x330   : > { %v6696_v22 = vadd.s32 4294967169, %v3366_v9  ;;  %v3191_v53 = vsel %vm3189_vm13, %v3179_v50, 2102212464  ;;  %v3196_v49 = vsel %vm3188_vm12, %v3179_v50, %v3195_v23  ;;  %v3198_v15 = vsel %vm3186_vm5, %v3176_v24, %v3179_v50 }
 0x331   : > { %v3199_v1 = vsel %vm3189_vm13, %v3185_v29, 1326507024  ;;  %vm2948_vm9 = vcmp.lt.s32.totalorder %v9249_v0, 0  ;;  %v3021_v14 = vor.u32 %v3020_v61, %v3019_v3  ;;  %v3126_v57 = vsub.s32 4294967266, %v3121_v5 }
 0x332   : > { %v10204_v43 = vsub.s32 %v3318_v40, %v3321_v36  ;;  %v3197_v2 = vsel %vm3187_vm15, %v3194_v25, %v3196_v49  ;;  %v3025_v7 = vor.u32 4788187, %v3024_v41  ;;  %v3122_v60 = vsub.s32 32, %v3121_v5 }
 0x333   : > { %v3190_v28 = vsel %vm3186_vm5, %v3170_v39, %v3173_v52  ;;  %v3200_v9 = vsel %vm3188_vm12, %v3182_v4, %v3199_v1  ;;  %v3192_v23 = vsel %vm3188_vm12, %v3176_v24, %v3191_v53  ;;  %v3372_v29 = vadd.s32 1, %v6696_v22 }
 0x334   : > { %v3324_v35 = vsub.s32 0, %v10204_v43  ;;  %v3201_v50 = vsel %vm3187_vm15, %v3198_v15, %v3200_v9  ;;  %v10217_v40 = vmul.u32.u64.low %v10191_v20, %v3197_v2  ;;  %v10218_v25 = vmul.u32.u64.high %v10191_v20, %v3197_v2, %v10217_v40 }
 0x335   : > { %v10213_v3 = vmul.u32.u64.low %v10191_v20, %v3201_v50  ;;  %v10214_v61 = vmul.u32.u64.high %v10191_v20, %v3201_v50, %v10213_v3  ;;  %v3106_v52 = vadd.s32 %v10038_v8, %v10062_v48  ;;  %v3127_v4 = vadd.s32 127, %v3126_v57 }
 0x336   : > { %v12844_v41 = vand.u32 2147483647, %v9648_v21  ;;  %vm3373_vm7 = vcmp.gt.s32.totalorder %v3372_v29, 0  ;;  %v2822_v24 = vxor.u32 2147483648, %v10172_v34  ;;  %v3032_v36 = vsub.s32 4, %v10016_v6 }
 0x337   : > { %v3193_v39 = vsel %vm3187_vm15, %v3190_v28, %v3192_v23  ;;  %v3374_v22 = vsel %vm3373_vm7, %v3372_v29, 0  ;;  %v3026_v53 = vand.u32 2147483647, %v3025_v7  ;;  %v3124_v49 = vshrl.u32 %v3106_v52, %v3122_v60 }
 0x338   : > { %v6693_v15 = vmin.u32 %v3324_v35, %v10204_v43  ;;  %v3376_v1 = vand.u32 31, %v3374_v22  ;;  %v13147_v2 = vand.u32 2147483647, %v9249_v0  ;;  %v3028_v48 = vcvt.s32.f32 %v3021_v14 }
 0x339   : > { %v3123_v57 = vshll.u32 %v10115_v63, %v3121_v5  ;;  %vm3211_vm14 = vc.u32 %v10214_v61, %v10217_v40  ;;  %v3212_v37 = vadd.s32 1, %v10218_v25  ;;  %v3128_v28 = vshll.u32 %v3127_v4, 23 }
 0x33a   : > { %vm10230_vm10 = vcmp.le.f32.partialorder %v13147_v2, 0.7853982  ;;  %v3209_v7 = vmul.u32 %v10191_v20, %v3193_v39  ;;  %v3369_v35 = vand.u32 8388607, %v12844_v41  ;;  %v3377_v60 = vsub.s32 32, %v3376_v1 }
 0x33b   : > { %7161 = vcosq.f32 %v10166_v55  ;;  %v2823_v14 = vsel %vm2740_vm0, %v2822_v24, %v10172_v34  ;;  %v10248_v63 = vsel %vm2948_vm9, %v3032_v36, %v10016_v6  ;;  %v3213_v5 = vsel %vm3211_vm14, %v3212_v37, %v10218_v25 }
 0x33c   : > { %v3029_v9 = vmul.f32 %v3028_v48, %v3026_v53  ;;  %v3125_v23 = vor.u32 %v3124_v49, %v3123_v57  ;;  %v3326_v20 = vclz %v6693_v15  ;;  %v3214_v50 = vadd.s32 %v3213_v5, %v3209_v7 }
 0x33d   : > { %v3380_v29 = vshrl.u32 %v12973_v44, %v3377_v60  ;;  %v3383_v3 = vshrl.u32 %v12975_v26, %v3377_v60  ;;  %v3386_v52 = vshrl.u32 %v12974_v11, %v3377_v60  ;;  %v3389_v4 = vshrl.u32 %v12986_v32, %v3377_v60 }
 0x33e   : > { %v3129_v34 = vor.u32 4788187, %v3128_v28  ;;  %v3215_v24 = vadd.s32 536870912, %v3214_v50  ;;  %v3370_v39 = vor.u32 8388608, %v3369_v35  ;;  %v3375_v2 = vshrl.u32 %v3374_v22, 5  ;;  %v10264_v35 = vpop.f32.mrb[17].mxu0 }
 0x33f   : > { %v3379_v6 = vshll.u32 %v12968_v38, %v3376_v1  ;;  %v3382_v25 = vshll.u32 %v12973_v44, %v3376_v1  ;;  %v3385_v36 = vshll.u32 %v12975_v26, %v3376_v1  ;;  %v3388_v53 = vshll.u32 %v12974_v11, %v3376_v1  ;;  %13150 = vst [vmem:[#allocation101_spill] sm:$0xff] %v10264_v35 }
 0x340   : > { %v6694_v49 = vadd.s32 4294967294, %v3326_v20  ;;  %v10259_v15 = vshrl.u32 %v3215_v24, 30  ;;  %v3391_v48 = vshll.u32 %v12986_v32, %v3376_v1  ;;  %v3392_v57 = vshrl.u32 %v12964_v47, %v3377_v60 }
 0x341   : > { %vm3052_vm0 = vcmp.lt.s32.totalorder %v9369_v30, 0  ;;  %v3381_v37 = vor.u32 %v3380_v29, %v3379_v6  ;;  %v3384_v28 = vor.u32 %v3383_v3, %v3382_v25  ;;  %v3387_v22 = vor.u32 %v3386_v52, %v3385_v36 }
 0x342   : > { %v3390_v7 = vor.u32 %v3389_v4, %v3388_v53  ;;  %v2826_v5 = vsel %vm10055_vm8, %v9140_v62, %v2823_v14  ;;  %v3035_v20 = vsel %vm10230_vm10, 0, %v10248_v63  ;;  %v3136_v1 = vsub.s32 4, %v10092_v16 }
 0x343   : > { %v3217_v24 = vshll.u32 %v10259_v15, 30  ;;  %v3030_v41 = vxor.u32 2147483648, %v3029_v9  ;;  %v3132_v19 = vcvt.s32.f32 %v3125_v23  ;;  %v3393_v29 = vor.u32 %v3392_v57, %v3391_v48 }
 0x344   : > { %v3469_v3 = vand.u32 2139095040, %v9754_v17  ;;  %v3130_v52 = vand.u32 2147483647, %v3129_v34  ;;  %vm3394_vm2 = vcmp.lt.s32.totalorder %v3375_v2, 1  ;;  %vm3397_vm3 = vcmp.lt.s32.totalorder %v3375_v2, 4 }
 0x345   : > { %v3410_v4 = vshll.u32 %v3370_v39, 8  ;;  %v10275_v6 = vpop.eup %7161  ;;  %v13152_v58 = vand.u32 2147483647, %v9369_v30  ;;  %vm6695_vm4 = vcmp.lt.s32.totalorder %v6694_v49, 0  ;;  %v3399_v63 = vsel %vm3397_vm3, %v3387_v22, 2102212464 }
 0x346   : > { %13151 = vst [vmem:[#allocation102_spill] sm:$0xff] %v10275_v6  ;;  %v3402_v25 = vsel %vm3394_vm2, %v3381_v37, %v3384_v28  ;;  %v3403_v23 = vsel %vm3397_vm3, %v3390_v7, 920167782  ;;  %v10284_v36 = vsub.s32 %v3214_v50, %v3217_v24  ;;  %v3378_v34 = vshrl.u32 %v12968_v38, %v3377_v60 }
 0x347   : > { %vm10279_vm8 = vcmp.le.f32.partialorder %v13152_v58, 0.7853982  ;;  %vm3395_vm11 = vcmp.lt.s32.totalorder %v3375_v2, 2  ;;  %vm3396_vm1 = vcmp.lt.s32.totalorder %v3375_v2, 3  ;;  %v3406_v53 = vsel %vm3394_vm2, %v3384_v28, %v3387_v22 }
 0x348   : > { %v3404_v39 = vsel %vm3396_vm1, %v3387_v22, %v3403_v23  ;;  %v3407_v48 = vsel %vm3397_vm3, %v3393_v29, 1326507024  ;;  %v3470_v57 = vshrl.u32 %v3469_v3, 23  ;;  %v10288_v58 = vsel %vm6695_vm4, 0, %v6694_v49 }
 0x349   : > { %v3398_v6 = vsel %vm3394_vm2, %v3378_v34, %v3381_v37  ;;  %v3400_v33 = vsel %vm3396_vm1, %v3384_v28, %v3399_v63  ;;  %v3405_v18 = vsel %vm3395_vm11, %v3402_v25, %v3404_v39  ;;  %v3408_v62 = vsel %vm3396_vm1, %v3390_v7, %v3407_v48  ;;  %v10327_v34 = vpop.f32.mrb[17].mxu1 }
 0x34a   : > { %v10292_v27 = vmul.u32.u64.low %v3410_v4, %v3405_v18  ;;  %v10293_v50 = vmul.u32.u64.high %v3410_v4, %v3405_v18, %v10292_v27  ;;  %v6700_v60 = vadd.s32 4294967169, %v3470_v57  ;;  %v3031_v24 = vsel %vm2948_vm9, %v3030_v41, %v3029_v9  ;;  %13156 = vst [vmem:[#allocation104_spill] sm:$0xff] %v10327_v34 }
 0x34b   : > { %v3133_v23 = vmul.f32 %v3132_v19, %v3130_v52  ;;  %v3137_v49 = vsel %vm3052_vm0, %v3136_v1, %v10092_v16  ;;  %v3409_v22 = vsel %vm3395_vm11, %v3406_v53, %v3408_v62  ;;  %v3220_v37 = vsub.s32 0, %v10284_v36 }
 0x34c   : > { %v10303_v28 = vmul.u32.u64.low %v3410_v4, %v3409_v22  ;;  %v10304_v29 = vmul.u32.u64.high %v3410_v4, %v3409_v22, %v10303_v28  ;;  %v3476_v7 = vadd.s32 1, %v6700_v60  ;;  %7163 = vsinq.f32 %v10166_v55 }
 0x34d   : > { %v3039_v18 = vadd.s32 3, %v3035_v20  ;;  %v3334_v3 = vsub.s32 4294967266, %v10288_v58  ;;  %v3401_v41 = vsel %vm3395_vm11, %v3398_v6, %v3400_v33  ;;  %7165 = vcosq.f32 %v2826_v5 }
 0x34e   : > { %vm3260_vm6 = vcmp.lt.s32.totalorder %v9443_v45, 0  ;;  %v3420_v16 = vadd.s32 1, %v10293_v50  ;;  %vm3477_vm5 = vcmp.gt.s32.totalorder %v3476_v7, 0  ;;  %v10314_v62 = vsel %vm10230_vm10, %v9249_v0, %v3031_v24 }
 0x34f   : > { %v3134_v19 = vxor.u32 2147483648, %v3133_v23  ;;  %v3139_v55 = vsel %vm10279_vm8, 0, %v3137_v49  ;;  %v3478_v9 = vsel %vm3477_vm5, %v3476_v7, 0  ;;  %v3344_v20 = vsub.s32 4, %v10196_v51 }
 0x350   : > { %v6689_v33 = vmin.u32 %v3220_v37, %v10284_v36  ;;  %v3417_v2 = vmul.u32 %v3410_v4, %v3401_v41  ;;  %vm3419_vm13 = vc.u32 %v10304_v29, %v10292_v27  ;;  %v10322_v1 = vand.u32 3, %v3039_v18 }
 0x351   : > { %v3335_v52 = vadd.s32 127, %v3334_v3  ;;  %v3421_v8 = vsel %vm3419_vm13, %v3420_v16, %v10293_v50  ;;  %v12852_v6 = vand.u32 2147483647, %v9754_v17  ;;  %7167 = vsinq.f32 %v2826_v5 }
 0x352   : > { %13155 = vst [vmem:[#allocation103_spill] sm:$0xff] %v10322_v1  ;;  %vm3156_vm15 = vcmp.lt.s32.totalorder %v9561_v13, 0  ;;  %v3422_v63 = vadd.s32 %v3421_v8, %v3417_v2  ;;  %v3480_v25 = vand.u32 31, %v3478_v9  ;;  %7169 = vcosq.f32 %v10314_v62 }
 0x353   : > { %v10332_v4 = vsel %vm3052_vm0, %v3134_v19, %v3133_v23  ;;  %v10334_v39 = vadd.s32 3, %v3139_v55  ;;  %v3314_v53 = vadd.s32 %v10155_v56, %v10160_v12  ;;  %v10341_v5 = vsel %vm3260_vm6, %v3344_v20, %v10196_v51 }
 0x354   : > { %v3222_v48 = vclz %v6689_v33  ;;  %v3423_v57 = vadd.s32 536870912, %v3422_v63  ;;  %v3481_v50 = vsub.s32 32, %v3480_v25  ;;  %v3330_v60 = vsub.s32 32, %v10288_v58 }
 0x355   : > { %v3336_v24 = vshll.u32 %v3335_v52, 23  ;;  %v3240_v49 = vsub.s32 4, %v10259_v15  ;;  %v3473_v23 = vand.u32 8388607, %v12852_v6  ;;  %v3483_v56 = vshll.u32 %v12968_v38, %v3480_v25 }
 0x356   : > { %v10347_v22 = vshrl.u32 %v3423_v57, 30  ;;  %v3484_v12 = vshrl.u32 %v12973_v44, %v3481_v50  ;;  %v3487_v51 = vshrl.u32 %v12975_v26, %v3481_v50  ;;  %v10352_v37 = vpop.eup %7163  ;;  %v3486_v28 = vshll.u32 %v12973_v44, %v3480_v25 }
 0x357   : > { %13157 = vst [vmem:[#allocation105_spill] sm:$0xff] %v10352_v37  ;;  %v3489_v7 = vshll.u32 %v12975_v26, %v3480_v25  ;;  %v3490_v18 = vshrl.u32 %v12974_v11, %v3481_v50  ;;  %v3493_v3 = vshrl.u32 %v12986_v32, %v3481_v50  ;;  %v10358_v41 = vpop.eup %7165  ;;  %v6690_v16 = vadd.s32 4294967294, %v3222_v48 }
 0x358   : > { %13158 = vst [vmem:[#allocation106_spill] sm:$0xff] %v10358_v41  ;;  %v3425_v19 = vshll.u32 %v10347_v22, 30  ;;  %v3479_v55 = vshrl.u32 %v3478_v9, 5  ;;  %v3492_v20 = vshll.u32 %v12974_v11, %v3480_v25  ;;  %v3474_v33 = vor.u32 8388608, %v3473_v23 }
 0x359   : > { %v3485_v2 = vor.u32 %v3484_v12, %v3483_v56  ;;  %v3488_v52 = vor.u32 %v3487_v51, %v3486_v28  ;;  %v3491_v8 = vor.u32 %v3490_v18, %v3489_v7  ;;  %v3495_v37 = vshll.u32 %v12986_v32, %v3480_v25 }
 0x35a   : > { %v10362_v57 = vsub.s32 %v3422_v63, %v3425_v19  ;;  %v3494_v6 = vor.u32 %v3493_v3, %v3492_v20  ;;  %v3496_v1 = vshrl.u32 %v12964_v47, %v3481_v50  ;;  %v13159_v0 = vand.u32 2147483647, %v9443_v45  ;;  %v13167_v3 = vld [vmem:[#allocation81_spill] sm:$0xff] }
 0x35b   : > { %v3331_v9 = vshll.u32 %v10204_v43, %v10288_v58  ;;  %v3332_v23 = vshrl.u32 %v3314_v53, %v3330_v60  ;;  %v3337_v56 = vor.u32 4788187, %v3336_v24  ;;  %v13162_v12 = vand.u32 2147483647, %v9561_v13  ;;  %v10383_v51 = vpop.eup %7167 }
 0x35c   : > { %vm10368_vm12 = vcmp.le.f32.partialorder %v13159_v0, 0.7853982  ;;  %v3241_v25 = vsel %vm3156_vm15, %v3240_v49, %v10259_v15  ;;  %13165 = vst [vmem:[#allocation107_spill] sm:$0xff] %v10383_v51  ;;  %vm6691_vm7 = vcmp.lt.s32.totalorder %v6690_v16, 0  ;;  %v3428_v0 = vsub.s32 0, %v10362_v57  ;;  %v10386_v43 = vpop.eup %7169 }
 0x35d   : > { %vm10376_vm9 = vcmp.le.f32.partialorder %v13162_v12, 0.7853982  ;;  %v3497_v28 = vor.u32 %v3496_v1, %v3495_v37  ;;  %vm3498_vm10 = vcmp.lt.s32.totalorder %v3479_v55, 1  ;;  %13166 = vst [vmem:[#allocation108_spill] sm:$0xff] %v10386_v43  ;;  %v3482_v58 = vshrl.u32 %v12968_v38, %v3481_v50 }
 0x35e   : > { %vm3501_vm14 = vcmp.lt.s32.totalorder %v3479_v55, 4  ;;  %v3506_v53 = vsel %vm3498_vm10, %v3485_v2, %v3488_v52  ;;  %v3514_v60 = vshll.u32 %v3474_v33, 8  ;;  %v6697_v24 = vmin.u32 %v3428_v0, %v10362_v57 }
 0x35f   : > { %vm3500_vm0 = vcmp.lt.s32.totalorder %v3479_v55, 3  ;;  %v3503_v7 = vsel %vm3501_vm14, %v3491_v8, 2102212464  ;;  %v3507_v18 = vsel %vm3501_vm14, %v3494_v6, 920167782  ;;  %vm3499_vm2 = vcmp.lt.s32.totalorder %v3479_v55, 2 }
 0x360   : > { %v3508_v15 = vsel %vm3500_vm0, %v3491_v8, %v3507_v18  ;;  %v3510_v49 = vsel %vm3498_vm10, %v3488_v52, %v3491_v8  ;;  %v3677_v19 = vand.u32 2139095040, %v13167_v3  ;;  %v3430_v20 = vclz %v6697_v24 }
 0x361   : > { %v3502_v1 = vsel %vm3498_vm10, %v3482_v58, %v3485_v2  ;;  %v3509_v37 = vsel %vm3499_vm2, %v3506_v53, %v3508_v15  ;;  %v3511_v12 = vsel %vm3501_vm14, %v3497_v28, 1326507024  ;;  %v3504_v43 = vsel %vm3500_vm0, %v3488_v52, %v3503_v7 }
 0x362   : > { %v3512_v50 = vsel %vm3500_vm0, %v3494_v6, %v3511_v12  ;;  %v10392_v41 = vmul.u32.u64.low %v3514_v60, %v3509_v37  ;;  %v10393_v51 = vmul.u32.u64.high %v3514_v60, %v3509_v37, %v10392_v41  ;;  %7171 = vsinq.f32 %v10314_v62  ;;  %v10424_v37 = vpop.f32.mrb[18].mxu0 }
 0x363   : > { %v3138_v33 = vsel %vm10279_vm8, %v9369_v30, %v10332_v4  ;;  %v3225_v8 = vsel %vm6691_vm7, 0, %v6690_v16  ;;  %v3513_v2 = vsel %vm3499_vm2, %v3510_v49, %v3512_v50  ;;  %v3333_v0 = vor.u32 %v3332_v23, %v3331_v9  ;;  %13168 = vst [vmem:[#allocation109_spill] sm:$0xff] %v10424_v37 }
 0x364   : > { %v10403_v58 = vmul.u32.u64.low %v3514_v60, %v3513_v2  ;;  %v10404_v28 = vmul.u32.u64.high %v3514_v60, %v3513_v2, %v10403_v58  ;;  %v3678_v6 = vshrl.u32 %v3677_v19, 23  ;;  %v3347_v52 = vsel %vm10368_vm12, 0, %v10341_v5 }
 0x365   : > { %v3243_v62 = vsel %vm10376_vm9, 0, %v3241_v25  ;;  %v6698_v53 = vadd.s32 4294967294, %v3430_v20  ;;  %v3505_v14 = vsel %vm3499_vm2, %v3502_v1, %v3504_v43  ;;  %v3338_v4 = vand.u32 2147483647, %v3337_v56 }
 0x366   : > { %v3226_v24 = vsub.s32 32, %v3225_v8  ;;  %v3524_v16 = vadd.s32 1, %v10393_v51  ;;  %v6708_v7 = vadd.s32 4294967169, %v3678_v6  ;;  %7173 = vcosq.f32 %v3138_v33 }
 0x367   : > { %v3210_v9 = vadd.s32 %v10217_v40, %v10214_v61  ;;  %v3230_v23 = vsub.s32 4294967266, %v3225_v8  ;;  %v12860_v18 = vand.u32 2147483647, %v13167_v3  ;;  %v3340_v15 = vcvt.s32.f32 %v3333_v0 }
 0x368   : > { %v3521_v5 = vmul.u32 %v3514_v60, %v3505_v14  ;;  %vm3523_vm3 = vc.u32 %v10404_v28, %v10392_v41  ;;  %v3684_v25 = vadd.s32 1, %v6708_v7  ;;  %v3351_v55 = vadd.s32 3, %v3347_v52 }
 0x369   : > { %v3247_v43 = vadd.s32 3, %v3243_v62  ;;  %vm6699_vm8 = vcmp.lt.s32.totalorder %v6698_v53, 0  ;;  %v3525_v56 = vsel %vm3523_vm3, %v3524_v16, %v10393_v51  ;;  %v10419_v49 = vmul.f32 %v3340_v15, %v3338_v4 }
 0x36a   : > { %v3228_v19 = vshrl.u32 %v3210_v9, %v3226_v24  ;;  %v3526_v20 = vadd.s32 %v3525_v56, %v3521_v5  ;;  %vm3685_vm4 = vcmp.gt.s32.totalorder %v3684_v25, 0  ;;  %v3231_v61 = vadd.s32 127, %v3230_v23 }
 0x36b   : > { %v3681_v40 = vand.u32 8388607, %v12860_v18  ;;  %v3686_v1 = vsel %vm3685_vm4, %v3684_v25, 0  ;;  %v3573_v60 = vand.u32 2139095040, %v9930_v46  ;;  %v3227_v12 = vshll.u32 %v10284_v36, %v3225_v8 }
 0x36c   : > { %v10427_v50 = vsel %vm6699_vm8, 0, %v6698_v53  ;;  %v3527_v2 = vadd.s32 536870912, %v3526_v20  ;;  %v3688_v51 = vand.u32 31, %v3686_v1  ;;  %v10429_v0 = vpop.eup %7171  ;;  %7175 = vsinq.f32 %v3138_v33 }
 0x36d   : > { %13169 = vst [vmem:[#allocation110_spill] sm:$0xff] %v10429_v0  ;;  %v10432_v58 = vand.u32 3, %v10334_v39  ;;  %v10434_v6 = vand.u32 3, %v3351_v55  ;;  %v10436_v52 = vand.u32 3, %v3247_v43  ;;  %v3342_v62 = vxor.u32 2147483648, %v10419_v49 }
 0x36e   : > { %v10439_v14 = vor.u32 %v3228_v19, %v3227_v12  ;;  %v10441_v4 = vshrl.u32 %v3527_v2, 30  ;;  %v3689_v36 = vsub.s32 32, %v3688_v51  ;;  %v3232_v8 = vshll.u32 %v3231_v61, 23 }
 0x36f   : > { %13170 = vst [vmem:[#allocation111_spill] sm:$0xff] %v10432_v58  ;;  %13171 = vst [vmem:[#allocation112_spill] sm:$0xff] %v10434_v6  ;;  %v3438_v53 = vsub.s32 4294967266, %v10427_v50  ;;  %v3682_v24 = vor.u32 8388608, %v3681_v40  ;;  %v3574_v16 = vshrl.u32 %v3573_v60, 23  ;;  %v3691_v39 = vshll.u32 %v12968_v38, %v3688_v51 }
 0x370   : > { %13172 = vst [vmem:[#allocation113_spill] sm:$0xff] %v10436_v52  ;;  %v3529_v33 = vshll.u32 %v10441_v4, 30  ;;  %v3692_v7 = vshrl.u32 %v12973_v44, %v3689_v36  ;;  %v3694_v9 = vshll.u32 %v12973_v44, %v3688_v51  ;;  %v10448_v23 = vpop.eup %7173  ;;  %v3695_v15 = vshrl.u32 %v12975_v26, %v3689_v36 }
 0x371   : > { %13173 = vst [vmem:[#allocation114_spill] sm:$0xff] %v10448_v23  ;;  %v3697_v5 = vshll.u32 %v12975_v26, %v3688_v51  ;;  %v3698_v25 = vshrl.u32 %v12974_v11, %v3689_v36  ;;  %v3701_v55 = vshrl.u32 %v12986_v32, %v3689_v36  ;;  %v3687_v56 = vshrl.u32 %v3686_v1, 5 }
 0x372   : > { %v10454_v43 = vsub.s32 %v3526_v20, %v3529_v33  ;;  %v3700_v19 = vshll.u32 %v12974_v11, %v3688_v51  ;;  %v3704_v61 = vshrl.u32 %v12964_v47, %v3689_v36  ;;  %v3693_v40 = vor.u32 %v3692_v7, %v3691_v39 }
 0x373   : > { %v3696_v60 = vor.u32 %v3695_v15, %v3694_v9  ;;  %v3699_v12 = vor.u32 %v3698_v25, %v3697_v5  ;;  %v3703_v2 = vshll.u32 %v12986_v32, %v3688_v51  ;;  %v3233_v18 = vor.u32 4788187, %v3232_v8 }
 0x374   : > { %v3448_v6 = vsub.s32 4, %v10347_v22  ;;  %v3532_v23 = vsub.s32 0, %v10454_v43  ;;  %v3702_v58 = vor.u32 %v3701_v55, %v3700_v19  ;;  %v3434_v30 = vsub.s32 32, %v10427_v50 }
 0x375   : > { %v3705_v20 = vor.u32 %v3704_v61, %v3703_v2  ;;  %v3722_v33 = vshll.u32 %v3682_v24, 8  ;;  %vm3364_vm11 = vcmp.lt.s32.totalorder %v9648_v21, 0  ;;  %v3439_v52 = vadd.s32 127, %v3438_v53 }
 0x376   : > { %v6701_v39 = vmin.u32 %v3532_v23, %v10454_v43  ;;  %vm3706_vm1 = vcmp.lt.s32.totalorder %v3687_v56, 1  ;;  %vm3709_vm5 = vcmp.lt.s32.totalorder %v3687_v56, 4  ;;  %v10465_v51 = vpop.eup %7175  ;;  %v3690_v8 = vshrl.u32 %v12968_v38, %v3689_v36 }
 0x377   : > { %13174 = vst [vmem:[#allocation115_spill] sm:$0xff] %v10465_v51  ;;  %v3711_v7 = vsel %vm3709_vm5, %v3699_v12, 2102212464  ;;  %v3714_v9 = vsel %vm3706_vm1, %v3693_v40, %v3696_v60  ;;  %v6704_v15 = vadd.s32 4294967169, %v3574_v16  ;;  %vm3707_vm13 = vcmp.lt.s32.totalorder %v3687_v56, 2 }
 0x378   : > { %v3534_v5 = vclz %v6701_v39  ;;  %vm3708_vm7 = vcmp.lt.s32.totalorder %v3687_v56, 3  ;;  %v3715_v24 = vsel %vm3709_vm5, %v3702_v58, 920167782  ;;  %v13175_v25 = vand.u32 2147483647, %v9648_v21 }
 0x379   : > { %v3710_v53 = vsel %vm3706_vm1, %v3690_v8, %v3693_v40  ;;  %v3716_v23 = vsel %vm3708_vm7, %v3699_v12, %v3715_v24  ;;  %v3718_v19 = vsel %vm3706_vm1, %v3696_v60, %v3699_v12  ;;  %v3719_v61 = vsel %vm3709_vm5, %v3705_v20, 1326507024 }
 0x37a   : > { %vm10470_vm10 = vcmp.le.f32.partialorder %v13175_v25, 0.7853982  ;;  %v6702_v2 = vadd.s32 4294967294, %v3534_v5  ;;  %v3712_v1 = vsel %vm3708_vm7, %v3696_v60, %v3711_v7  ;;  %v3717_v36 = vsel %vm3707_vm13, %v3714_v9, %v3716_v23 }
 0x37b   : > { %v3720_v51 = vsel %vm3708_vm7, %v3702_v58, %v3719_v61  ;;  %v10476_v39 = vmul.u32.u64.low %v3722_v33, %v3717_v36  ;;  %v10477_v0 = vmul.u32.u64.high %v3722_v33, %v3717_v36, %v10476_v39  ;;  %v3580_v10 = vadd.s32 1, %v6704_v15 }
 0x37c   : > { %v3721_v16 = vsel %vm3707_vm13, %v3718_v19, %v3720_v51  ;;  %v3343_v25 = vsel %vm3260_vm6, %v3342_v62, %v10419_v49  ;;  %v3418_v40 = vadd.s32 %v10292_v27, %v10304_v29  ;;  %v3234_v60 = vand.u32 2147483647, %v3233_v18 }
 0x37d   : > { %v10485_v12 = vmul.u32.u64.low %v3722_v33, %v3721_v16  ;;  %v10486_v20 = vmul.u32.u64.high %v3722_v33, %v3721_v16, %v10485_v12  ;;  %v3236_v58 = vcvt.s32.f32 %v10439_v14  ;;  %v3713_v51 = vsel %vm3707_vm13, %v3710_v53, %v3712_v1  ;;  %v10512_v14 = vpop.f32.mrb[18].mxu1 }
 0x37e   : > { %vm3581_vm14 = vcmp.gt.s32.totalorder %v3580_v10, 0  ;;  %v3436_v8 = vshrl.u32 %v3418_v40, %v3434_v30  ;;  %vm6703_vm0 = vcmp.lt.s32.totalorder %v6702_v2, 0  ;;  %v13178_v7 = vand.u32 2147483647, %v9930_v46  ;;  %13179 = vst [vmem:[#allocation116_spill] sm:$0xff] %v10512_v14 }
 0x37f   : > { %v3582_v15 = vsel %vm3581_vm14, %v3580_v10, 0  ;;  %v3440_v5 = vshll.u32 %v3439_v52, 23  ;;  %v10495_v27 = vsel %vm3364_vm11, %v3448_v6, %v10347_v22  ;;  %v3732_v29 = vadd.s32 1, %v10477_v0 }
 0x380   : > { %v3577_v9 = vand.u32 8388607, %v13178_v7  ;;  %v3584_v18 = vand.u32 31, %v3582_v15  ;;  %v10501_v49 = vsel %vm10368_vm12, %v9443_v45, %v3343_v25  ;;  %v3435_v30 = vshll.u32 %v10362_v57, %v10427_v50 }
 0x381   : > { %v3729_v62 = vmul.u32 %v3722_v33, %v3713_v51  ;;  %vm3731_vm6 = vc.u32 %v10486_v20, %v10476_v39  ;;  %v10507_v10 = vmul.f32 %v3236_v58, %v3234_v60  ;;  %v10509_v52 = vsel %vm6703_vm0, 0, %v6702_v2 }
 0x382   : > { %v3733_v22 = vsel %vm3731_vm6, %v3732_v29, %v10477_v0  ;;  %v3585_v6 = vsub.s32 32, %v3584_v18  ;;  %v3437_v56 = vor.u32 %v3436_v8, %v3435_v30  ;;  %v3451_v48 = vsel %vm10470_vm10, 0, %v10495_v27 }
 0x383   : > { %v3734_v1 = vadd.s32 %v3733_v22, %v3729_v62  ;;  %v3578_v57 = vor.u32 8388608, %v3577_v9  ;;  %v3441_v50 = vor.u32 4788187, %v3440_v5  ;;  %v3542_v23 = vsub.s32 4294967266, %v10509_v52 }
 0x384   : > { %v3588_v33 = vshrl.u32 %v12973_v44, %v3585_v6  ;;  %v3591_v24 = vshrl.u32 %v12975_v26, %v3585_v6  ;;  %v3594_v53 = vshrl.u32 %v12974_v11, %v3585_v6  ;;  %v3587_v19 = vshll.u32 %v12968_v38, %v3584_v18 }
 0x385   : > { %v3735_v0 = vadd.s32 536870912, %v3734_v1  ;;  %v3781_v61 = vand.u32 2139095040, %v9999_v54  ;;  %v3590_v2 = vshll.u32 %v12973_v44, %v3584_v18  ;;  %v3593_v36 = vshll.u32 %v12975_v26, %v3584_v18 }
 0x386   : > { %v3596_v16 = vshll.u32 %v12974_v11, %v3584_v18  ;;  %v3597_v25 = vshrl.u32 %v12986_v32, %v3585_v6  ;;  %v3583_v12 = vshrl.u32 %v3582_v15, 5  ;;  %v3599_v60 = vshll.u32 %v12986_v32, %v3584_v18 }
 0x387   : > { %v10527_v40 = vshrl.u32 %v3735_v0, 30  ;;  %v3600_v58 = vshrl.u32 %v12964_v47, %v3585_v6  ;;  %v3589_v51 = vor.u32 %v3588_v33, %v3587_v19  ;;  %v3592_v8 = vor.u32 %v3591_v24, %v3590_v2 }
 0x388   : > { %v3595_v7 = vor.u32 %v3594_v53, %v3593_v36  ;;  %v3598_v9 = vor.u32 %v3597_v25, %v3596_v16  ;;  %v3444_v5 = vcvt.s32.f32 %v3437_v56  ;;  %v3522_v27 = vadd.s32 %v10392_v41, %v10404_v28 }
 0x389   : > { %v3737_v29 = vshll.u32 %v10527_v40, 30  ;;  %v3601_v30 = vor.u32 %v3600_v58, %v3599_v60  ;;  %v3442_v62 = vand.u32 2147483647, %v3441_v50  ;;  %v3538_v22 = vsub.s32 32, %v10509_v52 }
 0x38a   : > { %v3543_v0 = vadd.s32 127, %v3542_v23  ;;  %v3618_v15 = vshll.u32 %v3578_v57, 8  ;;  %vm3602_vm12 = vcmp.lt.s32.totalorder %v3583_v12, 1  ;;  %vm3605_vm2 = vcmp.lt.s32.totalorder %v3583_v12, 4 }
 0x38b   : > { %v10535_v45 = vsub.s32 %v3734_v1, %v3737_v29  ;;  %v3782_v18 = vshrl.u32 %v3781_v61, 23  ;;  %v3607_v33 = vsel %vm3605_vm2, %v3595_v7, 2102212464  ;;  %v3610_v24 = vsel %vm3602_vm12, %v3589_v51, %v3592_v8 }
 0x38c   : > { %v3611_v56 = vsel %vm3605_vm2, %v3598_v9, 920167782  ;;  %v3615_v53 = vsel %vm3605_vm2, %v3601_v30, 1326507024  ;;  %v3586_v28 = vshrl.u32 %v12968_v38, %v3585_v6  ;;  %vm3604_vm3 = vcmp.lt.s32.totalorder %v3583_v12, 3 }
 0x38d   : > { %v3740_v41 = vsub.s32 0, %v10535_v45  ;;  %v3614_v50 = vsel %vm3602_vm12, %v3592_v8, %v3595_v7  ;;  %vm3468_vm8 = vcmp.lt.s32.totalorder %v9754_v17, 0  ;;  %v3544_v57 = vshll.u32 %v3543_v0, 23 }
 0x38e   : > { %vm3603_vm4 = vcmp.lt.s32.totalorder %v3583_v12, 2  ;;  %v3612_v1 = vsel %vm3604_vm3, %v3595_v7, %v3611_v56  ;;  %v3616_v23 = vsel %vm3604_vm3, %v3598_v9, %v3615_v53  ;;  %v3606_v61 = vsel %vm3602_vm12, %v3586_v28, %v3589_v51 }
 0x38f   : > { %v6709_v19 = vmin.u32 %v3740_v41, %v10535_v45  ;;  %v3608_v2 = vsel %vm3604_vm3, %v3592_v8, %v3607_v33  ;;  %v3613_v36 = vsel %vm3603_vm4, %v3610_v24, %v3612_v1  ;;  %v3540_v16 = vshrl.u32 %v3522_v27, %v3538_v22 }
 0x390   : > { %v3617_v25 = vsel %vm3603_vm4, %v3614_v50, %v3616_v23  ;;  %v10546_v6 = vmul.u32.u64.low %v3618_v15, %v3613_v36  ;;  %v10547_v60 = vmul.u32.u64.high %v3618_v15, %v3613_v36, %v10546_v6  ;;  %v13180_v58 = vand.u32 2147483647, %v9754_v17 }
 0x391   : > { %v3742_v7 = vclz %v6709_v19  ;;  %v10556_v9 = vmul.u32.u64.low %v3618_v15, %v3617_v25  ;;  %v10557_v30 = vmul.u32.u64.high %v3618_v15, %v3617_v25, %v10556_v9  ;;  %v6712_v51 = vadd.s32 4294967169, %v3782_v18 }
 0x392   : > { %vm10552_vm1 = vcmp.le.f32.partialorder %v13180_v58, 0.7853982  ;;  %v3445_v8 = vmul.f32 %v3444_v5, %v3442_v62  ;;  %v3455_v0 = vadd.s32 3, %v3451_v48  ;;  %v3539_v27 = vshll.u32 %v10454_v43, %v10509_v52 }
 0x393   : > { %v3609_v22 = vsel %vm3603_vm4, %v3606_v61, %v3608_v2  ;;  %v3238_v33 = vxor.u32 2147483648, %v10507_v10  ;;  %v3545_v24 = vor.u32 4788187, %v3544_v57  ;;  %v3552_v56 = vsub.s32 4, %v10441_v4 }
 0x394   : > { %v3788_v53 = vadd.s32 1, %v6712_v51  ;;  %v3541_v41 = vor.u32 %v3540_v16, %v3539_v27  ;;  %v6710_v28 = vadd.s32 4294967294, %v3742_v7  ;;  %v3628_v50 = vadd.s32 1, %v10547_v60  ;;  %v10607_v27 = vpop.f32.mrb[19].mxu0 }
 0x395   : > { %v12872_v1 = vand.u32 2147483647, %v9999_v54  ;;  %v3625_v18 = vmul.u32 %v3618_v15, %v3609_v22  ;;  %vm3627_vm5 = vc.u32 %v10557_v30, %v10546_v6  ;;  %v3885_v43 = vand.u32 2139095040, %v10113_v59 }
 0x396   : > { %vm3789_vm13 = vcmp.gt.s32.totalorder %v3788_v53, 0  ;;  %7177 = vcosq.f32 %v10501_v49  ;;  %v3446_v52 = vxor.u32 2147483648, %v3445_v8  ;;  %v3629_v48 = vsel %vm3627_vm5, %v3628_v50, %v10547_v60 }
 0x397   : > { %v3790_v12 = vsel %vm3789_vm13, %v3788_v53, 0  ;;  %v3239_v5 = vsel %vm3156_vm15, %v3238_v33, %v10507_v10  ;;  %v3546_v62 = vand.u32 2147483647, %v3545_v24  ;;  %v10577_v15 = vsel %vm3468_vm8, %v3552_v56, %v10441_v4 }
 0x398   : > { %v3630_v57 = vadd.s32 %v3629_v48, %v3625_v18  ;;  %7179 = vsinq.f32 %v10501_v49  ;;  %vm6711_vm7 = vcmp.lt.s32.totalorder %v6710_v28, 0  ;;  %v3785_v23 = vand.u32 8388607, %v12872_v1 }
 0x399   : > { %v3792_v19 = vand.u32 31, %v3790_v12  ;;  %v10582_v61 = vand.u32 3, %v3455_v0  ;;  %v3548_v2 = vcvt.s32.f32 %v3541_v41  ;;  %v3886_v16 = vshrl.u32 %v3885_v43, 23 }
 0x39a   : > { %v3631_v36 = vadd.s32 536870912, %v3630_v57  ;;  %v10587_v10 = vsel %vm10376_vm9, %v9561_v13, %v3239_v5  ;;  %v10591_v4 = vsel %vm3364_vm11, %v3446_v52, %v3445_v8  ;;  %v3730_v58 = vadd.s32 %v10476_v39, %v10486_v20 }
 0x39b   : > { %13183 = vst [vmem:[#allocation117_spill] sm:$0xff] %v10582_v61  ;;  %v3793_v25 = vsub.s32 32, %v3792_v19  ;;  %v10596_v60 = vmul.f32 %v3548_v2, %v3546_v62  ;;  %v10600_v7 = vsel %vm6711_vm7, 0, %v6710_v28  ;;  %v3786_v63 = vor.u32 8388608, %v3785_v23 }
 0x39c   : > { %v10602_v9 = vshrl.u32 %v3631_v36, 30  ;;  %v3795_v33 = vshll.u32 %v12968_v38, %v3792_v19  ;;  %v3798_v24 = vshll.u32 %v12973_v44, %v3792_v19  ;;  %v6716_v39 = vadd.s32 4294967169, %v3886_v16 }
 0x39d   : > { %v3796_v51 = vshrl.u32 %v12973_v44, %v3793_v25  ;;  %v3799_v8 = vshrl.u32 %v12975_v26, %v3793_v25  ;;  %v3802_v0 = vshrl.u32 %v12974_v11, %v3793_v25  ;;  %v3750_v20 = vsub.s32 4294967266, %v10600_v7 }
 0x39e   : > { %v3633_v22 = vshll.u32 %v10602_v9, 30  ;;  %v3801_v56 = vshll.u32 %v12975_v26, %v3792_v19  ;;  %v3804_v53 = vshll.u32 %v12974_v11, %v3792_v19  ;;  %v3805_v41 = vshrl.u32 %v12986_v32, %v3793_v25 }
 0x39f   : > { %v3791_v50 = vshrl.u32 %v3790_v12, 5  ;;  %v3797_v18 = vor.u32 %v3796_v51, %v3795_v33  ;;  %v3800_v43 = vor.u32 %v3799_v8, %v3798_v24  ;;  %v3807_v62 = vshll.u32 %v12986_v32, %v3792_v19 }
 0x3a0   : > { %v10616_v28 = vsub.s32 %v3630_v57, %v3633_v22  ;;  %v10618_v52 = vpop.eup %7177  ;;  %v3803_v48 = vor.u32 %v3802_v0, %v3801_v56  ;;  %v3806_v5 = vor.u32 %v3805_v41, %v3804_v53  ;;  %v3808_v23 = vshrl.u32 %v12964_v47, %v3793_v25 }
 0x3a1   : > { %13184 = vst [vmem:[#allocation118_spill] sm:$0xff] %v10618_v52  ;;  %v3760_v2 = vsub.s32 4, %v10527_v40  ;;  %v3826_v16 = vshll.u32 %v3786_v63, 8  ;;  %v3746_v12 = vsub.s32 32, %v10600_v7  ;;  %v3751_v51 = vadd.s32 127, %v3750_v20 }
 0x3a2   : > { %v3636_v36 = vsub.s32 0, %v10616_v28  ;;  %v10625_v57 = vpop.eup %7179  ;;  %v3809_v8 = vor.u32 %v3808_v23, %v3807_v62  ;;  %v3892_v22 = vadd.s32 1, %v6716_v39  ;;  %v3794_v19 = vshrl.u32 %v12968_v38, %v3793_v25 }
 0x3a3   : > { %13185 = vst [vmem:[#allocation119_spill] sm:$0xff] %v10625_v57  ;;  %vm3810_vm15 = vcmp.lt.s32.totalorder %v3791_v50, 1  ;;  %vm3813_vm9 = vcmp.lt.s32.totalorder %v3791_v50, 4  ;;  %vm3676_vm11 = vcmp.lt.s32.totalorder %v13167_v3, 0  ;;  %vm3812_vm14 = vcmp.lt.s32.totalorder %v3791_v50, 3 }
 0x3a4   : > { %v6705_v0 = vmin.u32 %v3636_v36, %v10616_v28  ;;  %v3815_v33 = vsel %vm3813_vm9, %v3803_v48, 2102212464  ;;  %v3818_v63 = vsel %vm3810_vm15, %v3797_v18, %v3800_v43  ;;  %v3819_v24 = vsel %vm3813_vm9, %v3806_v5, 920167782 }
 0x3a5   : > { %vm3811_vm0 = vcmp.lt.s32.totalorder %v3791_v50, 2  ;;  %v3820_v53 = vsel %vm3812_vm14, %v3803_v48, %v3819_v24  ;;  %v3822_v20 = vsel %vm3810_vm15, %v3800_v43, %v3803_v48  ;;  %v3747_v39 = vshll.u32 %v10535_v45, %v10600_v7 }
 0x3a6   : > { %v3638_v56 = vclz %v6705_v0  ;;  %v3748_v41 = vshrl.u32 %v3730_v58, %v3746_v12  ;;  %v3821_v25 = vsel %vm3811_vm0, %v3818_v63, %v3820_v53  ;;  %v3823_v62 = vsel %vm3813_vm9, %v3809_v8, 1326507024 }
 0x3a7   : > { %v3814_v36 = vsel %vm3810_vm15, %v3794_v19, %v3797_v18  ;;  %v3816_v1 = vsel %vm3812_vm14, %v3800_v43, %v3815_v33  ;;  %v3824_v49 = vsel %vm3812_vm14, %v3806_v5, %v3823_v62  ;;  %v3752_v52 = vshll.u32 %v3751_v51, 23 }
 0x3a8   : > { %v6706_v23 = vadd.s32 4294967294, %v3638_v56  ;;  %v3825_v57 = vsel %vm3811_vm0, %v3822_v20, %v3824_v49  ;;  %v10638_v0 = vmul.u32.u64.low %v3826_v16, %v3821_v25  ;;  %v10639_v61 = vmul.u32.u64.high %v3826_v16, %v3821_v25, %v10638_v0 }
 0x3a9   : > { %v10642_v48 = vmul.u32.u64.low %v3826_v16, %v3825_v57  ;;  %v10643_v24 = vmul.u32.u64.high %v3826_v16, %v3825_v57, %v10642_v48  ;;  %vm3893_vm12 = vcmp.gt.s32.totalorder %v3892_v22, 0  ;;  %7181 = vcosq.f32 %v10587_v10 }
 0x3aa   : > { %vm6707_vm6 = vcmp.lt.s32.totalorder %v6706_v23, 0  ;;  %v3550_v45 = vxor.u32 2147483648, %v10596_v60  ;;  %v3817_v58 = vsel %vm3811_vm0, %v3814_v36, %v3816_v1  ;;  %v3894_v7 = vsel %vm3893_vm12, %v3892_v22, 0 }
 0x3ab   : > { %7183 = vsinq.f32 %v10587_v10  ;;  %v10653_v49 = vsel %vm10470_vm10, %v9648_v21, %v10591_v4  ;;  %v13186_v18 = vsel %vm10552_vm1, 0, %v10577_v15  ;;  %v3749_v5 = vor.u32 %v3748_v41, %v3747_v39 }
 0x3ac   : > { %v10659_v43 = vadd.s32 3, %v13186_v18  ;;  %v3753_v57 = vor.u32 4788187, %v3752_v52  ;;  %vm3572_vm2 = vcmp.lt.s32.totalorder %v9930_v46, 0  ;;  %v10662_v1 = vsel %vm6707_vm6, 0, %v6706_v23 }
 0x3ad   : > { %v3836_v10 = vadd.s32 1, %v10639_v61  ;;  %v3896_v50 = vand.u32 31, %v3894_v7  ;;  %v10668_v55 = vsel %vm3676_vm11, %v3760_v2, %v10527_v40  ;;  %v3833_v4 = vmul.u32 %v3826_v16, %v3817_v58  ;;  %v10682_v40 = vpop.f32.mrb[19].mxu1 }
 0x3ae   : > { %vm3835_vm10 = vc.u32 %v10643_v24, %v10638_v0  ;;  %v13187_v15 = vand.u32 2147483647, %v10113_v59  ;;  %v10677_v52 = vsel %vm3468_vm8, %v3550_v45, %v10596_v60  ;;  %v3626_v51 = vadd.s32 %v10546_v6, %v10557_v30 }
 0x3af   : > { %v3837_v8 = vsel %vm3835_vm10, %v3836_v10, %v10639_v61  ;;  %v3897_v22 = vsub.s32 32, %v3896_v50  ;;  %v3756_v2 = vcvt.s32.f32 %v3749_v5  ;;  %v3646_v16 = vsub.s32 4294967266, %v10662_v1 }
 0x3b0   : > { %v3889_v12 = vand.u32 8388607, %v13187_v15  ;;  %v3656_v19 = vsub.s32 4, %v10602_v9  ;;  %v3838_v33 = vadd.s32 %v3837_v8, %v3833_v4  ;;  %v3754_v63 = vand.u32 2147483647, %v3753_v57 }
 0x3b1   : > { %v3900_v56 = vshrl.u32 %v12973_v44, %v3897_v22  ;;  %v3903_v60 = vshrl.u32 %v12975_v26, %v3897_v22  ;;  %v3906_v53 = vshrl.u32 %v12974_v11, %v3897_v22  ;;  %v3895_v30 = vshrl.u32 %v3894_v7, 5 }
 0x3b2   : > { %v3839_v20 = vadd.s32 536870912, %v3838_v33  ;;  %v3890_v6 = vor.u32 8388608, %v3889_v12  ;;  %v3899_v61 = vshll.u32 %v12968_v38, %v3896_v50  ;;  %v3902_v39 = vshll.u32 %v12973_v44, %v3896_v50 }
 0x3b3   : > { %v3905_v41 = vshll.u32 %v12975_v26, %v3896_v50  ;;  %v3908_v25 = vshll.u32 %v12974_v11, %v3896_v50  ;;  %v3909_v62 = vshrl.u32 %v12986_v32, %v3897_v22  ;;  %v3647_v23 = vadd.s32 127, %v3646_v16  ;;  %v10698_v58 = vpop.eup %7181 }
 0x3b4   : > { %v10694_v36 = vshrl.u32 %v3839_v20, 30  ;;  %v3911_v48 = vshll.u32 %v12986_v32, %v3896_v50  ;;  %v3912_v45 = vshrl.u32 %v12964_v47, %v3897_v22  ;;  %13188 = vst [vmem:[#allocation120_spill] sm:$0xff] %v10698_v58  ;;  %v3901_v7 = vor.u32 %v3900_v56, %v3899_v61 }
 0x3b5   : > { %v3904_v18 = vor.u32 %v3903_v60, %v3902_v39  ;;  %v3907_v5 = vor.u32 %v3906_v53, %v3905_v41  ;;  %v3910_v57 = vor.u32 %v3909_v62, %v3908_v25  ;;  %v10700_v10 = vpop.eup %7183  ;;  %v3757_v4 = vmul.f32 %v3756_v2, %v3754_v63 }
 0x3b6   : > { %13189 = vst [vmem:[#allocation121_spill] sm:$0xff] %v10700_v10  ;;  %v3657_v15 = vsel %vm3572_vm2, %v3656_v19, %v10602_v9  ;;  %v3841_v12 = vshll.u32 %v10694_v36, 30  ;;  %v3913_v8 = vor.u32 %v3912_v45, %v3911_v48  ;;  %v13190_v50 = vand.u32 2147483647, %v13167_v3 }
 0x3b7   : > { %v3642_v56 = vsub.s32 32, %v10662_v1  ;;  %v3643_v60 = vshll.u32 %v10616_v28, %v10662_v1  ;;  %v3930_v53 = vshll.u32 %v3890_v6, 8  ;;  %v4093_v2 = vand.u32 2139095040, %v10176_v42 }
 0x3b8   : > { %vm10708_vm3 = vcmp.le.f32.partialorder %v13190_v50, 0.7853982  ;;  %v3648_v63 = vshll.u32 %v3647_v23, 23  ;;  %v10716_v20 = vsub.s32 %v3838_v33, %v3841_v12  ;;  %vm3914_vm8 = vcmp.lt.s32.totalorder %v3895_v30, 1 }
 0x3b9   : > { %vm3917_vm4 = vcmp.lt.s32.totalorder %v3895_v30, 4  ;;  %v3922_v19 = vsel %vm3914_vm8, %v3901_v7, %v3904_v18  ;;  %v3898_v25 = vshrl.u32 %v12968_v38, %v3897_v22  ;;  %vm3916_vm5 = vcmp.lt.s32.totalorder %v3895_v30, 3 }
 0x3ba   : > { %v3919_v9 = vsel %vm3917_vm4, %v3907_v5, 2102212464  ;;  %v3923_v61 = vsel %vm3917_vm4, %v3910_v57, 920167782  ;;  %v3927_v39 = vsel %vm3917_vm4, %v3913_v8, 1326507024  ;;  %v3926_v62 = vsel %vm3914_vm8, %v3904_v18, %v3907_v5 }
 0x3bb   : > { %v3844_v41 = vsub.s32 0, %v10716_v20  ;;  %v3644_v48 = vshrl.u32 %v3626_v51, %v3642_v56  ;;  %vm3915_vm13 = vcmp.lt.s32.totalorder %v3895_v30, 2  ;;  %v3924_v28 = vsel %vm3916_vm5, %v3907_v5, %v3923_v61 }
 0x3bc   : > { %v3928_v1 = vsel %vm3916_vm5, %v3910_v57, %v3927_v39  ;;  %v3918_v33 = vsel %vm3914_vm8, %v3898_v25, %v3901_v7  ;;  %v3920_v23 = vsel %vm3916_vm5, %v3904_v18, %v3919_v9  ;;  %v3925_v45 = vsel %vm3915_vm13, %v3922_v19, %v3924_v28 }
 0x3bd   : > { %v6713_v6 = vmin.u32 %v3844_v41, %v10716_v20  ;;  %v3649_v12 = vor.u32 4788187, %v3648_v63  ;;  %v3929_v50 = vsel %vm3915_vm13, %v3926_v62, %v3928_v1  ;;  %v3758_v22 = vxor.u32 2147483648, %v3757_v4 }
 0x3be   : > { %v10723_v8 = vmul.u32.u64.low %v3930_v53, %v3925_v45  ;;  %v10724_v21 = vmul.u32.u64.high %v3930_v53, %v3925_v45, %v10723_v8  ;;  %v10727_v58 = vmul.u32.u64.low %v3930_v53, %v3929_v50  ;;  %v10728_v10 = vmul.u32.u64.high %v3930_v53, %v3929_v50, %v10727_v58 }
 0x3bf   : > { %v4094_v51 = vshrl.u32 %v4093_v2, 23  ;;  %v13193_v5 = vand.u32 2147483647, %v9930_v46  ;;  %v3645_v7 = vor.u32 %v3644_v48, %v3643_v60  ;;  %v3846_v18 = vclz %v6713_v6 }
 0x3c0   : > { %v3921_v56 = vsel %vm3915_vm13, %v3918_v33, %v3920_v23  ;;  %7185 = vcosq.f32 %v10653_v49  ;;  %v10739_v63 = vand.u32 3, %v10659_v43  ;;  %v3763_v58 = vsel %vm10708_vm3, 0, %v10668_v55 }
 0x3c1   : > { %vm10732_vm7 = vcmp.le.f32.partialorder %v13193_v5, 0.7853982  ;;  %v6724_v2 = vadd.s32 4294967169, %v4094_v51  ;;  %v3554_v9 = vsel %vm10552_vm1, %v9754_v17, %v10677_v52  ;;  %v3650_v19 = vand.u32 2147483647, %v3649_v12 }
 0x3c2   : > { %13196 = vst [vmem:[#allocation122_spill] sm:$0xff] %v10739_v63  ;;  %v3659_v30 = vsel %vm10732_vm7, 0, %v3657_v15  ;;  %v3940_v60 = vadd.s32 1, %v10724_v21  ;;  %v3759_v43 = vsel %vm3676_vm11, %v3758_v22, %v3757_v4  ;;  %v3937_v61 = vmul.u32 %v3930_v53, %v3921_v56 }
 0x3c3   : > { %vm3939_vm15 = vc.u32 %v10728_v10, %v10723_v8  ;;  %v4100_v55 = vadd.s32 1, %v6724_v2  ;;  %7187 = vsinq.f32 %v10653_v49  ;;  %v3652_v39 = vcvt.s32.f32 %v3645_v7 }
 0x3c4   : > { %v6714_v41 = vadd.s32 4294967294, %v3846_v18  ;;  %v3941_v29 = vsel %vm3939_vm15, %v3940_v60, %v10724_v21  ;;  %7189 = vcosq.f32 %v3554_v9  ;;  %v3767_v52 = vadd.s32 3, %v3763_v58  ;;  %v10788_v58 = vpop.f32.mrb[20].mxu0 }
 0x3c5   : > { %v3942_v25 = vadd.s32 %v3941_v29, %v3937_v61  ;;  %v12880_v15 = vand.u32 2147483647, %v10176_v42  ;;  %v3762_v4 = vsel %vm10708_vm3, %v13167_v3, %v3759_v43  ;;  %v3653_v53 = vmul.f32 %v3652_v39, %v3650_v19  ;;  %13202 = vst [vmem:[#allocation125_spill] sm:$0xff] %v10788_v58 }
 0x3c6   : > { %v3663_v62 = vadd.s32 3, %v3659_v30  ;;  %vm4101_vm1 = vcmp.gt.s32.totalorder %v4100_v55, 0  ;;  %v13197_v48 = vand.u32 2147483647, %v9999_v54  ;;  %v3864_v21 = vsub.s32 4, %v10694_v36 }
 0x3c7   : > { %v3943_v28 = vadd.s32 536870912, %v3942_v25  ;;  %v4102_v1 = vsel %vm4101_vm1, %v4100_v55, 0  ;;  %v3989_v6 = vand.u32 2139095040, %v10264_v35  ;;  %7191 = vsinq.f32 %v3554_v9 }
 0x3c8   : > { %vm10763_vm9 = vcmp.le.f32.partialorder %v13197_v48, 0.7853982  ;;  %vm3780_vm11 = vcmp.lt.s32.totalorder %v9999_v54, 0  ;;  %vm6715_vm14 = vcmp.lt.s32.totalorder %v6714_v41, 0  ;;  %v4104_v16 = vand.u32 31, %v4102_v1 }
 0x3c9   : > { %7193 = vcosq.f32 %v3762_v4  ;;  %v10770_v33 = vand.u32 3, %v3767_v52  ;;  %v10772_v23 = vshrl.u32 %v3943_v28, 30  ;;  %v4097_v45 = vand.u32 8388607, %v12880_v15 }
 0x3ca   : > { %7195 = vsinq.f32 %v3762_v4  ;;  %v3654_v12 = vxor.u32 2147483648, %v3653_v53  ;;  %v10776_v50 = vand.u32 3, %v3663_v62  ;;  %v4105_v22 = vsub.s32 32, %v4104_v16  ;;  %v10778_v51 = vpop.eup %7185 }
 0x3cb   : > { %13200 = vst [vmem:[#allocation123_spill] sm:$0xff] %v10770_v33  ;;  %13201 = vst [vmem:[#allocation124_spill] sm:$0xff] %v10778_v51  ;;  %v10780_v5 = vsel %vm6715_vm14, 0, %v6714_v41  ;;  %v10785_v7 = vsel %vm3780_vm11, %v3864_v21, %v10694_v36  ;;  %v3945_v18 = vshll.u32 %v10772_v23, 30  ;;  %v3990_v56 = vshrl.u32 %v3989_v6, 23 }
 0x3cc   : > { %v4107_v2 = vshll.u32 %v12968_v38, %v4104_v16  ;;  %v4108_v9 = vshrl.u32 %v12973_v44, %v4105_v22  ;;  %v4111_v19 = vshrl.u32 %v12975_v26, %v4105_v22  ;;  %v4114_v30 = vshrl.u32 %v12974_v11, %v4105_v22 }
 0x3cd   : > { %v10794_v60 = vsub.s32 %v3942_v25, %v3945_v18  ;;  %v4098_v43 = vor.u32 8388608, %v4097_v45  ;;  %v4110_v61 = vshll.u32 %v12973_v44, %v4104_v16  ;;  %v4113_v36 = vshll.u32 %v12975_v26, %v4104_v16  ;;  %v10798_v55 = vpop.eup %7187 }
 0x3ce   : > { %13203 = vst [vmem:[#allocation126_spill] sm:$0xff] %v10798_v55  ;;  %v3854_v39 = vsub.s32 4294967266, %v10780_v5  ;;  %v4103_v41 = vshrl.u32 %v4102_v1, 5  ;;  %v4109_v29 = vor.u32 %v4108_v9, %v4107_v2  ;;  %v4116_v52 = vshll.u32 %v12974_v11, %v4104_v16  ;;  %v10802_v4 = vpop.eup %7189 }
 0x3cf   : > { %13204 = vst [vmem:[#allocation127_spill] sm:$0xff] %v10802_v4  ;;  %v3948_v62 = vsub.s32 0, %v10794_v60  ;;  %v4112_v48 = vor.u32 %v4111_v19, %v4110_v61  ;;  %v4115_v25 = vor.u32 %v4114_v30, %v4113_v36  ;;  %v4117_v21 = vshrl.u32 %v12986_v32, %v4105_v22 }
 0x3d0   : > { %v3867_v28 = vsel %vm10763_vm9, 0, %v10785_v7  ;;  %v4119_v6 = vshll.u32 %v12986_v32, %v4104_v16  ;;  %v4120_v45 = vshrl.u32 %v12964_v47, %v4105_v22  ;;  %v6720_v1 = vadd.s32 4294967169, %v3990_v56 }
 0x3d1   : > { %v3655_v18 = vsel %vm3572_vm2, %v3654_v12, %v3653_v53  ;;  %v6717_v2 = vmin.u32 %v3948_v62, %v10794_v60  ;;  %v4118_v9 = vor.u32 %v4117_v21, %v4116_v52  ;;  %v10815_v30 = vpop.eup %7191  ;;  %vm4122_vm0 = vcmp.lt.s32.totalorder %v4103_v41, 1 }
 0x3d2   : > { %13205 = vst [vmem:[#allocation128_spill] sm:$0xff] %v10815_v30  ;;  %v4121_v61 = vor.u32 %v4120_v45, %v4119_v6  ;;  %vm4125_vm6 = vcmp.lt.s32.totalorder %v4103_v41, 4  ;;  %v4138_v36 = vshll.u32 %v4098_v43, 8  ;;  %v3855_v16 = vadd.s32 127, %v3854_v39 }
 0x3d3   : > { %v10817_v7 = vpop.eup %7193  ;;  %v3950_v15 = vclz %v6717_v2  ;;  %v4127_v56 = vsel %vm4125_vm6, %v4115_v25, 2102212464  ;;  %v4130_v33 = vsel %vm4122_vm0, %v4109_v29, %v4112_v48  ;;  %v4106_v12 = vshrl.u32 %v12968_v38, %v4105_v22 }
 0x3d4   : > { %13206 = vst [vmem:[#allocation129_spill] sm:$0xff] %v10817_v7  ;;  %v10821_v53 = vpop.eup %7195  ;;  %vm4124_vm12 = vcmp.lt.s32.totalorder %v4103_v41, 3  ;;  %v4131_v52 = vsel %vm4125_vm6, %v4118_v9, 920167782  ;;  %v3996_v62 = vadd.s32 1, %v6720_v1  ;;  %vm4123_vm2 = vcmp.lt.s32.totalorder %v4103_v41, 2 }
 0x3d5   : > { %13207 = vst [vmem:[#allocation130_spill] sm:$0xff] %v10821_v53  ;;  %v6718_v21 = vadd.s32 4294967294, %v3950_v15  ;;  %v4132_v6 = vsel %vm4124_vm12, %v4115_v25, %v4131_v52  ;;  %v4134_v43 = vsel %vm4122_vm0, %v4112_v48, %v4115_v25  ;;  %v4126_v39 = vsel %vm4122_vm0, %v4106_v12, %v4109_v29 }
 0x3d6   : > { %v4128_v45 = vsel %vm4124_vm12, %v4112_v48, %v4127_v56  ;;  %v4133_v2 = vsel %vm4123_vm2, %v4130_v33, %v4132_v6  ;;  %v4135_v19 = vsel %vm4125_vm6, %v4121_v61, 1326507024  ;;  %v3850_v1 = vsub.s32 32, %v10780_v5 }
 0x3d7   : > { %vm6719_vm10 = vcmp.lt.s32.totalorder %v6718_v21, 0  ;;  %v4136_v7 = vsel %vm4124_vm12, %v4118_v9, %v4135_v19  ;;  %v10829_v53 = vmul.u32.u64.low %v4138_v36, %v4133_v2  ;;  %v10830_v22 = vmul.u32.u64.high %v4138_v36, %v4133_v2, %v10829_v53 }
 0x3d8   : > { %v4137_v15 = vsel %vm4123_vm2, %v4134_v43, %v4136_v7  ;;  %v13208_v52 = vand.u32 2147483647, %v10264_v35  ;;  %vm3997_vm3 = vcmp.gt.s32.totalorder %v3996_v62, 0  ;;  %v3834_v29 = vadd.s32 %v10638_v0, %v10643_v24  ;;  %v10857_v43 = vpop.f32.mrb[20].mxu1 }
 0x3d9   : > { %v3856_v33 = vshll.u32 %v3855_v16, 23  ;;  %v4129_v48 = vsel %vm4123_vm2, %v4126_v39, %v4128_v45  ;;  %v3998_v61 = vsel %vm3997_vm3, %v3996_v62, 0  ;;  %v10840_v9 = vsel %vm6719_vm10, 0, %v6718_v21  ;;  %13209 = vst [vmem:[#allocation131_spill] sm:$0xff] %v10857_v43 }
 0x3da   : > { %v3993_v25 = vand.u32 8388607, %v13208_v52  ;;  %v10842_v19 = vmul.u32.u64.low %v4138_v36, %v4137_v15  ;;  %v10843_v56 = vmul.u32.u64.high %v4138_v36, %v4137_v15, %v10842_v19  ;;  %v4000_v12 = vand.u32 31, %v3998_v61 }
 0x3db   : > { %v10848_v7 = vsel %vm10732_vm7, %v9930_v46, %v3655_v18  ;;  %v10850_v6 = vadd.s32 3, %v3867_v28  ;;  %v3938_v0 = vadd.s32 %v10723_v8, %v10728_v10  ;;  %v4148_v24 = vadd.s32 1, %v10830_v22 }
 0x3dc   : > { %v3851_v41 = vshll.u32 %v10716_v20, %v10780_v5  ;;  %v3852_v16 = vshrl.u32 %v3834_v29, %v3850_v1  ;;  %v3994_v62 = vor.u32 8388608, %v3993_v25  ;;  %v4001_v21 = vsub.s32 32, %v4000_v12 }
 0x3dd   : > { %v3857_v39 = vor.u32 4788187, %v3856_v33  ;;  %v3958_v57 = vsub.s32 4294967266, %v10840_v9  ;;  %v4145_v18 = vmul.u32 %v4138_v36, %v4129_v48  ;;  %v4197_v28 = vand.u32 2139095040, %v10327_v34 }
 0x3de   : > { %vm4147_vm8 = vc.u32 %v10843_v56, %v10829_v53  ;;  %v3999_v10 = vshrl.u32 %v3998_v61, 5  ;;  %v4003_v8 = vshll.u32 %v12968_v38, %v4000_v12  ;;  %v4004_v45 = vshrl.u32 %v12973_v44, %v4001_v21 }
 0x3df   : > { %v4149_v20 = vsel %vm4147_vm8, %v4148_v24, %v10830_v22  ;;  %v4006_v5 = vshll.u32 %v12973_v44, %v4000_v12  ;;  %v4007_v2 = vshrl.u32 %v12975_v26, %v4001_v21  ;;  %v4009_v1 = vshll.u32 %v12975_v26, %v4000_v12 }
 0x3e0   : > { %v4150_v15 = vadd.s32 %v4149_v20, %v4145_v18  ;;  %v4010_v36 = vshrl.u32 %v12974_v11, %v4001_v21  ;;  %v4012_v52 = vshll.u32 %v12974_v11, %v4000_v12  ;;  %v4013_v25 = vshrl.u32 %v12986_v32, %v4001_v21 }
 0x3e1   : > { %v4005_v29 = vor.u32 %v4004_v45, %v4003_v8  ;;  %v4008_v33 = vor.u32 %v4007_v2, %v4006_v5  ;;  %v4015_v48 = vshll.u32 %v12986_v32, %v4000_v12  ;;  %v4016_v61 = vshrl.u32 %v12964_v47, %v4001_v21 }
 0x3e2   : > { %v4151_v22 = vadd.s32 536870912, %v4150_v15  ;;  %v4011_v19 = vor.u32 %v4010_v36, %v4009_v1  ;;  %v4014_v24 = vor.u32 %v4013_v25, %v4012_v52  ;;  %v4198_v4 = vshrl.u32 %v4197_v28, 23 }
 0x3e3   : > { %v3853_v3 = vor.u32 %v3852_v16, %v3851_v41  ;;  %v3858_v30 = vand.u32 2147483647, %v3857_v39  ;;  %v4017_v63 = vor.u32 %v4016_v61, %v4015_v48  ;;  %v4034_v18 = vshll.u32 %v3994_v62, 8 }
 0x3e4   : > { %v3954_v20 = vsub.s32 32, %v10840_v9  ;;  %v10875_v17 = vshrl.u32 %v4151_v22, 30  ;;  %vm4018_vm4 = vcmp.lt.s32.totalorder %v3999_v10, 1  ;;  %vm4021_vm5 = vcmp.lt.s32.totalorder %v3999_v10, 4 }
 0x3e5   : > { %v3959_v8 = vadd.s32 127, %v3958_v57  ;;  %vm4020_vm13 = vcmp.lt.s32.totalorder %v3999_v10, 3  ;;  %v4026_v12 = vsel %vm4018_vm4, %v4005_v29, %v4008_v33  ;;  %v4027_v45 = vsel %vm4021_vm5, %v4014_v24, 920167782 }
 0x3e6   : > { %v4153_v5 = vshll.u32 %v10875_v17, 30  ;;  %v4028_v2 = vsel %vm4020_vm13, %v4011_v19, %v4027_v45  ;;  %v4030_v41 = vsel %vm4018_vm4, %v4008_v33, %v4011_v19  ;;  %v6728_v16 = vadd.s32 4294967169, %v4198_v4 }
 0x3e7   : > { %v3860_v39 = vcvt.s32.f32 %v3853_v3  ;;  %vm4019_vm7 = vcmp.lt.s32.totalorder %v3999_v10, 2  ;;  %v4023_v62 = vsel %vm4021_vm5, %v4011_v19, 2102212464  ;;  %v4031_v28 = vsel %vm4021_vm5, %v4017_v63, 1326507024 }
 0x3e8   : > { %vm3884_vm15 = vcmp.lt.s32.totalorder %v10113_v59, 0  ;;  %v10882_v1 = vsub.s32 %v4150_v15, %v4153_v5  ;;  %v4002_v57 = vshrl.u32 %v12968_v38, %v4001_v21  ;;  %v4029_v36 = vsel %vm4019_vm7, %v4026_v12, %v4028_v2 }
 0x3e9   : > { %v4032_v52 = vsel %vm4020_vm13, %v4014_v24, %v4031_v28  ;;  %v3861_v25 = vmul.f32 %v3860_v39, %v3858_v30  ;;  %v3956_v48 = vshrl.u32 %v3938_v0, %v3954_v20  ;;  %v3960_v61 = vshll.u32 %v3959_v8, 23 }
 0x3ea   : > { %v4033_v22 = vsel %vm4019_vm7, %v4030_v41, %v4032_v52  ;;  %v4156_v3 = vsub.s32 0, %v10882_v1  ;;  %v4022_v4 = vsel %vm4018_vm4, %v4002_v57, %v4005_v29  ;;  %v4024_v63 = vsel %vm4020_vm13, %v4008_v33, %v4023_v62 }
 0x3eb   : > { %v4204_v19 = vadd.s32 1, %v6728_v16  ;;  %v10891_v15 = vmul.u32.u64.low %v4034_v18, %v4033_v22  ;;  %v10892_v45 = vmul.u32.u64.high %v4034_v18, %v4033_v22, %v10891_v15  ;;  %v3955_v30 = vshll.u32 %v10794_v60, %v10840_v9 }
 0x3ec   : > { %v10894_v21 = vmul.u32.u64.low %v4034_v18, %v4029_v36  ;;  %v10895_v5 = vmul.u32.u64.high %v4034_v18, %v4029_v36, %v10894_v21  ;;  %v6725_v0 = vmin.u32 %v4156_v3, %v10882_v1  ;;  %v12890_v24 = vand.u32 2147483647, %v10327_v34 }
 0x3ed   : > { %vm4205_vm1 = vcmp.gt.s32.totalorder %v4204_v19, 0  ;;  %v3862_v20 = vxor.u32 2147483648, %v3861_v25  ;;  %v3968_v29 = vsub.s32 4, %v10772_v23  ;;  %v4025_v33 = vsel %vm4019_vm7, %v4022_v4, %v4024_v63 }
 0x3ee   : > { %v4206_v8 = vsel %vm4205_vm1, %v4204_v19, 0  ;;  %7197 = vcosq.f32 %v10848_v7  ;;  %v3957_v12 = vor.u32 %v3956_v48, %v3955_v30  ;;  %v4158_v2 = vclz %v6725_v0 }
 0x3ef   : > { %v4208_v41 = vand.u32 31, %v4206_v8  ;;  %v10906_v16 = vand.u32 3, %v10850_v6  ;;  %v3961_v60 = vor.u32 4788187, %v3960_v61  ;;  %vm4043_vm14 = vc.u32 %v10892_v45, %v10894_v21 }
 0x3f0   : > { %v4044_v9 = vadd.s32 1, %v10895_v5  ;;  %v6726_v39 = vadd.s32 4294967294, %v4158_v2  ;;  %v4041_v62 = vmul.u32 %v4034_v18, %v4025_v33  ;;  %v4201_v10 = vand.u32 8388607, %v12890_v24 }
 0x3f1   : > { %13210 = vst [vmem:[#allocation132_spill] sm:$0xff] %v10906_v16  ;;  %v4209_v28 = vsub.s32 32, %v4208_v41  ;;  %7199 = vsinq.f32 %v10848_v7  ;;  %v3863_v57 = vsel %vm3780_vm11, %v3862_v20, %v3861_v25  ;;  %v10919_v6 = vsel %vm3884_vm15, %v3968_v29, %v10772_v23 }
 0x3f2   : > { %v4045_v36 = vsel %vm4043_vm14, %v4044_v9, %v10895_v5  ;;  %v3964_v52 = vcvt.s32.f32 %v3957_v12  ;;  %vm6727_vm0 = vcmp.lt.s32.totalorder %v6726_v39, 0  ;;  %v3962_v3 = vand.u32 2147483647, %v3961_v60 }
 0x3f3   : > { %v4046_v48 = vadd.s32 %v4045_v36, %v4041_v62  ;;  %v4212_v18 = vshrl.u32 %v12973_v44, %v4209_v28  ;;  %v10923_v61 = vsel %vm6727_vm0, 0, %v6726_v39  ;;  %v4215_v22 = vshrl.u32 %v12975_v26, %v4209_v28  ;;  %v10937_v39 = vpop.f32.mrb[21].mxu0 }
 0x3f4   : > { %v4218_v7 = vshrl.u32 %v12974_v11, %v4209_v28  ;;  %v4221_v25 = vshrl.u32 %v12986_v32, %v4209_v28  ;;  %v4166_v4 = vsub.s32 4294967266, %v10923_v61  ;;  %v4202_v63 = vor.u32 8388608, %v4201_v10 }
 0x3f5   : > { %v4047_v23 = vadd.s32 536870912, %v4046_v48  ;;  %v4211_v19 = vshll.u32 %v12968_v38, %v4208_v41  ;;  %v4214_v15 = vshll.u32 %v12973_v44, %v4208_v41  ;;  %v4217_v5 = vshll.u32 %v12975_v26, %v4208_v41 }
 0x3f6   : > { %v4220_v30 = vshll.u32 %v12974_v11, %v4208_v41  ;;  %v4207_v20 = vshrl.u32 %v4206_v8, 5  ;;  %v4223_v29 = vshll.u32 %v12986_v32, %v4208_v41  ;;  %v4224_v33 = vshrl.u32 %v12964_v47, %v4209_v28 }
 0x3f7   : > { %v10933_v0 = vshrl.u32 %v4047_v23, 30  ;;  %v4213_v12 = vor.u32 %v4212_v18, %v4211_v19  ;;  %v4216_v2 = vor.u32 %v4215_v22, %v4214_v15  ;;  %v4219_v60 = vor.u32 %v4218_v7, %v4217_v5 }
 0x3f8   : > { %v4222_v9 = vor.u32 %v4221_v25, %v4220_v30  ;;  %v10939_v62 = vpop.eup %7197  ;;  %v10944_v10 = vsel %vm10763_vm9, %v9999_v54, %v3863_v57  ;;  %v4146_v8 = vadd.s32 %v10829_v53, %v10843_v56  ;;  %v4167_v36 = vadd.s32 127, %v4166_v4 }
 0x3f9   : > { %13211 = vst [vmem:[#allocation133_spill] sm:$0xff] %v10939_v62  ;;  %v4049_v41 = vshll.u32 %v10933_v0, 30  ;;  %v3965_v23 = vmul.f32 %v3964_v52, %v3962_v3  ;;  %v4225_v18 = vor.u32 %v4224_v33, %v4223_v29  ;;  %v4242_v22 = vshll.u32 %v4202_v63, 8 }
 0x3fa   : > { %v4301_v7 = vand.u32 2139095040, %v10424_v37  ;;  %v13212_v25 = vand.u32 2147483647, %v10113_v59  ;;  %v4210_v57 = vshrl.u32 %v12968_v38, %v4209_v28  ;;  %vm4226_vm9 = vcmp.lt.s32.totalorder %v4207_v20, 1 }
 0x3fb   : > { %v10956_v49 = vsub.s32 %v4046_v48, %v4049_v41  ;;  %vm4229_vm6 = vcmp.lt.s32.totalorder %v4207_v20, 4  ;;  %v10959_v53 = vpop.eup %7199  ;;  %v4162_v56 = vsub.s32 32, %v10923_v61  ;;  %v4234_v3 = vsel %vm4226_vm9, %v4213_v12, %v4216_v2 }
 0x3fc   : > { %vm10952_vm11 = vcmp.le.f32.partialorder %v13212_v25, 0.7853982  ;;  %v4231_v52 = vsel %vm4229_vm6, %v4219_v60, 2102212464  ;;  %v4235_v4 = vsel %vm4229_vm6, %v4222_v9, 920167782  ;;  %v4238_v48 = vsel %vm4226_vm9, %v4216_v2, %v4219_v60 }
 0x3fd   : > { %v4168_v63 = vshll.u32 %v4167_v36, 23  ;;  %v4052_v15 = vsub.s32 0, %v10956_v49  ;;  %vm4227_vm12 = vcmp.lt.s32.totalorder %v4207_v20, 2  ;;  %vm4228_vm2 = vcmp.lt.s32.totalorder %v4207_v20, 3 }
 0x3fe   : > { %v4236_v5 = vsel %vm4228_vm2, %v4219_v60, %v4235_v4  ;;  %v4239_v30 = vsel %vm4229_vm6, %v4225_v18, 1326507024  ;;  %v4302_v28 = vshrl.u32 %v4301_v7, 23  ;;  %v4230_v33 = vsel %vm4226_vm9, %v4210_v57, %v4213_v12 }
 0x3ff   : > { %v6721_v29 = vmin.u32 %v4052_v15, %v10956_v49  ;;  %v4232_v41 = vsel %vm4228_vm2, %v4216_v2, %v4231_v52  ;;  %v4237_v25 = vsel %vm4227_vm12, %v4234_v3, %v4236_v5  ;;  %vm4092_vm10 = vcmp.lt.s32.totalorder %v10176_v42, 0 }
 0x400   : > { %v4240_v24 = vsel %vm4228_vm2, %v4222_v9, %v4239_v30  ;;  %v10969_v36 = vmul.u32.u64.low %v4242_v22, %v4237_v25  ;;  %v10970_v16 = vmul.u32.u64.high %v4242_v22, %v4237_v25, %v10969_v36  ;;  %v6732_v54 = vadd.s32 4294967169, %v4302_v28 }
 0x401   : > { %v3966_v4 = vxor.u32 2147483648, %v3965_v23  ;;  %v4164_v51 = vshrl.u32 %v4146_v8, %v4162_v56  ;;  %v4054_v60 = vclz %v6721_v29  ;;  %v4241_v18 = vsel %vm4227_vm12, %v4238_v48, %v4240_v24 }
 0x402   : > { %v10974_v7 = vmul.u32.u64.low %v4242_v22, %v4241_v18  ;;  %v10975_v15 = vmul.u32.u64.high %v4242_v22, %v4241_v18, %v10974_v7  ;;  %v12895_v12 = vand.u32 2147483647, %v10424_v37  ;;  %v4308_v2 = vadd.s32 1, %v6732_v54 }
 0x403   : > { %v4163_v57 = vshll.u32 %v10882_v1, %v10923_v61  ;;  %v4169_v9 = vor.u32 4788187, %v4168_v63  ;;  %v6722_v52 = vadd.s32 4294967294, %v4054_v60  ;;  %v4233_v3 = vsel %vm4227_vm12, %v4230_v33, %v4232_v41  ;;  %v10998_v33 = vpop.f32.mrb[21].mxu1 }
 0x404   : > { %7201 = vcosq.f32 %v10944_v10  ;;  %v3971_v8 = vsel %vm10952_vm11, 0, %v10919_v6  ;;  %v4252_v24 = vadd.s32 1, %v10970_v16  ;;  %vm4309_vm3 = vcmp.gt.s32.totalorder %v4308_v2, 0 }
 0x405   : > { %v4165_v56 = vor.u32 %v4164_v51, %v4163_v57  ;;  %v4176_v5 = vsub.s32 4, %v10875_v17  ;;  %vm3988_vm8 = vcmp.lt.s32.totalorder %v10264_v35, 0  ;;  %vm6723_vm4 = vcmp.lt.s32.totalorder %v6722_v52, 0 }
 0x406   : > { %v4310_v54 = vsel %vm4309_vm3, %v4308_v2, 0  ;;  %v3967_v1 = vsel %vm3884_vm15, %v3966_v4, %v3965_v23  ;;  %v4057_v61 = vsel %vm6723_vm4, 0, %v6722_v52  ;;  %v4249_v20 = vmul.u32 %v4242_v22, %v4233_v3 }
 0x407   : > { %vm4251_vm5 = vc.u32 %v10975_v15, %v10969_v36  ;;  %v4170_v63 = vand.u32 2147483647, %v4169_v9  ;;  %v4062_v6 = vsub.s32 4294967266, %v4057_v61  ;;  %v4305_v51 = vand.u32 8388607, %v12895_v12 }
 0x408   : > { %v4253_v48 = vsel %vm4251_vm5, %v4252_v24, %v10970_v16  ;;  %7203 = vsinq.f32 %v10944_v10  ;;  %v10996_v30 = vadd.s32 3, %v3971_v8  ;;  %v4312_v29 = vand.u32 31, %v4310_v54 }
 0x409   : > { %v4254_v28 = vadd.s32 %v4253_v48, %v4249_v20  ;;  %v11003_v23 = vsel %vm10952_vm11, %v10113_v59, %v3967_v1  ;;  %v4172_v22 = vcvt.s32.f32 %v4165_v56  ;;  %v11008_v16 = vsel %vm4092_vm10, %v4176_v5, %v10875_v17 }
 0x40a   : > { %v4063_v41 = vadd.s32 127, %v4062_v6  ;;  %v4042_v10 = vadd.s32 %v10894_v21, %v10892_v45  ;;  %v4072_v25 = vsub.s32 4, %v10933_v0  ;;  %v4313_v60 = vsub.s32 32, %v4312_v29  ;;  %v11099_v6 = vpop.f32.mrb[22].mxu0 }
 0x40b   : > { %v4255_v4 = vadd.s32 536870912, %v4254_v28  ;;  %v11013_v18 = vmul.f32 %v4172_v22, %v4170_v63  ;;  %v4058_v7 = vsub.s32 32, %v4057_v61  ;;  %v4306_v19 = vor.u32 8388608, %v4305_v51 }
 0x40c   : > { %v4315_v2 = vshll.u32 %v12968_v38, %v4312_v29  ;;  %v4316_v9 = vshrl.u32 %v12973_v44, %v4313_v60  ;;  %v4318_v17 = vshll.u32 %v12973_v44, %v4312_v29  ;;  %v4319_v52 = vshrl.u32 %v12975_v26, %v4313_v60 }
 0x40d   : > { %v11016_v57 = vshrl.u32 %v4255_v4, 30  ;;  %v4064_v3 = vshll.u32 %v4063_v41, 23  ;;  %v4321_v45 = vshll.u32 %v12975_v26, %v4312_v29  ;;  %v4322_v21 = vshrl.u32 %v12974_v11, %v4313_v60 }
 0x40e   : > { %v4325_v8 = vshrl.u32 %v12986_v32, %v4313_v60  ;;  %v11024_v24 = vpop.eup %7201  ;;  %v11029_v56 = vsel %vm3988_vm8, %v4072_v25, %v10933_v0  ;;  %v4311_v1 = vshrl.u32 %v4310_v54, 5  ;;  %v4324_v20 = vshll.u32 %v12974_v11, %v4312_v29 }
 0x40f   : > { %13215 = vst [vmem:[#allocation134_spill] sm:$0xff] %v11024_v24  ;;  %v4257_v5 = vshll.u32 %v11016_v57, 30  ;;  %v13216_v63 = vand.u32 2147483647, %v10176_v42  ;;  %v4060_v48 = vshrl.u32 %v4042_v10, %v4058_v7  ;;  %v4317_v51 = vor.u32 %v4316_v9, %v4315_v2 }
 0x410   : > { %v4320_v22 = vor.u32 %v4319_v52, %v4318_v17  ;;  %v4323_v41 = vor.u32 %v4322_v21, %v4321_v45  ;;  %v13219_v4 = vand.u32 2147483647, %v10264_v35  ;;  %v4326_v54 = vor.u32 %v4325_v8, %v4324_v20 }
 0x411   : > { %vm11035_vm13 = vcmp.le.f32.partialorder %v13216_v63, 0.7853982  ;;  %v11045_v25 = vsub.s32 %v4254_v28, %v4257_v5  ;;  %v4327_v12 = vshll.u32 %v12986_v32, %v4312_v29  ;;  %v4328_v63 = vshrl.u32 %v12964_v47, %v4313_v60 }
 0x412   : > { %vm11041_vm7 = vcmp.le.f32.partialorder %v13219_v4, 0.7853982  ;;  %v4174_v59 = vxor.u32 2147483648, %v11013_v18  ;;  %v4059_v10 = vshll.u32 %v10956_v49, %v4057_v61  ;;  %v4065_v7 = vor.u32 4788187, %v4064_v3  ;;  %v11051_v9 = vpop.eup %7203 }
 0x413   : > { %v4346_v2 = vshll.u32 %v4306_v19, 8  ;;  %13222 = vst [vmem:[#allocation135_spill] sm:$0xff] %v11051_v9  ;;  %v4260_v17 = vsub.s32 0, %v11045_v25  ;;  %v4329_v52 = vor.u32 %v4328_v63, %v4327_v12  ;;  %vm4330_vm15 = vcmp.lt.s32.totalorder %v4311_v1, 1 }
 0x414   : > { %v4509_v28 = vand.u32 2139095040, %v10512_v14  ;;  %v4061_v45 = vor.u32 %v4060_v48, %v4059_v10  ;;  %v4314_v21 = vshrl.u32 %v12968_v38, %v4313_v60  ;;  %vm4333_vm1 = vcmp.lt.s32.totalorder %v4311_v1, 4 }
 0x415   : > { %v4338_v29 = vsel %vm4330_vm15, %v4317_v51, %v4320_v22  ;;  %v6729_v8 = vmin.u32 %v4260_v17, %v11045_v25  ;;  %vm4332_vm14 = vcmp.lt.s32.totalorder %v4311_v1, 3  ;;  %v4335_v5 = vsel %vm4333_vm1, %v4323_v41, 2102212464 }
 0x416   : > { %v4339_v49 = vsel %vm4333_vm1, %v4326_v54, 920167782  ;;  %v4066_v61 = vand.u32 2147483647, %v4065_v7  ;;  %vm4331_vm0 = vcmp.lt.s32.totalorder %v4311_v1, 2  ;;  %v4342_v3 = vsel %vm4330_vm15, %v4320_v22, %v4323_v41 }
 0x417   : > { %v4340_v19 = vsel %vm4332_vm14, %v4323_v41, %v4339_v49  ;;  %v4262_v20 = vclz %v6729_v8  ;;  %v4334_v4 = vsel %vm4330_vm15, %v4314_v21, %v4317_v51  ;;  %v4343_v63 = vsel %vm4333_vm1, %v4329_v52, 1326507024 }
 0x418   : > { %v4341_v12 = vsel %vm4331_vm0, %v4338_v29, %v4340_v19  ;;  %v4336_v24 = vsel %vm4332_vm14, %v4320_v22, %v4335_v5  ;;  %v4344_v48 = vsel %vm4332_vm14, %v4326_v54, %v4343_v63  ;;  %v4179_v17 = vsel %vm11035_vm13, 0, %v11008_v16 }
 0x419   : > { %v11058_v10 = vmul.u32.u64.low %v4346_v2, %v4341_v12  ;;  %v11059_v60 = vmul.u32.u64.high %v4346_v2, %v4341_v12, %v11058_v10  ;;  %v4068_v9 = vcvt.s32.f32 %v4061_v45  ;;  %v6730_v7 = vadd.s32 4294967294, %v4262_v20 }
 0x41a   : > { %v4345_v49 = vsel %vm4331_vm0, %v4342_v3, %v4344_v48  ;;  %v4075_v51 = vsel %vm11041_vm7, 0, %v11029_v56  ;;  %v4510_v22 = vshrl.u32 %v4509_v28, 23  ;;  %v4175_v54 = vsel %vm4092_vm10, %v4174_v59, %v11013_v18 }
 0x41b   : > { %v11069_v41 = vmul.u32.u64.low %v4346_v2, %v4345_v49  ;;  %v11070_v52 = vmul.u32.u64.high %v4346_v2, %v4345_v49, %v11069_v41  ;;  %v4069_v21 = vmul.f32 %v4068_v9, %v4066_v61  ;;  %vm6731_vm11 = vcmp.lt.s32.totalorder %v6730_v7, 0 }
 0x41c   : > { %v4337_v16 = vsel %vm4331_vm0, %v4334_v4, %v4336_v24  ;;  %v11076_v45 = vsel %vm6731_vm11, 0, %v6730_v7  ;;  %v4356_v29 = vadd.s32 1, %v11059_v60  ;;  %v12900_v8 = vand.u32 2147483647, %v10512_v14 }
 0x41d   : > { %v6740_v5 = vadd.s32 4294967169, %v4510_v22  ;;  %7205 = vcosq.f32 %v11003_v23  ;;  %v11082_v56 = vand.u32 3, %v10996_v30  ;;  %v4183_v28 = vadd.s32 3, %v4179_v17 }
 0x41e   : > { %v4270_v19 = vsub.s32 4294967266, %v11076_v45  ;;  %v4079_v59 = vadd.s32 3, %v4075_v51  ;;  %v4353_v18 = vmul.u32 %v4346_v2, %v4337_v16  ;;  %vm4355_vm9 = vc.u32 %v11070_v52, %v11058_v10 }
 0x41f   : > { %13223 = vst [vmem:[#allocation136_spill] sm:$0xff] %v11082_v56  ;;  %v4516_v24 = vadd.s32 1, %v6740_v5  ;;  %7207 = vsinq.f32 %v11003_v23  ;;  %v4178_v1 = vsel %vm11035_vm13, %v10176_v42, %v4175_v54  ;;  %v4070_v9 = vxor.u32 2147483648, %v4069_v21 }
 0x420   : > { %v4357_v61 = vsel %vm4355_vm9, %v4356_v29, %v11059_v60  ;;  %v4271_v30 = vadd.s32 127, %v4270_v19  ;;  %v4513_v20 = vand.u32 8388607, %v12900_v8  ;;  %v11094_v2 = vand.u32 3, %v4183_v28 }
 0x421   : > { %v4358_v3 = vadd.s32 %v4357_v61, %v4353_v18  ;;  %vm4517_vm6 = vcmp.gt.s32.totalorder %v4516_v24, 0  ;;  %vm4196_vm12 = vcmp.lt.s32.totalorder %v10327_v34, 0  ;;  %v4266_v4 = vsub.s32 32, %v11076_v45 }
 0x422   : > { %13224 = vst [vmem:[#allocation137_spill] sm:$0xff] %v11094_v2  ;;  %v4518_v23 = vsel %vm4517_vm6, %v4516_v24, 0  ;;  %v4405_v12 = vand.u32 2139095040, %v10607_v27  ;;  %7209 = vcosq.f32 %v4178_v1  ;;  %v11101_v63 = vand.u32 3, %v4079_v59 }
 0x423   : > { %v4359_v48 = vadd.s32 536870912, %v4358_v3  ;;  %v4520_v60 = vand.u32 31, %v4518_v23  ;;  %7211 = vsinq.f32 %v4178_v1  ;;  %v4071_v17 = vsel %vm3988_vm8, %v4070_v9, %v4069_v21 }
 0x424   : > { %13225 = vst [vmem:[#allocation138_spill] sm:$0xff] %v11101_v63  ;;  %v4250_v7 = vadd.s32 %v10969_v36, %v10975_v15  ;;  %v4280_v49 = vsub.s32 4, %v11016_v57  ;;  %v4272_v51 = vshll.u32 %v4271_v30, 23  ;;  %v4514_v22 = vor.u32 8388608, %v4513_v20 }
 0x425   : > { %v11108_v41 = vshrl.u32 %v4359_v48, 30  ;;  %v4521_v54 = vsub.s32 32, %v4520_v60  ;;  %v4267_v16 = vshll.u32 %v11045_v25, %v11076_v45  ;;  %v4519_v5 = vshrl.u32 %v4518_v23, 5 }
 0x426   : > { %v4268_v29 = vshrl.u32 %v4250_v7, %v4266_v4  ;;  %v4406_v28 = vshrl.u32 %v4405_v12, 23  ;;  %v4523_v21 = vshll.u32 %v12968_v38, %v4520_v60  ;;  %v4526_v36 = vshll.u32 %v12973_v44, %v4520_v60 }
 0x427   : > { %v4361_v19 = vshll.u32 %v11108_v41, 30  ;;  %v4524_v59 = vshrl.u32 %v12973_v44, %v4521_v54  ;;  %v11116_v15 = vpop.eup %7205  ;;  %v4527_v18 = vshrl.u32 %v12975_v26, %v4521_v54  ;;  %v4529_v24 = vshll.u32 %v12975_v26, %v4520_v60 }
 0x428   : > { %13226 = vst [vmem:[#allocation139_spill] sm:$0xff] %v11116_v15  ;;  %v4530_v1 = vshrl.u32 %v12974_v11, %v4521_v54  ;;  %v4533_v25 = vshrl.u32 %v12986_v32, %v4521_v54  ;;  %v4273_v45 = vor.u32 4788187, %v4272_v51  ;;  %v4532_v61 = vshll.u32 %v12974_v11, %v4520_v60 }
 0x429   : > { %v11122_v9 = vsub.s32 %v4358_v3, %v4361_v19  ;;  %v4536_v30 = vshrl.u32 %v12964_v47, %v4521_v54  ;;  %v11126_v20 = vpop.eup %7207  ;;  %v4525_v4 = vor.u32 %v4524_v59, %v4523_v21  ;;  %v4528_v23 = vor.u32 %v4527_v18, %v4526_v36 }
 0x42a   : > { %13227 = vst [vmem:[#allocation140_spill] sm:$0xff] %v11126_v20  ;;  %v4531_v12 = vor.u32 %v4530_v1, %v4529_v24  ;;  %v4535_v48 = vshll.u32 %v12986_v32, %v4520_v60  ;;  %v11132_v7 = vsel %vm11041_vm7, %v10264_v35, %v4071_v17  ;;  %v11137_v3 = vsel %vm4196_vm12, %v4280_v49, %v11016_v57 }
 0x42b   : > { %v4364_v51 = vsub.s32 0, %v11122_v9  ;;  %v4534_v19 = vor.u32 %v4533_v25, %v4532_v61  ;;  %v4269_v8 = vor.u32 %v4268_v29, %v4267_v16  ;;  %v4554_v21 = vshll.u32 %v4514_v22, 8 }
 0x42c   : > { %v4537_v2 = vor.u32 %v4536_v30, %v4535_v48  ;;  %v11141_v36 = vpop.eup %7209  ;;  %v13229_v60 = vand.u32 2147483647, %v10327_v34  ;;  %vm4538_vm10 = vcmp.lt.s32.totalorder %v4519_v5, 1  ;;  %vm4541_vm3 = vcmp.lt.s32.totalorder %v4519_v5, 4 }
 0x42d   : > { %13228 = vst [vmem:[#allocation141_spill] sm:$0xff] %v11141_v36  ;;  %v6733_v17 = vmin.u32 %v4364_v51, %v11122_v9  ;;  %v6736_v57 = vadd.s32 4294967169, %v4406_v28  ;;  %v11150_v49 = vpop.eup %7211  ;;  %v4274_v16 = vand.u32 2147483647, %v4273_v45  ;;  %v4522_v22 = vshrl.u32 %v12968_v38, %v4521_v54 }
 0x42e   : > { %vm11145_vm2 = vcmp.le.f32.partialorder %v13229_v60, 0.7853982  ;;  %13232 = vst [vmem:[#allocation142_spill] sm:$0xff] %v11150_v49  ;;  %v4543_v29 = vsel %vm4541_vm3, %v4531_v12, 2102212464  ;;  %v4546_v18 = vsel %vm4538_vm10, %v4525_v4, %v4528_v23  ;;  %vm4539_vm8 = vcmp.lt.s32.totalorder %v4519_v5, 2 }
 0x42f   : > { %v4366_v24 = vclz %v6733_v17  ;;  %vm4540_vm4 = vcmp.lt.s32.totalorder %v4519_v5, 3  ;;  %v4547_v1 = vsel %vm4541_vm3, %v4534_v19, 920167782  ;;  %vm4300_vm5 = vcmp.lt.s32.totalorder %v10424_v37, 0 }
 0x430   : > { %v4542_v25 = vsel %vm4538_vm10, %v4522_v22, %v4525_v4  ;;  %v4548_v61 = vsel %vm4540_vm4, %v4531_v12, %v4547_v1  ;;  %v4550_v30 = vsel %vm4538_vm10, %v4528_v23, %v4531_v12  ;;  %v4551_v48 = vsel %vm4541_vm3, %v4537_v2, 1326507024 }
 0x431   : > { %v6734_v51 = vadd.s32 4294967294, %v4366_v24  ;;  %v4544_v60 = vsel %vm4540_vm4, %v4528_v23, %v4543_v29  ;;  %v4549_v28 = vsel %vm4539_vm8, %v4546_v18, %v4548_v61  ;;  %v4552_v59 = vsel %vm4540_vm4, %v4534_v19, %v4551_v48  ;;  %v11184_v48 = vpop.f32.mrb[22].mxu1 }
 0x432   : > { %v4553_v45 = vsel %vm4539_vm8, %v4550_v30, %v4552_v59  ;;  %v11156_v54 = vmul.u32.u64.low %v4554_v21, %v4549_v28  ;;  %v11157_v36 = vmul.u32.u64.high %v4554_v21, %v4549_v28, %v11156_v54  ;;  %v4412_v17 = vadd.s32 1, %v6736_v57 }
 0x433   : > { %v4276_v49 = vcvt.s32.f32 %v4269_v8  ;;  %vm6735_vm13 = vcmp.lt.s32.totalorder %v6734_v51, 0  ;;  %v11160_v15 = vmul.u32.u64.low %v4554_v21, %v4553_v45  ;;  %v11161_v20 = vmul.u32.u64.high %v4554_v21, %v4553_v45, %v11160_v15 }
 0x434   : > { %v4369_v4 = vsel %vm6735_vm13, 0, %v6734_v51  ;;  %v4545_v2 = vsel %vm4539_vm8, %v4542_v25, %v4544_v60  ;;  %v13233_v23 = vand.u32 2147483647, %v10607_v27  ;;  %vm4413_vm7 = vcmp.gt.s32.totalorder %v4412_v17, 0 }
 0x435   : > { %v4277_v19 = vmul.f32 %v4276_v49, %v4274_v16  ;;  %v4374_v22 = vsub.s32 4294967266, %v4369_v4  ;;  %v4384_v59 = vsub.s32 4, %v11108_v41  ;;  %v4414_v29 = vsel %vm4413_vm7, %v4412_v17, 0 }
 0x436   : > { %v4409_v12 = vand.u32 8388607, %v13233_v23  ;;  %7213 = vcosq.f32 %v11132_v7  ;;  %v4564_v15 = vadd.s32 1, %v11157_v36  ;;  %v4416_v57 = vand.u32 31, %v4414_v29 }
 0x437   : > { %v13234_v5 = vand.u32 2147483647, %v10424_v37  ;;  %v4354_v49 = vadd.s32 %v11058_v10, %v11070_v52  ;;  %v4561_v16 = vmul.u32 %v4554_v21, %v4545_v2  ;;  %vm4563_vm1 = vc.u32 %v11161_v20, %v11156_v54 }
 0x438   : > { %v4375_v1 = vadd.s32 127, %v4374_v22  ;;  %v4565_v25 = vsel %vm4563_vm1, %v4564_v15, %v11157_v36  ;;  %v4410_v61 = vor.u32 8388608, %v4409_v12  ;;  %v4417_v30 = vsub.s32 32, %v4416_v57 }
 0x439   : > { %vm11174_vm15 = vcmp.le.f32.partialorder %v13234_v5, 0.7853982  ;;  %v4278_v51 = vxor.u32 2147483648, %v4277_v19  ;;  %v4370_v60 = vsub.s32 32, %v4369_v4  ;;  %v11189_v28 = vsel %vm4300_vm5, %v4384_v59, %v11108_v41 }
 0x43a   : > { %v4566_v10 = vadd.s32 %v4565_v25, %v4561_v16  ;;  %v4420_v52 = vshrl.u32 %v12973_v44, %v4417_v30  ;;  %v4423_v21 = vshrl.u32 %v12975_v26, %v4417_v30  ;;  %v4426_v45 = vshrl.u32 %v12974_v11, %v4417_v30 }
 0x43b   : > { %v4613_v36 = vand.u32 2139095040, %v10682_v40  ;;  %v4415_v2 = vshrl.u32 %v4414_v29, 5  ;;  %v4419_v23 = vshll.u32 %v12968_v38, %v4416_v57  ;;  %v4422_v12 = vshll.u32 %v12973_v44, %v4416_v57 }
 0x43c   : > { %v4567_v17 = vadd.s32 536870912, %v4566_v10  ;;  %v4376_v22 = vshll.u32 %v4375_v1, 23  ;;  %v4425_v15 = vshll.u32 %v12975_v26, %v4416_v57  ;;  %v4428_v41 = vshll.u32 %v12974_v11, %v4416_v57 }
 0x43d   : > { %v4429_v59 = vshrl.u32 %v12986_v32, %v4417_v30  ;;  %v4372_v5 = vshrl.u32 %v4354_v49, %v4370_v60  ;;  %v4431_v25 = vshll.u32 %v12986_v32, %v4416_v57  ;;  %v4432_v24 = vshrl.u32 %v12964_v47, %v4417_v30 }
 0x43e   : > { %v11200_v16 = vshrl.u32 %v4567_v17, 30  ;;  %v4421_v8 = vor.u32 %v4420_v52, %v4419_v23  ;;  %v4424_v29 = vor.u32 %v4423_v21, %v4422_v12  ;;  %v4427_v42 = vor.u32 %v4426_v45, %v4425_v15 }
 0x43f   : > { %v4430_v56 = vor.u32 %v4429_v59, %v4428_v41  ;;  %v4371_v63 = vshll.u32 %v11122_v9, %v4369_v4  ;;  %v4433_v35 = vor.u32 %v4432_v24, %v4431_v25  ;;  %v4450_v55 = vshll.u32 %v4410_v61, 8 }
 0x440   : > { %v4569_v1 = vshll.u32 %v11200_v16, 30  ;;  %v11206_v62 = vpop.eup %7213  ;;  %v4279_v49 = vsel %vm4196_vm12, %v4278_v51, %v4277_v19  ;;  %v4377_v60 = vor.u32 4788187, %v4376_v22  ;;  %v4387_v57 = vsel %vm11174_vm15, 0, %v11189_v28 }
 0x441   : > { %13237 = vst [vmem:[#allocation143_spill] sm:$0xff] %v11206_v62  ;;  %v4614_v52 = vshrl.u32 %v4613_v36, 23  ;;  %v4373_v21 = vor.u32 %v4372_v5, %v4371_v63  ;;  %vm4434_vm14 = vcmp.lt.s32.totalorder %v4415_v2, 1  ;;  %vm4437_vm0 = vcmp.lt.s32.totalorder %v4415_v2, 4 }
 0x442   : > { %v11213_v45 = vsub.s32 %v4566_v10, %v4569_v1  ;;  %v4439_v9 = vsel %vm4437_vm0, %v4427_v42, 2102212464  ;;  %v4442_v4 = vsel %vm4434_vm14, %v4421_v8, %v4424_v29  ;;  %v4443_v24 = vsel %vm4437_vm0, %v4430_v56, 920167782 }
 0x443   : > { %v4447_v61 = vsel %vm4437_vm0, %v4433_v35, 1326507024  ;;  %v4418_v19 = vshrl.u32 %v12968_v38, %v4417_v30  ;;  %vm4436_vm11 = vcmp.lt.s32.totalorder %v4415_v2, 3  ;;  %v4446_v51 = vsel %vm4434_vm14, %v4424_v29, %v4427_v42 }
 0x444   : > { %v4572_v17 = vsub.s32 0, %v11213_v45  ;;  %v4378_v23 = vand.u32 2147483647, %v4377_v60  ;;  %vm4508_vm9 = vcmp.lt.s32.totalorder %v10512_v14, 0  ;;  %vm4435_vm6 = vcmp.lt.s32.totalorder %v4415_v2, 2 }
 0x445   : > { %v4444_v63 = vsel %vm4436_vm11, %v4427_v42, %v4443_v24  ;;  %v4448_v28 = vsel %vm4436_vm11, %v4430_v56, %v4447_v61  ;;  %v4438_v36 = vsel %vm4434_vm14, %v4418_v19, %v4421_v8  ;;  %v4440_v12 = vsel %vm4436_vm11, %v4424_v29, %v4439_v9 }
 0x446   : > { %v6741_v10 = vmin.u32 %v4572_v17, %v11213_v45  ;;  %v4445_v35 = vsel %vm4435_vm6, %v4442_v4, %v4444_v63  ;;  %v4380_v22 = vcvt.s32.f32 %v4373_v21  ;;  %v4449_v15 = vsel %vm4435_vm6, %v4446_v51, %v4448_v28 }
 0x447   : > { %v11224_v30 = vmul.u32.u64.low %v4450_v55, %v4445_v35  ;;  %v11225_v41 = vmul.u32.u64.high %v4450_v55, %v4445_v35, %v11224_v30  ;;  %v11228_v5 = vmul.u32.u64.low %v4450_v55, %v4449_v15  ;;  %v11229_v25 = vmul.u32.u64.high %v4450_v55, %v4449_v15, %v11228_v5 }
 0x448   : > { %v4574_v59 = vclz %v6741_v10  ;;  %v6744_v42 = vadd.s32 4294967169, %v4614_v52  ;;  %7215 = vsinq.f32 %v11132_v7  ;;  %v13238_v56 = vsel %vm11145_vm2, 0, %v11137_v3 }
 0x449   : > { %v4287_v8 = vadd.s32 3, %v13238_v56  ;;  %v4381_v29 = vmul.f32 %v4380_v22, %v4378_v23  ;;  %v4441_v1 = vsel %vm4435_vm6, %v4438_v36, %v4440_v12  ;;  %v4592_v21 = vsub.s32 4, %v11200_v16 }
 0x44a   : > { %v6742_v60 = vadd.s32 4294967294, %v4574_v59  ;;  %v4620_v9 = vadd.s32 1, %v6744_v42  ;;  %v4717_v4 = vand.u32 2139095040, %v10788_v58  ;;  %v4282_v52 = vsel %vm11145_vm2, %v10327_v34, %v4279_v49 }
 0x44b   : > { %v4391_v24 = vadd.s32 3, %v4387_v57  ;;  %v4460_v7 = vadd.s32 1, %v11225_v41  ;;  %v13239_v61 = vand.u32 2147483647, %v10682_v40  ;;  %v4457_v17 = vmul.u32 %v4450_v55, %v4441_v1 }
 0x44c   : > { %vm6743_vm12 = vcmp.lt.s32.totalorder %v6742_v60, 0  ;;  %vm4459_vm10 = vc.u32 %v11229_v25, %v11224_v30  ;;  %vm4621_vm3 = vcmp.gt.s32.totalorder %v4620_v9, 0  ;;  %v4382_v2 = vxor.u32 2147483648, %v4381_v29 }
 0x44d   : > { %v4617_v3 = vand.u32 8388607, %v13239_v61  ;;  %v4577_v19 = vsel %vm6743_vm12, 0, %v6742_v60  ;;  %v4461_v51 = vsel %vm4459_vm10, %v4460_v7, %v11225_v41  ;;  %v4622_v23 = vsel %vm4621_vm3, %v4620_v9, 0  ;;  %v11277_v9 = vpop.f32.mrb[23].mxu0 }
 0x44e   : > { %v4582_v63 = vsub.s32 4294967266, %v4577_v19  ;;  %v4593_v0 = vsel %vm4508_vm9, %v4592_v21, %v11200_v16  ;;  %v4462_v49 = vadd.s32 %v4461_v51, %v4457_v17  ;;  %v4718_v57 = vshrl.u32 %v4717_v4, 23 }
 0x44f   : > { %7217 = vcosq.f32 %v4282_v52  ;;  %v11251_v28 = vand.u32 3, %v4287_v8  ;;  %v13241_v55 = vand.u32 2147483647, %v10512_v14  ;;  %v4624_v36 = vand.u32 31, %v4622_v23 }
 0x450   : > { %7219 = vsinq.f32 %v4282_v52  ;;  %v11259_v12 = vand.u32 3, %v4391_v24  ;;  %v4578_v35 = vsub.s32 32, %v4577_v19  ;;  %v4463_v22 = vadd.s32 536870912, %v4462_v49 }
 0x451   : > { %13240 = vst [vmem:[#allocation144_spill] sm:$0xff] %v11251_v28  ;;  %vm11255_vm2 = vcmp.le.f32.partialorder %v13241_v55, 0.7853982  ;;  %v4562_v16 = vadd.s32 %v11156_v54, %v11161_v20  ;;  %v4583_v15 = vadd.s32 127, %v4582_v63  ;;  %v4625_v59 = vsub.s32 32, %v4624_v36 }
 0x452   : > { %13244 = vst [vmem:[#allocation145_spill] sm:$0xff] %v11259_v12  ;;  %v4595_v41 = vsel %vm11255_vm2, 0, %v4593_v0  ;;  %v11267_v5 = vsel %vm4300_vm5, %v4382_v2, %v4381_v29  ;;  %v11269_v42 = vshrl.u32 %v4463_v22, 30  ;;  %v4618_v56 = vor.u32 8388608, %v4617_v3  ;;  %v11271_v1 = vpop.eup %7215 }
 0x453   : > { %v6748_v8 = vadd.s32 4294967169, %v4718_v57  ;;  %v4579_v60 = vshll.u32 %v11213_v45, %v4577_v19  ;;  %v4628_v21 = vshrl.u32 %v12973_v44, %v4625_v59  ;;  %v4631_v20 = vshrl.u32 %v12975_v26, %v4625_v59 }
 0x454   : > { %v4634_v54 = vshrl.u32 %v12974_v11, %v4625_v59  ;;  %v4580_v4 = vshrl.u32 %v4562_v16, %v4578_v35  ;;  %v4465_v29 = vshll.u32 %v11269_v42, 30  ;;  %v4627_v52 = vshll.u32 %v12968_v38, %v4624_v36 }
 0x455   : > { %v4630_v24 = vshll.u32 %v12973_v44, %v4624_v36  ;;  %v4584_v7 = vshll.u32 %v4583_v15, 23  ;;  %v4633_v61 = vshll.u32 %v12975_v26, %v4624_v36  ;;  %v4636_v45 = vshll.u32 %v12974_v11, %v4624_v36 }
 0x456   : > { %v4637_v3 = vshrl.u32 %v12986_v32, %v4625_v59  ;;  %v11285_v17 = vsub.s32 %v4462_v49, %v4465_v29  ;;  %v4623_v2 = vshrl.u32 %v4622_v23, 5  ;;  %v4629_v19 = vor.u32 %v4628_v21, %v4627_v52 }
 0x457   : > { %v4632_v51 = vor.u32 %v4631_v20, %v4630_v24  ;;  %v4635_v63 = vor.u32 %v4634_v54, %v4633_v61  ;;  %v4639_v57 = vshll.u32 %v12986_v32, %v4624_v36  ;;  %v4640_v55 = vshrl.u32 %v12964_v47, %v4625_v59 }
 0x458   : > { %v4638_v0 = vor.u32 %v4637_v3, %v4636_v45  ;;  %v11289_v35 = vadd.s32 3, %v4595_v41  ;;  %v4468_v22 = vsub.s32 0, %v11285_v17  ;;  %v4658_v16 = vshll.u32 %v4618_v56, 8 }
 0x459   : > { %v11293_v12 = vpop.eup %7217  ;;  %v4581_v49 = vor.u32 %v4580_v4, %v4579_v60  ;;  %v4585_v29 = vor.u32 4788187, %v4584_v7  ;;  %v4641_v23 = vor.u32 %v4640_v55, %v4639_v57  ;;  %v4724_v21 = vadd.s32 1, %v6748_v8 }
 0x45a   : > { %13245 = vst [vmem:[#allocation146_spill] sm:$0xff] %v11293_v12  ;;  %v11295_v20 = vpop.eup %7219  ;;  %v6737_v54 = vmin.u32 %v4468_v22, %v11285_v17  ;;  %v4626_v36 = vshrl.u32 %v12968_v38, %v4625_v59  ;;  %vm4642_vm8 = vcmp.lt.s32.totalorder %v4623_v2, 1  ;;  %vm4645_vm4 = vcmp.lt.s32.totalorder %v4623_v2, 4 }
 0x45b   : > { %13246 = vst [vmem:[#allocation147_spill] sm:$0xff] %v11295_v20  ;;  %vm4644_vm5 = vcmp.lt.s32.totalorder %v4623_v2, 3  ;;  %v4647_v41 = vsel %vm4645_vm4, %v4635_v63, 2102212464  ;;  %v4650_v56 = vsel %vm4642_vm8, %v4629_v19, %v4632_v51  ;;  %v4651_v52 = vsel %vm4645_vm4, %v4638_v0, 920167782 }
 0x45c   : > { %vm4404_vm13 = vcmp.lt.s32.totalorder %v10607_v27, 0  ;;  %v4470_v24 = vclz %v6737_v54  ;;  %vm4643_vm7 = vcmp.lt.s32.totalorder %v4623_v2, 2  ;;  %v4652_v60 = vsel %vm4644_vm5, %v4635_v63, %v4651_v52 }
 0x45d   : > { %v4654_v8 = vsel %vm4642_vm8, %v4632_v51, %v4635_v63  ;;  %v4586_v4 = vand.u32 2147483647, %v4585_v29  ;;  %v4588_v7 = vcvt.s32.f32 %v4581_v49  ;;  %v4653_v61 = vsel %vm4643_vm7, %v4650_v56, %v4652_v60 }
 0x45e   : > { %v4655_v59 = vsel %vm4645_vm4, %v4641_v23, 1326507024  ;;  %v6738_v45 = vadd.s32 4294967294, %v4470_v24  ;;  %v4646_v3 = vsel %vm4642_vm8, %v4626_v36, %v4629_v19  ;;  %v4648_v57 = vsel %vm4644_vm5, %v4632_v51, %v4647_v41 }
 0x45f   : > { %v4656_v55 = vsel %vm4644_vm5, %v4638_v0, %v4655_v59  ;;  %v4488_v22 = vsub.s32 4, %v11269_v42  ;;  %v11309_v15 = vmul.u32.u64.low %v4658_v16, %v4653_v61  ;;  %v11310_v52 = vmul.u32.u64.high %v4658_v16, %v4653_v61, %v11309_v15  ;;  %v11339_v59 = vpop.f32.mrb[23].mxu1 }
 0x460   : > { %v4657_v54 = vsel %vm4643_vm7, %v4654_v8, %v4656_v55  ;;  %vm6739_vm1 = vcmp.lt.s32.totalorder %v6738_v45, 0  ;;  %vm4725_vm14 = vcmp.gt.s32.totalorder %v4724_v21, 0  ;;  %v4589_v29 = vmul.f32 %v4588_v7, %v4586_v4 }
 0x461   : > { %v11313_v63 = vmul.u32.u64.low %v4658_v16, %v4657_v54  ;;  %v11314_v49 = vmul.u32.u64.high %v4658_v16, %v4657_v54, %v11313_v63  ;;  %v4473_v23 = vsel %vm6739_vm1, 0, %v6738_v45  ;;  %v4649_v19 = vsel %vm4643_vm7, %v4646_v3, %v4648_v57 }
 0x462   : > { %v4726_v51 = vsel %vm4725_vm14, %v4724_v21, 0  ;;  %v11321_v0 = vsel %vm11174_vm15, %v10424_v37, %v11267_v5  ;;  %v4458_v36 = vadd.s32 %v11224_v30, %v11229_v25  ;;  %v4474_v41 = vsub.s32 32, %v4473_v23 }
 0x463   : > { %v4478_v56 = vsub.s32 4294967266, %v4473_v23  ;;  %v4668_v24 = vadd.s32 1, %v11310_v52  ;;  %v13247_v60 = vand.u32 2147483647, %v10788_v58  ;;  %v4728_v2 = vand.u32 31, %v4726_v51 }
 0x464   : > { %v4476_v4 = vshrl.u32 %v4458_v36, %v4474_v41  ;;  %v4665_v61 = vmul.u32 %v4658_v16, %v4649_v19  ;;  %vm4667_vm15 = vc.u32 %v11314_v49, %v11309_v15  ;;  %v4590_v18 = vxor.u32 2147483648, %v4589_v29 }
 0x465   : > { %v11328_v8 = vand.u32 8388607, %v13247_v60  ;;  %v4479_v7 = vadd.s32 127, %v4478_v56  ;;  %v11336_v30 = vsel %vm4404_vm13, %v4488_v22, %v11269_v42  ;;  %v4669_v25 = vsel %vm4667_vm15, %v4668_v24, %v11310_v52 }
 0x466   : > { %v4729_v5 = vsub.s32 32, %v4728_v2  ;;  %v4475_v45 = vshll.u32 %v11285_v17, %v4473_v23  ;;  %v4670_v57 = vadd.s32 %v4669_v25, %v4665_v61  ;;  %v4727_v55 = vshrl.u32 %v4726_v51, 5 }
 0x467   : > { %v4480_v3 = vshll.u32 %v4479_v7, 23  ;;  %v4737_v63 = vshll.u32 %v12975_v26, %v4728_v2  ;;  %v4731_v52 = vshll.u32 %v12968_v38, %v4728_v2  ;;  %vm4612_vm0 = vcmp.lt.s32.totalorder %v10682_v40, 0 }
 0x468   : > { %v4732_v16 = vshrl.u32 %v12973_v44, %v4729_v5  ;;  %v4735_v54 = vshrl.u32 %v12975_v26, %v4729_v5  ;;  %v4738_v19 = vshrl.u32 %v12974_v11, %v4729_v5  ;;  %v4477_v42 = vor.u32 %v4476_v4, %v4475_v45 }
 0x469   : > { %v4481_v22 = vor.u32 4788187, %v4480_v3  ;;  %v4671_v36 = vadd.s32 536870912, %v4670_v57  ;;  %v4734_v17 = vshll.u32 %v12973_v44, %v4728_v2  ;;  %v4740_v51 = vshll.u32 %v12974_v11, %v4728_v2 }
 0x46a   : > { %v4739_v23 = vor.u32 %v4738_v19, %v4737_v63  ;;  %v4741_v41 = vshrl.u32 %v12986_v32, %v4729_v5  ;;  %v4743_v60 = vshll.u32 %v12986_v32, %v4728_v2  ;;  %v4744_v7 = vshrl.u32 %v12964_v47, %v4729_v5 }
 0x46b   : > { %v4482_v56 = vand.u32 2147483647, %v4481_v22  ;;  %v4672_v24 = vshrl.u32 %v4671_v36, 30  ;;  %v4591_v4 = vsel %vm4508_vm9, %v4590_v18, %v4589_v29  ;;  %v4733_v61 = vor.u32 %v4732_v16, %v4731_v52 }
 0x46c   : > { %v4736_v25 = vor.u32 %v4735_v54, %v4734_v17  ;;  %v4742_v45 = vor.u32 %v4741_v41, %v4740_v51  ;;  %v13248_v3 = vand.u32 2147483647, %v10607_v27  ;;  %v4484_v19 = vcvt.s32.f32 %v4477_v42 }
 0x46d   : > { %v4673_v21 = vshll.u32 %v4672_v24, 30  ;;  %v4722_v22 = vor.u32 8388608, %v11328_v8  ;;  %v4745_v36 = vor.u32 %v4744_v7, %v4743_v60  ;;  %v13251_v2 = vand.u32 2147483647, %v10682_v40 }
 0x46e   : > { %vm11357_vm11 = vcmp.le.f32.partialorder %v13248_v3, 0.7853982  ;;  %v4730_v29 = vshrl.u32 %v12968_v38, %v4729_v5  ;;  %vm4746_vm9 = vcmp.lt.s32.totalorder %v4727_v55, 1  ;;  %vm4749_vm12 = vcmp.lt.s32.totalorder %v4727_v55, 4 }
 0x46f   : > { %vm11364_vm6 = vcmp.le.f32.partialorder %v13251_v2, 0.7853982  ;;  %v4925_v18 = vand.u32 2139095040, %v10857_v43  ;;  %v4485_v16 = vmul.f32 %v4484_v19, %v4482_v56  ;;  %v11370_v54 = vsub.s32 %v4670_v57, %v4673_v21 }
 0x470   : > { %v4696_v42 = vsub.s32 4, %v4672_v24  ;;  %v4751_v52 = vsel %vm4749_vm12, %v4739_v23, 2102212464  ;;  %vm4748_vm10 = vcmp.lt.s32.totalorder %v4727_v55, 3  ;;  %v4754_v8 = vsel %vm4746_vm9, %v4733_v61, %v4736_v25 }
 0x471   : > { %v4755_v17 = vsel %vm4749_vm12, %v4742_v45, 920167782  ;;  %v4759_v51 = vsel %vm4749_vm12, %v4745_v36, 1326507024  ;;  %v4676_v41 = vsub.s32 0, %v11370_v54  ;;  %v4750_v60 = vsel %vm4746_vm9, %v4730_v29, %v4733_v61 }
 0x472   : > { %v4752_v7 = vsel %vm4748_vm10, %v4736_v25, %v4751_v52  ;;  %v4758_v3 = vsel %vm4746_vm9, %v4736_v25, %v4739_v23  ;;  %vm4747_vm3 = vcmp.lt.s32.totalorder %v4727_v55, 2  ;;  %v4756_v5 = vsel %vm4748_vm10, %v4739_v23, %v4755_v17 }
 0x473   : > { %v4760_v2 = vsel %vm4748_vm10, %v4742_v45, %v4759_v51  ;;  %v4762_v12 = vshll.u32 %v4722_v22, 8  ;;  %v4486_v20 = vxor.u32 2147483648, %v4485_v16  ;;  %v6745_v56 = vmin.u32 %v4676_v41, %v11370_v54 }
 0x474   : > { %v4697_v21 = vsel %vm4612_vm0, %v4696_v42, %v4672_v24  ;;  %v4757_v57 = vsel %vm4747_vm3, %v4754_v8, %v4756_v5  ;;  %v4753_v19 = vsel %vm4747_vm3, %v4750_v60, %v4752_v7  ;;  %v4761_v28 = vsel %vm4747_vm3, %v4758_v3, %v4760_v2 }
 0x475   : > { %v11376_v34 = vmul.u32.u64.low %v4762_v12, %v4757_v57  ;;  %v11377_v36 = vmul.u32.u64.high %v4762_v12, %v4757_v57, %v11376_v34  ;;  %v4678_v62 = vclz %v6745_v56  ;;  %v4926_v55 = vshrl.u32 %v4925_v18, 23 }
 0x476   : > { %v11379_v61 = vmul.u32.u64.low %v4762_v12, %v4761_v28  ;;  %v11380_v29 = vmul.u32.u64.high %v4762_v12, %v4761_v28, %v11379_v61  ;;  %7221 = vcosq.f32 %v11321_v0  ;;  %v4594_v23 = vsel %vm11255_vm2, %v10512_v14, %v4591_v4 }
 0x477   : > { %v11387_v25 = vand.u32 3, %v11289_v35  ;;  %v4491_v24 = vsel %vm11357_vm11, 0, %v11336_v30  ;;  %v6746_v45 = vadd.s32 4294967294, %v4678_v62  ;;  %v4699_v22 = vsel %vm11364_vm6, 0, %v4697_v21 }
 0x478   : > { %v6756_v28 = vadd.s32 4294967169, %v4926_v55  ;;  %v13255_v18 = vand.u32 2147483647, %v10857_v43  ;;  %v4487_v52 = vsel %vm4404_vm13, %v4486_v20, %v4485_v16  ;;  %v4769_v10 = vmul.u32 %v4762_v12, %v4753_v19 }
 0x479   : > { %13254 = vst [vmem:[#allocation148_spill] sm:$0xff] %v11387_v25  ;;  %v4772_v4 = vadd.s32 1, %v11377_v36  ;;  %v12923_v35 = vand.u32 2147483647, %v10937_v39  ;;  %vm6747_vm2 = vcmp.lt.s32.totalorder %v6746_v45, 0  ;;  %vm4771_vm8 = vc.u32 %v11380_v29, %v11376_v34 }
 0x47a   : > { %v4929_v42 = vand.u32 8388607, %v13255_v18  ;;  %v4932_v30 = vadd.s32 1, %v6756_v28  ;;  %v4821_v62 = vand.u32 2139095040, %v10937_v39  ;;  %7223 = vsinq.f32 %v11321_v0 }
 0x47b   : > { %v4495_v8 = vadd.s32 3, %v4491_v24  ;;  %v4681_v17 = vsel %vm6747_vm2, 0, %v6746_v45  ;;  %v4773_v51 = vsel %vm4771_vm8, %v4772_v4, %v11377_v36  ;;  %7225 = vcosq.f32 %v4594_v23 }
 0x47c   : > { %v4686_v41 = vsub.s32 4294967266, %v4681_v17  ;;  %v4703_v20 = vadd.s32 3, %v4699_v22  ;;  %v4774_v12 = vadd.s32 %v4773_v51, %v4769_v10  ;;  %v11407_v16 = vsel %vm11357_vm11, %v10607_v27, %v4487_v52 }
 0x47d   : > { %v4930_v60 = vor.u32 8388608, %v4929_v42  ;;  %vm4933_vm4 = vcmp.gt.s32.totalorder %v4932_v30, 0  ;;  %v4825_v7 = vand.u32 8388607, %v12923_v35  ;;  %v4822_v2 = vshrl.u32 %v4821_v62, 23 }
 0x47e   : > { %v4687_v3 = vadd.s32 127, %v4686_v41  ;;  %v4775_v0 = vadd.s32 536870912, %v4774_v12  ;;  %v4934_v5 = vsel %vm4933_vm4, %v4932_v30, 0  ;;  %7227 = vsinq.f32 %v4594_v23 }
 0x47f   : > { %v11411_v56 = vand.u32 3, %v4495_v8  ;;  %v4666_v21 = vadd.s32 %v11309_v15, %v11314_v49  ;;  %v4936_v57 = vand.u32 31, %v4934_v5  ;;  %7229 = vcosq.f32 %v11407_v16 }
 0x480   : > { %v4682_v63 = vsub.s32 32, %v4681_v17  ;;  %v11416_v19 = vand.u32 3, %v4703_v20  ;;  %v11418_v36 = vshrl.u32 %v4775_v0, 30  ;;  %v11420_v61 = vpop.eup %7221  ;;  %v11423_v55 = vadd.s32 %v11376_v34, %v11380_v29 }
 0x481   : > { %13256 = vst [vmem:[#allocation149_spill] sm:$0xff] %v11420_v61  ;;  %v4937_v24 = vsub.s32 32, %v4936_v57  ;;  %v11425_v23 = vshll.u32 %v4930_v60, 8  ;;  %v4688_v22 = vshll.u32 %v4687_v3, 23  ;;  %v6752_v49 = vadd.s32 4294967169, %v4822_v2 }
 0x482   : > { %v4777_v15 = vshll.u32 %v11418_v36, 30  ;;  %v4826_v28 = vor.u32 8388608, %v4825_v7  ;;  %v4939_v18 = vshll.u32 %v12968_v38, %v4936_v57  ;;  %v4684_v34 = vshrl.u32 %v4666_v21, %v4682_v63 }
 0x483   : > { %v4940_v42 = vshrl.u32 %v12973_v44, %v4937_v24  ;;  %v4943_v52 = vshrl.u32 %v12975_v26, %v4937_v24  ;;  %v4946_v10 = vshrl.u32 %v12974_v11, %v4937_v24  ;;  %v4942_v4 = vshll.u32 %v12973_v44, %v4936_v57 }
 0x484   : > { %v11433_v29 = vsub.s32 %v4774_v12, %v4777_v15  ;;  %v4945_v30 = vshll.u32 %v12975_v26, %v4936_v57  ;;  %v11437_v62 = vpop.eup %7223  ;;  %v4683_v8 = vshll.u32 %v11370_v54, %v4681_v17  ;;  %v4935_v51 = vshrl.u32 %v4934_v5, 5 }
 0x485   : > { %13257 = vst [vmem:[#allocation150_spill] sm:$0xff] %v11437_v62  ;;  %v4941_v41 = vor.u32 %v4940_v42, %v4939_v18  ;;  %v4948_v20 = vshll.u32 %v12974_v11, %v4936_v57  ;;  %v11441_v60 = vpop.eup %7225  ;;  %v4944_v3 = vor.u32 %v4943_v52, %v4942_v4  ;;  %v4949_v12 = vshrl.u32 %v12986_v32, %v4937_v24 }
 0x486   : > { %13258 = vst [vmem:[#allocation151_spill] sm:$0xff] %v11441_v60  ;;  %v4780_v7 = vsub.s32 0, %v11433_v29  ;;  %v4947_v0 = vor.u32 %v4946_v10, %v4945_v30  ;;  %v4689_v2 = vor.u32 4788187, %v4688_v22  ;;  %v4951_v21 = vshll.u32 %v12986_v32, %v4936_v57 }
 0x487   : > { %v4952_v63 = vshrl.u32 %v12964_v47, %v4937_v24  ;;  %v11447_v15 = vshll.u32 %v4826_v28, 8  ;;  %v4685_v54 = vor.u32 %v4684_v34, %v4683_v8  ;;  %vm4716_vm5 = vcmp.lt.s32.totalorder %v10788_v58, 0 }
 0x488   : > { %v6749_v17 = vmin.u32 %v4780_v7, %v11433_v29  ;;  %v4950_v5 = vor.u32 %v4949_v12, %v4948_v20  ;;  %v4828_v18 = vadd.s32 1, %v6752_v49  ;;  %v11451_v42 = vpop.eup %7227  ;;  %vm4954_vm13 = vcmp.lt.s32.totalorder %v4935_v51, 1 }
 0x489   : > { %13259 = vst [vmem:[#allocation152_spill] sm:$0xff] %v11451_v42  ;;  %v4953_v52 = vor.u32 %v4952_v63, %v4951_v21  ;;  %vm4957_vm7 = vcmp.lt.s32.totalorder %v4935_v51, 4  ;;  %v5029_v22 = vand.u32 2139095040, %v10998_v33  ;;  %v11454_v10 = vpop.eup %7229  ;;  %v4800_v28 = vsub.s32 4, %v11418_v36 }
 0x48a   : > { %v4782_v57 = vclz %v6749_v17  ;;  %v4959_v34 = vsel %vm4957_vm7, %v4947_v0, 2102212464  ;;  %v4962_v4 = vsel %vm4954_vm13, %v4941_v41, %v4944_v3  ;;  %v4690_v30 = vand.u32 2147483647, %v4689_v2 }
 0x48b   : > { %v4938_v8 = vshrl.u32 %v12968_v38, %v4937_v24  ;;  %vm4956_vm1 = vcmp.lt.s32.totalorder %v4935_v51, 3  ;;  %v4963_v49 = vsel %vm4957_vm7, %v4950_v5, 920167782  ;;  %vm4955_vm14 = vcmp.lt.s32.totalorder %v4935_v51, 2 }
 0x48c   : > { %v6750_v20 = vadd.s32 4294967294, %v4782_v57  ;;  %v4964_v7 = vsel %vm4956_vm1, %v4947_v0, %v4963_v49  ;;  %v4966_v12 = vsel %vm4954_vm13, %v4944_v3, %v4947_v0  ;;  %v4960_v63 = vsel %vm4956_vm1, %v4944_v3, %v4959_v34 }
 0x48d   : > { %v4958_v21 = vsel %vm4954_vm13, %v4938_v8, %v4941_v41  ;;  %v4965_v17 = vsel %vm4955_vm14, %v4962_v4, %v4964_v7  ;;  %v4967_v35 = vsel %vm4957_vm7, %v4953_v52, 1326507024  ;;  %v4692_v60 = vcvt.s32.f32 %v4685_v54 }
 0x48e   : > { %vm6751_vm15 = vcmp.lt.s32.totalorder %v6750_v20, 0  ;;  %v4968_v45 = vsel %vm4956_vm1, %v4950_v5, %v4967_v35  ;;  %v11466_v2 = vmul.u32.u64.low %v11425_v23, %v4965_v17  ;;  %v11467_v24 = vmul.u32.u64.high %v11425_v23, %v4965_v17, %v11466_v2 }
 0x48f   : > { %v4785_v57 = vsel %vm6751_vm15, 0, %v6750_v20  ;;  %v4969_v49 = vsel %vm4955_vm14, %v4966_v12, %v4968_v45  ;;  %vm4829_vm11 = vcmp.gt.s32.totalorder %v4828_v18, 0  ;;  %v4961_v41 = vsel %vm4955_vm14, %v4958_v21, %v4960_v63 }
 0x490   : > { %v4786_v0 = vsub.s32 32, %v4785_v57  ;;  %v4790_v42 = vsub.s32 4294967266, %v4785_v57  ;;  %v4830_v3 = vsel %vm4829_vm11, %v4828_v18, 0  ;;  %v13260_v34 = vand.u32 2147483647, %v10788_v58 }
 0x491   : > { %v11481_v35 = vsel %vm4716_vm5, %v4800_v28, %v11418_v36  ;;  %v11484_v54 = vmul.u32.u64.low %v11425_v23, %v4969_v49  ;;  %v11485_v45 = vmul.u32.u64.high %v11425_v23, %v4969_v49, %v11484_v54  ;;  %v4832_v5 = vand.u32 31, %v4830_v3 }
 0x492   : > { %vm11474_vm9 = vcmp.le.f32.partialorder %v13260_v34, 0.7853982  ;;  %v4693_v4 = vmul.f32 %v4692_v60, %v4690_v30  ;;  %v4788_v51 = vshrl.u32 %v11423_v55, %v4786_v0  ;;  %v4791_v18 = vadd.s32 127, %v4790_v42 }
 0x493   : > { %v4980_v8 = vadd.s32 1, %v11467_v24  ;;  %v4787_v20 = vshll.u32 %v11433_v29, %v4785_v57  ;;  %v4977_v7 = vmul.u32 %v11425_v23, %v4961_v41  ;;  %v4833_v12 = vsub.s32 32, %v4832_v5 }
 0x494   : > { %v5030_v21 = vshrl.u32 %v5029_v22, 23  ;;  %v4792_v63 = vshll.u32 %v4791_v18, 23  ;;  %v11491_v36 = vshrl.u32 %v4830_v3, 5  ;;  %v4835_v28 = vshll.u32 %v12968_v38, %v4832_v5 }
 0x495   : > { %v4838_v17 = vshll.u32 %v12973_v44, %v4832_v5  ;;  %v4789_v49 = vor.u32 %v4788_v51, %v4787_v20  ;;  %vm4979_vm12 = vc.u32 %v11485_v45, %v11466_v2  ;;  %v4836_v55 = vshrl.u32 %v12973_v44, %v4833_v12 }
 0x496   : > { %v4841_v60 = vshll.u32 %v12975_v26, %v4832_v5  ;;  %v4793_v29 = vor.u32 4788187, %v4792_v63  ;;  %v4981_v23 = vsel %vm4979_vm12, %v4980_v8, %v11467_v24  ;;  %v4839_v42 = vshrl.u32 %v12975_v26, %v4833_v12 }
 0x497   : > { %v4844_v22 = vshll.u32 %v12974_v11, %v4832_v5  ;;  %v4982_v30 = vadd.s32 %v4981_v23, %v4977_v7  ;;  %v4842_v57 = vshrl.u32 %v12974_v11, %v4833_v12  ;;  %v4845_v0 = vshrl.u32 %v12986_v32, %v4833_v12 }
 0x498   : > { %v4847_v41 = vshll.u32 %v12986_v32, %v4832_v5  ;;  %v4794_v3 = vand.u32 2147483647, %v4793_v29  ;;  %v4837_v34 = vor.u32 %v4836_v55, %v4835_v28  ;;  %v4840_v54 = vor.u32 %v4839_v42, %v4838_v17 }
 0x499   : > { %v4848_v51 = vshrl.u32 %v12964_v47, %v4833_v12  ;;  %v4796_v18 = vcvt.s32.f32 %v4789_v49  ;;  %v4983_v20 = vadd.s32 536870912, %v4982_v30  ;;  %v4843_v63 = vor.u32 %v4842_v57, %v4841_v60 }
 0x49a   : > { %v4846_v24 = vor.u32 %v4845_v0, %v4844_v22  ;;  %v4694_v8 = vxor.u32 2147483648, %v4693_v4  ;;  %v4803_v7 = vsel %vm11474_vm9, 0, %v11481_v35  ;;  %v6760_v25 = vadd.s32 4294967169, %v5030_v21 }
 0x49b   : > { %v4849_v23 = vor.u32 %v4848_v51, %v4847_v41  ;;  %v4797_v61 = vmul.f32 %v4796_v18, %v4794_v3  ;;  %vm4924_vm10 = vcmp.lt.s32.totalorder %v10857_v43, 0  ;;  %v4984_v5 = vshrl.u32 %v4983_v20, 30 }
 0x49c   : > { %vm4850_vm3 = vcmp.lt.s32.totalorder %v11491_v36, 1  ;;  %vm4853_vm2 = vcmp.lt.s32.totalorder %v11491_v36, 4  ;;  %v4834_v28 = vshrl.u32 %v12968_v38, %v4833_v12  ;;  %vm4852_vm8 = vcmp.lt.s32.totalorder %v11491_v36, 3 }
 0x49d   : > { %v4858_v17 = vsel %vm4850_vm3, %v4837_v34, %v4840_v54  ;;  %v4859_v49 = vsel %vm4853_vm2, %v4846_v24, 920167782  ;;  %v4985_v55 = vshll.u32 %v4984_v5, 30  ;;  %v4855_v60 = vsel %vm4853_vm2, %v4843_v63, 2102212464 }
 0x49e   : > { %v4860_v35 = vsel %vm4852_vm8, %v4843_v63, %v4859_v49  ;;  %v4862_v21 = vsel %vm4850_vm3, %v4840_v54, %v4843_v63  ;;  %v4695_v29 = vsel %vm4612_vm0, %v4694_v8, %v4693_v4  ;;  %v13263_v42 = vand.u32 2147483647, %v10857_v43 }
 0x49f   : > { %vm4851_vm13 = vcmp.lt.s32.totalorder %v11491_v36, 2  ;;  %v4854_v12 = vsel %vm4850_vm3, %v4834_v28, %v4837_v34  ;;  %v4863_v57 = vsel %vm4853_vm2, %v4849_v23, 1326507024  ;;  %v4798_v0 = vxor.u32 2147483648, %v4797_v61 }
 0x4a0   : > { %vm11520_vm4 = vcmp.le.f32.partialorder %v13263_v42, 0.7853982  ;;  %v11525_v41 = vsub.s32 %v4982_v30, %v4985_v55  ;;  %v4861_v3 = vsel %vm4851_vm13, %v4858_v17, %v4860_v35  ;;  %v4864_v51 = vsel %vm4852_vm8, %v4846_v24, %v4863_v57 }
 0x4a1   : > { %v5008_v4 = vsub.s32 4, %v4984_v5  ;;  %v4856_v18 = vsel %vm4852_vm8, %v4840_v54, %v4855_v60  ;;  %v4865_v20 = vsel %vm4851_vm13, %v4862_v21, %v4864_v51  ;;  %v13266_v63 = vand.u32 2147483647, %v10998_v33 }
 0x4a2   : > { %v11540_v30 = vsel %vm11364_vm6, %v10682_v40, %v4695_v29  ;;  %v4807_v8 = vadd.s32 3, %v4803_v7  ;;  %v4988_v23 = vsub.s32 0, %v11525_v41  ;;  %v5036_v28 = vadd.s32 1, %v6760_v25 }
 0x4a3   : > { %v5033_v34 = vand.u32 8388607, %v13266_v63  ;;  %v11544_v24 = vmul.u32.u64.low %v11447_v15, %v4865_v20  ;;  %v11545_v17 = vmul.u32.u64.high %v11447_v15, %v4865_v20, %v11544_v24  ;;  %7231 = vsinq.f32 %v11407_v16 }
 0x4a4   : > { %v11548_v54 = vmul.u32.u64.low %v11447_v15, %v4861_v3  ;;  %v11549_v49 = vmul.u32.u64.high %v11447_v15, %v4861_v3, %v11548_v54  ;;  %v6757_v55 = vmin.u32 %v4988_v23, %v11525_v41  ;;  %v4857_v37 = vsel %vm4851_vm13, %v4854_v12, %v4856_v18 }
 0x4a5   : > { %vm5037_vm0 = vcmp.gt.s32.totalorder %v5036_v28, 0  ;;  %v4799_v25 = vsel %vm4716_vm5, %v4798_v0, %v4797_v61  ;;  %v11560_v7 = vsel %vm4924_vm10, %v5008_v4, %v4984_v5  ;;  %v5034_v60 = vor.u32 8388608, %v5033_v34 }
 0x4a6   : > { %v5038_v35 = vsel %vm5037_vm0, %v5036_v28, 0  ;;  %7233 = vcosq.f32 %v11540_v30  ;;  %v11563_v21 = vand.u32 3, %v4807_v8  ;;  %v4990_v16 = vclz %v6757_v55 }
 0x4a7   : > { %v5040_v29 = vand.u32 31, %v5038_v35  ;;  %v4978_v36 = vadd.s32 %v11466_v2, %v11485_v45  ;;  %v4873_v42 = vmul.u32 %v11447_v15, %v4857_v37  ;;  %vm4875_vm6 = vc.u32 %v11545_v17, %v11548_v54 }
 0x4a8   : > { %13267 = vst [vmem:[#allocation153_spill] sm:$0xff] %v11563_v21  ;;  %v4876_v61 = vadd.s32 1, %v11549_v49  ;;  %v11574_v5 = vsel %vm11474_vm9, %v10788_v58, %v4799_v25  ;;  %v6758_v12 = vadd.s32 4294967294, %v4990_v16  ;;  %v11580_v45 = vshrl.u32 %v5038_v35, 5 }
 0x4a9   : > { %v5041_v0 = vsub.s32 32, %v5040_v29  ;;  %v11582_v15 = vshll.u32 %v5034_v60, 8  ;;  %v5133_v3 = vand.u32 2139095040, %v11099_v6  ;;  %v5043_v52 = vshll.u32 %v12968_v38, %v5040_v29 }
 0x4aa   : > { %v4877_v2 = vsel %vm4875_vm6, %v4876_v61, %v11549_v49  ;;  %vm6759_vm5 = vcmp.lt.s32.totalorder %v6758_v12, 0  ;;  %vm4820_vm7 = vcmp.lt.s32.totalorder %v10937_v39, 0  ;;  %v5046_v24 = vshll.u32 %v12973_v44, %v5040_v29 }
 0x4ab   : > { %v4878_v51 = vadd.s32 %v4877_v2, %v4873_v42  ;;  %v5044_v4 = vshrl.u32 %v12973_v44, %v5041_v0  ;;  %v4993_v18 = vsel %vm6759_vm5, 0, %v6758_v12  ;;  %v5047_v20 = vshrl.u32 %v12975_v26, %v5041_v0 }
 0x4ac   : > { %v5050_v63 = vshrl.u32 %v12974_v11, %v5041_v0  ;;  %v5053_v34 = vshrl.u32 %v12986_v32, %v5041_v0  ;;  %v4994_v8 = vsub.s32 32, %v4993_v18  ;;  %v4998_v23 = vsub.s32 4294967266, %v4993_v18 }
 0x4ad   : > { %v4879_v28 = vadd.s32 536870912, %v4878_v51  ;;  %v4995_v49 = vshll.u32 %v11525_v41, %v4993_v18  ;;  %v5049_v55 = vshll.u32 %v12975_v26, %v5040_v29  ;;  %v5052_v37 = vshll.u32 %v12974_v11, %v5040_v29  ;;  %v11596_v60 = vpop.eup %7231 }
 0x4ae   : > { %v5055_v25 = vshll.u32 %v12986_v32, %v5040_v29  ;;  %v4996_v35 = vshrl.u32 %v4978_v36, %v4994_v8  ;;  %v4999_v16 = vadd.s32 127, %v4998_v23  ;;  %v5056_v61 = vshrl.u32 %v12964_v47, %v5041_v0 }
 0x4af   : > { %v4880_v42 = vshrl.u32 %v4879_v28, 30  ;;  %v13268_v12 = vand.u32 2147483647, %v10937_v39  ;;  %v5045_v41 = vor.u32 %v5044_v4, %v5043_v52  ;;  %v5048_v18 = vor.u32 %v5047_v20, %v5046_v24 }
 0x4b0   : > { %v5051_v57 = vor.u32 %v5050_v63, %v5049_v55  ;;  %v5054_v21 = vor.u32 %v5053_v34, %v5052_v37  ;;  %v11605_v58 = vpop.eup %7233  ;;  %v4997_v29 = vor.u32 %v4996_v35, %v4995_v49  ;;  %v5000_v14 = vshll.u32 %v4999_v16, 23 }
 0x4b1   : > { %vm11601_vm1 = vcmp.le.f32.partialorder %v13268_v12, 0.7853982  ;;  %v4881_v62 = vshll.u32 %v4880_v42, 30  ;;  %v4904_v36 = vsub.s32 4, %v4880_v42  ;;  %v5042_v8 = vshrl.u32 %v12968_v38, %v5041_v0 }
 0x4b2   : > { %v5057_v23 = vor.u32 %v5056_v61, %v5055_v25  ;;  %vm5058_vm14 = vcmp.lt.s32.totalorder %v11580_v45, 1  ;;  %vm5059_vm15 = vcmp.lt.s32.totalorder %v11580_v45, 2  ;;  %v5001_v28 = vor.u32 4788187, %v5000_v14 }
 0x4b3   : > { %v11610_v12 = vsub.s32 %v4878_v51, %v4881_v62  ;;  %vm5060_vm11 = vcmp.lt.s32.totalorder %v11580_v45, 3  ;;  %vm5061_vm9 = vcmp.lt.s32.totalorder %v11580_v45, 4  ;;  %v5062_v52 = vsel %vm5058_vm14, %v5042_v8, %v5045_v41 }
 0x4b4   : > { %v5063_v4 = vsel %vm5061_vm9, %v5051_v57, 2102212464  ;;  %v5066_v20 = vsel %vm5058_vm14, %v5045_v41, %v5048_v18  ;;  %v5067_v63 = vsel %vm5061_vm9, %v5054_v21, 920167782  ;;  %v5002_v34 = vand.u32 2147483647, %v5001_v28 }
 0x4b5   : > { %v5004_v24 = vcvt.s32.f32 %v4997_v29  ;;  %v4884_v0 = vsub.s32 0, %v11610_v12  ;;  %v4905_v49 = vsel %vm4820_vm7, %v4904_v36, %v4880_v42  ;;  %v5068_v14 = vsel %vm5060_vm11, %v5051_v57, %v5067_v63 }
 0x4b6   : > { %v5070_v62 = vsel %vm5058_vm14, %v5048_v18, %v5051_v57  ;;  %v5071_v51 = vsel %vm5061_vm9, %v5057_v23, 1326507024  ;;  %v5134_v55 = vshrl.u32 %v5133_v3, 23  ;;  %v5064_v35 = vsel %vm5060_vm11, %v5048_v18, %v5063_v4 }
 0x4b7   : > { %v5005_v37 = vmul.f32 %v5004_v24, %v5002_v34  ;;  %v6753_v25 = vmin.u32 %v4884_v0, %v11610_v12  ;;  %v5069_v16 = vsel %vm5059_vm15, %v5066_v20, %v5068_v14  ;;  %v5072_v61 = vsel %vm5060_vm11, %v5054_v21, %v5071_v51 }
 0x4b8   : > { %v11627_v42 = vmul.u32.u64.low %v11582_v15, %v5069_v16  ;;  %v11628_v41 = vmul.u32.u64.high %v11582_v15, %v5069_v16, %v11627_v42  ;;  %v6764_v57 = vadd.s32 4294967169, %v5134_v55  ;;  %v4907_v3 = vsel %vm11601_vm1, 0, %v4905_v49 }
 0x4b9   : > { %v4886_v29 = vclz %v6753_v25  ;;  %v5073_v36 = vsel %vm5059_vm15, %v5070_v62, %v5072_v61  ;;  %v12934_v18 = vand.u32 2147483647, %v11099_v6  ;;  %7235 = vsinq.f32 %v11540_v30 }
 0x4ba   : > { %v11638_v8 = vmul.u32.u64.low %v11582_v15, %v5073_v36  ;;  %v11639_v21 = vmul.u32.u64.high %v11582_v15, %v5073_v36, %v11638_v8  ;;  %v5140_v23 = vadd.s32 1, %v6764_v57  ;;  %7237 = vcosq.f32 %v11574_v5 }
 0x4bb   : > { %v5006_v28 = vxor.u32 2147483648, %v5005_v37  ;;  %v6754_v4 = vadd.s32 4294967294, %v4886_v29  ;;  %v5065_v20 = vsel %vm5059_vm15, %v5062_v52, %v5064_v35  ;;  %v13271_v63 = vsel %vm11520_vm4, 0, %v11560_v7 }
 0x4bc   : > { %v5015_v34 = vadd.s32 3, %v13271_v63  ;;  %v4911_v24 = vadd.s32 3, %v4907_v3  ;;  %v5084_v30 = vadd.s32 1, %v11628_v41  ;;  %vm5141_vm12 = vcmp.gt.s32.totalorder %v5140_v23, 0 }
 0x4bd   : > { %7239 = vsinq.f32 %v11574_v5  ;;  %vm6755_vm3 = vcmp.lt.s32.totalorder %v6754_v4, 0  ;;  %v5137_v0 = vand.u32 8388607, %v12934_v18  ;;  %v5142_v49 = vsel %vm5141_vm12, %v5140_v23, 0 }
 0x4be   : > { %v4874_v45 = vadd.s32 %v11548_v54, %v11545_v17  ;;  %v4889_v52 = vsel %vm6755_vm3, 0, %v6754_v4  ;;  %v5081_v14 = vmul.u32 %v11582_v15, %v5065_v20  ;;  %vm5083_vm2 = vc.u32 %v11639_v21, %v11627_v42 }
 0x4bf   : > { %v5007_v7 = vsel %vm4924_vm10, %v5006_v28, %v5005_v37  ;;  %v4890_v62 = vsub.s32 32, %v4889_v52  ;;  %v4894_v51 = vsub.s32 4294967266, %v4889_v52  ;;  %v5085_v5 = vsel %vm5083_vm2, %v5084_v30, %v11628_v41 }
 0x4c0   : > { %v11660_v55 = vand.u32 3, %v5015_v34  ;;  %v11662_v25 = vand.u32 3, %v4911_v24  ;;  %v5086_v35 = vadd.s32 %v5085_v5, %v5081_v14  ;;  %v5144_v16 = vand.u32 31, %v5142_v49 }
 0x4c1   : > { %v4891_v17 = vshll.u32 %v11610_v12, %v4889_v52  ;;  %v4892_v54 = vshrl.u32 %v4874_v45, %v4890_v62  ;;  %v4895_v15 = vadd.s32 127, %v4894_v51  ;;  %v5138_v61 = vor.u32 8388608, %v5137_v0 }
 0x4c2   : > { %13272 = vst [vmem:[#allocation154_spill] sm:$0xff] %v11660_v55  ;;  %v11668_v57 = vsel %vm11520_vm4, %v10857_v43, %v5007_v7  ;;  %vm5028_vm10 = vcmp.lt.s32.totalorder %v10998_v33, 0  ;;  %v5087_v37 = vadd.s32 536870912, %v5086_v35  ;;  %v5145_v41 = vsub.s32 32, %v5144_v16 }
 0x4c3   : > { %v4893_v3 = vor.u32 %v4892_v54, %v4891_v17  ;;  %v4896_v36 = vshll.u32 %v4895_v15, 23  ;;  %v5143_v8 = vshrl.u32 %v5142_v49, 5  ;;  %v5147_v23 = vshll.u32 %v12968_v38, %v5144_v16  ;;  %v11673_v12 = vpop.eup %7235 }
 0x4c4   : > { %v5088_v28 = vshrl.u32 %v5087_v37, 30  ;;  %v5148_v4 = vshrl.u32 %v12973_v44, %v5145_v41  ;;  %v5150_v22 = vshll.u32 %v12973_v44, %v5144_v16  ;;  %v5151_v20 = vshrl.u32 %v12975_v26, %v5145_v41  ;;  %v11678_v63 = vpop.eup %7237 }
 0x4c5   : > { %13273 = vst [vmem:[#allocation155_spill] sm:$0xff] %v11678_v63  ;;  %v4897_v34 = vor.u32 4788187, %v4896_v36  ;;  %v5153_v24 = vshll.u32 %v12975_v26, %v5144_v16  ;;  %v5154_v30 = vshrl.u32 %v12974_v11, %v5145_v41  ;;  %v5157_v0 = vshrl.u32 %v12986_v32, %v5145_v41 }
 0x4c6   : > { %v4900_v49 = vcvt.s32.f32 %v4893_v3  ;;  %v13274_v45 = vand.u32 2147483647, %v10998_v33  ;;  %v5089_v14 = vshll.u32 %v5088_v28, 30  ;;  %v5112_v7 = vsub.s32 4, %v5088_v28 }
 0x4c7   : > { %v5156_v62 = vshll.u32 %v12974_v11, %v5144_v16  ;;  %v11690_v51 = vpop.eup %7239  ;;  %v4898_v5 = vand.u32 2147483647, %v4897_v34  ;;  %v5149_v17 = vor.u32 %v5148_v4, %v5147_v23  ;;  %v5152_v54 = vor.u32 %v5151_v20, %v5150_v22 }
 0x4c8   : > { %vm11685_vm8 = vcmp.le.f32.partialorder %v13274_v45, 0.7853982  ;;  %v5155_v15 = vor.u32 %v5154_v30, %v5153_v24  ;;  %v11692_v37 = vsub.s32 %v5086_v35, %v5089_v14  ;;  %v5159_v3 = vshll.u32 %v12986_v32, %v5144_v16 }
 0x4c9   : > { %v5158_v36 = vor.u32 %v5157_v0, %v5156_v62  ;;  %v5160_v45 = vshrl.u32 %v12964_v47, %v5145_v41  ;;  %7241 = vcosq.f32 %v11668_v57  ;;  %v4901_v18 = vmul.f32 %v4900_v49, %v4898_v5 }
 0x4ca   : > { %v5178_v29 = vshll.u32 %v5138_v61, 8  ;;  %v5341_v43 = vand.u32 2139095040, %v11184_v48  ;;  %v5092_v55 = vsub.s32 0, %v11692_v37  ;;  %vm5162_vm4 = vcmp.lt.s32.totalorder %v5143_v8, 1 }
 0x4cb   : > { %v5161_v63 = vor.u32 %v5160_v45, %v5159_v3  ;;  %vm5165_vm13 = vcmp.lt.s32.totalorder %v5143_v8, 4  ;;  %v5113_v35 = vsel %vm5028_vm10, %v5112_v7, %v5088_v28  ;;  %v5146_v23 = vshrl.u32 %v12968_v38, %v5145_v41 }
 0x4cc   : > { %v5167_v16 = vsel %vm5165_vm13, %v5155_v15, 2102212464  ;;  %v5170_v4 = vsel %vm5162_vm4, %v5149_v17, %v5152_v54  ;;  %v4902_v22 = vxor.u32 2147483648, %v4901_v18  ;;  %v6761_v20 = vmin.u32 %v5092_v55, %v11692_v37 }
 0x4cd   : > { %vm5164_vm0 = vcmp.lt.s32.totalorder %v5143_v8, 3  ;;  %v5171_v61 = vsel %vm5165_vm13, %v5158_v36, 920167782  ;;  %vm5163_vm6 = vcmp.lt.s32.totalorder %v5143_v8, 2  ;;  %v5166_v34 = vsel %vm5162_vm4, %v5146_v23, %v5149_v17 }
 0x4ce   : > { %v5172_v24 = vsel %vm5164_vm0, %v5155_v15, %v5171_v61  ;;  %v5174_v30 = vsel %vm5162_vm4, %v5152_v54, %v5155_v15  ;;  %v5094_v0 = vclz %v6761_v20  ;;  %v5168_v49 = vsel %vm5164_vm0, %v5152_v54, %v5167_v16 }
 0x4cf   : > { %v5173_v14 = vsel %vm5163_vm6, %v5170_v4, %v5172_v24  ;;  %v5175_v28 = vsel %vm5165_vm13, %v5161_v63, 1326507024  ;;  %v5115_v41 = vsel %vm11685_vm8, 0, %v5113_v35  ;;  %v4903_v55 = vsel %vm4820_vm7, %v4902_v22, %v4901_v18 }
 0x4d0   : > { %v5176_v7 = vsel %vm5164_vm0, %v5158_v36, %v5175_v28  ;;  %v11708_v62 = vmul.u32.u64.low %v5178_v29, %v5173_v14  ;;  %v11709_v5 = vmul.u32.u64.high %v5178_v29, %v5173_v14, %v11708_v62  ;;  %v6762_v3 = vadd.s32 4294967294, %v5094_v0 }
 0x4d1   : > { %v5177_v17 = vsel %vm5163_vm6, %v5174_v30, %v5176_v7  ;;  %v13277_v15 = vand.u32 2147483647, %v11184_v48  ;;  %v5169_v54 = vsel %vm5163_vm6, %v5166_v34, %v5168_v49  ;;  %v5342_v63 = vshrl.u32 %v5341_v43, 23 }
 0x4d2   : > { %v11716_v23 = vmul.u32.u64.low %v5178_v29, %v5177_v17  ;;  %v11717_v8 = vmul.u32.u64.high %v5178_v29, %v5177_v17, %v11716_v23  ;;  %v5082_v36 = vadd.s32 %v11627_v42, %v11639_v21  ;;  %vm6763_vm5 = vcmp.lt.s32.totalorder %v6762_v3, 0 }
 0x4d3   : > { %v5345_v45 = vand.u32 8388607, %v13277_v15  ;;  %v5119_v35 = vadd.s32 3, %v5115_v41  ;;  %v12938_v16 = vand.u32 2147483647, %v11277_v9  ;;  %v11722_v4 = vpop.eup %7241  ;;  %v4906_v18 = vsel %vm11601_vm1, %v10937_v39, %v4903_v55 }
 0x4d4   : > { %13278 = vst [vmem:[#allocation156_spill] sm:$0xff] %v11722_v4  ;;  %v5097_v22 = vsel %vm6763_vm5, 0, %v6762_v3  ;;  %v5188_v20 = vadd.s32 1, %v11709_v5  ;;  %v6772_v61 = vadd.s32 4294967169, %v5342_v63  ;;  %v5185_v43 = vmul.u32 %v5178_v29, %v5169_v54 }
 0x4d5   : > { %v5098_v34 = vsub.s32 32, %v5097_v22  ;;  %v5102_v24 = vsub.s32 4294967266, %v5097_v22  ;;  %v5346_v30 = vor.u32 8388608, %v5345_v45  ;;  %v5099_v42 = vshll.u32 %v11692_v37, %v5097_v22 }
 0x4d6   : > { %vm5187_vm7 = vc.u32 %v11717_v8, %v11708_v62  ;;  %v5348_v21 = vadd.s32 1, %v6772_v61  ;;  %v5237_v0 = vand.u32 2139095040, %v11277_v9  ;;  %vm5132_vm1 = vcmp.lt.s32.totalorder %v11099_v6, 0 }
 0x4d7   : > { %v5100_v49 = vshrl.u32 %v5082_v36, %v5098_v34  ;;  %v5103_v14 = vadd.s32 127, %v5102_v24  ;;  %v5189_v2 = vsel %vm5187_vm7, %v5188_v20, %v11709_v5  ;;  %v5241_v28 = vand.u32 8388607, %v12938_v16 }
 0x4d8   : > { %7243 = vsinq.f32 %v11668_v57  ;;  %v11737_v29 = vand.u32 3, %v5119_v35  ;;  %v13279_v37 = vand.u32 2147483647, %v11099_v6  ;;  %v5190_v7 = vadd.s32 %v5189_v2, %v5185_v43 }
 0x4d9   : > { %vm5349_vm15 = vcmp.gt.s32.totalorder %v5348_v21, 0  ;;  %7245 = vcosq.f32 %v4906_v18  ;;  %v5101_v55 = vor.u32 %v5100_v49, %v5099_v42  ;;  %v5104_v3 = vshll.u32 %v5103_v14, 23 }
 0x4da   : > { %vm11741_vm14 = vcmp.le.f32.partialorder %v13279_v37, 0.7853982  ;;  %v5350_v17 = vsel %vm5349_vm15, %v5348_v21, 0  ;;  %7247 = vsinq.f32 %v4906_v18  ;;  %v5191_v5 = vadd.s32 536870912, %v5190_v7 }
 0x4db   : > { %v5352_v15 = vand.u32 31, %v5350_v17  ;;  %v11745_v45 = vshll.u32 %v5346_v30, 8  ;;  %v5105_v57 = vor.u32 4788187, %v5104_v3  ;;  %v11747_v54 = vshrl.u32 %v5350_v17, 5 }
 0x4dc   : > { %v5238_v23 = vshrl.u32 %v5237_v0, 23  ;;  %v5242_v63 = vor.u32 8388608, %v5241_v28  ;;  %v5108_v36 = vcvt.s32.f32 %v5101_v55  ;;  %v5192_v35 = vshrl.u32 %v5191_v5, 30 }
 0x4dd   : > { %v5353_v22 = vsub.s32 32, %v5352_v15  ;;  %v5355_v20 = vshll.u32 %v12968_v38, %v5352_v15  ;;  %v5106_v61 = vand.u32 2147483647, %v5105_v57  ;;  %v5358_v34 = vshll.u32 %v12973_v44, %v5352_v15 }
 0x4de   : > { %v5361_v24 = vshll.u32 %v12975_v26, %v5352_v15  ;;  %v5364_v18 = vshll.u32 %v12974_v11, %v5352_v15  ;;  %v5193_v43 = vshll.u32 %v5192_v35, 30  ;;  %v5216_v30 = vsub.s32 4, %v5192_v35 }
 0x4df   : > { %v5356_v42 = vshrl.u32 %v12973_v44, %v5353_v22  ;;  %v5367_v21 = vshll.u32 %v12986_v32, %v5352_v15  ;;  %v5109_v0 = vmul.f32 %v5108_v36, %v5106_v61  ;;  %v5359_v49 = vshrl.u32 %v12975_v26, %v5353_v22 }
 0x4e0   : > { %v5362_v14 = vshrl.u32 %v12974_v11, %v5353_v22  ;;  %v5365_v2 = vshrl.u32 %v12986_v32, %v5353_v22  ;;  %v11758_v28 = vsub.s32 %v5190_v7, %v5193_v43  ;;  %v5217_v37 = vsel %vm5132_vm1, %v5216_v30, %v5192_v35 }
 0x4e1   : > { %v5357_v55 = vor.u32 %v5356_v42, %v5355_v20  ;;  %v5368_v3 = vshrl.u32 %v12964_v47, %v5353_v22  ;;  %v5110_v17 = vxor.u32 2147483648, %v5109_v0  ;;  %v5219_v5 = vsel %vm11741_vm14, 0, %v5217_v37 }
 0x4e2   : > { %v5360_v15 = vor.u32 %v5359_v49, %v5358_v34  ;;  %v5363_v57 = vor.u32 %v5362_v14, %v5361_v24  ;;  %v11765_v36 = vpop.eup %7243  ;;  %v5186_v61 = vadd.s32 %v11708_v62, %v11717_v8  ;;  %v5196_v7 = vsub.s32 0, %v11758_v28 }
 0x4e3   : > { %13282 = vst [vmem:[#allocation157_spill] sm:$0xff] %v11765_v36  ;;  %v5366_v43 = vor.u32 %v5365_v2, %v5364_v18  ;;  %v11771_v35 = vpop.eup %7245  ;;  %v5354_v20 = vshrl.u32 %v12968_v38, %v5353_v22  ;;  %v5369_v30 = vor.u32 %v5368_v3, %v5367_v21  ;;  %v6768_v42 = vadd.s32 4294967169, %v5238_v23 }
 0x4e4   : > { %v11774_v4 = vshll.u32 %v5242_v63, 8  ;;  %v11776_v34 = vpop.eup %7247  ;;  %v6765_v24 = vmin.u32 %v5196_v7, %v11758_v28  ;;  %v5223_v49 = vadd.s32 3, %v5219_v5  ;;  %vm5370_vm11 = vcmp.lt.s32.totalorder %v11747_v54, 1 }
 0x4e5   : > { %vm5373_vm9 = vcmp.lt.s32.totalorder %v11747_v54, 4  ;;  %v5111_v62 = vsel %vm5028_vm10, %v5110_v17, %v5109_v0  ;;  %vm5371_vm12 = vcmp.lt.s32.totalorder %v11747_v54, 2  ;;  %v5378_v22 = vsel %vm5370_vm11, %v5357_v55, %v5360_v15 }
 0x4e6   : > { %v5375_v8 = vsel %vm5373_vm9, %v5363_v57, 2102212464  ;;  %v5198_v18 = vclz %v6765_v24  ;;  %vm5372_vm3 = vcmp.lt.s32.totalorder %v11747_v54, 3  ;;  %v5374_v23 = vsel %vm5370_vm11, %v5354_v20, %v5357_v55 }
 0x4e7   : > { %v5379_v63 = vsel %vm5373_vm9, %v5366_v43, 920167782  ;;  %v5376_v21 = vsel %vm5372_vm3, %v5360_v15, %v5375_v8  ;;  %v5382_v2 = vsel %vm5370_vm11, %v5360_v15, %v5363_v57  ;;  %v5383_v37 = vsel %vm5373_vm9, %v5369_v30, 1326507024 }
 0x4e8   : > { %v5380_v14 = vsel %vm5372_vm3, %v5363_v57, %v5379_v63  ;;  %v5114_v3 = vsel %vm11685_vm8, %v10998_v33, %v5111_v62  ;;  %v6766_v5 = vadd.s32 4294967294, %v5198_v18  ;;  %v5384_v17 = vsel %vm5372_vm3, %v5366_v43, %v5383_v37 }
 0x4e9   : > { %v5381_v0 = vsel %vm5371_vm12, %v5378_v22, %v5380_v14  ;;  %v5385_v7 = vsel %vm5371_vm12, %v5382_v2, %v5384_v17  ;;  %v5244_v20 = vadd.s32 1, %v6768_v42  ;;  %v5377_v15 = vsel %vm5371_vm12, %v5374_v23, %v5376_v21 }
 0x4ea   : > { %v11793_v24 = vmul.u32.u64.low %v11745_v45, %v5381_v0  ;;  %v11794_v55 = vmul.u32.u64.high %v11745_v45, %v5381_v0, %v11793_v24  ;;  %vm6767_vm2 = vcmp.lt.s32.totalorder %v6766_v5, 0  ;;  %7249 = vcosq.f32 %v5114_v3 }
 0x4eb   : > { %v11800_v52 = vmul.u32.u64.low %v11745_v45, %v5385_v7  ;;  %v11801_v57 = vmul.u32.u64.high %v11745_v45, %v5385_v7, %v11800_v52  ;;  %v5201_v30 = vsel %vm6767_vm2, 0, %v6766_v5  ;;  %v11803_v43 = vand.u32 3, %v5223_v49 }
 0x4ec   : > { %vm5245_vm10 = vcmp.gt.s32.totalorder %v5244_v20, 0  ;;  %7251 = vsinq.f32 %v5114_v3  ;;  %v5202_v62 = vsub.s32 32, %v5201_v30  ;;  %v5206_v8 = vsub.s32 4294967266, %v5201_v30 }
 0x4ed   : > { %13283 = vst [vmem:[#allocation158_spill] sm:$0xff] %v11803_v43  ;;  %v5246_v22 = vsel %vm5245_vm10, %v5244_v20, 0  ;;  %v5393_v18 = vmul.u32 %v11745_v45, %v5377_v15  ;;  %v5396_v42 = vadd.s32 1, %v11794_v55  ;;  %v5445_v54 = vand.u32 2139095040, %v11339_v59 }
 0x4ee   : > { %v5248_v63 = vand.u32 31, %v5246_v22  ;;  %v5203_v23 = vshll.u32 %v11758_v28, %v5201_v30  ;;  %v5204_v21 = vshrl.u32 %v5186_v61, %v5202_v62  ;;  %v5207_v14 = vadd.s32 127, %v5206_v8 }
 0x4ef   : > { %vm5395_vm8 = vc.u32 %v11801_v57, %v11793_v24  ;;  %vm5340_vm4 = vcmp.lt.s32.totalorder %v11184_v48, 0  ;;  %v5247_v2 = vshrl.u32 %v5246_v22, 5  ;;  %v13284_v0 = vand.u32 2147483647, %v11184_v48 }
 0x4f0   : > { %v5397_v49 = vsel %vm5395_vm8, %v5396_v42, %v11794_v55  ;;  %v5249_v37 = vsub.s32 32, %v5248_v63  ;;  %v5251_v45 = vshll.u32 %v12968_v38, %v5248_v63  ;;  %v5205_v3 = vor.u32 %v5204_v21, %v5203_v23 }
 0x4f1   : > { %v5208_v5 = vshll.u32 %v5207_v14, 23  ;;  %vm11816_vm13 = vcmp.le.f32.partialorder %v13284_v0, 0.7853982  ;;  %v5398_v28 = vadd.s32 %v5397_v49, %v5393_v18  ;;  %v5254_v61 = vshll.u32 %v12973_v44, %v5248_v63 }
 0x4f2   : > { %v5252_v7 = vshrl.u32 %v12973_v44, %v5249_v37  ;;  %v5255_v20 = vshrl.u32 %v12975_v26, %v5249_v37  ;;  %v5257_v55 = vshll.u32 %v12975_v26, %v5248_v63  ;;  %v5258_v15 = vshrl.u32 %v12974_v11, %v5249_v37 }
 0x4f3   : > { %v5209_v52 = vor.u32 4788187, %v5208_v5  ;;  %v5212_v30 = vcvt.s32.f32 %v5205_v3  ;;  %v5399_v62 = vadd.s32 536870912, %v5398_v28  ;;  %v5260_v8 = vshll.u32 %v12974_v11, %v5248_v63 }
 0x4f4   : > { %v5253_v22 = vor.u32 %v5252_v7, %v5251_v45  ;;  %v5256_v42 = vor.u32 %v5255_v20, %v5254_v61  ;;  %v5259_v23 = vor.u32 %v5258_v15, %v5257_v55  ;;  %v5261_v18 = vshrl.u32 %v12986_v32, %v5249_v37  ;;  %v11829_v16 = vpop.eup %7249 }
 0x4f5   : > { %v5210_v21 = vand.u32 2147483647, %v5209_v52  ;;  %v5400_v14 = vshrl.u32 %v5399_v62, 30  ;;  %v5263_v49 = vshll.u32 %v12986_v32, %v5248_v63  ;;  %v5264_v0 = vshrl.u32 %v12964_v47, %v5249_v37 }
 0x4f6   : > { %v5250_v36 = vshrl.u32 %v12968_v38, %v5249_v37  ;;  %v5262_v5 = vor.u32 %v5261_v18, %v5260_v8  ;;  %vm5266_vm0 = vcmp.lt.s32.totalorder %v5247_v2, 1  ;;  %v13287_v3 = vand.u32 2147483647, %v11339_v59  ;;  %v11834_v45 = vpop.eup %7251 }
 0x4f7   : > { %v5213_v61 = vmul.f32 %v5212_v30, %v5210_v21  ;;  %v5401_v7 = vshll.u32 %v5400_v14, 30  ;;  %v5424_v20 = vsub.s32 4, %v5400_v14  ;;  %v5265_v55 = vor.u32 %v5264_v0, %v5263_v49 }
 0x4f8   : > { %v5449_v43 = vand.u32 8388607, %v13287_v3  ;;  %vm5268_vm6 = vcmp.lt.s32.totalorder %v5247_v2, 3  ;;  %vm5269_vm5 = vcmp.lt.s32.totalorder %v5247_v2, 4  ;;  %v5270_v63 = vsel %vm5266_vm0, %v5250_v36, %v5253_v22 }
 0x4f9   : > { %v5274_v15 = vsel %vm5266_vm0, %v5253_v22, %v5256_v42  ;;  %v5214_v52 = vxor.u32 2147483648, %v5213_v61  ;;  %v11838_v62 = vsub.s32 %v5398_v28, %v5401_v7  ;;  %v5425_v37 = vsel %vm5340_vm4, %v5424_v20, %v5400_v14 }
 0x4fa   : > { %v5271_v8 = vsel %vm5269_vm5, %v5259_v23, 2102212464  ;;  %v5427_v18 = vsel %vm11816_vm13, 0, %v5425_v37  ;;  %v5275_v21 = vsel %vm5269_vm5, %v5262_v5, 920167782  ;;  %v5278_v22 = vsel %vm5266_vm0, %v5256_v42, %v5259_v23 }
 0x4fb   : > { %v5272_v30 = vsel %vm5268_vm6, %v5256_v42, %v5271_v8  ;;  %v5279_v49 = vsel %vm5269_vm5, %v5265_v55, 1326507024  ;;  %v5215_v0 = vsel %vm5132_vm1, %v5214_v52, %v5213_v61  ;;  %v5404_v36 = vsub.s32 0, %v11838_v62 }
 0x4fc   : > { %v5446_v28 = vshrl.u32 %v5445_v54, 23  ;;  %v5431_v3 = vadd.s32 3, %v5427_v18  ;;  %vm5267_vm7 = vcmp.lt.s32.totalorder %v5247_v2, 2  ;;  %v5276_v14 = vsel %vm5268_vm6, %v5259_v23, %v5275_v21 }
 0x4fd   : > { %v5280_v7 = vsel %vm5268_vm6, %v5262_v5, %v5279_v49  ;;  %v5218_v20 = vsel %vm11741_vm14, %v11099_v6, %v5215_v0  ;;  %v6773_v55 = vmin.u32 %v5404_v36, %v11838_v62  ;;  %v5273_v37 = vsel %vm5267_vm7, %v5270_v63, %v5272_v30  ;;  %v13290_v0 = vld [vmem:[#allocation25_spill] sm:$0xff]  ;;  %v13291_v36 = vld [vmem:[#allocation30_spill] sm:$0xff] }
 0x4fe   : > { %v5277_v8 = vsel %vm5267_vm7, %v5274_v15, %v5276_v14  ;;  %v5394_v61 = vadd.s32 %v11793_v24, %v11801_v57  ;;  %v5281_v52 = vsel %vm5267_vm7, %v5278_v22, %v5280_v7  ;;  %v6776_v5 = vadd.s32 4294967169, %v5446_v28  ;;  %v13289_v57 = vld [vmem:[#allocation31_spill] sm:$0xff] }
 0x4ff   : > { %v11858_v54 = vmul.u32.u64.low %v11774_v4, %v5277_v8  ;;  %v11859_v42 = vmul.u32.u64.high %v11774_v4, %v5277_v8, %v11858_v54  ;;  %v5406_v18 = vclz %v6773_v55  ;;  %7253 = vcosq.f32 %v5218_v20 }
 0x500   : > { %v11862_v2 = vmul.u32.u64.low %v11774_v4, %v5281_v52  ;;  %v11863_v23 = vmul.u32.u64.high %v11774_v4, %v5281_v52, %v11862_v2  ;;  %v11865_v41 = vand.u32 3, %v5431_v3  ;;  %v5289_v63 = vmul.u32 %v11774_v4, %v5273_v37 }
 0x501   : > { %v5450_v15 = vor.u32 8388608, %v5449_v43  ;;  %7255 = vsinq.f32 %v5218_v20  ;;  %v6774_v30 = vadd.s32 4294967294, %v5406_v18  ;;  %v5452_v24 = vadd.s32 1, %v6776_v5 }
 0x502   : > { %13288 = vst [vmem:[#allocation159_spill] sm:$0xff] %v11865_v41  ;;  %v755_v21 = vxor.u32 2147483648, %v13289_v57  ;;  %v5292_v49 = vadd.s32 1, %v11859_v42  ;;  %vm753_vm1 = vcmp.lt.s32.totalorder %v13290_v0, 2  ;;  %vm754_vm14 = vcmp.eq.s32.totalorder %v13290_v0, 0 }
 0x503   : > { %v758_v22 = vxor.u32 2147483648, %v13291_v36  ;;  %vm6775_vm15 = vcmp.lt.s32.totalorder %v6774_v30, 0  ;;  %vm5291_vm11 = vc.u32 %v11863_v23, %v11858_v54  ;;  %vm5453_vm9 = vcmp.gt.s32.totalorder %v5452_v24, 0 }
 0x504   : > { %vm757_vm12 = vcmp.eq.s32.totalorder %v13290_v0, 2  ;;  %v5409_v4 = vsel %vm6775_vm15, 0, %v6774_v30  ;;  %vm5236_vm3 = vcmp.lt.s32.totalorder %v11277_v9, 0  ;;  %v5293_v43 = vsel %vm5291_vm11, %v5292_v49, %v11859_v42 }
 0x505   : > { %v5454_v28 = vsel %vm5453_vm9, %v5452_v24, 0  ;;  %v11877_v3 = vshll.u32 %v5450_v15, 8  ;;  %v5410_v14 = vsub.s32 32, %v5409_v4  ;;  %v5414_v7 = vsub.s32 4294967266, %v5409_v4 }
 0x506   : > { %v13292_v20 = vand.u32 2147483647, %v11277_v9  ;;  %v5294_v37 = vadd.s32 %v5293_v43, %v5289_v63  ;;  %v756_v8 = vsel %vm754_vm14, %v13291_v36, %v755_v21  ;;  %v5411_v52 = vshll.u32 %v11838_v62, %v5409_v4 }
 0x507   : > { %v11888_v18 = vadd.s32 %v11858_v54, %v11863_v23  ;;  %v5456_v42 = vand.u32 31, %v5454_v28  ;;  %v759_v2 = vsel %vm757_vm12, %v758_v22, %v13289_v57  ;;  %v5412_v5 = vshrl.u32 %v5394_v61, %v5410_v14 }
 0x508   : > { %vm11881_vm2 = vcmp.le.f32.partialorder %v13292_v20, 0.7853982  ;;  %v5415_v15 = vadd.s32 127, %v5414_v7  ;;  %v5295_v30 = vadd.s32 536870912, %v5294_v37  ;;  %v11891_v24 = vshrl.u32 %v5454_v28, 5 }
 0x509   : > { %v5457_v49 = vsub.s32 32, %v5456_v42  ;;  %v5459_v20 = vshll.u32 %v12968_v38, %v5456_v42  ;;  %v5462_v63 = vshll.u32 %v12973_v44, %v5456_v42  ;;  %v760_v21 = vsel %vm753_vm1, %v756_v8, %v759_v2  ;;  %v11898_v4 = vpop.eup %7253 }
 0x50a   : > { %v5413_v62 = vor.u32 %v5412_v5, %v5411_v52  ;;  %v5416_v36 = vshll.u32 %v5415_v15, 23  ;;  %v5296_v54 = vshrl.u32 %v5295_v30, 30  ;;  %v5465_v23 = vshll.u32 %v12975_v26, %v5456_v42  ;;  %13295 = vst [vmem:[#allocation31_spill] sm:$0xff] %v11898_v4 }
 0x50b   : > { %v5460_v61 = vshrl.u32 %v12973_v44, %v5457_v49  ;;  %v5463_v57 = vshrl.u32 %v12975_v26, %v5457_v49  ;;  %v5466_v22 = vshrl.u32 %v12974_v11, %v5457_v49  ;;  %v5468_v43 = vshll.u32 %v12974_v11, %v5456_v42  ;;  %v11904_v28 = vpop.eup %7255  ;;  %v13296_v11 = vld [vmem:[#allocation7_spill] sm:$0xff] }
 0x50c   : > { %v5417_v14 = vor.u32 4788187, %v5416_v36  ;;  %v5297_v0 = vshll.u32 %v5296_v54, 30  ;;  %v5320_v7 = vsub.s32 4, %v5296_v54  ;;  %v5458_v8 = vshrl.u32 %v12968_v38, %v5457_v49 }
 0x50d   : > { %v5420_v52 = vcvt.s32.f32 %v5413_v62  ;;  %v5461_v2 = vor.u32 %v5460_v61, %v5459_v20  ;;  %v5464_v5 = vor.u32 %v5463_v57, %v5462_v63  ;;  %v5469_v15 = vshrl.u32 %v12986_v32, %v5457_v49 }
 0x50e   : > { %v5418_v30 = vand.u32 2147483647, %v5417_v14  ;;  %v11908_v44 = vsub.s32 %v5294_v37, %v5297_v0  ;;  %v5321_v26 = vsel %vm5236_vm3, %v5320_v7, %v5296_v54  ;;  %v5467_v41 = vor.u32 %v5466_v22, %v5465_v23 }
 0x50f   : > { %vm750_vm10 = vweird.f32 %v13296_v11  ;;  %v5323_v36 = vsel %vm11881_vm2, 0, %v5321_v26  ;;  %v5470_v4 = vor.u32 %v5469_v15, %v5468_v43  ;;  %v5471_v38 = vshll.u32 %v12986_v32, %v5456_v42 }
 0x510   : > { %v5472_v20 = vshrl.u32 %v12964_v47, %v5457_v49  ;;  %v5421_v63 = vmul.f32 %v5420_v52, %v5418_v30  ;;  %v5300_v62 = vsub.s32 0, %v11908_v44  ;;  %v5327_v61 = vadd.s32 3, %v5323_v36  ;;  %v13298_v30 = vld [vmem:[#allocation11_spill] sm:$0xff] }
 0x511   : > { %vm5474_vm8 = vcmp.lt.s32.totalorder %v11891_v24, 1  ;;  %vm5475_vm0 = vcmp.lt.s32.totalorder %v11891_v24, 2  ;;  %vm5477_vm6 = vcmp.lt.s32.totalorder %v11891_v24, 4  ;;  %vm5476_vm5 = vcmp.lt.s32.totalorder %v11891_v24, 3 }
 0x512   : > { %v5473_v37 = vor.u32 %v5472_v20, %v5471_v38  ;;  %v5478_v54 = vsel %vm5474_vm8, %v5458_v8, %v5461_v2  ;;  %v5422_v23 = vxor.u32 2147483648, %v5421_v63  ;;  %v6769_v57 = vmin.u32 %v5300_v62, %v11908_v44  ;;  %v13297_v8 = vld [vmem:[#allocation38_spill] sm:$0xff] }
 0x513   : > { %v5479_v47 = vsel %vm5477_vm6, %v5467_v41, 2102212464  ;;  %v5482_v42 = vsel %vm5474_vm8, %v5461_v2, %v5464_v5  ;;  %v5483_v49 = vsel %vm5477_vm6, %v5470_v4, 920167782  ;;  %v5486_v22 = vsel %vm5474_vm8, %v5464_v5, %v5467_v41 }
 0x514   : > { %v5480_v32 = vsel %vm5476_vm5, %v5464_v5, %v5479_v47  ;;  %v5423_v43 = vsel %vm5340_vm4, %v5422_v23, %v5421_v63  ;;  %v5302_v14 = vclz %v6769_v57  ;;  %v5484_v7 = vsel %vm5476_vm5, %v5467_v41, %v5483_v49 }
 0x515   : > { %v5481_v0 = vsel %vm5475_vm0, %v5478_v54, %v5480_v32  ;;  %vm1169_vm7 = vcmp.lt.s32.totalorder %v13297_v8, 2  ;;  %v5426_v52 = vsel %vm11816_vm13, %v11184_v48, %v5423_v43  ;;  %v11939_v2 = vand.u32 3, %v5327_v61  ;;  %v13300_v54 = vld [vmem:[#allocation45_spill] sm:$0xff]  ;;  %v13302_v43 = vld [vmem:[#allocation28_spill] sm:$0xff] }
 0x516   : > { %v5485_v5 = vsel %vm5475_vm0, %v5482_v42, %v5484_v7  ;;  %v5487_v15 = vsel %vm5477_vm6, %v5473_v37, 1326507024  ;;  %vm1166_vm4 = vweird.f32 %v13298_v30  ;;  %7257 = vcosq.f32 %v5426_v52  ;;  %v13299_v37 = vld [vmem:[#allocation46_spill] sm:$0xff]  ;;  %v13301_v42 = vld [vmem:[#allocation8_spill] sm:$0xff]  ;;  %v13310_v30 = vld [vmem:[#allocation51_spill] sm:$0xff] }
 0x517   : > { %v6770_v26 = vadd.s32 4294967294, %v5302_v14  ;;  %v5488_v41 = vsel %vm5476_vm5, %v5470_v4, %v5487_v15  ;;  %v5497_v36 = vmul.u32 %v11877_v3, %v5481_v0  ;;  %v761_v63 = vsel %vm750_vm10, nan, %v760_v21  ;;  %v13303_v0 = vld [vmem:[#allocation35_spill] sm:$0xff] }
 0x518   : > { %v5489_v17 = vsel %vm5475_vm0, %v5486_v22, %v5488_v41  ;;  %v11952_v38 = vmul.u32.u64.low %v11877_v3, %v5485_v5  ;;  %v11953_v20 = vmul.u32.u64.high %v11877_v3, %v5485_v5, %v11952_v38  ;;  %7259 = vsinq.f32 %v5426_v52 }
 0x519   : > { %vm6771_vm13 = vcmp.lt.s32.totalorder %v6770_v26, 0  ;;  %v11959_v62 = vmul.u32.u64.low %v11877_v3, %v5489_v17  ;;  %v11960_v61 = vmul.u32.u64.high %v11877_v3, %v5489_v17, %v11959_v62  ;;  %vm1170_vm1 = vcmp.eq.s32.totalorder %v13297_v8, 0 }
 0x51a   : > { %v5305_v4 = vsel %vm6771_vm13, 0, %v6770_v26  ;;  %v1171_v24 = vxor.u32 2147483648, %v13299_v37  ;;  %v1174_v23 = vxor.u32 2147483648, %v13300_v54  ;;  %vm1173_vm14 = vcmp.eq.s32.totalorder %v13297_v8, 2 }
 0x51b   : > { %v5306_v57 = vsub.s32 32, %v5305_v4  ;;  %v5307_v47 = vshll.u32 %v11908_v44, %v5305_v4  ;;  %v5310_v32 = vsub.s32 4294967266, %v5305_v4  ;;  %v5500_v21 = vadd.s32 1, %v11953_v20 }
 0x51c   : > { %v1172_v11 = vsel %vm1170_vm1, %v13300_v54, %v1171_v24  ;;  %v1175_v3 = vsel %vm1173_vm14, %v1174_v23, %v13299_v37  ;;  %vm958_vm15 = vweird.f32 %v13301_v42  ;;  %vm5499_vm11 = vc.u32 %v11960_v61, %v11952_v38  ;;  %v13308_v23 = vld [vmem:[#allocation12_spill] sm:$0xff] }
 0x51d   : > { %v5308_v49 = vshrl.u32 %v11888_v18, %v5306_v57  ;;  %v5311_v22 = vadd.s32 127, %v5310_v32  ;;  %vm961_vm9 = vcmp.lt.s32.totalorder %v13302_v43, 2  ;;  %vm5444_vm12 = vcmp.lt.s32.totalorder %v11339_v59, 0  ;;  %v13309_v57 = vld [vmem:[#allocation39_spill] sm:$0xff]  ;;  %v13311_v32 = vld [vmem:[#allocation5_spill] sm:$0xff] }
 0x51e   : > { %v5501_v44 = vsel %vm5499_vm11, %v5500_v21, %v11953_v20  ;;  %v1176_v14 = vsel %vm1169_vm7, %v1172_v11, %v1175_v3  ;;  %vm962_vm10 = vcmp.eq.s32.totalorder %v13302_v43, 0  ;;  %v963_v7 = vxor.u32 2147483648, %v13303_v0  ;;  %v13307_v20 = vld [vmem:[#allocation34_spill] sm:$0xff] }
 0x51f   : > { %v5309_v52 = vor.u32 %v5308_v49, %v5307_v47  ;;  %v5312_v5 = vshll.u32 %v5311_v22, 23  ;;  %v13304_v18 = vand.u32 2147483647, %v11339_v59  ;;  %v5502_v26 = vadd.s32 %v5501_v44, %v5497_v36  ;;  %v13312_v22 = vld [vmem:[#allocation49_spill] sm:$0xff] }
 0x520   : > { %v1177_v41 = vsel %vm1166_vm4, nan, %v1176_v14  ;;  %v964_v8 = vsel %vm962_vm10, %v13307_v20, %v963_v7  ;;  %vm965_vm0 = vcmp.eq.s32.totalorder %v13302_v43, 2  ;;  %v966_v62 = vxor.u32 2147483648, %v13307_v20  ;;  %v11992_v4 = vpop.eup %7257  ;;  %v13314_v43 = vld [vmem:[#allocation23_spill] sm:$0xff]  ;;  %v13316_v20 = vld [vmem:[#allocation9_spill] sm:$0xff] }
 0x521   : > { %vm11983_vm8 = vcmp.le.f32.partialorder %v13304_v18, 0.7853982  ;;  %v5563_v17 = vpack.c.bf16 %v1177_v41, %v761_v63  ;;  %v5313_v37 = vor.u32 4788187, %v5312_v5  ;;  %v5316_v24 = vcvt.s32.f32 %v5309_v52 }
 0x522   : > { %v5503_v54 = vadd.s32 536870912, %v5502_v26  ;;  %vm1374_vm6 = vweird.f32 %v13308_v23  ;;  %v967_v36 = vsel %vm965_vm0, %v966_v62, %v13303_v0  ;;  %vm1377_vm5 = vcmp.lt.s32.totalorder %v13309_v57, 2  ;;  %v11999_v47 = vpop.eup %7259  ;;  %v13313_v0 = vld [vmem:[#allocation19_spill] sm:$0xff] }
 0x523   : > { %5651 = vmatprep.subr.bf16.mxu0 %v5563_v17  ;;  %vm1378_vm7 = vcmp.eq.s32.totalorder %v13309_v57, 0  ;;  %v1379_v63 = vxor.u32 2147483648, %v13310_v30  ;;  %vm646_vm4 = vweird.f32 %v13311_v32  ;;  %v5314_v21 = vand.u32 2147483647, %v5313_v37  ;;  %v13315_v17 = vld [vmem:[#allocation22_spill] sm:$0xff]  ;;  %v13324_v32 = vld [vmem:[#allocation24_spill] sm:$0xff] }
 0x524   : > { %v5504_v11 = vshrl.u32 %v5503_v54, 30  ;;  %v968_v3 = vsel %vm961_vm9, %v964_v8, %v967_v36  ;;  %vm1381_vm13 = vcmp.eq.s32.totalorder %v13309_v57, 2  ;;  %v1382_v14 = vxor.u32 2147483648, %v13312_v22 }
 0x525   : > { %v969_v49 = vsel %vm958_vm15, nan, %v968_v3  ;;  %v1380_v44 = vsel %vm1378_vm7, %v13312_v22, %v1379_v63  ;;  %vm649_vm1 = vcmp.lt.s32.totalorder %v13313_v0, 2  ;;  %v5317_v7 = vmul.f32 %v5316_v24, %v5314_v21  ;;  %v13317_v22 = vld [vmem:[#allocation6_spill] sm:$0xff] }
 0x526   : > { %v5505_v52 = vshll.u32 %v5504_v11, 30  ;;  %v5528_v5 = vsub.s32 4, %v5504_v11  ;;  %vm650_vm14 = vcmp.eq.s32.totalorder %v13313_v0, 0  ;;  %v1383_v18 = vsel %vm1381_vm13, %v1382_v14, %v13310_v30  ;;  %v13318_v14 = vld [vmem:[#allocation32_spill] sm:$0xff] }
 0x527   : > { %v651_v41 = vxor.u32 2147483648, %v13314_v43  ;;  %vm653_vm11 = vcmp.eq.s32.totalorder %v13313_v0, 2  ;;  %v654_v42 = vxor.u32 2147483648, %v13315_v17  ;;  %vm1062_vm15 = vweird.f32 %v13316_v20  ;;  %v13321_v0 = vld [vmem:[#allocation10_spill] sm:$0xff] }
 0x528   : > { %v5318_v8 = vxor.u32 2147483648, %v5317_v7  ;;  %v12016_v62 = vsub.s32 %v5502_v26, %v5505_v52  ;;  %v5529_v37 = vsel %vm5444_vm12, %v5528_v5, %v5504_v11  ;;  %v1384_v24 = vsel %vm1377_vm5, %v1380_v44, %v1383_v18 }
 0x529   : > { %v5531_v54 = vsel %vm11983_vm8, 0, %v5529_v37  ;;  %v1385_v36 = vsel %vm1374_vm6, nan, %v1384_v24  ;;  %v652_v30 = vsel %vm650_vm14, %v13315_v17, %v651_v41  ;;  %v655_v63 = vsel %vm653_vm11, %v654_v42, %v13314_v43  ;;  %v13322_v43 = vld [vmem:[#allocation20_spill] sm:$0xff]  ;;  %v13323_v41 = vld [vmem:[#allocation27_spill] sm:$0xff] }
 0x52a   : > { %v5319_v26 = vsel %vm5236_vm3, %v5318_v8, %v5317_v7  ;;  %v5508_v21 = vsub.s32 0, %v12016_v62  ;;  %v5535_v3 = vadd.s32 3, %v5531_v54  ;;  %v5565_v11 = vpack.c.bf16 %v1385_v36, %v969_v49  ;;  %v13319_v49 = vld [vmem:[#allocation42_spill] sm:$0xff] }
 0x52b   : > { %vm854_vm9 = vweird.f32 %v13317_v22  ;;  %v5322_v57 = vsel %vm11881_vm2, %v11277_v9, %v5319_v26  ;;  %v5498_v23 = vadd.s32 %v11952_v38, %v11960_v61  ;;  %v656_v44 = vsel %vm649_vm1, %v652_v30, %v655_v63  ;;  %v13320_v38 = vld [vmem:[#allocation41_spill] sm:$0xff] }
 0x52c   : > { %vm1065_vm10 = vcmp.lt.s32.totalorder %v13318_v14, 2  ;;  %7261 = vcosq.f32 %v5322_v57  ;;  %v6777_v7 = vmin.u32 %v5508_v21, %v12016_v62  ;;  %v12041_v52 = vand.u32 3, %v5535_v3  ;;  %5764 = vmatprep.subr.bf16.mxu1 %v5565_v11  ;;  %v13325_v26 = vld [vmem:[#allocation37_spill] sm:$0xff]  ;;  %v13326_v21 = vld [vmem:[#allocation44_spill] sm:$0xff] }
 0x52d   : > { %vm1066_vm3 = vcmp.eq.s32.totalorder %v13318_v14, 0  ;;  %7263 = vsinq.f32 %v5322_v57  ;;  %v657_v55 = vsel %vm646_vm4, nan, %v656_v44  ;;  %v1067_v5 = vxor.u32 2147483648, %v13319_v49 }
 0x52e   : > { %v1070_v61 = vxor.u32 2147483648, %v13320_v38  ;;  %vm1270_vm2 = vweird.f32 %v13321_v0  ;;  %v5510_v18 = vclz %v6777_v7  ;;  %vm1069_vm0 = vcmp.eq.s32.totalorder %v13318_v14, 2  ;;  %v13327_v14 = vld [vmem:[#allocation43_spill] sm:$0xff] }
 0x52f   : > { %vm857_vm6 = vcmp.lt.s32.totalorder %v13322_v43, 2  ;;  %v859_v17 = vxor.u32 2147483648, %v13323_v41  ;;  %v1068_v42 = vsel %vm1066_vm3, %v13320_v38, %v1067_v5  ;;  %vm858_vm5 = vcmp.eq.s32.totalorder %v13322_v43, 0 }
 0x530   : > { %v1071_v8 = vsel %vm1069_vm0, %v1070_v61, %v13319_v49  ;;  %v862_v37 = vxor.u32 2147483648, %v13324_v32  ;;  %v6778_v24 = vadd.s32 4294967294, %v5510_v18  ;;  %vm861_vm7 = vcmp.eq.s32.totalorder %v13322_v43, 2  ;;  %v13328_v18 = vld [vmem:[#allocation15_spill] sm:$0xff]  ;;  %v13329_v43 = vld [vmem:[#allocation56_spill] sm:$0xff] }
 0x531   : > { %v1072_v54 = vsel %vm1065_vm10, %v1068_v42, %v1071_v8  ;;  %v860_v36 = vsel %vm858_vm5, %v13324_v32, %v859_v17  ;;  %vm1273_vm4 = vcmp.lt.s32.totalorder %v13325_v26, 2  ;;  %v1275_v3 = vxor.u32 2147483648, %v13326_v21 }
 0x532   : > { %v1073_v30 = vsel %vm1062_vm15, nan, %v1072_v54  ;;  %v863_v63 = vsel %vm861_vm7, %v862_v37, %v13323_v41  ;;  %vm6779_vm13 = vcmp.lt.s32.totalorder %v6778_v24, 0  ;;  %vm1274_vm1 = vcmp.eq.s32.totalorder %v13325_v26, 0  ;;  %v13330_v41 = vld [vmem:[#allocation62_spill] sm:$0xff] }
 0x533   : > { %v5562_v11 = vpack.c.bf16 %v1073_v30, %v657_v55  ;;  %v864_v57 = vsel %vm857_vm6, %v860_v36, %v863_v63  ;;  %v5513_v44 = vsel %vm6779_vm13, 0, %v6778_v24  ;;  %v1276_v7 = vsel %vm1274_vm1, %v13327_v14, %v1275_v3  ;;  %v13331_v24 = vld [vmem:[#allocation61_spill] sm:$0xff]  ;;  %v13333_v3 = vld [vmem:[#allocation72_spill] sm:$0xff] }
 0x534   : > { %vm1277_vm14 = vcmp.eq.s32.totalorder %v13325_v26, 2  ;;  %v1278_v20 = vxor.u32 2147483648, %v13327_v14  ;;  %v5514_v49 = vsub.s32 32, %v5513_v44  ;;  %v5515_v5 = vshll.u32 %v12016_v62, %v5513_v44  ;;  %v13335_v14 = vld [vmem:[#allocation75_spill] sm:$0xff] }
 0x535   : > { %v5518_v38 = vsub.s32 4294967266, %v5513_v44  ;;  %5652 = vmatpush1.bf16.msra.mxu0 %v5562_v11  ;;  %v865_v55 = vsel %vm854_vm9, nan, %v864_v57  ;;  %vm1582_vm11 = vweird.f32 %v13328_v18  ;;  %vm1585_vm15 = vcmp.lt.s32.totalorder %v13329_v43, 2  ;;  %v13334_v11 = vld [vmem:[#allocation76_spill] sm:$0xff]  ;;  %v13339_v18 = vld [vmem:[#allocation63_spill] sm:$0xff] }
 0x536   : > { %v1279_v61 = vsel %vm1277_vm14, %v1278_v20, %v13326_v21  ;;  %v1587_v17 = vxor.u32 2147483648, %v13330_v41  ;;  %v12078_v42 = vpop.eup %7261  ;;  %v5516_v8 = vshrl.u32 %v5498_v23, %v5514_v49  ;;  %vm1586_vm10 = vcmp.eq.s32.totalorder %v13329_v43, 0  ;;  %v13332_v21 = vld [vmem:[#allocation21_spill] sm:$0xff] }
 0x537   : > { %v5519_v32 = vadd.s32 127, %v5518_v38  ;;  %v1280_v62 = vsel %vm1273_vm4, %v1276_v7, %v1279_v61  ;;  %v12083_v37 = vpop.eup %7263  ;;  %vm1589_vm9 = vcmp.eq.s32.totalorder %v13329_v43, 2  ;;  %v1590_v36 = vxor.u32 2147483648, %v13331_v24  ;;  %v13336_v38 = vld [vmem:[#allocation16_spill] sm:$0xff] }
 0x538   : > { %v1281_v22 = vsel %vm1270_vm2, nan, %v1280_v62  ;;  %v1588_v54 = vsel %vm1586_vm10, %v13331_v24, %v1587_v17  ;;  %v5517_v30 = vor.u32 %v5516_v8, %v5515_v5  ;;  %vm1998_vm3 = vweird.f32 %v13332_v21  ;;  %v13338_v17 = vld [vmem:[#allocation67_spill] sm:$0xff]  ;;  %v13340_v62 = vld [vmem:[#allocation13_spill] sm:$0xff] }
 0x539   : > { %v5520_v63 = vshll.u32 %v5519_v32, 23  ;;  %v5564_v23 = vpack.c.bf16 %v1281_v22, %v865_v55  ;;  %v1591_v26 = vsel %vm1589_vm9, %v1590_v36, %v13330_v41  ;;  %vm2001_vm0 = vcmp.lt.s32.totalorder %v13333_v3, 2  ;;  %v13337_v41 = vld [vmem:[#allocation57_spill] sm:$0xff]  ;;  %v13341_v36 = vld [vmem:[#allocation26_spill] sm:$0xff] }
 0x53a   : > { %vm2002_vm6 = vcmp.eq.s32.totalorder %v13333_v3, 0  ;;  %v2003_v0 = vxor.u32 2147483648, %v13334_v11  ;;  %v1592_v44 = vsel %vm1585_vm15, %v1588_v54, %v1591_v26  ;;  %vm2005_vm2 = vcmp.eq.s32.totalorder %v13333_v3, 2  ;;  %v13343_v26 = vld [vmem:[#allocation82_spill] sm:$0xff] }
 0x53b   : > { %v5521_v57 = vor.u32 4788187, %v5520_v63  ;;  %5765 = vmatpush1.bf16.msra.mxu1 %v5564_v23  ;;  %v2006_v7 = vxor.u32 2147483648, %v13335_v14  ;;  %v5524_v20 = vcvt.s32.f32 %v5517_v30  ;;  %v1593_v49 = vsel %vm1582_vm11, nan, %v1592_v44  ;;  %v13342_v23 = vld [vmem:[#allocation73_spill] sm:$0xff] }
 0x53c   : > { %v2004_v5 = vsel %vm2002_vm6, %v13335_v14, %v2003_v0  ;;  %vm1790_vm5 = vweird.f32 %v13336_v38  ;;  %vm1793_vm7 = vcmp.lt.s32.totalorder %v13337_v41, 2  ;;  %v1795_v43 = vxor.u32 2147483648, %v13338_v17  ;;  %v13345_v44 = vld [vmem:[#allocation17_spill] sm:$0xff] }
 0x53d   : > { %v5522_v55 = vand.u32 2147483647, %v5521_v57  ;;  %v2007_v61 = vsel %vm2005_vm2, %v2006_v7, %v13334_v11  ;;  %vm1794_vm4 = vcmp.eq.s32.totalorder %v13337_v41, 0  ;;  %vm1797_vm13 = vcmp.eq.s32.totalorder %v13337_v41, 2  ;;  %v13344_v57 = vld [vmem:[#allocation79_spill] sm:$0xff]  ;;  %v13348_v41 = vld [vmem:[#allocation14_spill] sm:$0xff] }
 0x53e   : > { %v2008_v8 = vsel %vm2001_vm0, %v2004_v5, %v2007_v61  ;;  %v1798_v32 = vxor.u32 2147483648, %v13339_v18  ;;  %vm1478_vm1 = vweird.f32 %v13340_v62  ;;  %v1796_v54 = vsel %vm1794_vm4, %v13339_v18, %v1795_v43  ;;  %v13349_v43 = vld [vmem:[#allocation53_spill] sm:$0xff] }
 0x53f   : > { %v5525_v22 = vmul.f32 %v5524_v20, %v5522_v55  ;;  %v2009_v24 = vsel %vm1998_vm3, nan, %v2008_v8  ;;  %vm2206_vm14 = vweird.f32 %v13341_v36  ;;  %vm2209_vm11 = vcmp.lt.s32.totalorder %v13342_v23, 2  ;;  %v13346_v20 = vld [vmem:[#allocation48_spill] sm:$0xff]  ;;  %v13347_v55 = vld [vmem:[#allocation54_spill] sm:$0xff] }
 0x540   : > { %v5567_v30 = vpack.c.bf16 %v2009_v24, %v1593_v49  ;;  %v1799_v63 = vsel %vm1797_vm13, %v1798_v32, %v13338_v17  ;;  %v2211_v3 = vxor.u32 2147483648, %v13343_v26  ;;  %vm2210_vm15 = vcmp.eq.s32.totalorder %v13342_v23, 0  ;;  %v13351_v24 = vld [vmem:[#allocation18_spill] sm:$0xff]  ;;  %v13353_v36 = vld [vmem:[#allocation68_spill] sm:$0xff] }
 0x541   : > { %v5526_v11 = vxor.u32 2147483648, %v5525_v22  ;;  %v1800_v0 = vsel %vm1793_vm7, %v1796_v54, %v1799_v63  ;;  %v2214_v21 = vxor.u32 2147483648, %v13344_v57  ;;  %vm1894_vm10 = vweird.f32 %v13345_v44  ;;  %v13360_v44 = vld [vmem:[#allocation85_spill] sm:$0xff] }
 0x542   : > { %5653 = vmatprep.subr.bf16.mxu0 %v5567_v30  ;;  %v1801_v14 = vsel %vm1790_vm5, nan, %v1800_v0  ;;  %v2212_v7 = vsel %vm2210_vm15, %v13344_v57, %v2211_v3  ;;  %vm2213_vm9 = vcmp.eq.s32.totalorder %v13342_v23, 2  ;;  %vm1481_vm3 = vcmp.lt.s32.totalorder %v13346_v20, 2  ;;  %v13352_v30 = vld [vmem:[#allocation69_spill] sm:$0xff]  ;;  %v13354_v0 = vld [vmem:[#allocation55_spill] sm:$0xff]  ;;  %v13355_v57 = vld [vmem:[#allocation60_spill] sm:$0xff] }
 0x543   : > { %v5527_v49 = vsel %vm5444_vm12, %v5526_v11, %v5525_v22  ;;  %v2215_v5 = vsel %vm2213_vm9, %v2214_v21, %v13343_v26  ;;  %vm1482_vm0 = vcmp.eq.s32.totalorder %v13346_v20, 0  ;;  %v1483_v61 = vxor.u32 2147483648, %v13347_v55  ;;  %v13350_v22 = vld [vmem:[#allocation36_spill] sm:$0xff] }
 0x544   : > { %vm1686_vm6 = vweird.f32 %v13348_v41  ;;  %v5530_v38 = vsel %vm11983_vm8, %v11339_v59, %v5527_v49  ;;  %v2216_v17 = vsel %vm2209_vm11, %v2212_v7, %v2215_v5  ;;  %vm1485_vm2 = vcmp.eq.s32.totalorder %v13346_v20, 2  ;;  %v13356_v7 = vld [vmem:[#allocation59_spill] sm:$0xff]  ;;  %v13357_v5 = vld [vmem:[#allocation66_spill] sm:$0xff] }
 0x545   : > { %v1486_v8 = vxor.u32 2147483648, %v13349_v43  ;;  %7265 = vcosq.f32 %v5530_v38  ;;  %v2217_v18 = vsel %vm2206_vm14, nan, %v2216_v17  ;;  %v1484_v32 = vsel %vm1482_vm0, %v13349_v43, %v1483_v61  ;;  %v13359_v43 = vld [vmem:[#allocation70_spill] sm:$0xff] }
 0x546   : > { %vm1897_vm12 = vcmp.lt.s32.totalorder %v13350_v22, 2  ;;  %vm2102_vm5 = vweird.f32 %v13351_v24  ;;  %v5569_v54 = vpack.c.bf16 %v2217_v18, %v1801_v14  ;;  %vm1898_vm8 = vcmp.eq.s32.totalorder %v13350_v22, 0  ;;  %v13366_v24 = vld [vmem:[#allocation106_spill] sm:$0xff] }
 0x547   : > { %v1487_v15 = vsel %vm1485_vm2, %v1486_v8, %v13347_v55  ;;  %v1899_v63 = vxor.u32 2147483648, %v13352_v30  ;;  %7267 = vsinq.f32 %v5530_v38  ;;  %vm1901_vm7 = vcmp.eq.s32.totalorder %v13350_v22, 2  ;;  %v13358_v55 = vld [vmem:[#allocation74_spill] sm:$0xff] }
 0x548   : > { %v1488_v23 = vsel %vm1481_vm3, %v1484_v32, %v1487_v15  ;;  %v1902_v26 = vxor.u32 2147483648, %v13353_v36  ;;  %5766 = vmatprep.subr.bf16.mxu1 %v5569_v54  ;;  %vm1689_vm4 = vcmp.lt.s32.totalorder %v13354_v0, 2  ;;  %v1691_v21 = vxor.u32 2147483648, %v13355_v57 }
 0x549   : > { %v1489_v3 = vsel %vm1478_vm1, nan, %v1488_v23  ;;  %v1900_v11 = vsel %vm1898_vm8, %v13353_v36, %v1899_v63  ;;  %vm1690_vm13 = vcmp.eq.s32.totalorder %v13354_v0, 0  ;;  %vm1693_vm14 = vcmp.eq.s32.totalorder %v13354_v0, 2  ;;  %v13361_v63 = vld [vmem:[#allocation92_spill] sm:$0xff]  ;;  %v13362_v36 = vld [vmem:[#allocation90_spill] sm:$0xff]  ;;  %v13364_v0 = vld [vmem:[#allocation99_spill] sm:$0xff] }
 0x54a   : > { %v1903_v14 = vsel %vm1901_vm7, %v1902_v26, %v13352_v30  ;;  %v1694_v20 = vxor.u32 2147483648, %v13356_v7  ;;  %v1692_v62 = vsel %vm1690_vm13, %v13356_v7, %v1691_v21  ;;  %vm2105_vm1 = vcmp.lt.s32.totalorder %v13357_v5, 2  ;;  %v13365_v7 = vld [vmem:[#allocation107_spill] sm:$0xff] }
 0x54b   : > { %v1904_v49 = vsel %vm1897_vm12, %v1900_v11, %v1903_v14  ;;  %v2107_v61 = vxor.u32 2147483648, %v13358_v55  ;;  %vm2106_vm11 = vcmp.eq.s32.totalorder %v13357_v5, 0  ;;  %v2110_v8 = vxor.u32 2147483648, %v13359_v43  ;;  %v13363_v11 = vld [vmem:[#allocation52_spill] sm:$0xff] }
 0x54c   : > { %v1905_v38 = vsel %vm1894_vm10, nan, %v1904_v49  ;;  %v1695_v17 = vsel %vm1693_vm14, %v1694_v20, %v13355_v57  ;;  %vm2109_vm15 = vcmp.eq.s32.totalorder %v13357_v5, 2  ;;  %vm2414_vm9 = vweird.f32 %v13073_v31 }
 0x54d   : > { %v5566_v18 = vpack.c.bf16 %v1905_v38, %v1489_v3  ;;  %v1696_v32 = vsel %vm1689_vm4, %v1692_v62, %v1695_v17  ;;  %v2108_v22 = vsel %vm2106_vm11, %v13359_v43, %v2107_v61  ;;  %v2111_v15 = vsel %vm2109_vm15, %v2110_v8, %v13358_v55  ;;  %v13367_v38 = vld [vmem:[#allocation40_spill] sm:$0xff]  ;;  %v13369_v43 = vld [vmem:[#allocation29_spill] sm:$0xff] }
 0x54e   : > { %v1697_v54 = vsel %vm1686_vm6, nan, %v1696_v32  ;;  %vm2417_vm10 = vcmp.lt.s32.totalorder %v13360_v44, 2  ;;  %v2112_v30 = vsel %vm2105_vm1, %v2108_v22, %v2111_v15  ;;  %vm2418_vm3 = vcmp.eq.s32.totalorder %v13360_v44, 0  ;;  %v13368_v17 = vld [vmem:[#allocation88_spill] sm:$0xff]  ;;  %v13371_v22 = vld [vmem:[#allocation94_spill] sm:$0xff] }
 0x54f   : > { %5654 = vmatpush1.bf16.msra.mxu0 %v5566_v18  ;;  %v2419_v23 = vxor.u32 2147483648, %v13361_v63  ;;  %v2422_v26 = vxor.u32 2147483648, %v13362_v36  ;;  %v12183_v3 = vpop.eup %7265  ;;  %v2113_v41 = vsel %vm2102_vm5, nan, %v2112_v30  ;;  %vm2421_vm0 = vcmp.eq.s32.totalorder %v13360_v44, 2  ;;  %v13370_v18 = vld [vmem:[#allocation96_spill] sm:$0xff]  ;;  %v13372_v15 = vld [vmem:[#allocation58_spill] sm:$0xff] }
 0x550   : > { %vm2830_vm6 = vweird.f32 %v13363_v11  ;;  %vm2833_vm2 = vcmp.lt.s32.totalorder %v13364_v0, 2  ;;  %v5568_v57 = vpack.c.bf16 %v2113_v41, %v1697_v54  ;;  %v2835_v20 = vxor.u32 2147483648, %v13365_v7  ;;  %v13373_v44 = vld [vmem:[#allocation103_spill] sm:$0xff] }
 0x551   : > { %v2420_v21 = vsel %vm2418_vm3, %v13362_v36, %v2419_v23  ;;  %v2423_v14 = vsel %vm2421_vm0, %v2422_v26, %v13361_v63  ;;  %v12193_v49 = vpop.eup %7267  ;;  %vm2834_vm12 = vcmp.eq.s32.totalorder %v13364_v0, 0  ;;  %vm2837_vm5 = vcmp.eq.s32.totalorder %v13364_v0, 2  ;;  %v13374_v36 = vld [vmem:[#allocation110_spill] sm:$0xff]  ;;  %v13375_v41 = vld [vmem:[#allocation47_spill] sm:$0xff] }
 0x552   : > { %v2424_v62 = vsel %vm2417_vm10, %v2420_v21, %v2423_v14  ;;  %v2838_v5 = vxor.u32 2147483648, %v13366_v24  ;;  %5767 = vmatpush1.bf16.msra.mxu1 %v5568_v57  ;;  %v2836_v61 = vsel %vm2834_vm12, %v13366_v24, %v2835_v20  ;;  %vm2622_vm8 = vweird.f32 %v13367_v38  ;;  %v13376_v21 = vld [vmem:[#allocation108_spill] sm:$0xff]  ;;  %v13377_v20 = vld [vmem:[#allocation77_spill] sm:$0xff] }
 0x553   : > { %v2425_v55 = vsel %vm2414_vm9, nan, %v2424_v62  ;;  %vm2625_vm7 = vcmp.lt.s32.totalorder %v13368_v17, 2  ;;  %vm2310_vm4 = vweird.f32 %v13369_v43  ;;  %vm2626_vm13 = vcmp.eq.s32.totalorder %v13368_v17, 0  ;;  %v13378_v62 = vld [vmem:[#allocation33_spill] sm:$0xff] }
 0x554   : > { %v2839_v8 = vsel %vm2837_vm5, %v2838_v5, %v13365_v7  ;;  %v2627_v32 = vxor.u32 2147483648, %v13370_v18  ;;  %v2630_v54 = vxor.u32 2147483648, %v13371_v22  ;;  %vm2629_vm14 = vcmp.eq.s32.totalorder %v13368_v17, 2  ;;  %v13379_v5 = vld [vmem:[#allocation84_spill] sm:$0xff] }
 0x555   : > { %v2840_v31 = vsel %vm2833_vm2, %v2836_v61, %v2839_v8  ;;  %vm3038_vm1 = vweird.f32 %v13372_v15  ;;  %vm3041_vm11 = vcmp.lt.s32.totalorder %v13373_v44, 2  ;;  %v3043_v26 = vxor.u32 2147483648, %v13374_v36  ;;  %v13380_v61 = vld [vmem:[#allocation83_spill] sm:$0xff]  ;;  %v13385_v15 = vld [vmem:[#allocation80_spill] sm:$0xff] }
 0x556   : > { %v2841_v30 = vsel %vm2830_vm6, nan, %v2840_v31  ;;  %v2628_v63 = vsel %vm2626_vm13, %v13371_v22, %v2627_v32  ;;  %v2631_v23 = vsel %vm2629_vm14, %v2630_v54, %v13370_v18  ;;  %vm2726_vm15 = vweird.f32 %v13375_v41  ;;  %v13381_v8 = vld [vmem:[#allocation91_spill] sm:$0xff]  ;;  %v13382_v18 = vld [vmem:[#allocation98_spill] sm:$0xff] }
 0x557   : > { %v5571_v57 = vpack.c.bf16 %v2841_v30, %v2425_v55  ;;  %v2632_v0 = vsel %vm2625_vm7, %v2628_v63, %v2631_v23  ;;  %vm3042_vm9 = vcmp.eq.s32.totalorder %v13373_v44, 0  ;;  %v3046_v14 = vxor.u32 2147483648, %v13376_v21  ;;  %v13383_v22 = vld [vmem:[#allocation50_spill] sm:$0xff]  ;;  %v13384_v23 = vld [vmem:[#allocation97_spill] sm:$0xff] }
 0x558   : > { %v2633_v11 = vsel %vm2622_vm8, nan, %v2632_v0  ;;  %v3044_v7 = vsel %vm3042_vm9, %v13376_v21, %v3043_v26  ;;  %vm3045_vm10 = vcmp.eq.s32.totalorder %v13373_v44, 2  ;;  %vm2313_vm3 = vcmp.lt.s32.totalorder %v13377_v20, 2  ;;  %v13386_v0 = vld [vmem:[#allocation87_spill] sm:$0xff] }
 0x559   : > { %vm2518_vm0 = vweird.f32 %v13378_v62  ;;  %5655 = vmatprep.subr.bf16.mxu0 %v5571_v57  ;;  %v3047_v24 = vsel %vm3045_vm10, %v3046_v14, %v13374_v36  ;;  %vm2314_vm6 = vcmp.eq.s32.totalorder %v13377_v20, 0  ;;  %v2315_v55 = vxor.u32 2147483648, %v13379_v5 }
 0x55a   : > { %v2318_v17 = vxor.u32 2147483648, %v13380_v61  ;;  %v3048_v38 = vsel %vm3041_vm11, %v3044_v7, %v3047_v24  ;;  %vm2317_vm2 = vcmp.eq.s32.totalorder %v13377_v20, 2  ;;  %vm2729_vm12 = vcmp.lt.s32.totalorder %v13381_v8, 2  ;;  %v13388_v24 = vld [vmem:[#allocation93_spill] sm:$0xff] }
 0x55b   : > { %v2731_v32 = vxor.u32 2147483648, %v13382_v18  ;;  %vm2934_vm5 = vweird.f32 %v13383_v22  ;;  %v3049_v54 = vsel %vm3038_vm1, nan, %v3048_v38  ;;  %v2316_v31 = vsel %vm2314_vm6, %v13380_v61, %v2315_v55  ;;  %v13390_v38 = vld [vmem:[#allocation102_spill] sm:$0xff]  ;;  %v13394_v22 = vld [vmem:[#allocation133_spill] sm:$0xff] }
 0x55c   : > { %v2319_v30 = vsel %vm2317_vm2, %v2318_v17, %v13379_v5  ;;  %vm2730_vm8 = vcmp.eq.s32.totalorder %v13381_v8, 0  ;;  %v5573_v63 = vpack.c.bf16 %v3049_v54, %v2633_v11  ;;  %v2734_v26 = vxor.u32 2147483648, %v13384_v23  ;;  %v13387_v11 = vld [vmem:[#allocation86_spill] sm:$0xff]  ;;  %v13389_v5 = vld [vmem:[#allocation105_spill] sm:$0xff] }
 0x55d   : > { %v2320_v44 = vsel %vm2313_vm3, %v2316_v31, %v2319_v30  ;;  %v2732_v36 = vsel %vm2730_vm8, %v13384_v23, %v2731_v32  ;;  %vm2733_vm7 = vcmp.eq.s32.totalorder %v13381_v8, 2  ;;  %vm2521_vm13 = vcmp.lt.s32.totalorder %v13385_v15, 2  ;;  %v13391_v30 = vld [vmem:[#allocation113_spill] sm:$0xff] }
 0x55e   : > { %v2321_v57 = vsel %vm2310_vm4, nan, %v2320_v44  ;;  %v2523_v21 = vxor.u32 2147483648, %v13386_v0  ;;  %5768 = vmatprep.subr.bf16.mxu1 %v5573_v63  ;;  %v2735_v14 = vsel %vm2733_vm7, %v2734_v26, %v13382_v18  ;;  %vm2522_vm14 = vcmp.eq.s32.totalorder %v13385_v15, 0  ;;  %v13392_v44 = vld [vmem:[#allocation121_spill] sm:$0xff] }
 0x55f   : > { %vm2525_vm1 = vcmp.eq.s32.totalorder %v13385_v15, 2  ;;  %v2526_v7 = vxor.u32 2147483648, %v13387_v11  ;;  %v2736_v20 = vsel %vm2729_vm12, %v2732_v36, %v2735_v14  ;;  %vm2937_vm4 = vcmp.lt.s32.totalorder %v13388_v24, 2  ;;  %v13393_v36 = vld [vmem:[#allocation120_spill] sm:$0xff] }
 0x560   : > { %v2524_v43 = vsel %vm2522_vm14, %v13387_v11, %v2523_v21  ;;  %v2939_v55 = vxor.u32 2147483648, %v13389_v5  ;;  %v2737_v61 = vsel %vm2726_vm15, nan, %v2736_v20  ;;  %vm2938_vm11 = vcmp.eq.s32.totalorder %v13388_v24, 0 }
 0x561   : > { %v2527_v17 = vsel %vm2525_vm1, %v2526_v7, %v13386_v0  ;;  %v2942_v18 = vxor.u32 2147483648, %v13390_v38  ;;  %v5570_v32 = vpack.c.bf16 %v2737_v61, %v2321_v57  ;;  %vm2941_vm9 = vcmp.eq.s32.totalorder %v13388_v24, 2  ;;  %v13396_v24 = vld [vmem:[#allocation117_spill] sm:$0xff]  ;;  %v13398_v61 = vld [vmem:[#allocation126_spill] sm:$0xff] }
 0x562   : > { %v2528_v8 = vsel %vm2521_vm13, %v2524_v43, %v2527_v17  ;;  %v2940_v54 = vsel %vm2938_vm11, %v13390_v38, %v2939_v55  ;;  %vm3246_vm15 = vweird.f32 %v9561_v13  ;;  %vm3249_vm10 = vcmp.lt.s32.totalorder %v13391_v30, 2  ;;  %v13395_v43 = vld [vmem:[#allocation71_spill] sm:$0xff]  ;;  %v13399_v38 = vld [vmem:[#allocation124_spill] sm:$0xff] }
 0x563   : > { %v2529_v31 = vsel %vm2518_vm0, nan, %v2528_v8  ;;  %v2943_v41 = vsel %vm2941_vm9, %v2942_v18, %v13389_v5  ;;  %5656 = vmatpush1.bf16.msra.mxu0 %v5570_v32  ;;  %vm3250_vm3 = vcmp.eq.s32.totalorder %v13391_v30, 0  ;;  %v3251_v23 = vxor.u32 2147483648, %v13392_v44  ;;  %v13397_v5 = vld [vmem:[#allocation64_spill] sm:$0xff]  ;;  %v13400_v32 = vld [vmem:[#allocation89_spill] sm:$0xff] }
 0x564   : > { %v2944_v63 = vsel %vm2937_vm4, %v2940_v54, %v2943_v41  ;;  %v3254_v26 = vxor.u32 2147483648, %v13393_v36  ;;  %vm3253_vm6 = vcmp.eq.s32.totalorder %v13391_v30, 2  ;;  %vm3662_vm0 = vweird.f32 %v9930_v46  ;;  %v13401_v8 = vld [vmem:[#allocation132_spill] sm:$0xff]  ;;  %v13402_v41 = vld [vmem:[#allocation135_spill] sm:$0xff] }
 0x565   : > { %v2945_v57 = vsel %vm2934_vm5, nan, %v2944_v63  ;;  %vm3665_vm2 = vcmp.lt.s32.totalorder %v10776_v50, 2  ;;  %v3252_v15 = vsel %vm3250_vm3, %v13393_v36, %v3251_v23  ;;  %v3667_v21 = vxor.u32 2147483648, %v10959_v53  ;;  %v13403_v63 = vld [vmem:[#allocation78_spill] sm:$0xff] }
 0x566   : > { %v5572_v62 = vpack.c.bf16 %v2945_v57, %v2529_v31  ;;  %v3255_v0 = vsel %vm3253_vm6, %v3254_v26, %v13392_v44  ;;  %vm3666_vm12 = vcmp.eq.s32.totalorder %v10776_v50, 0  ;;  %vm3669_vm8 = vcmp.eq.s32.totalorder %v10776_v50, 2  ;;  %v13404_v23 = vld [vmem:[#allocation134_spill] sm:$0xff]  ;;  %v13405_v57 = vld [vmem:[#allocation111_spill] sm:$0xff] }
 0x567   : > { %v3256_v14 = vsel %vm3249_vm10, %v3252_v15, %v3255_v0  ;;  %v3670_v11 = vxor.u32 2147483648, %v13394_v22  ;;  %v3668_v20 = vsel %vm3666_vm12, %v13394_v22, %v3667_v21  ;;  %vm3454_vm5 = vweird.f32 %v13395_v43  ;;  %v13407_v0 = vld [vmem:[#allocation115_spill] sm:$0xff] }
 0x568   : > { %5769 = vmatpush1.bf16.msra.mxu1 %v5572_v62  ;;  %v3257_v7 = vsel %vm3246_vm15, nan, %v3256_v14  ;;  %vm3457_vm7 = vcmp.lt.s32.totalorder %v13396_v24, 2  ;;  %vm3142_vm13 = vweird.f32 %v13397_v5  ;;  %vm3458_vm14 = vcmp.eq.s32.totalorder %v13396_v24, 0  ;;  %v13406_v62 = vld [vmem:[#allocation65_spill] sm:$0xff]  ;;  %v13408_v14 = vld [vmem:[#allocation114_spill] sm:$0xff] }
 0x569   : > { %v3671_v55 = vsel %vm3669_vm8, %v3670_v11, %v10959_v53  ;;  %v3459_v17 = vxor.u32 2147483648, %v13398_v61  ;;  %v3462_v18 = vxor.u32 2147483648, %v13399_v38  ;;  %vm3461_vm1 = vcmp.eq.s32.totalorder %v13396_v24, 2  ;;  %v13411_v24 = vld [vmem:[#allocation81_spill] sm:$0xff] }
 0x56a   : > { %v3672_v13 = vsel %vm3665_vm2, %v3668_v20, %v3671_v55  ;;  %vm3870_vm4 = vweird.f32 %v13400_v32  ;;  %vm3873_vm11 = vcmp.lt.s32.totalorder %v13401_v8, 2  ;;  %v3875_v30 = vxor.u32 2147483648, %v13402_v41  ;;  %v13410_v20 = vld [vmem:[#allocation128_spill] sm:$0xff] }
 0x56b   : > { %v3673_v54 = vsel %vm3662_vm0, nan, %v3672_v13  ;;  %v3460_v53 = vsel %vm3458_vm14, %v13399_v38, %v3459_v17  ;;  %v3463_v31 = vsel %vm3461_vm1, %v3462_v18, %v13398_v61  ;;  %vm3558_vm9 = vweird.f32 %v13403_v63  ;;  %v13412_v13 = vld [vmem:[#allocation127_spill] sm:$0xff]  ;;  %v13413_v32 = vld [vmem:[#allocation112_spill] sm:$0xff] }
 0x56c   : > { %v5575_v44 = vpack.c.bf16 %v3673_v54, %v3257_v7  ;;  %v3464_v50 = vsel %vm3457_vm7, %v3460_v53, %v3463_v31  ;;  %vm3874_vm15 = vcmp.eq.s32.totalorder %v13401_v8, 0  ;;  %v3878_v36 = vxor.u32 2147483648, %v13404_v23  ;;  %v13409_v7 = vld [vmem:[#allocation122_spill] sm:$0xff]  ;;  %v13414_v31 = vld [vmem:[#allocation119_spill] sm:$0xff] }
 0x56d   : > { %v3465_v46 = vsel %vm3454_vm5, nan, %v3464_v50  ;;  %v3876_v26 = vsel %vm3874_vm15, %v13404_v23, %v3875_v30  ;;  %vm3877_vm10 = vcmp.eq.s32.totalorder %v13401_v8, 2  ;;  %vm3145_vm3 = vcmp.lt.s32.totalorder %v13405_v57, 2 }
 0x56e   : > { %vm3350_vm6 = vweird.f32 %v13406_v62  ;;  %5657 = vmatprep.subr.bf16.mxu0 %v5575_v44  ;;  %v3879_v15 = vsel %vm3877_vm10, %v3878_v36, %v13402_v41  ;;  %vm3146_vm0 = vcmp.eq.s32.totalorder %v13405_v57, 0  ;;  %v3147_v21 = vxor.u32 2147483648, %v13407_v0  ;;  %v13415_v44 = vld [vmem:[#allocation118_spill] sm:$0xff]  ;;  %v13416_v36 = vld [vmem:[#allocation123_spill] sm:$0xff] }
 0x56f   : > { %v3150_v22 = vxor.u32 2147483648, %v13408_v14  ;;  %v3880_v11 = vsel %vm3873_vm11, %v3876_v26, %v3879_v15  ;;  %vm3149_vm2 = vcmp.eq.s32.totalorder %v13405_v57, 2  ;;  %vm3561_vm12 = vcmp.lt.s32.totalorder %v13409_v7, 2 }
 0x570   : > { %v3563_v43 = vxor.u32 2147483648, %v13410_v20  ;;  %vm3766_vm8 = vweird.f32 %v13411_v24  ;;  %v3881_v55 = vsel %vm3870_vm4, nan, %v3880_v11  ;;  %v3148_v61 = vsel %vm3146_vm0, %v13408_v14, %v3147_v21 }
 0x571   : > { %v3151_v17 = vsel %vm3149_vm2, %v3150_v22, %v13407_v0  ;;  %vm3562_vm5 = vcmp.eq.s32.totalorder %v13409_v7, 0  ;;  %v5577_v38 = vpack.c.bf16 %v3881_v55, %v3465_v46  ;;  %v3566_v54 = vxor.u32 2147483648, %v13412_v13  ;;  %v13417_v46 = vld [vmem:[#allocation130_spill] sm:$0xff]  ;;  %v13418_v0 = vld [vmem:[#allocation129_spill] sm:$0xff] }
 0x572   : > { %v3152_v18 = vsel %vm3145_vm3, %v3148_v61, %v3151_v17  ;;  %v3564_v8 = vsel %vm3562_vm5, %v13412_v13, %v3563_v43  ;;  %vm3565_vm7 = vcmp.eq.s32.totalorder %v13409_v7, 2  ;;  %vm3353_vm14 = vcmp.lt.s32.totalorder %v13413_v32, 2  ;;  %v13420_v43 = vld [vmem:[#allocation138_spill] sm:$0xff]  ;;  %v13421_v17 = vld [vmem:[#allocation143_spill] sm:$0xff] }
 0x573   : > { %v3153_v53 = vsel %vm3142_vm13, nan, %v3152_v18  ;;  %v3355_v41 = vxor.u32 2147483648, %v13414_v31  ;;  %5770 = vmatprep.subr.bf16.mxu1 %v5577_v38  ;;  %v3567_v30 = vsel %vm3565_vm7, %v3566_v54, %v13410_v20  ;;  %vm3354_vm1 = vcmp.eq.s32.totalorder %v13413_v32, 0  ;;  %v13419_v20 = vld [vmem:[#allocation101_spill] sm:$0xff] }
 0x574   : > { %vm3357_vm4 = vcmp.eq.s32.totalorder %v13413_v32, 2  ;;  %v3358_v50 = vxor.u32 2147483648, %v13415_v44  ;;  %v3568_v23 = vsel %vm3561_vm12, %v3564_v8, %v3567_v30  ;;  %vm3769_vm13 = vcmp.lt.s32.totalorder %v13416_v36, 2  ;;  %v13423_v30 = vld [vmem:[#allocation144_spill] sm:$0xff] }
 0x575   : > { %v3356_v5 = vsel %vm3354_vm1, %v13415_v44, %v3355_v41  ;;  %v3771_v26 = vxor.u32 2147483648, %v13417_v46  ;;  %v3569_v57 = vsel %vm3558_vm9, nan, %v3568_v23  ;;  %vm3770_vm11 = vcmp.eq.s32.totalorder %v13416_v36, 0  ;;  %v13422_v41 = vld [vmem:[#allocation104_spill] sm:$0xff] }
 0x576   : > { %v3359_v15 = vsel %vm3357_vm4, %v3358_v50, %v13414_v31  ;;  %v3774_v21 = vxor.u32 2147483648, %v13418_v0  ;;  %v5574_v14 = vpack.c.bf16 %v3569_v57, %v3153_v53  ;;  %vm3773_vm15 = vcmp.eq.s32.totalorder %v13416_v36, 2  ;;  %v13425_v50 = vld [vmem:[#allocation147_spill] sm:$0xff] }
 0x577   : > { %v3360_v22 = vsel %vm3353_vm14, %v3356_v5, %v3359_v15  ;;  %v3772_v11 = vsel %vm3770_vm11, %v13418_v0, %v3771_v26  ;;  %vm4078_vm9 = vweird.f32 %v13419_v20  ;;  %vm4081_vm10 = vcmp.lt.s32.totalorder %v13420_v43, 2  ;;  %v13426_v5 = vld [vmem:[#allocation146_spill] sm:$0xff]  ;;  %v13427_v15 = vld [vmem:[#allocation109_spill] sm:$0xff] }
 0x578   : > { %v3361_v7 = vsel %vm3350_vm6, nan, %v3360_v22  ;;  %v3775_v63 = vsel %vm3773_vm15, %v3774_v21, %v13417_v46  ;;  %5658 = vmatpush1.bf16.msra.mxu0 %v5574_v14  ;;  %vm4082_vm3 = vcmp.eq.s32.totalorder %v13420_v43, 0  ;;  %v4083_v61 = vxor.u32 2147483648, %v11271_v1  ;;  %v13428_v22 = vld [vmem:[#allocation136_spill] sm:$0xff] }
 0x579   : > { %v3776_v55 = vsel %vm3769_vm13, %v3772_v11, %v3775_v63  ;;  %v4086_v38 = vxor.u32 2147483648, %v13421_v17  ;;  %vm4085_vm0 = vcmp.eq.s32.totalorder %v13420_v43, 2  ;;  %vm4494_vm6 = vweird.f32 %v10607_v27  ;;  %v13429_v11 = vld [vmem:[#allocation100_spill] sm:$0xff]  ;;  %v13431_v43 = vld [vmem:[#allocation139_spill] sm:$0xff] }
 0x57a   : > { %v3777_v18 = vsel %vm3766_vm8, nan, %v3776_v55  ;;  %vm4497_vm2 = vcmp.lt.s32.totalorder %v11411_v56, 2  ;;  %v4084_v13 = vsel %vm4082_vm3, %v13421_v17, %v4083_v61  ;;  %v4499_v54 = vxor.u32 2147483648, %v11596_v60  ;;  %v13430_v63 = vld [vmem:[#allocation140_spill] sm:$0xff]  ;;  %v13433_v17 = vld [vmem:[#allocation150_spill] sm:$0xff] }
 0x57b   : > { %v5576_v62 = vpack.c.bf16 %v3777_v18, %v3361_v7  ;;  %v4087_v8 = vsel %vm4085_vm0, %v4086_v38, %v11271_v1  ;;  %vm4498_vm12 = vcmp.eq.s32.totalorder %v11411_v56, 0  ;;  %vm4501_vm5 = vcmp.eq.s32.totalorder %v11411_v56, 2  ;;  %v13424_v1 = vld [vmem:[#allocation95_spill] sm:$0xff]  ;;  %v13434_v18 = vld [vmem:[#allocation116_spill] sm:$0xff] }
 0x57c   : > { %v4088_v53 = vsel %vm4081_vm10, %v4084_v13, %v4087_v8  ;;  %v4502_v24 = vxor.u32 2147483648, %v11454_v10  ;;  %v4500_v31 = vsel %vm4498_vm12, %v11454_v10, %v4499_v54  ;;  %vm4286_vm8 = vweird.f32 %v13422_v41  ;;  %v13435_v54 = vld [vmem:[#allocation149_spill] sm:$0xff] }
 0x57d   : > { %5771 = vmatpush1.bf16.msra.mxu1 %v5576_v62  ;;  %v4089_v32 = vsel %vm4078_vm9, nan, %v4088_v53  ;;  %vm4289_vm7 = vcmp.lt.s32.totalorder %v13423_v30, 2  ;;  %vm3974_vm14 = vweird.f32 %v13424_v1  ;;  %vm4290_vm1 = vcmp.eq.s32.totalorder %v13423_v30, 0 }
 0x57e   : > { %v4503_v44 = vsel %vm4501_vm5, %v4502_v24, %v11596_v60  ;;  %v4291_v23 = vxor.u32 2147483648, %v13425_v50  ;;  %v4294_v36 = vxor.u32 2147483648, %v13426_v5  ;;  %vm4293_vm4 = vcmp.eq.s32.totalorder %v13423_v30, 2 }
 0x57f   : > { %v4504_v46 = vsel %vm4497_vm2, %v4500_v31, %v4503_v44  ;;  %vm4702_vm13 = vweird.f32 %v10682_v40  ;;  %vm4705_vm11 = vcmp.lt.s32.totalorder %v11416_v19, 2  ;;  %v4707_v57 = vxor.u32 2147483648, %v11673_v12  ;;  %v13436_v40 = vld [vmem:[#allocation137_spill] sm:$0xff]  ;;  %v13437_v31 = vld [vmem:[#allocation142_spill] sm:$0xff] }
 0x580   : > { %v4505_v10 = vsel %vm4494_vm6, nan, %v4504_v46  ;;  %v4292_v60 = vsel %vm4290_vm1, %v13426_v5, %v4291_v23  ;;  %v4295_v26 = vsel %vm4293_vm4, %v4294_v36, %v13425_v50  ;;  %vm4390_vm15 = vweird.f32 %v13427_v15  ;;  %v13438_v44 = vld [vmem:[#allocation141_spill] sm:$0xff]  ;;  %v13439_v5 = vld [vmem:[#allocation148_spill] sm:$0xff] }
 0x581   : > { %v5579_v0 = vpack.c.bf16 %v4505_v10, %v4089_v32  ;;  %v4296_v56 = vsel %vm4289_vm7, %v4292_v60, %v4295_v26  ;;  %vm4706_vm9 = vcmp.eq.s32.totalorder %v11416_v19, 0  ;;  %v4710_v21 = vxor.u32 2147483648, %v11605_v58  ;;  %v13440_v36 = vld [vmem:[#allocation152_spill] sm:$0xff]  ;;  %v13441_v26 = vld [vmem:[#allocation151_spill] sm:$0xff] }
 0x582   : > { %v4297_v27 = vsel %vm4286_vm8, nan, %v4296_v56  ;;  %v4708_v14 = vsel %vm4706_vm9, %v11605_v58, %v4707_v57  ;;  %vm4709_vm10 = vcmp.eq.s32.totalorder %v11416_v19, 2  ;;  %vm3977_vm3 = vcmp.lt.s32.totalorder %v13428_v22, 2  ;;  %v13432_v58 = vld [vmem:[#allocation145_spill] sm:$0xff] }
 0x583   : > { %vm4182_vm0 = vweird.f32 %v13429_v11  ;;  %5659 = vmatprep.subr.bf16.mxu0 %v5579_v0  ;;  %v4711_v7 = vsel %vm4709_vm10, %v4710_v21, %v11673_v12  ;;  %vm3978_vm6 = vcmp.eq.s32.totalorder %v13428_v22, 0  ;;  %v3979_v20 = vxor.u32 2147483648, %v13430_v63 }
 0x584   : > { %v3982_v55 = vxor.u32 2147483648, %v13431_v43  ;;  %v4712_v61 = vsel %vm4705_vm11, %v4708_v14, %v4711_v7  ;;  %vm3981_vm2 = vcmp.eq.s32.totalorder %v13428_v22, 2  ;;  %vm4393_vm12 = vcmp.lt.s32.totalorder %v13432_v58, 2 }
 0x585   : > { %v4395_v38 = vxor.u32 2147483648, %v13433_v17  ;;  %vm4598_vm5 = vweird.f32 %v13434_v18  ;;  %v4713_v12 = vsel %vm4702_vm13, nan, %v4712_v61  ;;  %v3980_v62 = vsel %vm3978_vm6, %v13431_v43, %v3979_v20 }
 0x586   : > { %v3983_v13 = vsel %vm3981_vm2, %v3982_v55, %v13430_v63  ;;  %vm4394_vm8 = vcmp.eq.s32.totalorder %v13432_v58, 0  ;;  %v5581_v8 = vpack.c.bf16 %v4713_v12, %v4297_v27  ;;  %v4398_v24 = vxor.u32 2147483648, %v13435_v54 }
 0x587   : > { %v3984_v19 = vsel %vm3977_vm3, %v3980_v62, %v3983_v13  ;;  %v4396_v53 = vsel %vm4394_vm8, %v13435_v54, %v4395_v38  ;;  %vm4397_vm7 = vcmp.eq.s32.totalorder %v13432_v58, 2  ;;  %vm4185_vm1 = vcmp.lt.s32.totalorder %v13436_v40, 2  ;;  %v13444_v54 = vld [vmem:[#allocation155_spill] sm:$0xff] }
 0x588   : > { %v3985_v32 = vsel %vm3974_vm14, nan, %v3984_v19  ;;  %v4187_v41 = vxor.u32 2147483648, %v13437_v31  ;;  %5772 = vmatprep.subr.bf16.mxu1 %v5581_v8  ;;  %v4399_v30 = vsel %vm4397_vm7, %v4398_v24, %v13433_v17  ;;  %vm4186_vm4 = vcmp.eq.s32.totalorder %v13436_v40, 0 }
 0x589   : > { %vm4189_vm13 = vcmp.eq.s32.totalorder %v13436_v40, 2  ;;  %v4190_v50 = vxor.u32 2147483648, %v13438_v44  ;;  %v4400_v23 = vsel %vm4393_vm12, %v4396_v53, %v4399_v30  ;;  %vm4601_vm14 = vcmp.lt.s32.totalorder %v13439_v5, 2  ;;  %v13446_v30 = vld [vmem:[#allocation31_spill] sm:$0xff] }
 0x58a   : > { %v4188_v1 = vsel %vm4186_vm4, %v13438_v44, %v4187_v41  ;;  %v4603_v46 = vxor.u32 2147483648, %v13440_v36  ;;  %v4401_v10 = vsel %vm4390_vm15, nan, %v4400_v23  ;;  %vm4602_vm11 = vcmp.eq.s32.totalorder %v13439_v5, 0  ;;  %v13447_v23 = vld [vmem:[#allocation154_spill] sm:$0xff] }
 0x58b   : > { %v4191_v60 = vsel %vm4189_vm13, %v4190_v50, %v13437_v31  ;;  %v4606_v57 = vxor.u32 2147483648, %v13441_v26  ;;  %v5578_v0 = vpack.c.bf16 %v4401_v10, %v3985_v32  ;;  %vm4605_vm9 = vcmp.eq.s32.totalorder %v13439_v5, 2  ;;  %v13449_v5 = vld [vmem:[#allocation156_spill] sm:$0xff] }
 0x58c   : > { %v4192_v56 = vsel %vm4185_vm1, %v4188_v1, %v4191_v60  ;;  %v4604_v21 = vsel %vm4602_vm11, %v13441_v26, %v4603_v46  ;;  %vm4910_vm15 = vweird.f32 %v10937_v39  ;;  %vm4913_vm10 = vcmp.lt.s32.totalorder %v11662_v25, 2  ;;  %v13450_v60 = vld [vmem:[#allocation159_spill] sm:$0xff] }
 0x58d   : > { %v4193_v27 = vsel %vm4182_vm0, nan, %v4192_v56  ;;  %v4607_v15 = vsel %vm4605_vm9, %v4606_v57, %v13440_v36  ;;  %5660 = vmatpush1.bf16.msra.mxu0 %v5578_v0  ;;  %vm4914_vm3 = vcmp.eq.s32.totalorder %v11662_v25, 0  ;;  %v4915_v22 = vxor.u32 2147483648, %v11776_v34 }
 0x58e   : > { %v4608_v14 = vsel %vm4601_vm14, %v4604_v21, %v4607_v15  ;;  %v4918_v7 = vxor.u32 2147483648, %v11771_v35  ;;  %vm4917_vm6 = vcmp.eq.s32.totalorder %v11662_v25, 2  ;;  %vm5326_vm0 = vweird.f32 %v11277_v9 }
 0x58f   : > { %v4609_v63 = vsel %vm4598_vm5, nan, %v4608_v14  ;;  %vm5329_vm2 = vcmp.lt.s32.totalorder %v11939_v2, 2  ;;  %v4916_v20 = vsel %vm4914_vm3, %v11771_v35, %v4915_v22  ;;  %v5331_v55 = vxor.u32 2147483648, %v12083_v37  ;;  %v13442_v35 = vld [vmem:[#allocation125_spill] sm:$0xff]  ;;  %v13451_v22 = vld [vmem:[#allocation131_spill] sm:$0xff] }
 0x590   : > { %v5580_v11 = vpack.c.bf16 %v4609_v63, %v4193_v27  ;;  %v4919_v43 = vsel %vm4917_vm6, %v4918_v7, %v11776_v34  ;;  %vm5330_vm12 = vcmp.eq.s32.totalorder %v11939_v2, 0  ;;  %vm5333_vm8 = vcmp.eq.s32.totalorder %v11939_v2, 2 }
 0x591   : > { %v4920_v61 = vsel %vm4913_vm10, %v4916_v20, %v4919_v43  ;;  %v5334_v58 = vxor.u32 2147483648, %v12078_v42  ;;  %v5332_v17 = vsel %vm5330_vm12, %v12078_v42, %v5331_v55  ;;  %vm5118_vm5 = vweird.f32 %v10998_v33  ;;  %v13445_v33 = vld [vmem:[#allocation158_spill] sm:$0xff]  ;;  %v7064_v20 = vld [vmem:[%s12698_s2 + $0x18] sm:$0xff]   ;;  %v7065_v43 = vld [vmem:[%s12698_s2 + $0x20] sm:$0xff]  }
 0x592   : > { %5773 = vmatpush1.bf16.msra.mxu1 %v5580_v11  ;;  %v4921_v25 = vsel %vm4910_vm15, nan, %v4920_v61  ;;  %vm5121_vm7 = vcmp.lt.s32.totalorder %v11737_v29, 2  ;;  %vm4806_vm1 = vweird.f32 %v13442_v35  ;;  %vm5122_vm4 = vcmp.eq.s32.totalorder %v11737_v29, 0  ;;  %v7066_v55 = vld [vmem:[%s12698_s2 + $0x28] sm:$0xff]   ;;  %v7067_v61 = vld [vmem:[%s12698_s2 + $0x30] sm:$0xff]  }
 0x593   : > { %v5335_v34 = vsel %vm5333_vm8, %v5334_v58, %v12083_v37  ;;  %v5123_v38 = vxor.u32 2147483648, %v11834_v45  ;;  %v5126_v18 = vxor.u32 2147483648, %v11829_v16  ;;  %vm5125_vm13 = vcmp.eq.s32.totalorder %v11737_v29, 2  ;;  %v7068_v58 = vld [vmem:[%s12698_s2 + $0x38] sm:$0xff]  }
 0x594   : > { %v5336_v39 = vsel %vm5329_vm2, %v5332_v17, %v5335_v34  ;;  %vm5534_vm14 = vweird.f32 %v11339_v59  ;;  %vm5537_vm11 = vcmp.lt.s32.totalorder %v12041_v52, 2  ;;  %v5539_v62 = vxor.u32 2147483648, %v12193_v49  ;;  %v13448_v59 = vld [vmem:[#allocation157_spill] sm:$0xff] }
 0x595   : > { %v5337_v42 = vsel %vm5326_vm0, nan, %v5336_v39  ;;  %v5124_v37 = vsel %vm5122_vm4, %v11829_v16, %v5123_v38  ;;  %v5127_v12 = vsel %vm5125_vm13, %v5126_v18, %v11834_v45  ;;  %vm5222_vm9 = vweird.f32 %v11099_v6  ;;  %v13443_v16 = vld [vmem:[#allocation153_spill] sm:$0xff] }
 0x596   : > { %v5583_v13 = vpack.c.bf16 %v5337_v42, %v4921_v25  ;;  %v5128_v2 = vsel %vm5121_vm7, %v5124_v37, %v5127_v12  ;;  %vm5538_vm15 = vcmp.eq.s32.totalorder %v12041_v52, 0  ;;  %v5542_v8 = vxor.u32 2147483648, %v12183_v3  ;;  %v7061_v6 = vld [vmem:[%s12698_s2] sm:$0xff]  }
 0x597   : > { %v5129_v9 = vsel %vm5118_vm5, nan, %v5128_v2  ;;  %v5540_v19 = vsel %vm5538_vm15, %v12183_v3, %v5539_v62  ;;  %vm5541_vm10 = vcmp.eq.s32.totalorder %v12041_v52, 2  ;;  %vm4809_vm3 = vcmp.lt.s32.totalorder %v13443_v16, 2 }
 0x598   : > { %5661 = vmatprep.subr.bf16.mxu0 %v5583_v13  ;;  %v5543_v45 = vsel %vm5541_vm10, %v5542_v8, %v12193_v49  ;;  %vm4810_vm6 = vcmp.eq.s32.totalorder %v13443_v16, 0  ;;  %v4811_v29 = vxor.u32 2147483648, %v11690_v51  ;;  %v4814_v53 = vxor.u32 2147483648, %v13444_v54 }
 0x599   : > { %v5544_v24 = vsel %vm5537_vm11, %v5540_v19, %v5543_v45  ;;  %vm4813_vm0 = vcmp.eq.s32.totalorder %v13443_v16, 2  ;;  %vm5225_vm2 = vcmp.lt.s32.totalorder %v13445_v33, 2  ;;  %v5227_v3 = vxor.u32 2147483648, %v11904_v28 }
 0x59a   : > { %v5545_v32 = vsel %vm5534_vm14, nan, %v5544_v24  ;;  %v4812_v49 = vsel %vm4810_vm6, %v13444_v54, %v4811_v29  ;;  %v4815_v40 = vsel %vm4813_vm0, %v4814_v53, %v11690_v51  ;;  %vm5226_vm12 = vcmp.eq.s32.totalorder %v13445_v33, 0 }
 0x59b   : > { %v5585_v31 = vpack.c.bf16 %v5545_v32, %v5129_v9  ;;  %v4816_v41 = vsel %vm4809_vm3, %v4812_v49, %v4815_v40  ;;  %v5228_v52 = vsel %vm5226_vm12, %v13446_v30, %v5227_v3  ;;  %v5230_v44 = vxor.u32 2147483648, %v13446_v30 }
 0x59c   : > { %v4817_v50 = vsel %vm4806_vm1, nan, %v4816_v41  ;;  %vm5229_vm8 = vcmp.eq.s32.totalorder %v13445_v33, 2  ;;  %vm5017_vm5 = vcmp.lt.s32.totalorder %v13447_v23, 2  ;;  %v5019_v1 = vxor.u32 2147483648, %v13448_v59 }
 0x59d   : > { %5774 = vmatprep.subr.bf16.mxu1 %v5585_v31  ;;  %v5231_v51 = vsel %vm5229_vm8, %v5230_v44, %v11904_v28  ;;  %vm5018_vm7 = vcmp.eq.s32.totalorder %v13447_v23, 0  ;;  %vm5021_vm4 = vcmp.eq.s32.totalorder %v13447_v23, 2  ;;  %v5022_v36 = vxor.u32 2147483648, %v13449_v5 }
 0x59e   : > { %v5232_v46 = vsel %vm5225_vm2, %v5228_v52, %v5231_v51  ;;  %v5020_v10 = vsel %vm5018_vm7, %v13449_v5, %v5019_v1  ;;  %vm5434_vm1 = vcmp.eq.s32.totalorder %v13450_v60, 0  ;;  %v5435_v26 = vxor.u32 2147483648, %v11999_v47 }
 0x59f   : > { %v5233_v57 = vsel %vm5222_vm9, nan, %v5232_v46  ;;  %v5023_v28 = vsel %vm5021_vm4, %v5022_v36, %v13448_v59  ;;  %vm5437_vm13 = vcmp.eq.s32.totalorder %v13450_v60, 2  ;;  %v5438_v0 = vxor.u32 2147483648, %v11992_v4 }
 0x5a0   : > { %v5582_v56 = vpack.c.bf16 %v5233_v57, %v4817_v50  ;;  %v5024_v21 = vsel %vm5017_vm5, %v5020_v10, %v5023_v28  ;;  %v5436_v27 = vsel %vm5434_vm1, %v11992_v4, %v5435_v26  ;;  %vm5433_vm14 = vcmp.lt.s32.totalorder %v13450_v60, 2 }
 0x5a1   : > { %v5439_v15 = vsel %vm5437_vm13, %v5438_v0, %v11999_v47  ;;  %v7356_v14 = vmov 0   ;;  %vm5014_vm11 = vweird.f32 %v13451_v22  ;;  %vm5430_vm9 = vweird.f32 %v11184_v48  ;;  %v7062_v47 = vld [vmem:[%s12698_s2 + $0x8] sm:$0xff]   ;;  %v7063_v48 = vld [vmem:[%s12698_s2 + $0x10] sm:$0xff]  }
 0x5a2   : > { %5683 = vmatprep.mubr.bf16.mxu0 %v7356_v14  ;;  %5796 = vmatprep.mubr.bf16.mxu1 %v7356_v14  ;;  %v5440_v7 = vsel %vm5433_vm14, %v5436_v27, %v5439_v15  ;;  %vm5626_vm15 = vcmask 785408   ;;  %v5025_v4 = vsel %vm5014_vm11, nan, %v5024_v21 }
 0x5a3   : > { %5662 = vmatpush1.bf16.msra.mxu0 %v5582_v56  ;;  %v5441_v63 = vsel %vm5430_vm9, nan, %v5440_v7 }
 0x5a4   : > { %v5584_v11 = vpack.c.bf16 %v5441_v63, %v5025_v4 }
 0x5a6   : > { %6788 = vmatmul.mubr.msk.bf16.vlgmr.msra.gmra.mrb[24].mxu0 %vm5626_vm15, %v7061_v6  ;;  %5775 = vmatpush1.bf16.msra.mxu1 %v5584_v11 }
 0x5a7   : > { %5693 = vmatprep.mubr.bf16.mxu0 %v7356_v14 }
 0x5a9   : > { %6796 = vmatmul.mubr.msk.bf16.vlgmr.msra.gmra.mrb[24].mxu1 %vm5626_vm15, %v7061_v6 }
 0x5aa   : > { %5806 = vmatprep.mubr.bf16.mxu1 %v7356_v14 }
 0x5ae   : > { %6789 = vmatmul.mubr.msk.bf16.gmra.mrb[28].mxu0 %vm5626_vm15, %v7062_v47 }
 0x5af   : > { %5703 = vmatprep.mubr.bf16.mxu0 %v7356_v14 }
 0x5b1   : > { %6797 = vmatmul.mubr.msk.bf16.gmra.mrb[28].mxu1 %vm5626_vm15, %v7062_v47 }
 0x5b2   : > { %5816 = vmatprep.mubr.bf16.mxu1 %v7356_v14 }
 0x5b6   : > { %6790 = vmatmul.mubr.msk.bf16.gmra.mrb[32].mxu0 %vm5626_vm15, %v7063_v48 }
 0x5b7   : > { %5713 = vmatprep.mubr.bf16.mxu0 %v7356_v14 }
 0x5b9   : > { %6798 = vmatmul.mubr.msk.bf16.gmra.mrb[32].mxu1 %vm5626_vm15, %v7063_v48 }
 0x5ba   : > { %5826 = vmatprep.mubr.bf16.mxu1 %v7356_v14 }
 0x5be   : > { %6791 = vmatmul.mubr.msk.bf16.gmra.mrb[36].mxu0 %vm5626_vm15, %v7064_v20 }
 0x5bf   : > { %5723 = vmatprep.mubr.bf16.mxu0 %v7356_v14 }
 0x5c1   : > { %6799 = vmatmul.mubr.msk.bf16.gmra.mrb[36].mxu1 %vm5626_vm15, %v7064_v20 }
 0x5c2   : > { %5836 = vmatprep.mubr.bf16.mxu1 %v7356_v14 }
 0x5c6   : > { %6792 = vmatmul.mubr.msk.bf16.gmra.mrb[40].mxu0 %vm5626_vm15, %v7065_v43 }
 0x5c7   : > { %5733 = vmatprep.mubr.bf16.mxu0 %v7356_v14 }
 0x5c9   : > { %6800 = vmatmul.mubr.msk.bf16.gmra.mrb[40].mxu1 %vm5626_vm15, %v7065_v43 }
 0x5ca   : > { %5846 = vmatprep.mubr.bf16.mxu1 %v7356_v14 }
 0x5ce   : > { %6793 = vmatmul.mubr.msk.bf16.gmra.mrb[44].mxu0 %vm5626_vm15, %v7066_v55 }
 0x5cf   : > { %5743 = vmatprep.mubr.bf16.mxu0 %v7356_v14 }
 0x5d1   : > { %6801 = vmatmul.mubr.msk.bf16.gmra.mrb[44].mxu1 %vm5626_vm15, %v7066_v55 }
 0x5d2   : > { %5856 = vmatprep.mubr.bf16.mxu1 %v7356_v14 }
 0x5d6   : > { %6794 = vmatmul.mubr.msk.bf16.gmra.mrb[48].mxu0 %vm5626_vm15, %v7067_v61 }
 0x5d7   : > { %5753 = vmatprep.mubr.bf16.mxu0 %v7356_v14 }
 0x5d9   : > { %6802 = vmatmul.mubr.msk.bf16.gmra.mrb[48].mxu1 %vm5626_vm15, %v7067_v61 }
 0x5da   : > { %5866 = vmatprep.mubr.bf16.mxu1 %v7356_v14 }
 0x5de   : > { %6795 = vmatmul.mubr.msk.bf16.gmra.mrb[52].mxu0 %vm5626_vm15, %v7068_v58 }
 0x5df   : > { %6069 = vmatprep.mubr.bf16.mxu0 %v7356_v14 }
 0x5e1   : > { %6803 = vmatmul.mubr.msk.bf16.gmra.mrb[52].mxu1 %vm5626_vm15, %v7068_v58 }
 0x5e2   : > { %6182 = vmatprep.mubr.bf16.mxu1 %v7356_v14 }
 0x679   : > { %v5685_v25 = vpop.f32.mrb[24].mxu0 }
 0x67a   : > { %v5687_v17 = vpop.f32.mrb[25].mxu0  ;;  %v5877_v34 = vmax.f32 %v5685_v25, 0.0 }
 0x67b   : > { %v5689_v35 = vpop.f32.mrb[26].mxu0  ;;  %v5878_v42 = vmax.f32 %v5687_v17, 0.0 }
 0x67c   : > { %v5881_v38 = vmax.f32 %v5689_v35, 0.0  ;;  %v5691_v18 = vpop.f32.mrb[27].mxu0  ;;  %v5798_v39 = vpop.f32.mrb[24].mxu1 }
 0x67d   : > { %v5882_v37 = vmax.f32 %v5691_v18, 0.0  ;;  %v5800_v12 = vpop.f32.mrb[25].mxu1  ;;  %v5879_v8 = vmax.f32 %v5798_v39, 0.0 }
 0x67e   : > { %v5957_v62 = vpack.c.bf16 %v5881_v38, %v5877_v34  ;;  %v5802_v13 = vpop.f32.mrb[26].mxu1  ;;  %v5880_v16 = vmax.f32 %v5800_v12, 0.0 }
 0x67f   : > { %v5958_v2 = vpack.c.bf16 %v5882_v37, %v5878_v42  ;;  %v5883_v9 = vmax.f32 %v5802_v13, 0.0  ;;  %v5804_v19 = vpop.f32.mrb[27].mxu1 }
 0x680   : > { %v5884_v45 = vmax.f32 %v5804_v19, 0.0 }
 0x681   : > { %v5695_v29 = vpop.f32.mrb[28].mxu0  ;;  %6037 = vmatprep.subr.bf16.mxu0 %v5958_v2  ;;  %v5959_v54 = vpack.c.bf16 %v5883_v9, %v5879_v8 }
 0x682   : > { %v5697_v53 = vpop.f32.mrb[29].mxu0  ;;  %6038 = vmatpush1.bf16.msra.mxu0 %v5957_v62  ;;  %v5960_v24 = vpack.c.bf16 %v5884_v45, %v5880_v16  ;;  %v5885_v3 = vmax.f32 %v5695_v29, 0.0 }
 0x683   : > { %v5699_v33 = vpop.f32.mrb[30].mxu0  ;;  %v5886_v31 = vmax.f32 %v5697_v53, 0.0 }
 0x684   : > { %v5889_v32 = vmax.f32 %v5699_v33, 0.0  ;;  %v5701_v49 = vpop.f32.mrb[31].mxu0  ;;  %v5808_v40 = vpop.f32.mrb[28].mxu1  ;;  %6150 = vmatprep.subr.bf16.mxu1 %v5960_v24 }
 0x685   : > { %v5890_v41 = vmax.f32 %v5701_v49, 0.0  ;;  %v5810_v30 = vpop.f32.mrb[29].mxu1  ;;  %6151 = vmatpush1.bf16.msra.mxu1 %v5959_v54  ;;  %v5887_v23 = vmax.f32 %v5808_v40, 0.0 }
 0x686   : > { %v5961_v52 = vpack.c.bf16 %v5889_v32, %v5885_v3  ;;  %v5812_v44 = vpop.f32.mrb[30].mxu1  ;;  %v5888_v51 = vmax.f32 %v5810_v30, 0.0 }
 0x687   : > { %v5962_v50 = vpack.c.bf16 %v5890_v41, %v5886_v31  ;;  %v5891_v59 = vmax.f32 %v5812_v44, 0.0  ;;  %v5814_v1 = vpop.f32.mrb[31].mxu1 }
 0x688   : > { %v5892_v5 = vmax.f32 %v5814_v1, 0.0 }
 0x689   : > { %v5705_v36 = vpop.f32.mrb[32].mxu0  ;;  %6039 = vmatprep.subr.bf16.mxu0 %v5962_v50  ;;  %v5963_v46 = vpack.c.bf16 %v5891_v59, %v5887_v23 }
 0x68a   : > { %v5707_v10 = vpop.f32.mrb[33].mxu0  ;;  %6040 = vmatpush1.bf16.msra.mxu0 %v5961_v52  ;;  %v5964_v60 = vpack.c.bf16 %v5892_v5, %v5888_v51  ;;  %v5893_v57 = vmax.f32 %v5705_v36, 0.0 }
 0x68b   : > { %v5709_v26 = vpop.f32.mrb[34].mxu0  ;;  %v5894_v21 = vmax.f32 %v5707_v10, 0.0 }
 0x68c   : > { %v5897_v28 = vmax.f32 %v5709_v26, 0.0  ;;  %v5711_v0 = vpop.f32.mrb[35].mxu0  ;;  %v5818_v56 = vpop.f32.mrb[32].mxu1  ;;  %6152 = vmatprep.subr.bf16.mxu1 %v5964_v60 }
 0x68d   : > { %v5898_v27 = vmax.f32 %v5711_v0, 0.0  ;;  %v5820_v15 = vpop.f32.mrb[33].mxu1  ;;  %6153 = vmatpush1.bf16.msra.mxu1 %v5963_v46  ;;  %v5895_v4 = vmax.f32 %v5818_v56, 0.0 }
 0x68e   : > { %v5965_v6 = vpack.c.bf16 %v5897_v28, %v5893_v57  ;;  %v5822_v22 = vpop.f32.mrb[34].mxu1  ;;  %v5896_v47 = vmax.f32 %v5820_v15, 0.0 }
 0x68f   : > { %v5966_v7 = vpack.c.bf16 %v5898_v27, %v5894_v21  ;;  %v5899_v63 = vmax.f32 %v5822_v22, 0.0  ;;  %v5824_v11 = vpop.f32.mrb[35].mxu1 }
 0x690   : > { %v5900_v48 = vmax.f32 %v5824_v11, 0.0 }
 0x691   : > { %v5715_v20 = vpop.f32.mrb[36].mxu0  ;;  %6041 = vmatprep.subr.bf16.mxu0 %v5966_v7  ;;  %v5967_v43 = vpack.c.bf16 %v5899_v63, %v5895_v4 }
 0x692   : > { %v5717_v55 = vpop.f32.mrb[37].mxu0  ;;  %6042 = vmatpush1.bf16.msra.mxu0 %v5965_v6  ;;  %v5968_v61 = vpack.c.bf16 %v5900_v48, %v5896_v47  ;;  %v5901_v25 = vmax.f32 %v5715_v20, 0.0 }
 0x693   : > { %v5719_v58 = vpop.f32.mrb[38].mxu0  ;;  %v5902_v38 = vmax.f32 %v5717_v55, 0.0 }
 0x694   : > { %v5905_v17 = vmax.f32 %v5719_v58, 0.0  ;;  %v5721_v35 = vpop.f32.mrb[39].mxu0  ;;  %v5828_v34 = vpop.f32.mrb[36].mxu1  ;;  %6154 = vmatprep.subr.bf16.mxu1 %v5968_v61 }
 0x695   : > { %v5906_v18 = vmax.f32 %v5721_v35, 0.0  ;;  %v5830_v39 = vpop.f32.mrb[37].mxu1  ;;  %6155 = vmatpush1.bf16.msra.mxu1 %v5967_v43  ;;  %v5903_v62 = vmax.f32 %v5828_v34, 0.0 }
 0x696   : > { %v5969_v42 = vpack.c.bf16 %v5905_v17, %v5901_v25  ;;  %v5832_v37 = vpop.f32.mrb[38].mxu1  ;;  %v5904_v8 = vmax.f32 %v5830_v39, 0.0 }
 0x697   : > { %v5970_v12 = vpack.c.bf16 %v5906_v18, %v5902_v38  ;;  %v5907_v13 = vmax.f32 %v5832_v37, 0.0  ;;  %v5834_v2 = vpop.f32.mrb[39].mxu1 }
 0x698   : > { %v5908_v9 = vmax.f32 %v5834_v2, 0.0 }
 0x699   : > { %v5725_v19 = vpop.f32.mrb[40].mxu0  ;;  %6043 = vmatprep.subr.bf16.mxu0 %v5970_v12  ;;  %v5971_v16 = vpack.c.bf16 %v5907_v13, %v5903_v62 }
 0x69a   : > { %v5727_v45 = vpop.f32.mrb[41].mxu0  ;;  %6044 = vmatpush1.bf16.msra.mxu0 %v5969_v42  ;;  %v5972_v29 = vpack.c.bf16 %v5908_v9, %v5904_v8  ;;  %v5909_v53 = vmax.f32 %v5725_v19, 0.0 }
 0x69b   : > { %v5729_v54 = vpop.f32.mrb[42].mxu0  ;;  %v5910_v32 = vmax.f32 %v5727_v45, 0.0 }
 0x69c   : > { %v5913_v24 = vmax.f32 %v5729_v54, 0.0  ;;  %v5731_v33 = vpop.f32.mrb[43].mxu0  ;;  %v5838_v3 = vpop.f32.mrb[40].mxu1  ;;  %6156 = vmatprep.subr.bf16.mxu1 %v5972_v29 }
 0x69d   : > { %v5914_v49 = vmax.f32 %v5731_v33, 0.0  ;;  %v5840_v40 = vpop.f32.mrb[41].mxu1  ;;  %6157 = vmatpush1.bf16.msra.mxu1 %v5971_v16  ;;  %v5911_v52 = vmax.f32 %v5838_v3, 0.0 }
 0x69e   : > { %v5973_v31 = vpack.c.bf16 %v5913_v24, %v5909_v53  ;;  %v5842_v41 = vpop.f32.mrb[42].mxu1  ;;  %v5912_v23 = vmax.f32 %v5840_v40, 0.0 }
 0x69f   : > { %v5974_v30 = vpack.c.bf16 %v5914_v49, %v5910_v32  ;;  %v5915_v44 = vmax.f32 %v5842_v41, 0.0  ;;  %v5844_v50 = vpop.f32.mrb[43].mxu1 }
 0x6a0   : > { %v5916_v59 = vmax.f32 %v5844_v50, 0.0  ;;  %v7069_v50 = vld [vmem:[%s12699_s3] sm:$0xff]  }
 0x6a1   : > { %v5735_v1 = vpop.f32.mrb[44].mxu0  ;;  %6045 = vmatprep.subr.bf16.mxu0 %v5974_v30  ;;  %v5975_v51 = vpack.c.bf16 %v5915_v44, %v5911_v52 }
 0x6a2   : > { %v5737_v5 = vpop.f32.mrb[45].mxu0  ;;  %6046 = vmatpush1.bf16.msra.mxu0 %v5973_v31  ;;  %v5976_v36 = vpack.c.bf16 %v5916_v59, %v5912_v23  ;;  %v5917_v10 = vmax.f32 %v5735_v1, 0.0  ;;  %v7070_v1 = vld [vmem:[%s12699_s3 + $0x8] sm:$0xff]  }
 0x6a3   : > { %v5739_v46 = vpop.f32.mrb[46].mxu0  ;;  %v5918_v28 = vmax.f32 %v5737_v5, 0.0  ;;  %v7072_v5 = vld [vmem:[%s12699_s3 + $0x18] sm:$0xff]  }
 0x6a4   : > { %v5921_v60 = vmax.f32 %v5739_v46, 0.0  ;;  %v5741_v26 = vpop.f32.mrb[47].mxu0  ;;  %v5848_v57 = vpop.f32.mrb[44].mxu1  ;;  %6158 = vmatprep.subr.bf16.mxu1 %v5976_v36  ;;  %v7073_v36 = vld [vmem:[%s12699_s3 + $0x20] sm:$0xff]   ;;  %v7074_v46 = vld [vmem:[%s12699_s3 + $0x28] sm:$0xff]  }
 0x6a5   : > { %v5922_v0 = vmax.f32 %v5741_v26, 0.0  ;;  %v5850_v56 = vpop.f32.mrb[45].mxu1  ;;  %6159 = vmatpush1.bf16.msra.mxu1 %v5975_v51  ;;  %v5919_v6 = vmax.f32 %v5848_v57, 0.0  ;;  %v7071_v51 = vld [vmem:[%s12699_s3 + $0x10] sm:$0xff]  }
 0x6a6   : > { %v5977_v21 = vpack.c.bf16 %v5921_v60, %v5917_v10  ;;  %v5852_v27 = vpop.f32.mrb[46].mxu1  ;;  %v5920_v4 = vmax.f32 %v5850_v56, 0.0  ;;  %v7075_v10 = vld [vmem:[%s12699_s3 + $0x30] sm:$0xff]   ;;  %v7076_v60 = vld [vmem:[%s12699_s3 + $0x38] sm:$0xff]  }
 0x6a7   : > { %v5978_v15 = vpack.c.bf16 %v5922_v0, %v5918_v28  ;;  %v5923_v22 = vmax.f32 %v5852_v27, 0.0  ;;  %v5854_v7 = vpop.f32.mrb[47].mxu1 }
 0x6a8   : > { %v5924_v63 = vmax.f32 %v5854_v7, 0.0 }
 0x6a9   : > { %v5745_v11 = vpop.f32.mrb[48].mxu0  ;;  %6047 = vmatprep.subr.bf16.mxu0 %v5978_v15  ;;  %v5979_v47 = vpack.c.bf16 %v5923_v22, %v5919_v6 }
 0x6aa   : > { %v5747_v48 = vpop.f32.mrb[49].mxu0  ;;  %6048 = vmatpush1.bf16.msra.mxu0 %v5977_v21  ;;  %v5980_v20 = vpack.c.bf16 %v5924_v63, %v5920_v4  ;;  %v5925_v55 = vmax.f32 %v5745_v11, 0.0 }
 0x6ab   : > { %v5749_v43 = vpop.f32.mrb[50].mxu0  ;;  %v5926_v17 = vmax.f32 %v5747_v48, 0.0 }
 0x6ac   : > { %v5929_v61 = vmax.f32 %v5749_v43, 0.0  ;;  %v5751_v58 = vpop.f32.mrb[51].mxu0  ;;  %v5858_v25 = vpop.f32.mrb[48].mxu1  ;;  %6160 = vmatprep.subr.bf16.mxu1 %v5980_v20 }
 0x6ad   : > { %v5930_v35 = vmax.f32 %v5751_v58, 0.0  ;;  %v5860_v34 = vpop.f32.mrb[49].mxu1  ;;  %6161 = vmatpush1.bf16.msra.mxu1 %v5979_v47  ;;  %v5927_v42 = vmax.f32 %v5858_v25, 0.0 }
 0x6ae   : > { %v5981_v38 = vpack.c.bf16 %v5929_v61, %v5925_v55  ;;  %v5862_v18 = vpop.f32.mrb[50].mxu1  ;;  %v5928_v62 = vmax.f32 %v5860_v34, 0.0 }
 0x6af   : > { %v5982_v39 = vpack.c.bf16 %v5930_v35, %v5926_v17  ;;  %v5931_v37 = vmax.f32 %v5862_v18, 0.0  ;;  %v5864_v12 = vpop.f32.mrb[51].mxu1 }
 0x6b0   : > { %v5932_v13 = vmax.f32 %v5864_v12, 0.0 }
 0x6b1   : > { %v5755_v2 = vpop.f32.mrb[52].mxu0  ;;  %6049 = vmatprep.subr.bf16.mxu0 %v5982_v39  ;;  %v5983_v8 = vpack.c.bf16 %v5931_v37, %v5927_v42 }
 0x6b2   : > { %v5757_v9 = vpop.f32.mrb[53].mxu0  ;;  %6050 = vmatpush1.bf16.msra.mxu0 %v5981_v38  ;;  %v5984_v19 = vpack.c.bf16 %v5932_v13, %v5928_v62  ;;  %v5933_v45 = vmax.f32 %v5755_v2, 0.0 }
 0x6b3   : > { %v5759_v16 = vpop.f32.mrb[54].mxu0  ;;  %v5934_v24 = vmax.f32 %v5757_v9, 0.0 }
 0x6b4   : > { %v5937_v29 = vmax.f32 %v5759_v16, 0.0  ;;  %v5761_v54 = vpop.f32.mrb[55].mxu0  ;;  %v5868_v53 = vpop.f32.mrb[52].mxu1  ;;  %6162 = vmatprep.subr.bf16.mxu1 %v5984_v19 }
 0x6b5   : > { %v5938_v33 = vmax.f32 %v5761_v54, 0.0  ;;  %v5870_v3 = vpop.f32.mrb[53].mxu1  ;;  %6163 = vmatpush1.bf16.msra.mxu1 %v5983_v8  ;;  %v5935_v31 = vmax.f32 %v5868_v53, 0.0 }
 0x6b6   : > { %v5985_v32 = vpack.c.bf16 %v5937_v29, %v5933_v45  ;;  %v5872_v49 = vpop.f32.mrb[54].mxu1  ;;  %v5936_v52 = vmax.f32 %v5870_v3, 0.0 }
 0x6b7   : > { %v5986_v40 = vpack.c.bf16 %v5938_v33, %v5934_v24  ;;  %v5939_v41 = vmax.f32 %v5872_v49, 0.0  ;;  %v5874_v30 = vpop.f32.mrb[55].mxu1 }
 0x6b8   : > { %v5940_v44 = vmax.f32 %v5874_v30, 0.0 }
 0x6b9   : > { %6051 = vmatprep.subr.bf16.mxu0 %v5986_v40  ;;  %v5987_v23 = vpack.c.bf16 %v5939_v41, %v5935_v31 }
 0x6ba   : > { %6052 = vmatpush1.bf16.msra.mxu0 %v5985_v32  ;;  %v5988_v59 = vpack.c.bf16 %v5940_v44, %v5936_v52 }
 0x6bc   : > { %6164 = vmatprep.subr.bf16.mxu1 %v5988_v59 }
 0x6bd   : > { %6070 = vmatmul.mubr.bf16.vlgmr.msra.gmra.mrb[56].mxu0 %v7069_v50  ;;  %6165 = vmatpush1.bf16.msra.mxu1 %v5987_v23 }
 0x6be   : > { %6079 = vmatprep.mubr.bf16.mxu0 %v7356_v14 }
 0x6c0   : > { %6183 = vmatmul.mubr.bf16.vlgmr.msra.gmra.mrb[56].mxu1 %v7069_v50 }
 0x6c1   : > { %6192 = vmatprep.mubr.bf16.mxu1 %v7356_v14 }
 0x6c5   : > { %6080 = vmatmul.mubr.bf16.gmra.mrb[60].mxu0 %v7070_v1 }
 0x6c6   : > { %6089 = vmatprep.mubr.bf16.mxu0 %v7356_v14 }
 0x6c8   : > { %6193 = vmatmul.mubr.bf16.gmra.mrb[60].mxu1 %v7070_v1 }
 0x6c9   : > { %6202 = vmatprep.mubr.bf16.mxu1 %v7356_v14 }
 0x6cd   : > { %6090 = vmatmul.mubr.bf16.gmra.mrb[64].mxu0 %v7071_v51 }
 0x6ce   : > { %6099 = vmatprep.mubr.bf16.mxu0 %v7356_v14 }
 0x6d0   : > { %6203 = vmatmul.mubr.bf16.gmra.mrb[64].mxu1 %v7071_v51 }
 0x6d1   : > { %6212 = vmatprep.mubr.bf16.mxu1 %v7356_v14 }
 0x6d5   : > { %6100 = vmatmul.mubr.bf16.gmra.mrb[68].mxu0 %v7072_v5 }
 0x6d6   : > { %6109 = vmatprep.mubr.bf16.mxu0 %v7356_v14 }
 0x6d8   : > { %6213 = vmatmul.mubr.bf16.gmra.mrb[68].mxu1 %v7072_v5 }
 0x6d9   : > { %6222 = vmatprep.mubr.bf16.mxu1 %v7356_v14 }
 0x6dd   : > { %6110 = vmatmul.mubr.bf16.gmra.mrb[72].mxu0 %v7073_v36 }
 0x6de   : > { %6119 = vmatprep.mubr.bf16.mxu0 %v7356_v14 }
 0x6e0   : > { %6223 = vmatmul.mubr.bf16.gmra.mrb[72].mxu1 %v7073_v36 }
 0x6e1   : > { %6232 = vmatprep.mubr.bf16.mxu1 %v7356_v14 }
 0x6e5   : > { %6120 = vmatmul.mubr.bf16.gmra.mrb[76].mxu0 %v7074_v46 }
 0x6e6   : > { %6129 = vmatprep.mubr.bf16.mxu0 %v7356_v14 }
 0x6e8   : > { %6233 = vmatmul.mubr.bf16.gmra.mrb[76].mxu1 %v7074_v46 }
 0x6e9   : > { %6242 = vmatprep.mubr.bf16.mxu1 %v7356_v14 }
 0x6ed   : > { %6130 = vmatmul.mubr.bf16.gmra.mrb[80].mxu0 %v7075_v10 }
 0x6ee   : > { %6139 = vmatprep.mubr.bf16.mxu0 %v7356_v14 }
 0x6f0   : > { %6243 = vmatmul.mubr.bf16.gmra.mrb[80].mxu1 %v7075_v10 }
 0x6f1   : > { %6252 = vmatprep.mubr.bf16.mxu1 %v7356_v14 }
 0x6f5   : > { %6140 = vmatmul.mubr.bf16.gmra.mrb[84].mxu0 %v7076_v60 }
 0x6f6   : > { %6392 = vmatprep.mubr.bf16.mxu0 %v7356_v14 }
 0x6f8   : > { %6253 = vmatmul.mubr.bf16.gmra.mrb[84].mxu1 %v7076_v60 }
 0x6f9   : > { %6433 = vmatprep.mubr.bf16.mxu1 %v7356_v14 }
 0x790   : > { %v6071_v26 = vpop.f32.mrb[56].mxu0 }
 0x791   : > { %v6073_v57 = vpop.f32.mrb[57].mxu0  ;;  %v6263_v0 = vmax.f32 %v6071_v26, 0.0 }
 0x792   : > { %v6075_v28 = vpop.f32.mrb[58].mxu0  ;;  %v6264_v15 = vmax.f32 %v6073_v57, 0.0 }
 0x793   : > { %v6267_v56 = vmax.f32 %v6075_v28, 0.0  ;;  %v6077_v21 = vpop.f32.mrb[59].mxu0  ;;  %v6184_v27 = vpop.f32.mrb[56].mxu1 }
 0x794   : > { %v6268_v6 = vmax.f32 %v6077_v21, 0.0  ;;  %v6186_v22 = vpop.f32.mrb[57].mxu1  ;;  %v6265_v11 = vmax.f32 %v6184_v27, 0.0 }
 0x795   : > { %v6328_v7 = vpack.c.bf16 %v6267_v56, %v6263_v0  ;;  %v6188_v4 = vpop.f32.mrb[58].mxu1  ;;  %v6266_v20 = vmax.f32 %v6186_v22, 0.0 }
 0x796   : > { %v6329_v63 = vpack.c.bf16 %v6268_v6, %v6264_v15  ;;  %v6269_v47 = vmax.f32 %v6188_v4, 0.0  ;;  %v6190_v48 = vpop.f32.mrb[59].mxu1 }
 0x797   : > { %v6270_v43 = vmax.f32 %v6190_v48, 0.0 }
 0x798   : > { %v6081_v55 = vpop.f32.mrb[60].mxu0  ;;  %6360 = vmatprep.subr.bf16.mxu0 %v6329_v63  ;;  %v6330_v14 = vpack.c.bf16 %v6269_v47, %v6265_v11 }
 0x799   : > { %v6083_v61 = vpop.f32.mrb[61].mxu0  ;;  %6361 = vmatpush1.bf16.msra.mxu0 %v6328_v7  ;;  %v6331_v58 = vpack.c.bf16 %v6270_v43, %v6266_v20  ;;  %v6271_v17 = vmax.f32 %v6081_v55, 0.0 }
 0x79a   : > { %v6085_v25 = vpop.f32.mrb[62].mxu0  ;;  %v6272_v18 = vmax.f32 %v6083_v61, 0.0 }
 0x79b   : > { %v6275_v35 = vmax.f32 %v6085_v25, 0.0  ;;  %v6087_v34 = vpop.f32.mrb[63].mxu0  ;;  %v6194_v38 = vpop.f32.mrb[60].mxu1  ;;  %6401 = vmatprep.subr.bf16.mxu1 %v6331_v58 }
 0x79c   : > { %v6276_v39 = vmax.f32 %v6087_v34, 0.0  ;;  %v6196_v42 = vpop.f32.mrb[61].mxu1  ;;  %6402 = vmatpush1.bf16.msra.mxu1 %v6330_v14  ;;  %v6273_v13 = vmax.f32 %v6194_v38, 0.0 }
 0x79d   : > { %v6332_v37 = vpack.c.bf16 %v6275_v35, %v6271_v17  ;;  %v6198_v12 = vpop.f32.mrb[62].mxu1  ;;  %v6274_v9 = vmax.f32 %v6196_v42, 0.0 }
 0x79e   : > { %v6333_v62 = vpack.c.bf16 %v6276_v39, %v6272_v18  ;;  %v6277_v2 = vmax.f32 %v6198_v12, 0.0  ;;  %v6200_v8 = vpop.f32.mrb[63].mxu1 }
 0x79f   : > { %v6278_v19 = vmax.f32 %v6200_v8, 0.0 }
 0x7a0   : > { %v6091_v16 = vpop.f32.mrb[64].mxu0  ;;  %6362 = vmatprep.subr.bf16.mxu0 %v6333_v62  ;;  %v6334_v45 = vpack.c.bf16 %v6277_v2, %v6273_v13 }
 0x7a1   : > { %v6093_v29 = vpop.f32.mrb[65].mxu0  ;;  %6363 = vmatpush1.bf16.msra.mxu0 %v6332_v37  ;;  %v6335_v54 = vpack.c.bf16 %v6278_v19, %v6274_v9  ;;  %v6279_v24 = vmax.f32 %v6091_v16, 0.0 }
 0x7a2   : > { %v6095_v53 = vpop.f32.mrb[66].mxu0  ;;  %v6280_v49 = vmax.f32 %v6093_v29, 0.0 }
 0x7a3   : > { %v6283_v33 = vmax.f32 %v6095_v53, 0.0  ;;  %v6097_v3 = vpop.f32.mrb[67].mxu0  ;;  %v6204_v32 = vpop.f32.mrb[64].mxu1  ;;  %6403 = vmatprep.subr.bf16.mxu1 %v6335_v54 }
 0x7a4   : > { %v6284_v40 = vmax.f32 %v6097_v3, 0.0  ;;  %v6206_v31 = vpop.f32.mrb[65].mxu1  ;;  %6404 = vmatpush1.bf16.msra.mxu1 %v6334_v45  ;;  %v6281_v44 = vmax.f32 %v6204_v32, 0.0 }
 0x7a5   : > { %v6336_v41 = vpack.c.bf16 %v6283_v33, %v6279_v24  ;;  %v6208_v30 = vpop.f32.mrb[66].mxu1  ;;  %v6282_v59 = vmax.f32 %v6206_v31, 0.0 }
 0x7a6   : > { %v6337_v52 = vpack.c.bf16 %v6284_v40, %v6280_v49  ;;  %v6285_v50 = vmax.f32 %v6208_v30, 0.0  ;;  %v6210_v23 = vpop.f32.mrb[67].mxu1 }
 0x7a7   : > { %v6286_v1 = vmax.f32 %v6210_v23, 0.0 }
 0x7a8   : > { %v6101_v51 = vpop.f32.mrb[68].mxu0  ;;  %6364 = vmatprep.subr.bf16.mxu0 %v6337_v52  ;;  %v6338_v5 = vpack.c.bf16 %v6285_v50, %v6281_v44 }
 0x7a9   : > { %v6103_v36 = vpop.f32.mrb[69].mxu0  ;;  %6365 = vmatpush1.bf16.msra.mxu0 %v6336_v41  ;;  %v6339_v46 = vpack.c.bf16 %v6286_v1, %v6282_v59  ;;  %v6287_v60 = vmax.f32 %v6101_v51, 0.0 }
 0x7aa   : > { %v6105_v10 = vpop.f32.mrb[70].mxu0  ;;  %v6288_v0 = vmax.f32 %v6103_v36, 0.0 }
 0x7ab   : > { %v6291_v26 = vmax.f32 %v6105_v10, 0.0  ;;  %v6107_v57 = vpop.f32.mrb[71].mxu0  ;;  %v6214_v28 = vpop.f32.mrb[68].mxu1  ;;  %6405 = vmatprep.subr.bf16.mxu1 %v6339_v46 }
 0x7ac   : > { %v6292_v56 = vmax.f32 %v6107_v57, 0.0  ;;  %v6216_v21 = vpop.f32.mrb[69].mxu1  ;;  %6406 = vmatpush1.bf16.msra.mxu1 %v6338_v5  ;;  %v6289_v22 = vmax.f32 %v6214_v28, 0.0 }
 0x7ad   : > { %v6340_v27 = vpack.c.bf16 %v6291_v26, %v6287_v60  ;;  %v6218_v15 = vpop.f32.mrb[70].mxu1  ;;  %v6290_v63 = vmax.f32 %v6216_v21, 0.0 }
 0x7ae   : > { %v6341_v6 = vpack.c.bf16 %v6292_v56, %v6288_v0  ;;  %v6293_v7 = vmax.f32 %v6218_v15, 0.0  ;;  %v6220_v4 = vpop.f32.mrb[71].mxu1 }
 0x7af   : > { %v6294_v11 = vmax.f32 %v6220_v4, 0.0 }
 0x7b0   : > { %v6111_v47 = vpop.f32.mrb[72].mxu0  ;;  %6366 = vmatprep.subr.bf16.mxu0 %v6341_v6  ;;  %v6342_v48 = vpack.c.bf16 %v6293_v7, %v6289_v22 }
 0x7b1   : > { %v6113_v20 = vpop.f32.mrb[73].mxu0  ;;  %6367 = vmatpush1.bf16.msra.mxu0 %v6340_v27  ;;  %v6343_v43 = vpack.c.bf16 %v6294_v11, %v6290_v63  ;;  %v6295_v14 = vmax.f32 %v6111_v47, 0.0 }
 0x7b2   : > { %v6115_v55 = vpop.f32.mrb[74].mxu0  ;;  %v6296_v17 = vmax.f32 %v6113_v20, 0.0 }
 0x7b3   : > { %v6299_v61 = vmax.f32 %v6115_v55, 0.0  ;;  %v6117_v58 = vpop.f32.mrb[75].mxu0  ;;  %v6224_v25 = vpop.f32.mrb[72].mxu1  ;;  %6407 = vmatprep.subr.bf16.mxu1 %v6343_v43 }
 0x7b4   : > { %v6300_v35 = vmax.f32 %v6117_v58, 0.0  ;;  %v6226_v34 = vpop.f32.mrb[73].mxu1  ;;  %6408 = vmatpush1.bf16.msra.mxu1 %v6342_v48  ;;  %v6297_v42 = vmax.f32 %v6224_v25, 0.0 }
 0x7b5   : > { %v6344_v38 = vpack.c.bf16 %v6299_v61, %v6295_v14  ;;  %v6228_v18 = vpop.f32.mrb[74].mxu1  ;;  %v6298_v62 = vmax.f32 %v6226_v34, 0.0 }
 0x7b6   : > { %v6345_v39 = vpack.c.bf16 %v6300_v35, %v6296_v17  ;;  %v6301_v37 = vmax.f32 %v6228_v18, 0.0  ;;  %v6230_v12 = vpop.f32.mrb[75].mxu1 }
 0x7b7   : > { %v6302_v13 = vmax.f32 %v6230_v12, 0.0  ;;  %v6327_v12 = vld [vmem:[%s12700_s4] sm:$0x3] }
 0x7b8   : > { %v6121_v2 = vpop.f32.mrb[76].mxu0  ;;  %6368 = vmatprep.subr.bf16.mxu0 %v6345_v39  ;;  %v6346_v8 = vpack.c.bf16 %v6301_v37, %v6297_v42 }
 0x7b9   : > { %v6123_v9 = vpop.f32.mrb[77].mxu0  ;;  %6369 = vmatpush1.bf16.msra.mxu0 %v6344_v38  ;;  %v6347_v19 = vpack.c.bf16 %v6302_v13, %v6298_v62  ;;  %v6303_v45 = vmax.f32 %v6121_v2, 0.0 }
 0x7ba   : > { %v6125_v16 = vpop.f32.mrb[78].mxu0  ;;  %v6304_v24 = vmax.f32 %v6123_v9, 0.0 }
 0x7bb   : > { %v6307_v29 = vmax.f32 %v6125_v16, 0.0  ;;  %v6127_v54 = vpop.f32.mrb[79].mxu0  ;;  %v6234_v53 = vpop.f32.mrb[76].mxu1  ;;  %6409 = vmatprep.subr.bf16.mxu1 %v6347_v19 }
 0x7bc   : > { %v6308_v33 = vmax.f32 %v6127_v54, 0.0  ;;  %v6236_v3 = vpop.f32.mrb[77].mxu1  ;;  %6410 = vmatpush1.bf16.msra.mxu1 %v6346_v8  ;;  %v6305_v31 = vmax.f32 %v6234_v53, 0.0 }
 0x7bd   : > { %v6348_v32 = vpack.c.bf16 %v6307_v29, %v6303_v45  ;;  %v6238_v49 = vpop.f32.mrb[78].mxu1  ;;  %v6306_v52 = vmax.f32 %v6236_v3, 0.0 }
 0x7be   : > { %v6349_v40 = vpack.c.bf16 %v6308_v33, %v6304_v24  ;;  %v6309_v41 = vmax.f32 %v6238_v49, 0.0  ;;  %v6240_v30 = vpop.f32.mrb[79].mxu1 }
 0x7bf   : > { %v6310_v44 = vmax.f32 %v6240_v30, 0.0 }
 0x7c0   : > { %v6131_v50 = vpop.f32.mrb[80].mxu0  ;;  %6370 = vmatprep.subr.bf16.mxu0 %v6349_v40  ;;  %v6350_v23 = vpack.c.bf16 %v6309_v41, %v6305_v31  ;;  %v6442_v31 = vlaneseq }
 0x7c1   : > { %v6133_v59 = vpop.f32.mrb[81].mxu0  ;;  %6371 = vmatpush1.bf16.msra.mxu0 %v6348_v32  ;;  %v6351_v1 = vpack.c.bf16 %v6310_v44, %v6306_v52  ;;  %v6311_v5 = vmax.f32 %v6131_v50, 0.0 }
 0x7c2   : > { %v6135_v51 = vpop.f32.mrb[82].mxu0  ;;  %v6312_v60 = vmax.f32 %v6133_v59, 0.0  ;;  %v6443_v50 = vshrl.u32 %v6442_v31, 7 }
 0x7c3   : > { %v6315_v36 = vmax.f32 %v6135_v51, 0.0  ;;  %v6137_v46 = vpop.f32.mrb[83].mxu0  ;;  %v6244_v10 = vpop.f32.mrb[80].mxu1  ;;  %6411 = vmatprep.subr.bf16.mxu1 %v6351_v1 }
 0x7c4   : > { %v6316_v26 = vmax.f32 %v6137_v46, 0.0  ;;  %v6246_v57 = vpop.f32.mrb[81].mxu1  ;;  %6412 = vmatpush1.bf16.msra.mxu1 %v6350_v23  ;;  %v6313_v21 = vmax.f32 %v6244_v10, 0.0  ;;  %vm6444_vm10 = vcmp.lt.s32.totalorder %v6443_v50, 3 }
 0x7c5   : > { %v6352_v28 = vpack.c.bf16 %v6315_v36, %v6311_v5  ;;  %v6248_v0 = vpop.f32.mrb[82].mxu1  ;;  %v6314_v6 = vmax.f32 %v6246_v57, 0.0 }
 0x7c6   : > { %v6353_v56 = vpack.c.bf16 %v6316_v26, %v6312_v60  ;;  %v6317_v27 = vmax.f32 %v6248_v0, 0.0  ;;  %v6250_v15 = vpop.f32.mrb[83].mxu1 }
 0x7c7   : > { %v6318_v22 = vmax.f32 %v6250_v15, 0.0 }
 0x7c8   : > { %v6141_v7 = vpop.f32.mrb[84].mxu0  ;;  %6372 = vmatprep.subr.bf16.mxu0 %v6353_v56  ;;  %v6354_v4 = vpack.c.bf16 %v6317_v27, %v6313_v21 }
 0x7c9   : > { %v6143_v63 = vpop.f32.mrb[85].mxu0  ;;  %6373 = vmatpush1.bf16.msra.mxu0 %v6352_v28  ;;  %v6355_v11 = vpack.c.bf16 %v6318_v22, %v6314_v6  ;;  %v6319_v48 = vmax.f32 %v6141_v7, 0.0 }
 0x7ca   : > { %v6145_v47 = vpop.f32.mrb[86].mxu0  ;;  %v6320_v14 = vmax.f32 %v6143_v63, 0.0 }
 0x7cb   : > { %v6323_v20 = vmax.f32 %v6145_v47, 0.0  ;;  %v6147_v43 = vpop.f32.mrb[87].mxu0  ;;  %v6254_v55 = vpop.f32.mrb[84].mxu1  ;;  %6413 = vmatprep.subr.bf16.mxu1 %v6355_v11 }
 0x7cc   : > { %v6324_v61 = vmax.f32 %v6147_v43, 0.0  ;;  %v6256_v58 = vpop.f32.mrb[85].mxu1  ;;  %6414 = vmatpush1.bf16.msra.mxu1 %v6354_v4  ;;  %v6321_v34 = vmax.f32 %v6254_v55, 0.0 }
 0x7cd   : > { %v6356_v25 = vpack.c.bf16 %v6323_v20, %v6319_v48  ;;  %v6258_v17 = vpop.f32.mrb[86].mxu1  ;;  %v6322_v39 = vmax.f32 %v6256_v58, 0.0 }
 0x7ce   : > { %v6357_v35 = vpack.c.bf16 %v6324_v61, %v6320_v14  ;;  %v6325_v38 = vmax.f32 %v6258_v17, 0.0  ;;  %v6260_v18 = vpop.f32.mrb[87].mxu1 }
 0x7cf   : > { %v6326_v42 = vmax.f32 %v6260_v18, 0.0 }
 0x7d0   : > { %6374 = vmatprep.subr.bf16.mxu0 %v6357_v35  ;;  %v6358_v37 = vpack.c.bf16 %v6325_v38, %v6321_v34 }
 0x7d1   : > { %6375 = vmatpush1.bf16.msra.mxu0 %v6356_v25  ;;  %v6359_v62 = vpack.c.bf16 %v6326_v42, %v6322_v39 }
 0x7d3   : > { %6415 = vmatprep.subr.bf16.mxu1 %v6359_v62 }
 0x7d4   : > { %6393 = vmatmul.mubr.bf16.vlgmr.msra.gmra.mrb[88].mxu0 %v6327_v12  ;;  %6416 = vmatpush1.bf16.msra.mxu1 %v6358_v37 }
 0x7d7   : > { %6434 = vmatmul.mubr.bf16.vlgmr.msra.gmra.mrb[88].mxu1 %v6327_v12 }
 0x8a7   : > { %v6394_v13 = vpop.f32.mrb[88].mxu0 }
 0x8a8   : > { %v6812_v2 = vmul.f32 -1.442695, %v6394_v13  ;;  %v6396_v8 = vpop.f32.mrb[89].mxu0 }
 0x8a9   : > { %v6813_v9 = vmul.f32 -1.442695, %v6396_v8  ;;  %v6398_v19 = vpop.f32.mrb[90].mxu0 }
 0x8aa   : > { %7269 = vpow2.f32 %v6812_v2  ;;  %v6399_v16 = vpop.f32.mrb[91].mxu0  ;;  %v6435_v45 = vpop.f32.mrb[88].mxu1 }
 0x8ab   : > { %7271 = vpow2.f32 %v6813_v9  ;;  %v6814_v29 = vmul.f32 -1.442695, %v6435_v45  ;;  %v6437_v54 = vpop.f32.mrb[89].mxu1 }
 0x8ac   : > { %v6815_v53 = vmul.f32 -1.442695, %v6437_v54  ;;  %v6439_v24 = vpop.f32.mrb[90].mxu1 }
 0x8ad   : > { %7273 = vpow2.f32 %v6814_v29  ;;  %v6440_v33 = vpop.f32.mrb[91].mxu1 }
 0x8ae   : > { %7275 = vpow2.f32 %v6815_v53 }
 0x8b4   : > { %v7270_v3 = vpop.eup %7269 }
 0x8b5   : > { %v7272_v32 = vpop.eup %7271  ;;  %v6457_v49 = vadd.f32 1.0, %v7270_v3 }
 0x8b6   : > { %v6458_v40 = vadd.f32 1.0, %v7272_v32 }
 0x8b7   : > { %7277 = vrcp.f32 %v6457_v49  ;;  %v7274_v41 = vpop.eup %7273 }
 0x8b8   : > { %7279 = vrcp.f32 %v6458_v40  ;;  %v7276_v30 = vpop.eup %7275  ;;  %v6459_v52 = vadd.f32 1.0, %v7274_v41 }
 0x8b9   : > { %v6460_v44 = vadd.f32 1.0, %v7276_v30 }
 0x8ba   : > { %7281 = vrcp.f32 %v6459_v52 }
 0x8bb   : > { %7283 = vrcp.f32 %v6460_v44 }
 0x8c1   : > { %v7278_v23 = vpop.eup %7277 }
 0x8c2   : > { %v7280_v59 = vpop.eup %7279  ;;  %v6469_v1 = vsel %vm6444_vm10, %v7278_v23, %v6394_v13 }
 0x8c3   : > { %v6470_v51 = vsel %vm6444_vm10, %v7280_v59, %v6396_v8 }
 0x8c4   : > { %v6477_v5 = vcombine.low %v6469_v1, %v6470_v51  ;;  %v7282_v36 = vpop.eup %7281 }
 0x8c5   : > { %v7284_v46 = vpop.eup %7283  ;;  %v6471_v10 = vsel %vm6444_vm10, %v7282_v36, %v6435_v45 }
 0x8c6   : > { %6481 = vst [vmem:[%s218_s7] sm:$0xff] %v6477_v5  ;;  %v6472_v60 = vsel %vm6444_vm10, %v7284_v46, %v6437_v54 }
 0x8c7   : > { %v6478_v26 = vcombine.low %v6471_v10, %v6472_v60 }
 0x8c9   : > { %6482 = vst [vmem:[%s218_s7 + $0x8] sm:$0xff] %v6478_v26 }
 0x8ca   : > { %7298 = shalt.err (!%p7295_p3)
}
 0x8cb   : > { %s7299_s16 = scalar_lea.hbm %s12654_s11, 256  ;;  %s7303_s25 = scalar_lea.hbm %s12701_s5, 512 }
 0x8cc   : > { %p7300_p4 = scmp.ne.s32.totalorder %s12654_s11, %s7299_s16  ;;  %p7304_p9 = scmp.lt.u32.totalorder %s12654_s11, %s12701_s5 }
 0x8cd   : > { %p7305_p10 = scmp.lt.u32.totalorder %s7303_s25, %s7299_s16  ;;  %p7307_p12 = scmp.lt.u32.totalorder %s7299_s16, %s12654_s11 }
 0x8ce   : > { %p7301_p7 = pnand %p7300_p4, %p7426_p5 }
 0x8cf   : > { %p7306_p11 = por %p7305_p10, %p7304_p9 }
 0x8d0   : > { %p7302_p8 = pneg %p7301_p7 }
 0x8d1   : > { %p7308_p13 = por %p7307_p12, %p7306_p11 }
 0x8d3   : > { %p7309_p0 = pnand %p7308_p13, %p7302_p8 }
 0x8d5   : > { %7312 = shalt.err (!%p7309_p0)
}
 0x8d6   : > { %7014 = dma.vmem_to_hbm [thread:$0]  (%p7426_p5), %s12656_s8, 256, %s12654_s11, %s6484_s12  }
 0x8d7 PF: > { %p7020_p1 = scmp.ge.s32.totalorder %s7347_s21, 2  ;;  %s6510_s6 = sand.u32 1, %s7335_s18  }
 0x8d8   : > { %s6511_s7 = scalar_lea.sflag [#allocation3], %s6510_s6 }
 0x8d9   : > { %p7017_p2 = pnand %p7020_p1, %p7430_p6 }
 0x8db   : > { %7330 = dma.done.wait (!%p7017_p2), %s6511_s7, 256  }
 0x8dc   : > { %7332 = vsyncadd (!%p7017_p2), %s6511_s7, 4294967040  ;;  %p15_p3 = scmp.ge.s32.totalorder %s7413_s24, 4   ;;  %s13452_s18 = smov %s7339_s19 }
 0x8dd   : > { %s13453_s19 = smov %s7343_s20  ;;  %s13454_s20 = smov %s7424_s27 }
 0x8de   : > { %s13455_s21 = smov %s7413_s24  ;;  %17 = sbr.rel (!%p15_p3) target bundleno = 3 (0x3), region = 75 }
 0x8e5   :  { %6516 = vsyncpa [#allocation3], 1 }
 0x8e6   :  { %6518 = vsyncpa [#allocation3 + $0x1], 1 }

</bundles_post_ra>
